<compile_context>
chip_gen: v5e
topology: v5e:2x2
jax: 0.10.0
libtpu: 0.0.40
codegen_flags: <defaults>
</compile_context>

<pallas_src>
import functools

import numpy as np
import jax
import jax.numpy as jnp
from jax import lax
from jax.experimental import pallas as pl
from jax.experimental.pallas import tpu as pltpu

C_PAD = 128      # hidden channels (10) padded to a full 128-lane vreg width
CIN_PAD = 8      # RGB input channels (3) padded to a full sublane group
NCLS_PAD = 128   # classifier output padded to a full lane width

# Whole-array-in-VMEM spec (for the tiny grid-less FC call and small operands).
_VMEM = pl.BlockSpec(memory_space=pltpu.MemorySpace.VMEM)


# ----------------------------- Pallas kernels ------------------------------

def _conv_block_kernel(x_ref, w1_ref, b1_ref, w2_ref, b2_ref, sel_ref, o_ref,
                       xp_ref, h1p_ref):
    """Fused [conv3x3+ReLU, conv3x3+ReLU, maxpool2x2] for one image.

    x_ref  : (1, H, W, Cin)         input tile (batch dim = grid)
    w1_ref : (9, Cin, C)            conv1 taps, (ky*3+kx) major
    b1_ref : (1, C)
    w2_ref : (9, C, C)              conv2 taps
    b2_ref : (1, C)
    sel_ref: (Ho*Wo, H*W - W - 1)   0/1 row-selection matrix for the pool
    o_ref  : (1, Ho*Wo, C)          pooled output (rows in (ho, wo) order)
    xp_ref : (H+2, W+2, Cin)        VMEM scratch: spatially padded input
    h1p_ref: (H+2, W+2, C)          VMEM scratch: spatially padded conv1 output
    """
    _, H, W, Cin = x_ref.shape
    C = w2_ref.shape[1]

    # 1) zero-pad the input spatially into VMEM scratch (re-done every step so
    #    it is correct under megacore "parallel" scheduling).
    xp_ref[...] = jnp.zeros_like(xp_ref)
    xp_ref[1:H + 1, 1:W + 1, :] = x_ref[0]

    # 2) conv1 (3x3, stride 1, pad 1) as 9 shifted matmuls, f32 accumulate.
    acc = jnp.zeros((H * W, C), jnp.float32)
    for ky in range(3):
        for kx in range(3):
            xs = xp_ref[ky:ky + H, kx:kx + W, :].reshape(H * W, Cin)
            acc = acc + jnp.dot(xs, w1_ref[3 * ky + kx],
                                preferred_element_type=jnp.float32)
    h1 = jnp.maximum(acc + b1_ref[...], 0.0)                    # (H*W, C)

    # 3) re-pad the intermediate in VMEM for conv2 (never leaves the chip).
    h1p_ref[...] = jnp.zeros_like(h1p_ref)
    h1p_ref[1:H + 1, 1:W + 1, :] = h1.reshape(H, W, C)

    # 4) conv2 (3x3, pad 1) + bias + ReLU.
    acc2 = jnp.zeros((H * W, C), jnp.float32)
    for ky in range(3):
        for kx in range(3):
            xs = h1p_ref[ky:ky + H, kx:kx + W, :].reshape(H * W, C)
            acc2 = acc2 + jnp.dot(xs, w2_ref[3 * ky + kx],
                                  preferred_element_type=jnp.float32)
    h2 = jnp.maximum(acc2 + b2_ref[...], 0.0)                   # rows = (h, w)

    # 5) fused 2x2/stride-2 max-pool epilogue:
    #    pair-max along H (rows W apart), pair-max along W (adjacent rows),
    #    then select the (2*ho, 2*wo) rows with a 0/1 matmul (exact).
    mh = jnp.maximum(h2[:(H - 1) * W, :], h2[W:, :])            # ((H-1)*W, C)
    mw = jnp.maximum(mh[:(H - 1) * W - 1, :], mh[1:(H - 1) * W, :])
    o_ref[0] = jnp.dot(sel_ref[...], mw,
                       preferred_element_type=jnp.float32)      # (Ho*Wo, C)


def _fc_kernel(x_ref, w_ref, b_ref, o_ref):
    # o = x @ w + b   (final fc, no activation; lane-dense padded output)
    o_ref[...] = (jnp.dot(x_ref[...], w_ref[...],
                          preferred_element_type=jnp.float32) + b_ref[...])


# --------------------------- pallas_call wrappers ---------------------------

def _conv_block_call(x_nhwc, w1, b1, w2, b2, sel):
    N, H, W, Cin = x_nhwc.shape
    C = w2.shape[1]
    Ho, Wo = H // 2, W // 2
    assert H % 2 == 0 and W % 2 == 0, "maxpool2x2 assumes even H, W"
    return pl.pallas_call(
        _conv_block_kernel,
        out_shape=jax.ShapeDtypeStruct((N, Ho * Wo, C), jnp.float32),
        grid=(N,),
        in_specs=[
            pl.BlockSpec((1, H, W, Cin), lambda n: (n, 0, 0, 0)),
            pl.BlockSpec(w1.shape, lambda n: (0, 0, 0)),
            pl.BlockSpec(b1.shape, lambda n: (0, 0)),
            pl.BlockSpec(w2.shape, lambda n: (0, 0, 0)),
            pl.BlockSpec(b2.shape, lambda n: (0, 0)),
            pl.BlockSpec(sel.shape, lambda n: (0, 0)),
        ],
        out_specs=pl.BlockSpec((1, Ho * Wo, C), lambda n: (n, 0, 0)),
        scratch_shapes=[
            pltpu.VMEM((H + 2, W + 2, Cin), jnp.float32),
            pltpu.VMEM((H + 2, W + 2, C), jnp.float32),
        ],
        compiler_params=pltpu.CompilerParams(
            dimension_semantics=("parallel",)),
    )(x_nhwc, w1, b1, w2, b2, sel)


def _fc_call(x2d, w, b):
    M, _ = x2d.shape
    Np = w.shape[1]
    return pl.pallas_call(
        _fc_kernel,
        out_shape=jax.ShapeDtypeStruct((M, Np), jnp.float32),
        in_specs=[_VMEM, _VMEM, _VMEM],
        out_specs=_VMEM,
    )(x2d, w, b)


def tinyvgg_forward(x_nchw, params):
    N, _, H, W = x_nchw.shape
    x = jnp.transpose(x_nchw.astype(jnp.float32), (0, 2, 3, 1))        # NHWC
    x = jnp.pad(x, ((0, 0), (0, 0), (0, 0), (0, CIN_PAD - x.shape[-1])))

    p1 = params["block1"]
    y1 = _conv_block_call(x, p1["w1"], p1["b1"], p1["w2"], p1["b2"], p1["sel"])
    y1 = y1.reshape(N, H // 2, W // 2, C_PAD)                  # free reshape

    p2 = params["block2"]
    y2 = _conv_block_call(y1, p2["w1"], p2["b1"], p2["w2"], p2["b2"], p2["sel"])

    flat = y2.reshape(N, -1)          # (N, Ho2*Wo2*C_PAD), NHWC-flatten order
    logits = _fc_call(flat, params["fc_w"], params["fc_b"])
    return logits[:, :params["n_classes"]]


# ------------------------- parameters (deterministic) ------------------------

def _conv_mats(w, b, cin_pad, cout_pad):
    """torch (Cout,Cin,3,3) -> per-tap (9, Cin_pad, Cout_pad) + (1, Cout_pad)."""
    cout, cin, _, _ = w.shape
    wk = jnp.transpose(w, (2, 3, 1, 0)).reshape(9, cin, cout)
    wk = jnp.pad(wk, ((0, 0), (0, cin_pad - cin), (0, cout_pad - cout)))
    bk = jnp.pad(b, (0, cout_pad - cout)).reshape(1, cout_pad)
    return wk, bk


def _pool_select(H, W):
    """0/1 matrix picking rows (2*ho)*W + 2*wo from the pair-maxed conv rows."""
    Ho, Wo = H // 2, W // 2
    K = H * W - W - 1
    S = np.zeros((Ho * Wo, K), np.float32)
    r = np.arange(Ho * Wo)
    S[r, 2 * (r // Wo) * W + 2 * (r % Wo)] = 1.0
    return jnp.asarray(S)


def make_params(key, n_classes, image_h, image_w):
    in_ch, hidden = 3, 10
    k1, k2, k3, k4, k5 = jax.random.split(key, 5)

    def conv_param(k, cin, cout, scale=0.1):
        kw, kb = jax.random.split(k)
        w = jax.random.normal(kw, (cout, cin, 3, 3), jnp.float32) * scale
        b = jax.random.normal(kb, (cout,), jnp.float32) * scale
        return w, b

    w11, b11 = conv_param(k1, in_ch, hidden)
    w12, b12 = conv_param(k2, hidden, hidden)
    w21, b21 = conv_param(k3, hidden, hidden)
    w22, b22 = conv_param(k4, hidden, hidden)

    Ho1, Wo1 = image_h // 2, image_w // 2
    Ho2, Wo2 = image_h // 4, image_w // 4
    linear_dim = hidden * Ho2 * Wo2
    kfw, kfb = jax.random.split(k5)
    fc_w = jax.random.normal(kfw, (n_classes, linear_dim), jnp.float32) * 0.05
    fc_b = jax.random.normal(kfb, (n_classes,), jnp.float32) * 0.05

    w11m, b11m = _conv_mats(w11, b11, CIN_PAD, C_PAD)
    w12m, b12m = _conv_mats(w12, b12, C_PAD, C_PAD)
    w21m, b21m = _conv_mats(w21, b21, C_PAD, C_PAD)
    w22m, b22m = _conv_mats(w22, b22, C_PAD, C_PAD)

    # FC weight: fold torch's NCHW Flatten ordering + channel padding into the
    # weight rows so no runtime transpose is needed (padded channels -> 0 rows).
    fc_w_r = fc_w.reshape(n_classes, hidden, Ho2, Wo2)          # (cls, c, ho, wo)
    fc_w_perm = jnp.transpose(fc_w_r, (2, 3, 1, 0))             # (ho, wo, c, cls)
    fc_w_perm = jnp.pad(fc_w_perm, ((0, 0), (0, 0),
                                    (0, C_PAD - hidden),
                                    (0, NCLS_PAD - n_classes)))
    fc_w_mat = fc_w_perm.reshape(Ho2 * Wo2 * C_PAD, NCLS_PAD)
    fc_b_row = jnp.pad(fc_b, (0, NCLS_PAD - n_classes)).reshape(1, NCLS_PAD)

    params = {
        "n_classes": n_classes,
        "block1": {"w1": w11m, "b1": b11m, "w2": w12m, "b2": b12m,
                   "sel": _pool_select(image_h, image_w)},
        "block2": {"w1": w21m, "b1": b21m, "w2": w22m, "b2": b22m,
                   "sel": _pool_select(Ho1, Wo1)},
        "fc_w": fc_w_mat, "fc_b": fc_b_row,
    }
    torch_like = {"conv": [(w11, b11), (w12, b12), (w21, b21), (w22, b22)],
                  "fc": (fc_w, fc_b)}
    return params, torch_like


# ------------------------------ pure-JAX reference ---------------------------

def _ref_conv_relu(x_nhwc, w_torch, b):
    w_hwio = jnp.transpose(w_torch, (2, 3, 1, 0))
    y = lax.conv_general_dilated(
        x_nhwc, w_hwio, window_strides=(1, 1), padding=((1, 1), (1, 1)),
        dimension_numbers=("NHWC", "HWIO", "NHWC"))
    return jnp.maximum(y + b[None, None, None, :], 0.0)


def _ref_pool(x):
    N, H, W, C = x.shape
    return x.reshape(N, H // 2, 2, W // 2, 2, C).max(axis=(2, 4))


def reference_forward(x_nchw, torch_like):
    x = jnp.transpose(x_nchw.astype(jnp.float32), (0, 2, 3, 1))
    (w11, b11), (w12, b12), (w21, b21), (w22, b22) = torch_like["conv"]
    x = _ref_pool(_ref_conv_relu(_ref_conv_relu(x, w11, b11), w12, b12))
    x = _ref_pool(_ref_conv_relu(_ref_conv_relu(x, w21, b21), w22, b22))
    x = jnp.transpose(x, (0, 3, 1, 2)).reshape(x.shape[0], -1)
    fc_w, fc_b = torch_like["fc"]
    return x @ fc_w.T + fc_b[None, :]


# ------------------------------------ main -----------------------------------

if __name__ == "__main__":
    N, C_in, H, W = 2, 3, 16, 16     # small shapes; module fixes Cin=3
    n_classes = 3

    key = jax.random.PRNGKey(0)
    kx, kp = jax.random.split(key)
    x = jax.random.normal(kx, (N, C_in, H, W), jnp.float32)
    params, torch_like = make_params(kp, n_classes, H, W)

    fwd = jax.jit(functools.partial(tinyvgg_forward, params=params))
    out = jax.block_until_ready(fwd(x))

    ref = reference_forward(x, torch_like)
    assert out.shape == (N, n_classes), out.shape
    assert jnp.allclose(out, ref, rtol=1e-4, atol=1e-4), (
        f"max abs err {jnp.max(jnp.abs(out - ref))}")

    print("KERNEL_OK")
</pallas_src>

<mosaic_0001>
module attributes {stable_mosaic.version = 11 : i64} {
  func.func @_conv_block_kernel(%arg0: i32, %arg1: memref<1x8x8x128xf32, #tpu.memory_space<vmem>>, %arg2: memref<9x128x128xf32, #tpu.memory_space<vmem>>, %arg3: memref<1x128xf32, #tpu.memory_space<vmem>>, %arg4: memref<9x128x128xf32, #tpu.memory_space<vmem>>, %arg5: memref<1x128xf32, #tpu.memory_space<vmem>>, %arg6: memref<16x55xf32, #tpu.memory_space<vmem>>, %arg7: memref<1x16x128xf32, #tpu.memory_space<vmem>>, %arg8: memref<10x10x128xf32, #tpu.memory_space<vmem>>, %arg9: memref<10x10x128xf32, #tpu.memory_space<vmem>>) attributes {dimension_semantics = [#tpu.dimension_semantics<parallel>], iteration_bounds = array<i64: 2>, scalar_prefetch = 0 : i64, scratch_operands = 2 : i64, tpu.core_type = #tpu.core_type<tc>, window_params = [{transform_indices = @transform_0, window_bounds = array<i64: 1, 8, 8, 128>}, {pipeline_mode = #tpu.pipeline_mode<synchronous>, transform_indices = @transform_1, window_bounds = array<i64: 9, 128, 128>}, {pipeline_mode = #tpu.pipeline_mode<synchronous>, transform_indices = @transform_2, window_bounds = array<i64: 1, 128>}, {pipeline_mode = #tpu.pipeline_mode<synchronous>, transform_indices = @transform_3, window_bounds = array<i64: 9, 128, 128>}, {pipeline_mode = #tpu.pipeline_mode<synchronous>, transform_indices = @transform_4, window_bounds = array<i64: 1, 128>}, {pipeline_mode = #tpu.pipeline_mode<synchronous>, transform_indices = @transform_5, window_bounds = array<i64: 16, 55>}, {transform_indices = @transform_6, window_bounds = array<i64: 1, 16, 128>}]} {
    %cst = arith.constant 0.000000e+00 : f32
    %0 = vector.broadcast %cst : f32 to vector<10x10x128xf32>
    %c0 = arith.constant 0 : index
    %c0_0 = arith.constant 0 : index
    %c0_1 = arith.constant 0 : index
    %1 = vector.load %arg8[%c0, %c0_0, %c0_1] : memref<10x10x128xf32, #tpu.memory_space<vmem>>, vector<10x10x128xf32>
    tpu.vector_store %arg8[%c0, %c0_0, %c0_1], %0 {strides = array<i32>} : memref<10x10x128xf32, #tpu.memory_space<vmem>>, vector<10x10x128xf32>,
    %c0_2 = arith.constant 0 : index
    %c0_3 = arith.constant 0 : index
    %c0_4 = arith.constant 0 : index
    %c0_5 = arith.constant 0 : index
    %2 = vector.load %arg1[%c0_2, %c0_3, %c0_4, %c0_5] : memref<1x8x8x128xf32, #tpu.memory_space<vmem>>, vector<1x8x8x128xf32>
    %3 = vector.shape_cast %2 : vector<1x8x8x128xf32> to vector<8x8x128xf32>
    %c1 = arith.constant 1 : index
    %c1_6 = arith.constant 1 : index
    %c0_7 = arith.constant 0 : index
    %4 = vector.load %arg8[%c1, %c1_6, %c0_7] : memref<10x10x128xf32, #tpu.memory_space<vmem>>, vector<8x8x128xf32>
    tpu.vector_store %arg8[%c1, %c1_6, %c0_7], %3 {strides = array<i32>} : memref<10x10x128xf32, #tpu.memory_space<vmem>>, vector<8x8x128xf32>,
    %cst_8 = arith.constant 0.000000e+00 : f32
    %5 = vector.broadcast %cst_8 : f32 to vector<64x128xf32>
    %c0_9 = arith.constant 0 : index
    %c0_10 = arith.constant 0 : index
    %c0_11 = arith.constant 0 : index
    %6 = vector.load %arg8[%c0_9, %c0_10, %c0_11] : memref<10x10x128xf32, #tpu.memory_space<vmem>>, vector<8x8x128xf32>
    %7 = vector.shape_cast %6 : vector<8x8x128xf32> to vector<64x128xf32>
    %c0_12 = arith.constant 0 : index
    %c0_13 = arith.constant 0 : index
    %c0_14 = arith.constant 0 : index
    %8 = vector.load %arg2[%c0_12, %c0_13, %c0_14] : memref<9x128x128xf32, #tpu.memory_space<vmem>>, vector<1x128x128xf32>
    %9 = vector.shape_cast %8 : vector<1x128x128xf32> to vector<128x128xf32>
    %cst_15 = arith.constant dense<0.000000e+00> : vector<64x128xf32>
    %10 = tpu.matmul %7, %9, %cst_15 {dimension_numbers = #tpu.dot_dimension_numbers<[1], [0], [0], [1], [0, 0, 1, 1], [], []>} : vector<64x128xf32>, vector<128x128xf32>, vector<64x128xf32> -> vector<64x128xf32>
    %11 = arith.addf %5, %10 : vector<64x128xf32>
    %c0_16 = arith.constant 0 : index
    %c1_17 = arith.constant 1 : index
    %c0_18 = arith.constant 0 : index
    %12 = vector.load %arg8[%c0_16, %c1_17, %c0_18] : memref<10x10x128xf32, #tpu.memory_space<vmem>>, vector<8x8x128xf32>
    %13 = vector.shape_cast %12 : vector<8x8x128xf32> to vector<64x128xf32>
    %c1_19 = arith.constant 1 : index
    %c0_20 = arith.constant 0 : index
    %c0_21 = arith.constant 0 : index
    %14 = vector.load %arg2[%c1_19, %c0_20, %c0_21] : memref<9x128x128xf32, #tpu.memory_space<vmem>>, vector<1x128x128xf32>
    %15 = vector.shape_cast %14 : vector<1x128x128xf32> to vector<128x128xf32>
    %cst_22 = arith.constant dense<0.000000e+00> : vector<64x128xf32>
    %16 = tpu.matmul %13, %15, %cst_22 {dimension_numbers = #tpu.dot_dimension_numbers<[1], [0], [0], [1], [0, 0, 1, 1], [], []>} : vector<64x128xf32>, vector<128x128xf32>, vector<64x128xf32> -> vector<64x128xf32>
    %17 = arith.addf %11, %16 : vector<64x128xf32>
    %c0_23 = arith.constant 0 : index
    %c2 = arith.constant 2 : index
    %c0_24 = arith.constant 0 : index
    %18 = vector.load %arg8[%c0_23, %c2, %c0_24] : memref<10x10x128xf32, #tpu.memory_space<vmem>>, vector<8x8x128xf32>
    %19 = vector.shape_cast %18 : vector<8x8x128xf32> to vector<64x128xf32>
    %c2_25 = arith.constant 2 : index
    %c0_26 = arith.constant 0 : index
    %c0_27 = arith.constant 0 : index
    %20 = vector.load %arg2[%c2_25, %c0_26, %c0_27] : memref<9x128x128xf32, #tpu.memory_space<vmem>>, vector<1x128x128xf32>
    %21 = vector.shape_cast %20 : vector<1x128x128xf32> to vector<128x128xf32>
    %cst_28 = arith.constant dense<0.000000e+00> : vector<64x128xf32>
    %22 = tpu.matmul %19, %21, %cst_28 {dimension_numbers = #tpu.dot_dimension_numbers<[1], [0], [0], [1], [0, 0, 1, 1], [], []>} : vector<64x128xf32>, vector<128x128xf32>, vector<64x128xf32> -> vector<64x128xf32>
    %23 = arith.addf %17, %22 : vector<64x128xf32>
    %c1_29 = arith.constant 1 : index
    %c0_30 = arith.constant 0 : index
    %c0_31 = arith.constant 0 : index
    %24 = vector.load %arg8[%c1_29, %c0_30, %c0_31] : memref<10x10x128xf32, #tpu.memory_space<vmem>>, vector<8x8x128xf32>
    %25 = vector.shape_cast %24 : vector<8x8x128xf32> to vector<64x128xf32>
    %c3 = arith.constant 3 : index
    %c0_32 = arith.constant 0 : index
    %c0_33 = arith.constant 0 : index
    %26 = vector.load %arg2[%c3, %c0_32, %c0_33] : memref<9x128x128xf32, #tpu.memory_space<vmem>>, vector<1x128x128xf32>
    %27 = vector.shape_cast %26 : vector<1x128x128xf32> to vector<128x128xf32>
    %cst_34 = arith.constant dense<0.000000e+00> : vector<64x128xf32>
    %28 = tpu.matmul %25, %27, %cst_34 {dimension_numbers = #tpu.dot_dimension_numbers<[1], [0], [0], [1], [0, 0, 1, 1], [], []>} : vector<64x128xf32>, vector<128x128xf32>, vector<64x128xf32> -> vector<64x128xf32>
    %29 = arith.addf %23, %28 : vector<64x128xf32>
    %c1_35 = arith.constant 1 : index
    %c1_36 = arith.constant 1 : index
    %c0_37 = arith.constant 0 : index
    %30 = vector.load %arg8[%c1_35, %c1_36, %c0_37] : memref<10x10x128xf32, #tpu.memory_space<vmem>>, vector<8x8x128xf32>
    %31 = vector.shape_cast %30 : vector<8x8x128xf32> to vector<64x128xf32>
    %c4 = arith.constant 4 : index
    %c0_38 = arith.constant 0 : index
    %c0_39 = arith.constant 0 : index
    %32 = vector.load %arg2[%c4, %c0_38, %c0_39] : memref<9x128x128xf32, #tpu.memory_space<vmem>>, vector<1x128x128xf32>
    %33 = vector.shape_cast %32 : vector<1x128x128xf32> to vector<128x128xf32>
    %cst_40 = arith.constant dense<0.000000e+00> : vector<64x128xf32>
    %34 = tpu.matmul %31, %33, %cst_40 {dimension_numbers = #tpu.dot_dimension_numbers<[1], [0], [0], [1], [0, 0, 1, 1], [], []>} : vector<64x128xf32>, vector<128x128xf32>, vector<64x128xf32> -> vector<64x128xf32>
    %35 = arith.addf %29, %34 : vector<64x128xf32>
    %c1_41 = arith.constant 1 : index
    %c2_42 = arith.constant 2 : index
    %c0_43 = arith.constant 0 : index
    %36 = vector.load %arg8[%c1_41, %c2_42, %c0_43] : memref<10x10x128xf32, #tpu.memory_space<vmem>>, vector<8x8x128xf32>
    %37 = vector.shape_cast %36 : vector<8x8x128xf32> to vector<64x128xf32>
    %c5 = arith.constant 5 : index
    %c0_44 = arith.constant 0 : index
    %c0_45 = arith.constant 0 : index
    %38 = vector.load %arg2[%c5, %c0_44, %c0_45] : memref<9x128x128xf32, #tpu.memory_space<vmem>>, vector<1x128x128xf32>
    %39 = vector.shape_cast %38 : vector<1x128x128xf32> to vector<128x128xf32>
    %cst_46 = arith.constant dense<0.000000e+00> : vector<64x128xf32>
    %40 = tpu.matmul %37, %39, %cst_46 {dimension_numbers = #tpu.dot_dimension_numbers<[1], [0], [0], [1], [0, 0, 1, 1], [], []>} : vector<64x128xf32>, vector<128x128xf32>, vector<64x128xf32> -> vector<64x128xf32>
    %41 = arith.addf %35, %40 : vector<64x128xf32>
    %c2_47 = arith.constant 2 : index
    %c0_48 = arith.constant 0 : index
    %c0_49 = arith.constant 0 : index
    %42 = vector.load %arg8[%c2_47, %c0_48, %c0_49] : memref<10x10x128xf32, #tpu.memory_space<vmem>>, vector<8x8x128xf32>
    %43 = vector.shape_cast %42 : vector<8x8x128xf32> to vector<64x128xf32>
    %c6 = arith.constant 6 : index
    %c0_50 = arith.constant 0 : index
    %c0_51 = arith.constant 0 : index
    %44 = vector.load %arg2[%c6, %c0_50, %c0_51] : memref<9x128x128xf32, #tpu.memory_space<vmem>>, vector<1x128x128xf32>
    %45 = vector.shape_cast %44 : vector<1x128x128xf32> to vector<128x128xf32>
    %cst_52 = arith.constant dense<0.000000e+00> : vector<64x128xf32>
    %46 = tpu.matmul %43, %45, %cst_52 {dimension_numbers = #tpu.dot_dimension_numbers<[1], [0], [0], [1], [0, 0, 1, 1], [], []>} : vector<64x128xf32>, vector<128x128xf32>, vector<64x128xf32> -> vector<64x128xf32>
    %47 = arith.addf %41, %46 : vector<64x128xf32>
    %c2_53 = arith.constant 2 : index
    %c1_54 = arith.constant 1 : index
    %c0_55 = arith.constant 0 : index
    %48 = vector.load %arg8[%c2_53, %c1_54, %c0_55] : memref<10x10x128xf32, #tpu.memory_space<vmem>>, vector<8x8x128xf32>
    %49 = vector.shape_cast %48 : vector<8x8x128xf32> to vector<64x128xf32>
    %c7 = arith.constant 7 : index
    %c0_56 = arith.constant 0 : index
    %c0_57 = arith.constant 0 : index
    %50 = vector.load %arg2[%c7, %c0_56, %c0_57] : memref<9x128x128xf32, #tpu.memory_space<vmem>>, vector<1x128x128xf32>
    %51 = vector.shape_cast %50 : vector<1x128x128xf32> to vector<128x128xf32>
    %cst_58 = arith.constant dense<0.000000e+00> : vector<64x128xf32>
    %52 = tpu.matmul %49, %51, %cst_58 {dimension_numbers = #tpu.dot_dimension_numbers<[1], [0], [0], [1], [0, 0, 1, 1], [], []>} : vector<64x128xf32>, vector<128x128xf32>, vector<64x128xf32> -> vector<64x128xf32>
    %53 = arith.addf %47, %52 : vector<64x128xf32>
    %c2_59 = arith.constant 2 : index
    %c2_60 = arith.constant 2 : index
    %c0_61 = arith.constant 0 : index
    %54 = vector.load %arg8[%c2_59, %c2_60, %c0_61] : memref<10x10x128xf32, #tpu.memory_space<vmem>>, vector<8x8x128xf32>
    %55 = vector.shape_cast %54 : vector<8x8x128xf32> to vector<64x128xf32>
    %c8 = arith.constant 8 : index
    %c0_62 = arith.constant 0 : index
    %c0_63 = arith.constant 0 : index
    %56 = vector.load %arg2[%c8, %c0_62, %c0_63] : memref<9x128x128xf32, #tpu.memory_space<vmem>>, vector<1x128x128xf32>
    %57 = vector.shape_cast %56 : vector<1x128x128xf32> to vector<128x128xf32>
    %cst_64 = arith.constant dense<0.000000e+00> : vector<64x128xf32>
    %58 = tpu.matmul %55, %57, %cst_64 {dimension_numbers = #tpu.dot_dimension_numbers<[1], [0], [0], [1], [0, 0, 1, 1], [], []>} : vector<64x128xf32>, vector<128x128xf32>, vector<64x128xf32> -> vector<64x128xf32>
    %59 = arith.addf %53, %58 : vector<64x128xf32>
    %c0_65 = arith.constant 0 : index
    %c0_66 = arith.constant 0 : index
    %60 = vector.load %arg3[%c0_65, %c0_66] : memref<1x128xf32, #tpu.memory_space<vmem>>, vector<1x128xf32>
    %61 = vector.broadcast %60 : vector<1x128xf32> to vector<64x128xf32>
    %62 = arith.addf %59, %61 : vector<64x128xf32>
    %cst_67 = arith.constant 0.000000e+00 : f32
    %63 = vector.broadcast %cst_67 : f32 to vector<64x128xf32>
    %64 = arith.maximumf %62, %63 : vector<64x128xf32>
    %cst_68 = arith.constant 0.000000e+00 : f32
    %65 = vector.broadcast %cst_68 : f32 to vector<10x10x128xf32>
    %c0_69 = arith.constant 0 : index
    %c0_70 = arith.constant 0 : index
    %c0_71 = arith.constant 0 : index
    %66 = vector.load %arg9[%c0_69, %c0_70, %c0_71] : memref<10x10x128xf32, #tpu.memory_space<vmem>>, vector<10x10x128xf32>
    tpu.vector_store %arg9[%c0_69, %c0_70, %c0_71], %65 {strides = array<i32>} : memref<10x10x128xf32, #tpu.memory_space<vmem>>, vector<10x10x128xf32>,
    %67 = vector.shape_cast %64 : vector<64x128xf32> to vector<8x8x128xf32>
    %c1_72 = arith.constant 1 : index
    %c1_73 = arith.constant 1 : index
    %c0_74 = arith.constant 0 : index
    %68 = vector.load %arg9[%c1_72, %c1_73, %c0_74] : memref<10x10x128xf32, #tpu.memory_space<vmem>>, vector<8x8x128xf32>
    tpu.vector_store %arg9[%c1_72, %c1_73, %c0_74], %67 {strides = array<i32>} : memref<10x10x128xf32, #tpu.memory_space<vmem>>, vector<8x8x128xf32>,
    %cst_75 = arith.constant 0.000000e+00 : f32
    %69 = vector.broadcast %cst_75 : f32 to vector<64x128xf32>
    %c0_76 = arith.constant 0 : index
    %c0_77 = arith.constant 0 : index
    %c0_78 = arith.constant 0 : index
    %70 = vector.load %arg9[%c0_76, %c0_77, %c0_78] : memref<10x10x128xf32, #tpu.memory_space<vmem>>, vector<8x8x128xf32>
    %71 = vector.shape_cast %70 : vector<8x8x128xf32> to vector<64x128xf32>
    %c0_79 = arith.constant 0 : index
    %c0_80 = arith.constant 0 : index
    %c0_81 = arith.constant 0 : index
    %72 = vector.load %arg4[%c0_79, %c0_80, %c0_81] : memref<9x128x128xf32, #tpu.memory_space<vmem>>, vector<1x128x128xf32>
    %73 = vector.shape_cast %72 : vector<1x128x128xf32> to vector<128x128xf32>
    %cst_82 = arith.constant dense<0.000000e+00> : vector<64x128xf32>
    %74 = tpu.matmul %71, %73, %cst_82 {dimension_numbers = #tpu.dot_dimension_numbers<[1], [0], [0], [1], [0, 0, 1, 1], [], []>} : vector<64x128xf32>, vector<128x128xf32>, vector<64x128xf32> -> vector<64x128xf32>
    %75 = arith.addf %69, %74 : vector<64x128xf32>
    %c0_83 = arith.constant 0 : index
    %c1_84 = arith.constant 1 : index
    %c0_85 = arith.constant 0 : index
    %76 = vector.load %arg9[%c0_83, %c1_84, %c0_85] : memref<10x10x128xf32, #tpu.memory_space<vmem>>, vector<8x8x128xf32>
    %77 = vector.shape_cast %76 : vector<8x8x128xf32> to vector<64x128xf32>
    %c1_86 = arith.constant 1 : index
    %c0_87 = arith.constant 0 : index
    %c0_88 = arith.constant 0 : index
    %78 = vector.load %arg4[%c1_86, %c0_87, %c0_88] : memref<9x128x128xf32, #tpu.memory_space<vmem>>, vector<1x128x128xf32>
    %79 = vector.shape_cast %78 : vector<1x128x128xf32> to vector<128x128xf32>
    %cst_89 = arith.constant dense<0.000000e+00> : vector<64x128xf32>
    %80 = tpu.matmul %77, %79, %cst_89 {dimension_numbers = #tpu.dot_dimension_numbers<[1], [0], [0], [1], [0, 0, 1, 1], [], []>} : vector<64x128xf32>, vector<128x128xf32>, vector<64x128xf32> -> vector<64x128xf32>
    %81 = arith.addf %75, %80 : vector<64x128xf32>
    %c0_90 = arith.constant 0 : index
    %c2_91 = arith.constant 2 : index
    %c0_92 = arith.constant 0 : index
    %82 = vector.load %arg9[%c0_90, %c2_91, %c0_92] : memref<10x10x128xf32, #tpu.memory_space<vmem>>, vector<8x8x128xf32>
    %83 = vector.shape_cast %82 : vector<8x8x128xf32> to vector<64x128xf32>
    %c2_93 = arith.constant 2 : index
    %c0_94 = arith.constant 0 : index
    %c0_95 = arith.constant 0 : index
    %84 = vector.load %arg4[%c2_93, %c0_94, %c0_95] : memref<9x128x128xf32, #tpu.memory_space<vmem>>, vector<1x128x128xf32>
    %85 = vector.shape_cast %84 : vector<1x128x128xf32> to vector<128x128xf32>
    %cst_96 = arith.constant dense<0.000000e+00> : vector<64x128xf32>
    %86 = tpu.matmul %83, %85, %cst_96 {dimension_numbers = #tpu.dot_dimension_numbers<[1], [0], [0], [1], [0, 0, 1, 1], [], []>} : vector<64x128xf32>, vector<128x128xf32>, vector<64x128xf32> -> vector<64x128xf32>
    %87 = arith.addf %81, %86 : vector<64x128xf32>
    %c1_97 = arith.constant 1 : index
    %c0_98 = arith.constant 0 : index
    %c0_99 = arith.constant 0 : index
    %88 = vector.load %arg9[%c1_97, %c0_98, %c0_99] : memref<10x10x128xf32, #tpu.memory_space<vmem>>, vector<8x8x128xf32>
    %89 = vector.shape_cast %88 : vector<8x8x128xf32> to vector<64x128xf32>
    %c3_100 = arith.constant 3 : index
    %c0_101 = arith.constant 0 : index
    %c0_102 = arith.constant 0 : index
    %90 = vector.load %arg4[%c3_100, %c0_101, %c0_102] : memref<9x128x128xf32, #tpu.memory_space<vmem>>, vector<1x128x128xf32>
    %91 = vector.shape_cast %90 : vector<1x128x128xf32> to vector<128x128xf32>
    %cst_103 = arith.constant dense<0.000000e+00> : vector<64x128xf32>
    %92 = tpu.matmul %89, %91, %cst_103 {dimension_numbers = #tpu.dot_dimension_numbers<[1], [0], [0], [1], [0, 0, 1, 1], [], []>} : vector<64x128xf32>, vector<128x128xf32>, vector<64x128xf32> -> vector<64x128xf32>
    %93 = arith.addf %87, %92 : vector<64x128xf32>
    %c1_104 = arith.constant 1 : index
    %c1_105 = arith.constant 1 : index
    %c0_106 = arith.constant 0 : index
    %94 = vector.load %arg9[%c1_104, %c1_105, %c0_106] : memref<10x10x128xf32, #tpu.memory_space<vmem>>, vector<8x8x128xf32>
    %95 = vector.shape_cast %94 : vector<8x8x128xf32> to vector<64x128xf32>
    %c4_107 = arith.constant 4 : index
    %c0_108 = arith.constant 0 : index
    %c0_109 = arith.constant 0 : index
    %96 = vector.load %arg4[%c4_107, %c0_108, %c0_109] : memref<9x128x128xf32, #tpu.memory_space<vmem>>, vector<1x128x128xf32>
    %97 = vector.shape_cast %96 : vector<1x128x128xf32> to vector<128x128xf32>
    %cst_110 = arith.constant dense<0.000000e+00> : vector<64x128xf32>
    %98 = tpu.matmul %95, %97, %cst_110 {dimension_numbers = #tpu.dot_dimension_numbers<[1], [0], [0], [1], [0, 0, 1, 1], [], []>} : vector<64x128xf32>, vector<128x128xf32>, vector<64x128xf32> -> vector<64x128xf32>
    %99 = arith.addf %93, %98 : vector<64x128xf32>
    %c1_111 = arith.constant 1 : index
    %c2_112 = arith.constant 2 : index
    %c0_113 = arith.constant 0 : index
    %100 = vector.load %arg9[%c1_111, %c2_112, %c0_113] : memref<10x10x128xf32, #tpu.memory_space<vmem>>, vector<8x8x128xf32>
    %101 = vector.shape_cast %100 : vector<8x8x128xf32> to vector<64x128xf32>
    %c5_114 = arith.constant 5 : index
    %c0_115 = arith.constant 0 : index
    %c0_116 = arith.constant 0 : index
    %102 = vector.load %arg4[%c5_114, %c0_115, %c0_116] : memref<9x128x128xf32, #tpu.memory_space<vmem>>, vector<1x128x128xf32>
    %103 = vector.shape_cast %102 : vector<1x128x128xf32> to vector<128x128xf32>
    %cst_117 = arith.constant dense<0.000000e+00> : vector<64x128xf32>
    %104 = tpu.matmul %101, %103, %cst_117 {dimension_numbers = #tpu.dot_dimension_numbers<[1], [0], [0], [1], [0, 0, 1, 1], [], []>} : vector<64x128xf32>, vector<128x128xf32>, vector<64x128xf32> -> vector<64x128xf32>
    %105 = arith.addf %99, %104 : vector<64x128xf32>
    %c2_118 = arith.constant 2 : index
    %c0_119 = arith.constant 0 : index
    %c0_120 = arith.constant 0 : index
    %106 = vector.load %arg9[%c2_118, %c0_119, %c0_120] : memref<10x10x128xf32, #tpu.memory_space<vmem>>, vector<8x8x128xf32>
    %107 = vector.shape_cast %106 : vector<8x8x128xf32> to vector<64x128xf32>
    %c6_121 = arith.constant 6 : index
    %c0_122 = arith.constant 0 : index
    %c0_123 = arith.constant 0 : index
    %108 = vector.load %arg4[%c6_121, %c0_122, %c0_123] : memref<9x128x128xf32, #tpu.memory_space<vmem>>, vector<1x128x128xf32>
    %109 = vector.shape_cast %108 : vector<1x128x128xf32> to vector<128x128xf32>
    %cst_124 = arith.constant dense<0.000000e+00> : vector<64x128xf32>
    %110 = tpu.matmul %107, %109, %cst_124 {dimension_numbers = #tpu.dot_dimension_numbers<[1], [0], [0], [1], [0, 0, 1, 1], [], []>} : vector<64x128xf32>, vector<128x128xf32>, vector<64x128xf32> -> vector<64x128xf32>
    %111 = arith.addf %105, %110 : vector<64x128xf32>
    %c2_125 = arith.constant 2 : index
    %c1_126 = arith.constant 1 : index
    %c0_127 = arith.constant 0 : index
    %112 = vector.load %arg9[%c2_125, %c1_126, %c0_127] : memref<10x10x128xf32, #tpu.memory_space<vmem>>, vector<8x8x128xf32>
    %113 = vector.shape_cast %112 : vector<8x8x128xf32> to vector<64x128xf32>
    %c7_128 = arith.constant 7 : index
    %c0_129 = arith.constant 0 : index
    %c0_130 = arith.constant 0 : index
    %114 = vector.load %arg4[%c7_128, %c0_129, %c0_130] : memref<9x128x128xf32, #tpu.memory_space<vmem>>, vector<1x128x128xf32>
    %115 = vector.shape_cast %114 : vector<1x128x128xf32> to vector<128x128xf32>
    %cst_131 = arith.constant dense<0.000000e+00> : vector<64x128xf32>
    %116 = tpu.matmul %113, %115, %cst_131 {dimension_numbers = #tpu.dot_dimension_numbers<[1], [0], [0], [1], [0, 0, 1, 1], [], []>} : vector<64x128xf32>, vector<128x128xf32>, vector<64x128xf32> -> vector<64x128xf32>
    %117 = arith.addf %111, %116 : vector<64x128xf32>
    %c2_132 = arith.constant 2 : index
    %c2_133 = arith.constant 2 : index
    %c0_134 = arith.constant 0 : index
    %118 = vector.load %arg9[%c2_132, %c2_133, %c0_134] : memref<10x10x128xf32, #tpu.memory_space<vmem>>, vector<8x8x128xf32>
    %119 = vector.shape_cast %118 : vector<8x8x128xf32> to vector<64x128xf32>
    %c8_135 = arith.constant 8 : index
    %c0_136 = arith.constant 0 : index
    %c0_137 = arith.constant 0 : index
    %120 = vector.load %arg4[%c8_135, %c0_136, %c0_137] : memref<9x128x128xf32, #tpu.memory_space<vmem>>, vector<1x128x128xf32>
    %121 = vector.shape_cast %120 : vector<1x128x128xf32> to vector<128x128xf32>
    %cst_138 = arith.constant dense<0.000000e+00> : vector<64x128xf32>
    %122 = tpu.matmul %119, %121, %cst_138 {dimension_numbers = #tpu.dot_dimension_numbers<[1], [0], [0], [1], [0, 0, 1, 1], [], []>} : vector<64x128xf32>, vector<128x128xf32>, vector<64x128xf32> -> vector<64x128xf32>
    %123 = arith.addf %117, %122 : vector<64x128xf32>
    %c0_139 = arith.constant 0 : index
    %c0_140 = arith.constant 0 : index
    %124 = vector.load %arg5[%c0_139, %c0_140] : memref<1x128xf32, #tpu.memory_space<vmem>>, vector<1x128xf32>
    %125 = vector.broadcast %124 : vector<1x128xf32> to vector<64x128xf32>
    %126 = arith.addf %123, %125 : vector<64x128xf32>
    %cst_141 = arith.constant 0.000000e+00 : f32
    %127 = vector.broadcast %cst_141 : f32 to vector<64x128xf32>
    %128 = arith.maximumf %126, %127 : vector<64x128xf32>
    %129 = vector.extract_strided_slice %128 {offsets = [0, 0], sizes = [56, 128], strides = [1, 1]} : vector<64x128xf32> to vector<56x128xf32>
    %130 = vector.extract_strided_slice %128 {offsets = [8, 0], sizes = [56, 128], strides = [1, 1]} : vector<64x128xf32> to vector<56x128xf32>
    %131 = arith.maximumf %129, %130 : vector<56x128xf32>
    %132 = vector.extract_strided_slice %131 {offsets = [0, 0], sizes = [55, 128], strides = [1, 1]} : vector<56x128xf32> to vector<55x128xf32>
    %133 = vector.extract_strided_slice %131 {offsets = [1, 0], sizes = [55, 128], strides = [1, 1]} : vector<56x128xf32> to vector<55x128xf32>
    %134 = arith.maximumf %132, %133 : vector<55x128xf32>
    %c0_142 = arith.constant 0 : index
    %c0_143 = arith.constant 0 : index
    %135 = vector.load %arg6[%c0_142, %c0_143] : memref<16x55xf32, #tpu.memory_space<vmem>>, vector<16x55xf32>
    %cst_144 = arith.constant dense<0.000000e+00> : vector<16x128xf32>
    %136 = tpu.matmul %135, %134, %cst_144 {dimension_numbers = #tpu.dot_dimension_numbers<[1], [0], [0], [1], [0, 0, 1, 1], [], []>} : vector<16x55xf32>, vector<55x128xf32>, vector<16x128xf32> -> vector<16x128xf32>
    %c0_145 = arith.constant 0 : index
    %c0_146 = arith.constant 0 : index
    %c0_147 = arith.constant 0 : index
    %137 = vector.load %arg7[%c0_145, %c0_146, %c0_147] : memref<1x16x128xf32, #tpu.memory_space<vmem>>, vector<1x16x128xf32>
    %138 = vector.shape_cast %137 : vector<1x16x128xf32> to vector<16x128xf32>
    %139 = vector.shape_cast %136 : vector<16x128xf32> to vector<1x16x128xf32>
    tpu.vector_store %arg7[%c0_145, %c0_146, %c0_147], %139 {strides = array<i32>} : memref<1x16x128xf32, #tpu.memory_space<vmem>>, vector<1x16x128xf32>,
    return
  }
  func.func @transform_0(%arg0: i32) -> (i32, i32, i32, i32) {
    %c0_i32 = arith.constant 0 : i32
    %c0_i32_0 = arith.constant 0 : i32
    %c0_i32_1 = arith.constant 0 : i32
    %c0_i32_2 = arith.constant 0 : i32
    return %arg0, %c0_i32, %c0_i32_0, %c0_i32_1 : i32, i32, i32, i32
  }
  func.func @transform_1(%arg0: i32) -> (i32, i32, i32) {
    %c0_i32 = arith.constant 0 : i32
    %c0_i32_0 = arith.constant 0 : i32
    %c0_i32_1 = arith.constant 0 : i32
    %c0_i32_2 = arith.constant 0 : i32
    return %c0_i32, %c0_i32_0, %c0_i32_1 : i32, i32, i32
  }
  func.func @transform_2(%arg0: i32) -> (i32, i32) {
    %c0_i32 = arith.constant 0 : i32
    %c0_i32_0 = arith.constant 0 : i32
    %c0_i32_1 = arith.constant 0 : i32
    return %c0_i32, %c0_i32_0 : i32, i32
  }
  func.func @transform_3(%arg0: i32) -> (i32, i32, i32) {
    %c0_i32 = arith.constant 0 : i32
    %c0_i32_0 = arith.constant 0 : i32
    %c0_i32_1 = arith.constant 0 : i32
    %c0_i32_2 = arith.constant 0 : i32
    return %c0_i32, %c0_i32_0, %c0_i32_1 : i32, i32, i32
  }
  func.func @transform_4(%arg0: i32) -> (i32, i32) {
    %c0_i32 = arith.constant 0 : i32
    %c0_i32_0 = arith.constant 0 : i32
    %c0_i32_1 = arith.constant 0 : i32
    return %c0_i32, %c0_i32_0 : i32, i32
  }
  func.func @transform_5(%arg0: i32) -> (i32, i32) {
    %c0_i32 = arith.constant 0 : i32
    %c0_i32_0 = arith.constant 0 : i32
    %c0_i32_1 = arith.constant 0 : i32
    return %c0_i32, %c0_i32_0 : i32, i32
  }
  func.func @transform_6(%arg0: i32) -> (i32, i32, i32) {
    %c0_i32 = arith.constant 0 : i32
    %c0_i32_0 = arith.constant 0 : i32
    %c0_i32_1 = arith.constant 0 : i32
    return %arg0, %c0_i32, %c0_i32_0 : i32, i32, i32
  }
}

module attributes {stable_mosaic.version = 11 : i64} {
  func.func @_conv_block_kernel(%arg0: i32, %arg1: memref<1x16x16x8xf32, #tpu.memory_space<vmem>>, %arg2: memref<9x8x128xf32, #tpu.memory_space<vmem>>, %arg3: memref<1x128xf32, #tpu.memory_space<vmem>>, %arg4: memref<9x128x128xf32, #tpu.memory_space<vmem>>, %arg5: memref<1x128xf32, #tpu.memory_space<vmem>>, %arg6: memref<64x239xf32, #tpu.memory_space<vmem>>, %arg7: memref<1x64x128xf32, #tpu.memory_space<vmem>>, %arg8: memref<18x18x8xf32, #tpu.memory_space<vmem>>, %arg9: memref<18x18x128xf32, #tpu.memory_space<vmem>>) attributes {dimension_semantics = [#tpu.dimension_semantics<parallel>], iteration_bounds = array<i64: 2>, scalar_prefetch = 0 : i64, scratch_operands = 2 : i64, tpu.core_type = #tpu.core_type<tc>, window_params = [{transform_indices = @transform_0, window_bounds = array<i64: 1, 16, 16, 8>}, {pipeline_mode = #tpu.pipeline_mode<synchronous>, transform_indices = @transform_1, window_bounds = array<i64: 9, 8, 128>}, {pipeline_mode = #tpu.pipeline_mode<synchronous>, transform_indices = @transform_2, window_bounds = array<i64: 1, 128>}, {pipeline_mode = #tpu.pipeline_mode<synchronous>, transform_indices = @transform_3, window_bounds = array<i64: 9, 128, 128>}, {pipeline_mode = #tpu.pipeline_mode<synchronous>, transform_indices = @transform_4, window_bounds = array<i64: 1, 128>}, {pipeline_mode = #tpu.pipeline_mode<synchronous>, transform_indices = @transform_5, window_bounds = array<i64: 64, 239>}, {transform_indices = @transform_6, window_bounds = array<i64: 1, 64, 128>}]} {
    %cst = arith.constant 0.000000e+00 : f32
    %0 = vector.broadcast %cst : f32 to vector<18x18x8xf32>
    %c0 = arith.constant 0 : index
    %c0_0 = arith.constant 0 : index
    %c0_1 = arith.constant 0 : index
    %1 = vector.load %arg8[%c0, %c0_0, %c0_1] : memref<18x18x8xf32, #tpu.memory_space<vmem>>, vector<18x18x8xf32>
    tpu.vector_store %arg8[%c0, %c0_0, %c0_1], %0 {strides = array<i32>} : memref<18x18x8xf32, #tpu.memory_space<vmem>>, vector<18x18x8xf32>,
    %c0_2 = arith.constant 0 : index
    %c0_3 = arith.constant 0 : index
    %c0_4 = arith.constant 0 : index
    %c0_5 = arith.constant 0 : index
    %2 = vector.load %arg1[%c0_2, %c0_3, %c0_4, %c0_5] : memref<1x16x16x8xf32, #tpu.memory_space<vmem>>, vector<1x16x16x8xf32>
    %3 = vector.shape_cast %2 : vector<1x16x16x8xf32> to vector<16x16x8xf32>
    %c1 = arith.constant 1 : index
    %c1_6 = arith.constant 1 : index
    %c0_7 = arith.constant 0 : index
    %4 = vector.load %arg8[%c1, %c1_6, %c0_7] : memref<18x18x8xf32, #tpu.memory_space<vmem>>, vector<16x16x8xf32>
    tpu.vector_store %arg8[%c1, %c1_6, %c0_7], %3 {strides = array<i32>} : memref<18x18x8xf32, #tpu.memory_space<vmem>>, vector<16x16x8xf32>,
    %cst_8 = arith.constant 0.000000e+00 : f32
    %5 = vector.broadcast %cst_8 : f32 to vector<256x128xf32>
    %c0_9 = arith.constant 0 : index
    %c0_10 = arith.constant 0 : index
    %c0_11 = arith.constant 0 : index
    %6 = vector.load %arg8[%c0_9, %c0_10, %c0_11] : memref<18x18x8xf32, #tpu.memory_space<vmem>>, vector<16x16x8xf32>
    %7 = vector.shape_cast %6 : vector<16x16x8xf32> to vector<256x8xf32>
    %c0_12 = arith.constant 0 : index
    %c0_13 = arith.constant 0 : index
    %c0_14 = arith.constant 0 : index
    %8 = vector.load %arg2[%c0_12, %c0_13, %c0_14] : memref<9x8x128xf32, #tpu.memory_space<vmem>>, vector<1x8x128xf32>
    %9 = vector.shape_cast %8 : vector<1x8x128xf32> to vector<8x128xf32>
    %cst_15 = arith.constant dense<0.000000e+00> : vector<256x128xf32>
    %10 = tpu.matmul %7, %9, %cst_15 {dimension_numbers = #tpu.dot_dimension_numbers<[1], [0], [0], [1], [0, 0, 1, 1], [], []>} : vector<256x8xf32>, vector<8x128xf32>, vector<256x128xf32> -> vector<256x128xf32>
    %11 = arith.addf %5, %10 : vector<256x128xf32>
    %c0_16 = arith.constant 0 : index
    %c1_17 = arith.constant 1 : index
    %c0_18 = arith.constant 0 : index
    %12 = vector.load %arg8[%c0_16, %c1_17, %c0_18] : memref<18x18x8xf32, #tpu.memory_space<vmem>>, vector<16x16x8xf32>
    %13 = vector.shape_cast %12 : vector<16x16x8xf32> to vector<256x8xf32>
    %c1_19 = arith.constant 1 : index
    %c0_20 = arith.constant 0 : index
    %c0_21 = arith.constant 0 : index
    %14 = vector.load %arg2[%c1_19, %c0_20, %c0_21] : memref<9x8x128xf32, #tpu.memory_space<vmem>>, vector<1x8x128xf32>
    %15 = vector.shape_cast %14 : vector<1x8x128xf32> to vector<8x128xf32>
    %cst_22 = arith.constant dense<0.000000e+00> : vector<256x128xf32>
    %16 = tpu.matmul %13, %15, %cst_22 {dimension_numbers = #tpu.dot_dimension_numbers<[1], [0], [0], [1], [0, 0, 1, 1], [], []>} : vector<256x8xf32>, vector<8x128xf32>, vector<256x128xf32> -> vector<256x128xf32>
    %17 = arith.addf %11, %16 : vector<256x128xf32>
    %c0_23 = arith.constant 0 : index
    %c2 = arith.constant 2 : index
    %c0_24 = arith.constant 0 : index
    %18 = vector.load %arg8[%c0_23, %c2, %c0_24] : memref<18x18x8xf32, #tpu.memory_space<vmem>>, vector<16x16x8xf32>
    %19 = vector.shape_cast %18 : vector<16x16x8xf32> to vector<256x8xf32>
    %c2_25 = arith.constant 2 : index
    %c0_26 = arith.constant 0 : index
    %c0_27 = arith.constant 0 : index
    %20 = vector.load %arg2[%c2_25, %c0_26, %c0_27] : memref<9x8x128xf32, #tpu.memory_space<vmem>>, vector<1x8x128xf32>
    %21 = vector.shape_cast %20 : vector<1x8x128xf32> to vector<8x128xf32>
    %cst_28 = arith.constant dense<0.000000e+00> : vector<256x128xf32>
    %22 = tpu.matmul %19, %21, %cst_28 {dimension_numbers = #tpu.dot_dimension_numbers<[1], [0], [0], [1], [0, 0, 1, 1], [], []>} : vector<256x8xf32>, vector<8x128xf32>, vector<256x128xf32> -> vector<256x128xf32>
    %23 = arith.addf %17, %22 : vector<256x128xf32>
    %c1_29 = arith.constant 1 : index
    %c0_30 = arith.constant 0 : index
    %c0_31 = arith.constant 0 : index
    %24 = vector.load %arg8[%c1_29, %c0_30, %c0_31] : memref<18x18x8xf32, #tpu.memory_space<vmem>>, vector<16x16x8xf32>
    %25 = vector.shape_cast %24 : vector<16x16x8xf32> to vector<256x8xf32>
    %c3 = arith.constant 3 : index
    %c0_32 = arith.constant 0 : index
    %c0_33 = arith.constant 0 : index
    %26 = vector.load %arg2[%c3, %c0_32, %c0_33] : memref<9x8x128xf32, #tpu.memory_space<vmem>>, vector<1x8x128xf32>
    %27 = vector.shape_cast %26 : vector<1x8x128xf32> to vector<8x128xf32>
    %cst_34 = arith.constant dense<0.000000e+00> : vector<256x128xf32>
    %28 = tpu.matmul %25, %27, %cst_34 {dimension_numbers = #tpu.dot_dimension_numbers<[1], [0], [0], [1], [0, 0, 1, 1], [], []>} : vector<256x8xf32>, vector<8x128xf32>, vector<256x128xf32> -> vector<256x128xf32>
    %29 = arith.addf %23, %28 : vector<256x128xf32>
    %c1_35 = arith.constant 1 : index
    %c1_36 = arith.constant 1 : index
    %c0_37 = arith.constant 0 : index
    %30 = vector.load %arg8[%c1_35, %c1_36, %c0_37] : memref<18x18x8xf32, #tpu.memory_space<vmem>>, vector<16x16x8xf32>
    %31 = vector.shape_cast %30 : vector<16x16x8xf32> to vector<256x8xf32>
    %c4 = arith.constant 4 : index
    %c0_38 = arith.constant 0 : index
    %c0_39 = arith.constant 0 : index
    %32 = vector.load %arg2[%c4, %c0_38, %c0_39] : memref<9x8x128xf32, #tpu.memory_space<vmem>>, vector<1x8x128xf32>
    %33 = vector.shape_cast %32 : vector<1x8x128xf32> to vector<8x128xf32>
    %cst_40 = arith.constant dense<0.000000e+00> : vector<256x128xf32>
    %34 = tpu.matmul %31, %33, %cst_40 {dimension_numbers = #tpu.dot_dimension_numbers<[1], [0], [0], [1], [0, 0, 1, 1], [], []>} : vector<256x8xf32>, vector<8x128xf32>, vector<256x128xf32> -> vector<256x128xf32>
    %35 = arith.addf %29, %34 : vector<256x128xf32>
    %c1_41 = arith.constant 1 : index
    %c2_42 = arith.constant 2 : index
    %c0_43 = arith.constant 0 : index
    %36 = vector.load %arg8[%c1_41, %c2_42, %c0_43] : memref<18x18x8xf32, #tpu.memory_space<vmem>>, vector<16x16x8xf32>
    %37 = vector.shape_cast %36 : vector<16x16x8xf32> to vector<256x8xf32>
    %c5 = arith.constant 5 : index
    %c0_44 = arith.constant 0 : index
    %c0_45 = arith.constant 0 : index
    %38 = vector.load %arg2[%c5, %c0_44, %c0_45] : memref<9x8x128xf32, #tpu.memory_space<vmem>>, vector<1x8x128xf32>
    %39 = vector.shape_cast %38 : vector<1x8x128xf32> to vector<8x128xf32>
    %cst_46 = arith.constant dense<0.000000e+00> : vector<256x128xf32>
    %40 = tpu.matmul %37, %39, %cst_46 {dimension_numbers = #tpu.dot_dimension_numbers<[1], [0], [0], [1], [0, 0, 1, 1], [], []>} : vector<256x8xf32>, vector<8x128xf32>, vector<256x128xf32> -> vector<256x128xf32>
    %41 = arith.addf %35, %40 : vector<256x128xf32>
    %c2_47 = arith.constant 2 : index
    %c0_48 = arith.constant 0 : index
    %c0_49 = arith.constant 0 : index
    %42 = vector.load %arg8[%c2_47, %c0_48, %c0_49] : memref<18x18x8xf32, #tpu.memory_space<vmem>>, vector<16x16x8xf32>
    %43 = vector.shape_cast %42 : vector<16x16x8xf32> to vector<256x8xf32>
    %c6 = arith.constant 6 : index
    %c0_50 = arith.constant 0 : index
    %c0_51 = arith.constant 0 : index
    %44 = vector.load %arg2[%c6, %c0_50, %c0_51] : memref<9x8x128xf32, #tpu.memory_space<vmem>>, vector<1x8x128xf32>
    %45 = vector.shape_cast %44 : vector<1x8x128xf32> to vector<8x128xf32>
    %cst_52 = arith.constant dense<0.000000e+00> : vector<256x128xf32>
    %46 = tpu.matmul %43, %45, %cst_52 {dimension_numbers = #tpu.dot_dimension_numbers<[1], [0], [0], [1], [0, 0, 1, 1], [], []>} : vector<256x8xf32>, vector<8x128xf32>, vector<256x128xf32> -> vector<256x128xf32>
    %47 = arith.addf %41, %46 : vector<256x128xf32>
    %c2_53 = arith.constant 2 : index
    %c1_54 = arith.constant 1 : index
    %c0_55 = arith.constant 0 : index
    %48 = vector.load %arg8[%c2_53, %c1_54, %c0_55] : memref<18x18x8xf32, #tpu.memory_space<vmem>>, vector<16x16x8xf32>
    %49 = vector.shape_cast %48 : vector<16x16x8xf32> to vector<256x8xf32>
    %c7 = arith.constant 7 : index
    %c0_56 = arith.constant 0 : index
    %c0_57 = arith.constant 0 : index
    %50 = vector.load %arg2[%c7, %c0_56, %c0_57] : memref<9x8x128xf32, #tpu.memory_space<vmem>>, vector<1x8x128xf32>
    %51 = vector.shape_cast %50 : vector<1x8x128xf32> to vector<8x128xf32>
    %cst_58 = arith.constant dense<0.000000e+00> : vector<256x128xf32>
    %52 = tpu.matmul %49, %51, %cst_58 {dimension_numbers = #tpu.dot_dimension_numbers<[1], [0], [0], [1], [0, 0, 1, 1], [], []>} : vector<256x8xf32>, vector<8x128xf32>, vector<256x128xf32> -> vector<256x128xf32>
    %53 = arith.addf %47, %52 : vector<256x128xf32>
    %c2_59 = arith.constant 2 : index
    %c2_60 = arith.constant 2 : index
    %c0_61 = arith.constant 0 : index
    %54 = vector.load %arg8[%c2_59, %c2_60, %c0_61] : memref<18x18x8xf32, #tpu.memory_space<vmem>>, vector<16x16x8xf32>
    %55 = vector.shape_cast %54 : vector<16x16x8xf32> to vector<256x8xf32>
    %c8 = arith.constant 8 : index
    %c0_62 = arith.constant 0 : index
    %c0_63 = arith.constant 0 : index
    %56 = vector.load %arg2[%c8, %c0_62, %c0_63] : memref<9x8x128xf32, #tpu.memory_space<vmem>>, vector<1x8x128xf32>
    %57 = vector.shape_cast %56 : vector<1x8x128xf32> to vector<8x128xf32>
    %cst_64 = arith.constant dense<0.000000e+00> : vector<256x128xf32>
    %58 = tpu.matmul %55, %57, %cst_64 {dimension_numbers = #tpu.dot_dimension_numbers<[1], [0], [0], [1], [0, 0, 1, 1], [], []>} : vector<256x8xf32>, vector<8x128xf32>, vector<256x128xf32> -> vector<256x128xf32>
    %59 = arith.addf %53, %58 : vector<256x128xf32>
    %c0_65 = arith.constant 0 : index
    %c0_66 = arith.constant 0 : index
    %60 = vector.load %arg3[%c0_65, %c0_66] : memref<1x128xf32, #tpu.memory_space<vmem>>, vector<1x128xf32>
    %61 = vector.broadcast %60 : vector<1x128xf32> to vector<256x128xf32>
    %62 = arith.addf %59, %61 : vector<256x128xf32>
    %cst_67 = arith.constant 0.000000e+00 : f32
    %63 = vector.broadcast %cst_67 : f32 to vector<256x128xf32>
    %64 = arith.maximumf %62, %63 : vector<256x128xf32>
    %cst_68 = arith.constant 0.000000e+00 : f32
    %65 = vector.broadcast %cst_68 : f32 to vector<18x18x128xf32>
    %c0_69 = arith.constant 0 : index
    %c0_70 = arith.constant 0 : index
    %c0_71 = arith.constant 0 : index
    %66 = vector.load %arg9[%c0_69, %c0_70, %c0_71] : memref<18x18x128xf32, #tpu.memory_space<vmem>>, vector<18x18x128xf32>
    tpu.vector_store %arg9[%c0_69, %c0_70, %c0_71], %65 {strides = array<i32>} : memref<18x18x128xf32, #tpu.memory_space<vmem>>, vector<18x18x128xf32>,
    %67 = vector.shape_cast %64 : vector<256x128xf32> to vector<16x16x128xf32>
    %c1_72 = arith.constant 1 : index
    %c1_73 = arith.constant 1 : index
    %c0_74 = arith.constant 0 : index
    %68 = vector.load %arg9[%c1_72, %c1_73, %c0_74] : memref<18x18x128xf32, #tpu.memory_space<vmem>>, vector<16x16x128xf32>
    tpu.vector_store %arg9[%c1_72, %c1_73, %c0_74], %67 {strides = array<i32>} : memref<18x18x128xf32, #tpu.memory_space<vmem>>, vector<16x16x128xf32>,
    %cst_75 = arith.constant 0.000000e+00 : f32
    %69 = vector.broadcast %cst_75 : f32 to vector<256x128xf32>
    %c0_76 = arith.constant 0 : index
    %c0_77 = arith.constant 0 : index
    %c0_78 = arith.constant 0 : index
    %70 = vector.load %arg9[%c0_76, %c0_77, %c0_78] : memref<18x18x128xf32, #tpu.memory_space<vmem>>, vector<16x16x128xf32>
    %71 = vector.shape_cast %70 : vector<16x16x128xf32> to vector<256x128xf32>
    %c0_79 = arith.constant 0 : index
    %c0_80 = arith.constant 0 : index
    %c0_81 = arith.constant 0 : index
    %72 = vector.load %arg4[%c0_79, %c0_80, %c0_81] : memref<9x128x128xf32, #tpu.memory_space<vmem>>, vector<1x128x128xf32>
    %73 = vector.shape_cast %72 : vector<1x128x128xf32> to vector<128x128xf32>
    %cst_82 = arith.constant dense<0.000000e+00> : vector<256x128xf32>
    %74 = tpu.matmul %71, %73, %cst_82 {dimension_numbers = #tpu.dot_dimension_numbers<[1], [0], [0], [1], [0, 0, 1, 1], [], []>} : vector<256x128xf32>, vector<128x128xf32>, vector<256x128xf32> -> vector<256x128xf32>
    %75 = arith.addf %69, %74 : vector<256x128xf32>
    %c0_83 = arith.constant 0 : index
    %c1_84 = arith.constant 1 : index
    %c0_85 = arith.constant 0 : index
    %76 = vector.load %arg9[%c0_83, %c1_84, %c0_85] : memref<18x18x128xf32, #tpu.memory_space<vmem>>, vector<16x16x128xf32>
    %77 = vector.shape_cast %76 : vector<16x16x128xf32> to vector<256x128xf32>
    %c1_86 = arith.constant 1 : index
    %c0_87 = arith.constant 0 : index
    %c0_88 = arith.constant 0 : index
    %78 = vector.load %arg4[%c1_86, %c0_87, %c0_88] : memref<9x128x128xf32, #tpu.memory_space<vmem>>, vector<1x128x128xf32>
    %79 = vector.shape_cast %78 : vector<1x128x128xf32> to vector<128x128xf32>
    %cst_89 = arith.constant dense<0.000000e+00> : vector<256x128xf32>
    %80 = tpu.matmul %77, %79, %cst_89 {dimension_numbers = #tpu.dot_dimension_numbers<[1], [0], [0], [1], [0, 0, 1, 1], [], []>} : vector<256x128xf32>, vector<128x128xf32>, vector<256x128xf32> -> vector<256x128xf32>
    %81 = arith.addf %75, %80 : vector<256x128xf32>
    %c0_90 = arith.constant 0 : index
    %c2_91 = arith.constant 2 : index
    %c0_92 = arith.constant 0 : index
    %82 = vector.load %arg9[%c0_90, %c2_91, %c0_92] : memref<18x18x128xf32, #tpu.memory_space<vmem>>, vector<16x16x128xf32>
    %83 = vector.shape_cast %82 : vector<16x16x128xf32> to vector<256x128xf32>
    %c2_93 = arith.constant 2 : index
    %c0_94 = arith.constant 0 : index
    %c0_95 = arith.constant 0 : index
    %84 = vector.load %arg4[%c2_93, %c0_94, %c0_95] : memref<9x128x128xf32, #tpu.memory_space<vmem>>, vector<1x128x128xf32>
    %85 = vector.shape_cast %84 : vector<1x128x128xf32> to vector<128x128xf32>
    %cst_96 = arith.constant dense<0.000000e+00> : vector<256x128xf32>
    %86 = tpu.matmul %83, %85, %cst_96 {dimension_numbers = #tpu.dot_dimension_numbers<[1], [0], [0], [1], [0, 0, 1, 1], [], []>} : vector<256x128xf32>, vector<128x128xf32>, vector<256x128xf32> -> vector<256x128xf32>
    %87 = arith.addf %81, %86 : vector<256x128xf32>
    %c1_97 = arith.constant 1 : index
    %c0_98 = arith.constant 0 : index
    %c0_99 = arith.constant 0 : index
    %88 = vector.load %arg9[%c1_97, %c0_98, %c0_99] : memref<18x18x128xf32, #tpu.memory_space<vmem>>, vector<16x16x128xf32>
    %89 = vector.shape_cast %88 : vector<16x16x128xf32> to vector<256x128xf32>
    %c3_100 = arith.constant 3 : index
    %c0_101 = arith.constant 0 : index
    %c0_102 = arith.constant 0 : index
    %90 = vector.load %arg4[%c3_100, %c0_101, %c0_102] : memref<9x128x128xf32, #tpu.memory_space<vmem>>, vector<1x128x128xf32>
    %91 = vector.shape_cast %90 : vector<1x128x128xf32> to vector<128x128xf32>
    %cst_103 = arith.constant dense<0.000000e+00> : vector<256x128xf32>
    %92 = tpu.matmul %89, %91, %cst_103 {dimension_numbers = #tpu.dot_dimension_numbers<[1], [0], [0], [1], [0, 0, 1, 1], [], []>} : vector<256x128xf32>, vector<128x128xf32>, vector<256x128xf32> -> vector<256x128xf32>
    %93 = arith.addf %87, %92 : vector<256x128xf32>
    %c1_104 = arith.constant 1 : index
    %c1_105 = arith.constant 1 : index
    %c0_106 = arith.constant 0 : index
    %94 = vector.load %arg9[%c1_104, %c1_105, %c0_106] : memref<18x18x128xf32, #tpu.memory_space<vmem>>, vector<16x16x128xf32>
    %95 = vector.shape_cast %94 : vector<16x16x128xf32> to vector<256x128xf32>
    %c4_107 = arith.constant 4 : index
    %c0_108 = arith.constant 0 : index
    %c0_109 = arith.constant 0 : index
    %96 = vector.load %arg4[%c4_107, %c0_108, %c0_109] : memref<9x128x128xf32, #tpu.memory_space<vmem>>, vector<1x128x128xf32>
    %97 = vector.shape_cast %96 : vector<1x128x128xf32> to vector<128x128xf32>
    %cst_110 = arith.constant dense<0.000000e+00> : vector<256x128xf32>
    %98 = tpu.matmul %95, %97, %cst_110 {dimension_numbers = #tpu.dot_dimension_numbers<[1], [0], [0], [1], [0, 0, 1, 1], [], []>} : vector<256x128xf32>, vector<128x128xf32>, vector<256x128xf32> -> vector<256x128xf32>
    %99 = arith.addf %93, %98 : vector<256x128xf32>
    %c1_111 = arith.constant 1 : index
    %c2_112 = arith.constant 2 : index
    %c0_113 = arith.constant 0 : index
    %100 = vector.load %arg9[%c1_111, %c2_112, %c0_113] : memref<18x18x128xf32, #tpu.memory_space<vmem>>, vector<16x16x128xf32>
    %101 = vector.shape_cast %100 : vector<16x16x128xf32> to vector<256x128xf32>
    %c5_114 = arith.constant 5 : index
    %c0_115 = arith.constant 0 : index
    %c0_116 = arith.constant 0 : index
    %102 = vector.load %arg4[%c5_114, %c0_115, %c0_116] : memref<9x128x128xf32, #tpu.memory_space<vmem>>, vector<1x128x128xf32>
    %103 = vector.shape_cast %102 : vector<1x128x128xf32> to vector<128x128xf32>
    %cst_117 = arith.constant dense<0.000000e+00> : vector<256x128xf32>
    %104 = tpu.matmul %101, %103, %cst_117 {dimension_numbers = #tpu.dot_dimension_numbers<[1], [0], [0], [1], [0, 0, 1, 1], [], []>} : vector<256x128xf32>, vector<128x128xf32>, vector<256x128xf32> -> vector<256x128xf32>
    %105 = arith.addf %99, %104 : vector<256x128xf32>
    %c2_118 = arith.constant 2 : index
    %c0_119 = arith.constant 0 : index
    %c0_120 = arith.constant 0 : index
    %106 = vector.load %arg9[%c2_118, %c0_119, %c0_120] : memref<18x18x128xf32, #tpu.memory_space<vmem>>, vector<16x16x128xf32>
    %107 = vector.shape_cast %106 : vector<16x16x128xf32> to vector<256x128xf32>
    %c6_121 = arith.constant 6 : index
    %c0_122 = arith.constant 0 : index
    %c0_123 = arith.constant 0 : index
    %108 = vector.load %arg4[%c6_121, %c0_122, %c0_123] : memref<9x128x128xf32, #tpu.memory_space<vmem>>, vector<1x128x128xf32>
    %109 = vector.shape_cast %108 : vector<1x128x128xf32> to vector<128x128xf32>
    %cst_124 = arith.constant dense<0.000000e+00> : vector<256x128xf32>
    %110 = tpu.matmul %107, %109, %cst_124 {dimension_numbers = #tpu.dot_dimension_numbers<[1], [0], [0], [1], [0, 0, 1, 1], [], []>} : vector<256x128xf32>, vector<128x128xf32>, vector<256x128xf32> -> vector<256x128xf32>
    %111 = arith.addf %105, %110 : vector<256x128xf32>
    %c2_125 = arith.constant 2 : index
    %c1_126 = arith.constant 1 : index
    %c0_127 = arith.constant 0 : index
    %112 = vector.load %arg9[%c2_125, %c1_126, %c0_127] : memref<18x18x128xf32, #tpu.memory_space<vmem>>, vector<16x16x128xf32>
    %113 = vector.shape_cast %112 : vector<16x16x128xf32> to vector<256x128xf32>
    %c7_128 = arith.constant 7 : index
    %c0_129 = arith.constant 0 : index
    %c0_130 = arith.constant 0 : index
    %114 = vector.load %arg4[%c7_128, %c0_129, %c0_130] : memref<9x128x128xf32, #tpu.memory_space<vmem>>, vector<1x128x128xf32>
    %115 = vector.shape_cast %114 : vector<1x128x128xf32> to vector<128x128xf32>
    %cst_131 = arith.constant dense<0.000000e+00> : vector<256x128xf32>
    %116 = tpu.matmul %113, %115, %cst_131 {dimension_numbers = #tpu.dot_dimension_numbers<[1], [0], [0], [1], [0, 0, 1, 1], [], []>} : vector<256x128xf32>, vector<128x128xf32>, vector<256x128xf32> -> vector<256x128xf32>
    %117 = arith.addf %111, %116 : vector<256x128xf32>
    %c2_132 = arith.constant 2 : index
    %c2_133 = arith.constant 2 : index
    %c0_134 = arith.constant 0 : index
    %118 = vector.load %arg9[%c2_132, %c2_133, %c0_134] : memref<18x18x128xf32, #tpu.memory_space<vmem>>, vector<16x16x128xf32>
    %119 = vector.shape_cast %118 : vector<16x16x128xf32> to vector<256x128xf32>
    %c8_135 = arith.constant 8 : index
    %c0_136 = arith.constant 0 : index
    %c0_137 = arith.constant 0 : index
    %120 = vector.load %arg4[%c8_135, %c0_136, %c0_137] : memref<9x128x128xf32, #tpu.memory_space<vmem>>, vector<1x128x128xf32>
    %121 = vector.shape_cast %120 : vector<1x128x128xf32> to vector<128x128xf32>
    %cst_138 = arith.constant dense<0.000000e+00> : vector<256x128xf32>
    %122 = tpu.matmul %119, %121, %cst_138 {dimension_numbers = #tpu.dot_dimension_numbers<[1], [0], [0], [1], [0, 0, 1, 1], [], []>} : vector<256x128xf32>, vector<128x128xf32>, vector<256x128xf32> -> vector<256x128xf32>
    %123 = arith.addf %117, %122 : vector<256x128xf32>
    %c0_139 = arith.constant 0 : index
    %c0_140 = arith.constant 0 : index
    %124 = vector.load %arg5[%c0_139, %c0_140] : memref<1x128xf32, #tpu.memory_space<vmem>>, vector<1x128xf32>
    %125 = vector.broadcast %124 : vector<1x128xf32> to vector<256x128xf32>
    %126 = arith.addf %123, %125 : vector<256x128xf32>
    %cst_141 = arith.constant 0.000000e+00 : f32
    %127 = vector.broadcast %cst_141 : f32 to vector<256x128xf32>
    %128 = arith.maximumf %126, %127 : vector<256x128xf32>
    %129 = vector.extract_strided_slice %128 {offsets = [0, 0], sizes = [240, 128], strides = [1, 1]} : vector<256x128xf32> to vector<240x128xf32>
    %130 = vector.extract_strided_slice %128 {offsets = [16, 0], sizes = [240, 128], strides = [1, 1]} : vector<256x128xf32> to vector<240x128xf32>
    %131 = arith.maximumf %129, %130 : vector<240x128xf32>
    %132 = vector.extract_strided_slice %131 {offsets = [0, 0], sizes = [239, 128], strides = [1, 1]} : vector<240x128xf32> to vector<239x128xf32>
    %133 = vector.extract_strided_slice %131 {offsets = [1, 0], sizes = [239, 128], strides = [1, 1]} : vector<240x128xf32> to vector<239x128xf32>
    %134 = arith.maximumf %132, %133 : vector<239x128xf32>
    %c0_142 = arith.constant 0 : index
    %c0_143 = arith.constant 0 : index
    %135 = vector.load %arg6[%c0_142, %c0_143] : memref<64x239xf32, #tpu.memory_space<vmem>>, vector<64x239xf32>
    %cst_144 = arith.constant dense<0.000000e+00> : vector<64x128xf32>
    %136 = tpu.matmul %135, %134, %cst_144 {dimension_numbers = #tpu.dot_dimension_numbers<[1], [0], [0], [1], [0, 0, 1, 1], [], []>} : vector<64x239xf32>, vector<239x128xf32>, vector<64x128xf32> -> vector<64x128xf32>
    %c0_145 = arith.constant 0 : index
    %c0_146 = arith.constant 0 : index
    %c0_147 = arith.constant 0 : index
    %137 = vector.load %arg7[%c0_145, %c0_146, %c0_147] : memref<1x64x128xf32, #tpu.memory_space<vmem>>, vector<1x64x128xf32>
    %138 = vector.shape_cast %137 : vector<1x64x128xf32> to vector<64x128xf32>
    %139 = vector.shape_cast %136 : vector<64x128xf32> to vector<1x64x128xf32>
    tpu.vector_store %arg7[%c0_145, %c0_146, %c0_147], %139 {strides = array<i32>} : memref<1x64x128xf32, #tpu.memory_space<vmem>>, vector<1x64x128xf32>,
    return
  }
  func.func @transform_0(%arg0: i32) -> (i32, i32, i32, i32) {
    %c0_i32 = arith.constant 0 : i32
    %c0_i32_0 = arith.constant 0 : i32
    %c0_i32_1 = arith.constant 0 : i32
    %c0_i32_2 = arith.constant 0 : i32
    return %arg0, %c0_i32, %c0_i32_0, %c0_i32_1 : i32, i32, i32, i32
  }
  func.func @transform_1(%arg0: i32) -> (i32, i32, i32) {
    %c0_i32 = arith.constant 0 : i32
    %c0_i32_0 = arith.constant 0 : i32
    %c0_i32_1 = arith.constant 0 : i32
    %c0_i32_2 = arith.constant 0 : i32
    return %c0_i32, %c0_i32_0, %c0_i32_1 : i32, i32, i32
  }
  func.func @transform_2(%arg0: i32) -> (i32, i32) {
    %c0_i32 = arith.constant 0 : i32
    %c0_i32_0 = arith.constant 0 : i32
    %c0_i32_1 = arith.constant 0 : i32
    return %c0_i32, %c0_i32_0 : i32, i32
  }
  func.func @transform_3(%arg0: i32) -> (i32, i32, i32) {
    %c0_i32 = arith.constant 0 : i32
    %c0_i32_0 = arith.constant 0 : i32
    %c0_i32_1 = arith.constant 0 : i32
    %c0_i32_2 = arith.constant 0 : i32
    return %c0_i32, %c0_i32_0, %c0_i32_1 : i32, i32, i32
  }
  func.func @transform_4(%arg0: i32) -> (i32, i32) {
    %c0_i32 = arith.constant 0 : i32
    %c0_i32_0 = arith.constant 0 : i32
    %c0_i32_1 = arith.constant 0 : i32
    return %c0_i32, %c0_i32_0 : i32, i32
  }
  func.func @transform_5(%arg0: i32) -> (i32, i32) {
    %c0_i32 = arith.constant 0 : i32
    %c0_i32_0 = arith.constant 0 : i32
    %c0_i32_1 = arith.constant 0 : i32
    return %c0_i32, %c0_i32_0 : i32, i32
  }
  func.func @transform_6(%arg0: i32) -> (i32, i32, i32) {
    %c0_i32 = arith.constant 0 : i32
    %c0_i32_0 = arith.constant 0 : i32
    %c0_i32_1 = arith.constant 0 : i32
    return %arg0, %c0_i32, %c0_i32_0 : i32, i32, i32
  }
}

module attributes {stable_mosaic.version = 11 : i64} {
  func.func @_fc_kernel(%arg0: memref<2x2048xf32, #tpu.memory_space<vmem>>, %arg1: memref<2048x128xf32, #tpu.memory_space<vmem>>, %arg2: memref<1x128xf32, #tpu.memory_space<vmem>>, %arg3: memref<2x128xf32, #tpu.memory_space<vmem>>) attributes {dimension_semantics = [], scalar_prefetch = 0 : i64, scratch_operands = 0 : i64, tpu.core_type = #tpu.core_type<tc>} {
    %c0 = arith.constant 0 : index
    %c0_0 = arith.constant 0 : index
    %0 = vector.load %arg0[%c0, %c0_0] : memref<2x2048xf32, #tpu.memory_space<vmem>>, vector<2x2048xf32>
    %c0_1 = arith.constant 0 : index
    %c0_2 = arith.constant 0 : index
    %1 = vector.load %arg1[%c0_1, %c0_2] : memref<2048x128xf32, #tpu.memory_space<vmem>>, vector<2048x128xf32>
    %cst = arith.constant dense<0.000000e+00> : vector<2x128xf32>
    %2 = tpu.matmul %0, %1, %cst {dimension_numbers = #tpu.dot_dimension_numbers<[1], [0], [0], [1], [0, 0, 1, 1], [], []>} : vector<2x2048xf32>, vector<2048x128xf32>, vector<2x128xf32> -> vector<2x128xf32>
    %c0_3 = arith.constant 0 : index
    %c0_4 = arith.constant 0 : index
    %3 = vector.load %arg2[%c0_3, %c0_4] : memref<1x128xf32, #tpu.memory_space<vmem>>, vector<1x128xf32>
    %4 = vector.broadcast %3 : vector<1x128xf32> to vector<2x128xf32>
    %5 = arith.addf %2, %4 : vector<2x128xf32>
    %c0_5 = arith.constant 0 : index
    %c0_6 = arith.constant 0 : index
    %6 = vector.load %arg3[%c0_5, %c0_6] : memref<2x128xf32, #tpu.memory_space<vmem>>, vector<2x128xf32>
    tpu.vector_store %arg3[%c0_5, %c0_6], %5 {strides = array<i32>} : memref<2x128xf32, #tpu.memory_space<vmem>>, vector<2x128xf32>,
    return
  }
}

</mosaic_0001>

<bundles_post_ra>
// kernel: tinyvgg_forward.5
= control target key start
LH: loop header
LB: loop body
LE: loop exit
PB: predicated region body
PF: predicated region fallthrough
CT: control target
= control target key end

     0   :  { %8 = vsyncpa [#allocation3], 0  ;;  %s794_s0 = inlined_call_operand.vmem [shape: f32[2,2048], index: 0, kind: input, shape index: {}]   ;;  %s795_s1 = inlined_call_operand.hbm [shape: f32[2048,128], index: 1, kind: input, shape index: {}]   ;;  %s796_s2 = inlined_call_operand.vmem [shape: f32[1,128], index: 2, kind: input, shape index: {}]   ;;  %s797_s3 = inlined_call_operand.hbm [shape: f32[2,128], index: 3, kind: output, shape index: {}]  }
   0x1   :  { %9 = vsyncpa [#allocation4], 0  ;;  %s16_s14 = sshll.u32 %s795_s1, 4  ;;  %s731_s15 = smov [#allocation2]   ;;  %s17_s14 = int_to_ptr.hbm [resolvable:$true] %s16_s14 }
   0x2   :  { %s18_s16 = sshll.u32 %s731_s15, 4  ;;  %s732_s17 = smov 128   ;;  %s19_s16 = int_to_ptr.vmem [resolvable:$true] %s18_s16 }
   0x3   :  { %s733_s18 = smov 8  }
   0x4   :  { %24 = dma.hbm_to_vmem [thread:$0]  %s17_s14, 32768, %s19_s16, [#allocation3], %s732_s17, %s732_s17, %s733_s18  }
   0x5   :  { %727 = dma.done.wait [#allocation3], 32768  }
   0x6   :  { %728 = vsyncadd [#allocation3], 4294934528  ;;  %v50_v0 = vld [vmem:[#allocation2 + $0x78] sm:$0xff]  ;;  %v49_v2 = vld [vmem:[#allocation2 + $0x70] sm:$0xff]  ;;  %s664_s30 = sshll.u32 %s797_s3, 4  ;;  %s665_s30 = int_to_ptr.hbm [resolvable:$true] %s664_s30 }
   0x7   :  { %v82_v1 = vld [vmem:[#allocation2 + $0x178] sm:$0xff]  ;;  %336 = vmatpush.msra.mxu0 %v50_v0  ;;  %v81_v4 = vld [vmem:[#allocation2 + $0x170] sm:$0xff]  ;;  %v48_v6 = vld [vmem:[#allocation2 + $0x68] sm:$0xff] }
   0x8   :  { %376 = vmatpush.msra.mxu2 %v82_v1  ;;  %v66_v3 = vld [vmem:[#allocation2 + $0xf8] sm:$0xff]  ;;  %v65_v7 = vld [vmem:[#allocation2 + $0xf0] sm:$0xff]  ;;  %v80_v8 = vld [vmem:[#allocation2 + $0x168] sm:$0xff] }
   0x9   :  { %v98_v5 = vld [vmem:[#allocation2 + $0x1f8] sm:$0xff]  ;;  %356 = vmatpush.msra.mxu1 %v66_v3  ;;  %337 = vmatpush.msra.mxu0 %v49_v2  ;;  %v97_v9 = vld [vmem:[#allocation2 + $0x1f0] sm:$0xff]  ;;  %v64_v10 = vld [vmem:[#allocation2 + $0xe8] sm:$0xff] }
   0xa   :  { %396 = vmatpush.msra.mxu3 %v98_v5  ;;  %377 = vmatpush.msra.mxu2 %v81_v4  ;;  %v47_v11 = vld [vmem:[#allocation2 + $0x60] sm:$0xff]  ;;  %v96_v13 = vld [vmem:[#allocation2 + $0x1e8] sm:$0xff]  ;;  %v46_v16 = vld [vmem:[#allocation2 + $0x58] sm:$0xff] }
   0xb   :  { %357 = vmatpush.msra.mxu1 %v65_v7  ;;  %v79_v12 = vld [vmem:[#allocation2 + $0x160] sm:$0xff]  ;;  %338 = vmatpush.msra.mxu0 %v48_v6  ;;  %v78_v17 = vld [vmem:[#allocation2 + $0x158] sm:$0xff]  ;;  %v45_v20 = vld [vmem:[#allocation2 + $0x50] sm:$0xff] }
   0xc   :  { %397 = vmatpush.msra.mxu3 %v97_v9  ;;  %378 = vmatpush.msra.mxu2 %v80_v8  ;;  %v63_v14 = vld [vmem:[#allocation2 + $0xe0] sm:$0xff]  ;;  %v62_v18 = vld [vmem:[#allocation2 + $0xd8] sm:$0xff]  ;;  %v77_v21 = vld [vmem:[#allocation2 + $0x150] sm:$0xff] }
   0xd   :  { %v95_v15 = vld [vmem:[#allocation2 + $0x1e0] sm:$0xff]  ;;  %358 = vmatpush.msra.mxu1 %v64_v10  ;;  %339 = vmatpush.msra.mxu0 %v47_v11  ;;  %v94_v19 = vld [vmem:[#allocation2 + $0x1d8] sm:$0xff]  ;;  %v61_v22 = vld [vmem:[#allocation2 + $0xd0] sm:$0xff] }
   0xe   :  { %398 = vmatpush.msra.mxu3 %v96_v13  ;;  %379 = vmatpush.msra.mxu2 %v79_v12  ;;  %v93_v23 = vld [vmem:[#allocation2 + $0x1d0] sm:$0xff]  ;;  %v44_v24 = vld [vmem:[#allocation2 + $0x48] sm:$0xff]  ;;  %v43_v28 = vld [vmem:[#allocation2 + $0x40] sm:$0xff] }
   0xf   :  { %359 = vmatpush.msra.mxu1 %v63_v14  ;;  %340 = vmatpush.msra.mxu0 %v46_v16  ;;  %v76_v25 = vld [vmem:[#allocation2 + $0x148] sm:$0xff]  ;;  %v75_v29 = vld [vmem:[#allocation2 + $0x140] sm:$0xff]  ;;  %v42_v32 = vld [vmem:[#allocation2 + $0x38] sm:$0xff] }
  0x10   :  { %399 = vmatpush.msra.mxu3 %v95_v15  ;;  %380 = vmatpush.msra.mxu2 %v78_v17  ;;  %v60_v26 = vld [vmem:[#allocation2 + $0xc8] sm:$0xff]  ;;  %v59_v30 = vld [vmem:[#allocation2 + $0xc0] sm:$0xff]  ;;  %v74_v33 = vld [vmem:[#allocation2 + $0x138] sm:$0xff] }
  0x11   :  { %360 = vmatpush.msra.mxu1 %v62_v18  ;;  %341 = vmatpush.msra.mxu0 %v45_v20  ;;  %v92_v27 = vld [vmem:[#allocation2 + $0x1c8] sm:$0xff]  ;;  %v91_v31 = vld [vmem:[#allocation2 + $0x1c0] sm:$0xff]  ;;  %v58_v34 = vld [vmem:[#allocation2 + $0xb8] sm:$0xff] }
  0x12   :  { %400 = vmatpush.msra.mxu3 %v94_v19  ;;  %381 = vmatpush.msra.mxu2 %v77_v21  ;;  %v90_v35 = vld [vmem:[#allocation2 + $0x1b8] sm:$0xff]  ;;  %v41_v36 = vld [vmem:[#allocation2 + $0x30] sm:$0xff]  ;;  %v40_v40 = vld [vmem:[#allocation2 + $0x28] sm:$0xff] }
  0x13   :  { %361 = vmatpush.msra.mxu1 %v61_v22  ;;  %342 = vmatpush.msra.mxu0 %v44_v24  ;;  %v73_v37 = vld [vmem:[#allocation2 + $0x130] sm:$0xff]  ;;  %v72_v41 = vld [vmem:[#allocation2 + $0x128] sm:$0xff]  ;;  %v39_v44 = vld [vmem:[#allocation2 + $0x20] sm:$0xff] }
  0x14   :  { %401 = vmatpush.msra.mxu3 %v93_v23  ;;  %382 = vmatpush.msra.mxu2 %v76_v25  ;;  %v57_v38 = vld [vmem:[#allocation2 + $0xb0] sm:$0xff]  ;;  %v56_v42 = vld [vmem:[#allocation2 + $0xa8] sm:$0xff]  ;;  %v71_v45 = vld [vmem:[#allocation2 + $0x120] sm:$0xff] }
  0x15   :  { %362 = vmatpush.msra.mxu1 %v60_v26  ;;  %343 = vmatpush.msra.mxu0 %v43_v28  ;;  %v89_v39 = vld [vmem:[#allocation2 + $0x1b0] sm:$0xff]  ;;  %v88_v43 = vld [vmem:[#allocation2 + $0x1a8] sm:$0xff]  ;;  %v55_v46 = vld [vmem:[#allocation2 + $0xa0] sm:$0xff] }
  0x16   :  { %402 = vmatpush.msra.mxu3 %v92_v27  ;;  %383 = vmatpush.msra.mxu2 %v75_v29  ;;  %v87_v47 = vld [vmem:[#allocation2 + $0x1a0] sm:$0xff]  ;;  %v38_v48 = vld [vmem:[#allocation2 + $0x18] sm:$0xff]  ;;  %v37_v52 = vld [vmem:[#allocation2 + $0x10] sm:$0xff] }
  0x17   :  { %363 = vmatpush.msra.mxu1 %v59_v30  ;;  %344 = vmatpush.msra.mxu0 %v42_v32  ;;  %v70_v49 = vld [vmem:[#allocation2 + $0x118] sm:$0xff]  ;;  %v69_v53 = vld [vmem:[#allocation2 + $0x110] sm:$0xff]  ;;  %v36_v56 = vld [vmem:[#allocation2 + $0x8] sm:$0xff] }
  0x18   :  { %403 = vmatpush.msra.mxu3 %v91_v31  ;;  %384 = vmatpush.msra.mxu2 %v74_v33  ;;  %v54_v50 = vld [vmem:[#allocation2 + $0x98] sm:$0xff]  ;;  %v53_v54 = vld [vmem:[#allocation2 + $0x90] sm:$0xff]  ;;  %v68_v57 = vld [vmem:[#allocation2 + $0x108] sm:$0xff] }
  0x19   :  { %364 = vmatpush.msra.mxu1 %v58_v34  ;;  %345 = vmatpush.msra.mxu0 %v41_v36  ;;  %v86_v51 = vld [vmem:[#allocation2 + $0x198] sm:$0xff]  ;;  %v85_v55 = vld [vmem:[#allocation2 + $0x190] sm:$0xff]  ;;  %v52_v58 = vld [vmem:[#allocation2 + $0x88] sm:$0xff] }
  0x1a   :  { %404 = vmatpush.msra.mxu3 %v90_v35  ;;  %385 = vmatpush.msra.mxu2 %v73_v37  ;;  %v84_v59 = vld [vmem:[#allocation2 + $0x188] sm:$0xff]  ;;  %v35_v60 = vld [vmem:[#allocation2] sm:$0xff]  ;;  %v114_v62 = vld [vmem:[#allocation2 + $0x278] sm:$0xff] }
  0x1b   :  { %365 = vmatpush.msra.mxu1 %v57_v38  ;;  %346 = vmatpush.msra.mxu0 %v40_v40  ;;  %v67_v61 = vld [vmem:[#allocation2 + $0x100] sm:$0xff]  ;;  %v146_v63 = vld [vmem:[#allocation2 + $0x378] sm:$0xff]  ;;  %v113_v2 = vld [vmem:[#allocation2 + $0x270] sm:$0xff] }
  0x1c   :  { %405 = vmatpush.msra.mxu3 %v89_v39  ;;  %386 = vmatpush.msra.mxu2 %v72_v41  ;;  %v51_v0 = vld [vmem:[#allocation2 + $0x80] sm:$0xff]  ;;  %v130_v3 = vld [vmem:[#allocation2 + $0x2f8] sm:$0xff]  ;;  %v145_v4 = vld [vmem:[#allocation2 + $0x370] sm:$0xff] }
  0x1d   :  { %366 = vmatpush.msra.mxu1 %v56_v42  ;;  %347 = vmatpush.msra.mxu0 %v39_v44  ;;  %v83_v1 = vld [vmem:[#allocation2 + $0x180] sm:$0xff]  ;;  %v162_v5 = vld [vmem:[#allocation2 + $0x3f8] sm:$0xff]  ;;  %v112_v6 = vld [vmem:[#allocation2 + $0x268] sm:$0xff] }
  0x1e   :  { %406 = vmatpush.msra.mxu3 %v88_v43  ;;  %387 = vmatpush.msra.mxu2 %v71_v45  ;;  %v129_v7 = vld [vmem:[#allocation2 + $0x2f0] sm:$0xff]  ;;  %v144_v8 = vld [vmem:[#allocation2 + $0x368] sm:$0xff]  ;;  %v111_v10 = vld [vmem:[#allocation2 + $0x260] sm:$0xff] }
  0x1f   :  { %367 = vmatpush.msra.mxu1 %v55_v46  ;;  %348 = vmatpush.msra.mxu0 %v38_v48  ;;  %v161_v9 = vld [vmem:[#allocation2 + $0x3f0] sm:$0xff]  ;;  %v128_v11 = vld [vmem:[#allocation2 + $0x2e8] sm:$0xff]  ;;  %v143_v12 = vld [vmem:[#allocation2 + $0x360] sm:$0xff] }
  0x20   :  { %407 = vmatpush.msra.mxu3 %v87_v47  ;;  %388 = vmatpush.msra.mxu2 %v70_v49  ;;  %v160_v13 = vld [vmem:[#allocation2 + $0x3e8] sm:$0xff]  ;;  %v110_v14 = vld [vmem:[#allocation2 + $0x258] sm:$0xff]  ;;  %v127_v15 = vld [vmem:[#allocation2 + $0x2e0] sm:$0xff] }
  0x21   :  { %368 = vmatpush.msra.mxu1 %v54_v50  ;;  %349 = vmatpush.msra.mxu0 %v37_v52  ;;  %v142_v16 = vld [vmem:[#allocation2 + $0x358] sm:$0xff]  ;;  %v159_v17 = vld [vmem:[#allocation2 + $0x3e0] sm:$0xff]  ;;  %v109_v18 = vld [vmem:[#allocation2 + $0x250] sm:$0xff] }
  0x22   :  { %408 = vmatpush.msra.mxu3 %v86_v51  ;;  %389 = vmatpush.msra.mxu2 %v69_v53  ;;  %v126_v19 = vld [vmem:[#allocation2 + $0x2d8] sm:$0xff]  ;;  %v141_v20 = vld [vmem:[#allocation2 + $0x350] sm:$0xff]  ;;  %v108_v22 = vld [vmem:[#allocation2 + $0x248] sm:$0xff] }
  0x23   :  { %369 = vmatpush.msra.mxu1 %v53_v54  ;;  %350 = vmatpush.msra.mxu0 %v36_v56  ;;  %v158_v21 = vld [vmem:[#allocation2 + $0x3d8] sm:$0xff]  ;;  %v125_v23 = vld [vmem:[#allocation2 + $0x2d0] sm:$0xff]  ;;  %v140_v24 = vld [vmem:[#allocation2 + $0x348] sm:$0xff] }
  0x24   :  { %409 = vmatpush.msra.mxu3 %v85_v55  ;;  %390 = vmatpush.msra.mxu2 %v68_v57  ;;  %v157_v25 = vld [vmem:[#allocation2 + $0x3d0] sm:$0xff]  ;;  %v31_v26 = vld [vmem:[%s794_s0] sm:$0xff]  ;;  %v107_v27 = vld [vmem:[#allocation2 + $0x240] sm:$0xff] }
  0x25   :  { %370 = vmatpush.msra.mxu1 %v52_v58  ;;  %351 = vmatpush.msra.mxu0 %v35_v60  ;;  %v124_v28 = vld [vmem:[#allocation2 + $0x2c8] sm:$0xff]  ;;  %299 = vst [vmem:[#allocation1] ss:$4 sm:$0xff] %v31_v26  ;;  %v139_v29 = vld [vmem:[#allocation2 + $0x340] sm:$0xff]  ;;  %v106_v31 = vld [vmem:[#allocation2 + $0x238] sm:$0xff] }
  0x26   :  { %410 = vmatpush.msra.mxu3 %v84_v59  ;;  %391 = vmatpush.msra.mxu2 %v67_v61  ;;  %v156_v30 = vld [vmem:[#allocation2 + $0x3c8] sm:$0xff]  ;;  %v123_v32 = vld [vmem:[#allocation2 + $0x2c0] sm:$0xff]  ;;  %v138_v33 = vld [vmem:[#allocation2 + $0x338] sm:$0xff] }
  0x27   :  { %416 = vmatpush.msrb.mxu0 %v114_v62  ;;  %371 = vmatpush.msra.mxu1 %v51_v0  ;;  %v155_v34 = vld [vmem:[#allocation2 + $0x3c0] sm:$0xff]  ;;  %v105_v35 = vld [vmem:[#allocation2 + $0x230] sm:$0xff]  ;;  %v122_v36 = vld [vmem:[#allocation2 + $0x2b8] sm:$0xff] }
  0x28   :  { %456 = vmatpush.msrb.mxu2 %v146_v63  ;;  %411 = vmatpush.msra.mxu3 %v83_v1  ;;  %v137_v37 = vld [vmem:[#allocation2 + $0x330] sm:$0xff]  ;;  %v154_v38 = vld [vmem:[#allocation2 + $0x3b8] sm:$0xff]  ;;  %v104_v39 = vld [vmem:[#allocation2 + $0x228] sm:$0xff] }
  0x29   :  { %417 = vmatpush.msrb.mxu0 %v113_v2  ;;  %436 = vmatpush.msrb.mxu1 %v130_v3  ;;  %v121_v40 = vld [vmem:[#allocation2 + $0x2b0] sm:$0xff]  ;;  %v136_v41 = vld [vmem:[#allocation2 + $0x328] sm:$0xff]  ;;  %v32_v43 = vld [vmem:[%s794_s0 + $0x8] sm:$0xff] }
  0x2a   :  { %457 = vmatpush.msrb.mxu2 %v145_v4  ;;  %476 = vmatpush.msrb.mxu3 %v162_v5  ;;  %v153_v42 = vld [vmem:[#allocation2 + $0x3b0] sm:$0xff]  ;;  %v103_v44 = vld [vmem:[#allocation2 + $0x220] sm:$0xff]  ;;  %v120_v45 = vld [vmem:[#allocation2 + $0x2a8] sm:$0xff]  ;;  %301 = vst [vmem:[#allocation1 + $0x20] ss:$4 sm:$0xff] %v32_v43 }
  0x2b   :  { %418 = vmatpush.msrb.mxu0 %v112_v6  ;;  %437 = vmatpush.msrb.mxu1 %v129_v7  ;;  %v33_v46 = vld [vmem:[%s794_s0 + $0x10] sm:$0xff]  ;;  %v135_v47 = vld [vmem:[#allocation2 + $0x320] sm:$0xff]  ;;  %v102_v53 = vld [vmem:[#allocation2 + $0x218] sm:$0xff] }
  0x2c   :  { %458 = vmatpush.msrb.mxu2 %v144_v8  ;;  %477 = vmatpush.msrb.mxu3 %v161_v9  ;;  %v302_v48 = vld.sshfl [vmem:[#allocation1] sm:$0xff pattern:$0x73625140]  ;;  %v304_v49 = vld.sshfl [vmem:[#allocation1 + $0x10] sm:$0xff pattern:$0x73625140] }
  0x2d   :  { %419 = vmatpush.msrb.mxu0 %v111_v10  ;;  %438 = vmatpush.msrb.mxu1 %v128_v11  ;;  %v767_v50 = vld.sshfl [vmem:[#allocation1 + $0x8] sm:$0xff pattern:$0x73625140]  ;;  %v769_v51 = vld.sshfl [vmem:[#allocation1 + $0x18] sm:$0xff pattern:$0x73625140] }
  0x2e   :  { %459 = vmatpush.msrb.mxu2 %v143_v12  ;;  %478 = vmatpush.msrb.mxu3 %v160_v13  ;;  %v152_v52 = vld [vmem:[#allocation2 + $0x3a8] sm:$0xff]  ;;  %v119_v54 = vld [vmem:[#allocation2 + $0x2a0] sm:$0xff]  ;;  %310 = vst [vmem:[#allocation1] ss:$4 sm:$0xff] %v33_v46  ;;  %v134_v55 = vld [vmem:[#allocation2 + $0x318] sm:$0xff] }
  0x2f   :  { %420 = vmatpush.msrb.mxu0 %v110_v14  ;;  %439 = vmatpush.msrb.mxu1 %v127_v15  ;;  %v151_v56 = vld [vmem:[#allocation2 + $0x3a0] sm:$0xff]  ;;  %v101_v57 = vld [vmem:[#allocation2 + $0x210] sm:$0xff]  ;;  %v118_v58 = vld [vmem:[#allocation2 + $0x298] sm:$0xff] }
  0x30   :  { %460 = vmatpush.msrb.mxu2 %v142_v16  ;;  %479 = vmatpush.msrb.mxu3 %v159_v17  ;;  %v133_v59 = vld [vmem:[#allocation2 + $0x310] sm:$0xff]  ;;  %v150_v60 = vld [vmem:[#allocation2 + $0x398] sm:$0xff]  ;;  %v100_v61 = vld [vmem:[#allocation2 + $0x208] sm:$0xff] }
  0x31   :  { %421 = vmatpush.msrb.mxu0 %v109_v18  ;;  %440 = vmatpush.msrb.mxu1 %v126_v19  ;;  %v117_v62 = vld [vmem:[#allocation2 + $0x290] sm:$0xff]  ;;  %v774_v0 = vld.sshfl [vmem:[#allocation1 + $0x30] sm:$0xff pattern:$0x73625140]  ;;  %v99_v6 = vld [vmem:[#allocation2 + $0x200] sm:$0xff] }
  0x32   :  { %461 = vmatpush.msrb.mxu2 %v141_v20  ;;  %480 = vmatpush.msrb.mxu3 %v158_v21  ;;  %v34_v63 = vld [vmem:[%s794_s0 + $0x18] sm:$0xff]  ;;  %v776_v1 = vld.sshfl [vmem:[#allocation1 + $0x20] sm:$0xff pattern:$0x73625140]  ;;  %v132_v4 = vld [vmem:[#allocation2 + $0x308] sm:$0xff] }
  0x33   :  { %422 = vmatpush.msrb.mxu0 %v108_v22  ;;  %441 = vmatpush.msrb.mxu1 %v125_v23  ;;  %v778_v2 = vld.sshfl [vmem:[#allocation1 + $0x38] sm:$0xff pattern:$0x73625140]  ;;  %v780_v3 = vld.sshfl [vmem:[#allocation1 + $0x28] sm:$0xff pattern:$0x73625140] }
  0x34   :  { %462 = vmatpush.msrb.mxu2 %v140_v24  ;;  %481 = vmatpush.msrb.mxu3 %v157_v25  ;;  %v149_v5 = vld [vmem:[#allocation2 + $0x390] sm:$0xff]  ;;  %311 = vst [vmem:[#allocation1 + $0x20] ss:$4 sm:$0xff] %v34_v63  ;;  %v116_v7 = vld [vmem:[#allocation2 + $0x288] sm:$0xff]  ;;  %v131_v8 = vld [vmem:[#allocation2 + $0x300] sm:$0xff] }
  0x35   :  { %423 = vmatpush.msrb.mxu0 %v107_v27  ;;  %442 = vmatpush.msrb.mxu1 %v124_v28  ;;  %v148_v9 = vld [vmem:[#allocation2 + $0x388] sm:$0xff]  ;;  %v178_v10 = vld [vmem:[#allocation2 + $0x478] sm:$0xff]  ;;  %v115_v12 = vld [vmem:[#allocation2 + $0x280] sm:$0xff] }
  0x36   :  { %463 = vmatpush.msrb.mxu2 %v139_v29  ;;  %482 = vmatpush.msrb.mxu3 %v156_v30  ;;  %v210_v11 = vld [vmem:[#allocation2 + $0x578] sm:$0xff]  ;;  %v147_v13 = vld [vmem:[#allocation2 + $0x380] sm:$0xff]  ;;  %v177_v14 = vld [vmem:[#allocation2 + $0x470] sm:$0xff] }
  0x37   :  { %424 = vmatpush.msrb.mxu0 %v106_v31  ;;  %443 = vmatpush.msrb.mxu1 %v123_v32  ;;  %v194_v15 = vld [vmem:[#allocation2 + $0x4f8] sm:$0xff]  ;;  %v209_v16 = vld [vmem:[#allocation2 + $0x570] sm:$0xff]  ;;  %v176_v18 = vld [vmem:[#allocation2 + $0x468] sm:$0xff] }
  0x38   :  { %464 = vmatpush.msrb.mxu2 %v138_v33  ;;  %483 = vmatpush.msrb.mxu3 %v155_v34  ;;  %v226_v17 = vld [vmem:[#allocation2 + $0x5f8] sm:$0xff]  ;;  %v193_v19 = vld [vmem:[#allocation2 + $0x4f0] sm:$0xff]  ;;  %v208_v20 = vld [vmem:[#allocation2 + $0x568] sm:$0xff] }
  0x39   :  { %425 = vmatpush.msrb.mxu0 %v105_v35  ;;  %444 = vmatpush.msrb.mxu1 %v122_v36  ;;  %v225_v21 = vld [vmem:[#allocation2 + $0x5f0] sm:$0xff]  ;;  %v175_v22 = vld [vmem:[#allocation2 + $0x460] sm:$0xff]  ;;  %v192_v23 = vld [vmem:[#allocation2 + $0x4e8] sm:$0xff] }
  0x3a   :  { %465 = vmatpush.msrb.mxu2 %v137_v37  ;;  %484 = vmatpush.msrb.mxu3 %v154_v38  ;;  %v207_v24 = vld [vmem:[#allocation2 + $0x560] sm:$0xff]  ;;  %v224_v25 = vld [vmem:[#allocation2 + $0x5e8] sm:$0xff]  ;;  %v174_v26 = vld [vmem:[#allocation2 + $0x458] sm:$0xff] }
  0x3b   :  { %426 = vmatpush.msrb.mxu0 %v104_v39  ;;  %445 = vmatpush.msrb.mxu1 %v121_v40  ;;  %v191_v27 = vld [vmem:[#allocation2 + $0x4e0] sm:$0xff]  ;;  %v206_v28 = vld [vmem:[#allocation2 + $0x558] sm:$0xff]  ;;  %v173_v30 = vld [vmem:[#allocation2 + $0x450] sm:$0xff] }
  0x3c   :  { %466 = vmatpush.msrb.mxu2 %v136_v41  ;;  %485 = vmatpush.msrb.mxu3 %v153_v42  ;;  %v223_v29 = vld [vmem:[#allocation2 + $0x5e0] sm:$0xff]  ;;  %v190_v31 = vld [vmem:[#allocation2 + $0x4d8] sm:$0xff]  ;;  %v205_v32 = vld [vmem:[#allocation2 + $0x550] sm:$0xff] }
  0x3d   :  { %427 = vmatpush.msrb.mxu0 %v103_v44  ;;  %446 = vmatpush.msrb.mxu1 %v120_v45  ;;  %v222_v33 = vld [vmem:[#allocation2 + $0x5d8] sm:$0xff]  ;;  %v172_v34 = vld [vmem:[#allocation2 + $0x448] sm:$0xff]  ;;  %v189_v35 = vld [vmem:[#allocation2 + $0x4d0] sm:$0xff] }
  0x3e   :  { %467 = vmatpush.msrb.mxu2 %v135_v47  ;;  %486 = vmatpush.msrb.mxu3 %v152_v52  ;;  %v204_v36 = vld [vmem:[#allocation2 + $0x548] sm:$0xff]  ;;  %v221_v37 = vld [vmem:[#allocation2 + $0x5d0] sm:$0xff]  ;;  %v171_v38 = vld [vmem:[#allocation2 + $0x440] sm:$0xff] }
  0x3f   :  { %428 = vmatpush.msrb.mxu0 %v102_v53  ;;  %447 = vmatpush.msrb.mxu1 %v119_v54  ;;  %v188_v39 = vld [vmem:[#allocation2 + $0x4c8] sm:$0xff]  ;;  %v203_v40 = vld [vmem:[#allocation2 + $0x540] sm:$0xff]  ;;  %v170_v42 = vld [vmem:[#allocation2 + $0x438] sm:$0xff] }
  0x40   :  { %468 = vmatpush.msrb.mxu2 %v134_v55  ;;  %487 = vmatpush.msrb.mxu3 %v151_v56  ;;  %v220_v41 = vld [vmem:[#allocation2 + $0x5c8] sm:$0xff]  ;;  %v187_v43 = vld [vmem:[#allocation2 + $0x4c0] sm:$0xff]  ;;  %v202_v44 = vld [vmem:[#allocation2 + $0x538] sm:$0xff] }
  0x41   :  { %429 = vmatpush.msrb.mxu0 %v101_v57  ;;  %448 = vmatpush.msrb.mxu1 %v118_v58  ;;  %v219_v45 = vld [vmem:[#allocation2 + $0x5c0] sm:$0xff]  ;;  %v169_v46 = vld [vmem:[#allocation2 + $0x430] sm:$0xff]  ;;  %v186_v47 = vld [vmem:[#allocation2 + $0x4b8] sm:$0xff] }
  0x42   :  { %469 = vmatpush.msrb.mxu2 %v133_v59  ;;  %488 = vmatpush.msrb.mxu3 %v150_v60  ;;  %v200_v52 = vld [vmem:[#allocation2 + $0x528] sm:$0xff]  ;;  %v217_v53 = vld [vmem:[#allocation2 + $0x5b0] sm:$0xff]  ;;  %v167_v54 = vld [vmem:[#allocation2 + $0x420] sm:$0xff] }
  0x43   :  { %430 = vmatpush.msrb.mxu0 %v100_v61  ;;  %449 = vmatpush.msrb.mxu1 %v117_v62  ;;  %v184_v55 = vld [vmem:[#allocation2 + $0x4a8] sm:$0xff]  ;;  %v199_v56 = vld [vmem:[#allocation2 + $0x520] sm:$0xff]  ;;  %v166_v58 = vld [vmem:[#allocation2 + $0x418] sm:$0xff] }
  0x44   :  { %470 = vmatpush.msrb.mxu2 %v132_v4  ;;  %489 = vmatpush.msrb.mxu3 %v149_v5  ;;  %v216_v57 = vld [vmem:[#allocation2 + $0x5a8] sm:$0xff]  ;;  %v183_v59 = vld [vmem:[#allocation2 + $0x4a0] sm:$0xff]  ;;  %v198_v60 = vld [vmem:[#allocation2 + $0x518] sm:$0xff] }
  0x45   :  { %431 = vmatpush.msrb.mxu0 %v99_v6  ;;  %450 = vmatpush.msrb.mxu1 %v116_v7  ;;  %v215_v61 = vld [vmem:[#allocation2 + $0x5a0] sm:$0xff]  ;;  %v165_v62 = vld [vmem:[#allocation2 + $0x410] sm:$0xff]  ;;  %v182_v63 = vld [vmem:[#allocation2 + $0x498] sm:$0xff] }
  0x46   :  { %471 = vmatpush.msrb.mxu2 %v131_v8  ;;  %490 = vmatpush.msrb.mxu3 %v148_v9  ;;  %v196_v4 = vld [vmem:[#allocation2 + $0x508] sm:$0xff]  ;;  %v213_v5 = vld [vmem:[#allocation2 + $0x590] sm:$0xff]  ;;  %v163_v6 = vld [vmem:[#allocation2 + $0x400] sm:$0xff] }
  0x47   :  { %352 = vmatmul.f32.vlgmr.msra.gmra.mxu0 %v302_v48  ;;  %392 = vmatmul.f32.vlgmr.msra.gmra.mxu2 %v304_v49  ;;  %v201_v48 = vld [vmem:[#allocation2 + $0x530] sm:$0xff]  ;;  %v218_v49 = vld [vmem:[#allocation2 + $0x5b8] sm:$0xff]  ;;  %v180_v7 = vld [vmem:[#allocation2 + $0x488] sm:$0xff] }
  0x48   :  { %496 = vmatpush.msra.mxu0 %v178_v10  ;;  %536 = vmatpush.msra.mxu2 %v210_v11  ;;  %v195_v8 = vld [vmem:[#allocation2 + $0x500] sm:$0xff]  ;;  %v212_v9 = vld [vmem:[#allocation2 + $0x588] sm:$0xff]  ;;  %v312_v10 = vld.sshfl [vmem:[#allocation1] sm:$0xff pattern:$0x73625140] }
  0x49   :  { %451 = vmatpush.msrb.mxu1 %v115_v12  ;;  %491 = vmatpush.msrb.mxu3 %v147_v13  ;;  %v314_v11 = vld.sshfl [vmem:[#allocation1 + $0x10] sm:$0xff pattern:$0x73625140]  ;;  %v242_v12 = vld [vmem:[#allocation2 + $0x678] sm:$0xff] }
  0x4a   :  { %372 = vmatmul.f32.vlgmr.msra.gmra.mxu1 %v767_v50  ;;  %412 = vmatmul.f32.vlgmr.msra.gmra.mxu3 %v769_v51  ;;  %v168_v50 = vld [vmem:[#allocation2 + $0x428] sm:$0xff]  ;;  %v185_v51 = vld [vmem:[#allocation2 + $0x4b0] sm:$0xff]  ;;  %v274_v13 = vld [vmem:[#allocation2 + $0x778] sm:$0xff] }
  0x4b   :  { %497 = vmatpush.msra.mxu0 %v177_v14  ;;  %516 = vmatpush.msra.mxu1 %v194_v15  ;;  %v179_v14 = vld [vmem:[#allocation2 + $0x480] sm:$0xff] }
  0x4c   :  { %537 = vmatpush.msra.mxu2 %v209_v16  ;;  %556 = vmatpush.msra.mxu3 %v226_v17  ;;  %v211_v15 = vld [vmem:[#allocation2 + $0x580] sm:$0xff]  ;;  %v315_v17 = vld.sshfl [vmem:[#allocation1 + $0x18] sm:$0xff pattern:$0x73625140] }
  0x4d   :  { %498 = vmatpush.msra.mxu0 %v176_v18  ;;  %517 = vmatpush.msra.mxu1 %v193_v19  ;;  %v313_v16 = vld.sshfl [vmem:[#allocation1 + $0x8] sm:$0xff pattern:$0x73625140]  ;;  %v241_v18 = vld [vmem:[#allocation2 + $0x670] sm:$0xff]  ;;  %v258_v19 = vld [vmem:[#allocation2 + $0x6f8] sm:$0xff] }
  0x4e   :  { %538 = vmatpush.msra.mxu2 %v208_v20  ;;  %557 = vmatpush.msra.mxu3 %v225_v21  ;;  %v273_v20 = vld [vmem:[#allocation2 + $0x770] sm:$0xff]  ;;  %v290_v21 = vld [vmem:[#allocation2 + $0x7f8] sm:$0xff] }
  0x4f   :  { %499 = vmatpush.msra.mxu0 %v175_v22  ;;  %518 = vmatpush.msra.mxu1 %v192_v23  ;;  %v240_v22 = vld [vmem:[#allocation2 + $0x668] sm:$0xff]  ;;  %v257_v23 = vld [vmem:[#allocation2 + $0x6f0] sm:$0xff] }
  0x50   :  { %539 = vmatpush.msra.mxu2 %v207_v24  ;;  %558 = vmatpush.msra.mxu3 %v224_v25  ;;  %v272_v24 = vld [vmem:[#allocation2 + $0x768] sm:$0xff]  ;;  %v289_v25 = vld [vmem:[#allocation2 + $0x7f0] sm:$0xff] }
  0x51   :  { %472 = vmatmul.f32.vlgmr.msrb.gmra.mxu2 %v774_v0  ;;  %500 = vmatpush.msra.mxu0 %v174_v26  ;;  %v197_v0 = vld [vmem:[#allocation2 + $0x510] sm:$0xff]  ;;  %v239_v26 = vld [vmem:[#allocation2 + $0x660] sm:$0xff] }
  0x52   :  { %519 = vmatpush.msra.mxu1 %v191_v27  ;;  %540 = vmatpush.msra.mxu2 %v206_v28  ;;  %v256_v27 = vld [vmem:[#allocation2 + $0x6e8] sm:$0xff]  ;;  %v271_v28 = vld [vmem:[#allocation2 + $0x760] sm:$0xff] }
  0x53   :  { %559 = vmatpush.msra.mxu3 %v223_v29  ;;  %432 = vmatmul.f32.vlgmr.msrb.gmra.mxu0 %v776_v1  ;;  %v214_v1 = vld [vmem:[#allocation2 + $0x598] sm:$0xff]  ;;  %v288_v29 = vld [vmem:[#allocation2 + $0x7e8] sm:$0xff] }
  0x54   :  { %492 = vmatmul.f32.vlgmr.msrb.gmra.mxu3 %v778_v2  ;;  %501 = vmatpush.msra.mxu0 %v173_v30  ;;  %v164_v2 = vld [vmem:[#allocation2 + $0x408] sm:$0xff]  ;;  %v238_v30 = vld [vmem:[#allocation2 + $0x658] sm:$0xff] }
  0x55   :  { %520 = vmatpush.msra.mxu1 %v190_v31  ;;  %541 = vmatpush.msra.mxu2 %v205_v32  ;;  %v255_v31 = vld [vmem:[#allocation2 + $0x6e0] sm:$0xff]  ;;  %v270_v32 = vld [vmem:[#allocation2 + $0x758] sm:$0xff] }
  0x56   :  { %560 = vmatpush.msra.mxu3 %v222_v33  ;;  %452 = vmatmul.f32.vlgmr.msrb.gmra.mxu1 %v780_v3  ;;  %v181_v3 = vld [vmem:[#allocation2 + $0x490] sm:$0xff]  ;;  %v287_v33 = vld [vmem:[#allocation2 + $0x7e0] sm:$0xff] }
  0x57   :  { %502 = vmatpush.msra.mxu0 %v172_v34  ;;  %521 = vmatpush.msra.mxu1 %v189_v35  ;;  %v237_v34 = vld [vmem:[#allocation2 + $0x650] sm:$0xff]  ;;  %v254_v35 = vld [vmem:[#allocation2 + $0x6d8] sm:$0xff] }
  0x58   :  { %542 = vmatpush.msra.mxu2 %v204_v36  ;;  %561 = vmatpush.msra.mxu3 %v221_v37  ;;  %v269_v36 = vld [vmem:[#allocation2 + $0x750] sm:$0xff]  ;;  %v286_v37 = vld [vmem:[#allocation2 + $0x7d8] sm:$0xff] }
  0x59   :  { %503 = vmatpush.msra.mxu0 %v171_v38  ;;  %522 = vmatpush.msra.mxu1 %v188_v39  ;;  %v236_v38 = vld [vmem:[#allocation2 + $0x648] sm:$0xff]  ;;  %v253_v39 = vld [vmem:[#allocation2 + $0x6d0] sm:$0xff] }
  0x5a   :  { %543 = vmatpush.msra.mxu2 %v203_v40  ;;  %562 = vmatpush.msra.mxu3 %v220_v41  ;;  %v268_v40 = vld [vmem:[#allocation2 + $0x748] sm:$0xff]  ;;  %v285_v41 = vld [vmem:[#allocation2 + $0x7d0] sm:$0xff] }
  0x5b   :  { %504 = vmatpush.msra.mxu0 %v170_v42  ;;  %523 = vmatpush.msra.mxu1 %v187_v43  ;;  %v235_v42 = vld [vmem:[#allocation2 + $0x640] sm:$0xff]  ;;  %v252_v43 = vld [vmem:[#allocation2 + $0x6c8] sm:$0xff] }
  0x5c   :  { %544 = vmatpush.msra.mxu2 %v202_v44  ;;  %563 = vmatpush.msra.mxu3 %v219_v45  ;;  %v267_v44 = vld [vmem:[#allocation2 + $0x740] sm:$0xff]  ;;  %v284_v45 = vld [vmem:[#allocation2 + $0x7c8] sm:$0xff] }
  0x5d   :  { %505 = vmatpush.msra.mxu0 %v169_v46  ;;  %524 = vmatpush.msra.mxu1 %v186_v47  ;;  %v234_v46 = vld [vmem:[#allocation2 + $0x638] sm:$0xff]  ;;  %v251_v47 = vld [vmem:[#allocation2 + $0x6c0] sm:$0xff] }
  0x5e   :  { %545 = vmatpush.msra.mxu2 %v201_v48  ;;  %564 = vmatpush.msra.mxu3 %v218_v49  ;;  %v266_v48 = vld [vmem:[#allocation2 + $0x738] sm:$0xff]  ;;  %v283_v49 = vld [vmem:[#allocation2 + $0x7c0] sm:$0xff] }
  0x5f   :  { %506 = vmatpush.msra.mxu0 %v168_v50  ;;  %525 = vmatpush.msra.mxu1 %v185_v51  ;;  %v233_v50 = vld [vmem:[#allocation2 + $0x630] sm:$0xff]  ;;  %v250_v51 = vld [vmem:[#allocation2 + $0x6b8] sm:$0xff] }
  0x60   :  { %546 = vmatpush.msra.mxu2 %v200_v52  ;;  %565 = vmatpush.msra.mxu3 %v217_v53  ;;  %v265_v52 = vld [vmem:[#allocation2 + $0x730] sm:$0xff]  ;;  %v282_v53 = vld [vmem:[#allocation2 + $0x7b8] sm:$0xff] }
  0x61   :  { %507 = vmatpush.msra.mxu0 %v167_v54  ;;  %526 = vmatpush.msra.mxu1 %v184_v55  ;;  %v232_v54 = vld [vmem:[#allocation2 + $0x628] sm:$0xff]  ;;  %v249_v55 = vld [vmem:[#allocation2 + $0x6b0] sm:$0xff] }
  0x62   :  { %547 = vmatpush.msra.mxu2 %v199_v56  ;;  %566 = vmatpush.msra.mxu3 %v216_v57  ;;  %v264_v56 = vld [vmem:[#allocation2 + $0x728] sm:$0xff]  ;;  %v281_v57 = vld [vmem:[#allocation2 + $0x7b0] sm:$0xff] }
  0x63   :  { %508 = vmatpush.msra.mxu0 %v166_v58  ;;  %527 = vmatpush.msra.mxu1 %v183_v59  ;;  %v231_v58 = vld [vmem:[#allocation2 + $0x620] sm:$0xff]  ;;  %v248_v59 = vld [vmem:[#allocation2 + $0x6a8] sm:$0xff] }
  0x64   :  { %548 = vmatpush.msra.mxu2 %v198_v60  ;;  %567 = vmatpush.msra.mxu3 %v215_v61  ;;  %v263_v60 = vld [vmem:[#allocation2 + $0x720] sm:$0xff]  ;;  %v280_v61 = vld [vmem:[#allocation2 + $0x7a8] sm:$0xff] }
  0x65   :  { %509 = vmatpush.msra.mxu0 %v165_v62  ;;  %528 = vmatpush.msra.mxu1 %v182_v63  ;;  %v230_v62 = vld [vmem:[#allocation2 + $0x618] sm:$0xff]  ;;  %v247_v63 = vld [vmem:[#allocation2 + $0x6a0] sm:$0xff] }
  0x66   :  { %549 = vmatpush.msra.mxu2 %v197_v0  ;;  %568 = vmatpush.msra.mxu3 %v214_v1  ;;  %v262_v0 = vld [vmem:[#allocation2 + $0x718] sm:$0xff]  ;;  %v279_v1 = vld [vmem:[#allocation2 + $0x7a0] sm:$0xff] }
  0x67   :  { %510 = vmatpush.msra.mxu0 %v164_v2  ;;  %529 = vmatpush.msra.mxu1 %v181_v3  ;;  %v229_v2 = vld [vmem:[#allocation2 + $0x610] sm:$0xff]  ;;  %v246_v3 = vld [vmem:[#allocation2 + $0x698] sm:$0xff] }
  0x68   :  { %550 = vmatpush.msra.mxu2 %v196_v4  ;;  %569 = vmatpush.msra.mxu3 %v213_v5  ;;  %v261_v4 = vld [vmem:[#allocation2 + $0x710] sm:$0xff]  ;;  %v278_v5 = vld [vmem:[#allocation2 + $0x798] sm:$0xff] }
  0x69   :  { %511 = vmatpush.msra.mxu0 %v163_v6  ;;  %530 = vmatpush.msra.mxu1 %v180_v7  ;;  %v228_v6 = vld [vmem:[#allocation2 + $0x608] sm:$0xff]  ;;  %v245_v7 = vld [vmem:[#allocation2 + $0x690] sm:$0xff] }
  0x6a   :  { %551 = vmatpush.msra.mxu2 %v195_v8  ;;  %570 = vmatpush.msra.mxu3 %v212_v9  ;;  %v260_v8 = vld [vmem:[#allocation2 + $0x708] sm:$0xff]  ;;  %v277_v9 = vld [vmem:[#allocation2 + $0x790] sm:$0xff] }
  0x6b   :  { %512 = vmatmul.f32.vlgmr.msra.gmra.mxu0 %v312_v10  ;;  %552 = vmatmul.f32.vlgmr.msra.gmra.mxu2 %v314_v11  ;;  %v227_v10 = vld [vmem:[#allocation2 + $0x600] sm:$0xff]  ;;  %v244_v11 = vld [vmem:[#allocation2 + $0x688] sm:$0xff] }
  0x6c   :  { %576 = vmatpush.msrb.mxu0 %v242_v12  ;;  %616 = vmatpush.msrb.mxu2 %v274_v13  ;;  %v259_v12 = vld [vmem:[#allocation2 + $0x700] sm:$0xff]  ;;  %v276_v13 = vld [vmem:[#allocation2 + $0x788] sm:$0xff] }
  0x6d   :  { %531 = vmatpush.msra.mxu1 %v179_v14  ;;  %571 = vmatpush.msra.mxu3 %v211_v15  ;;  %v316_v14 = vld.sshfl [vmem:[#allocation1 + $0x20] sm:$0xff pattern:$0x73625140]  ;;  %v318_v15 = vld.sshfl [vmem:[#allocation1 + $0x30] sm:$0xff pattern:$0x73625140] }
  0x6e   :  { %532 = vmatmul.f32.vlgmr.msra.gmra.mxu1 %v313_v16  ;;  %572 = vmatmul.f32.vlgmr.msra.gmra.mxu3 %v315_v17  ;;  %v243_v16 = vld [vmem:[#allocation2 + $0x680] sm:$0xff] }
  0x6f   :  { %577 = vmatpush.msrb.mxu0 %v241_v18  ;;  %596 = vmatpush.msrb.mxu1 %v258_v19  ;;  %v275_v17 = vld [vmem:[#allocation2 + $0x780] sm:$0xff]  ;;  %v319_v19 = vld.sshfl [vmem:[#allocation1 + $0x38] sm:$0xff pattern:$0x73625140] }
  0x70   :  { %617 = vmatpush.msrb.mxu2 %v273_v20  ;;  %636 = vmatpush.msrb.mxu3 %v290_v21  ;;  %v317_v18 = vld.sshfl [vmem:[#allocation1 + $0x28] sm:$0xff pattern:$0x73625140]  ;;  %v678_v20 = vld [vmem:[%s796_s2] ss:$0 sm:$0xff]  ;;  %s734_s2 = smov [#allocation5]  }
  0x71   :  { %578 = vmatpush.msrb.mxu0 %v240_v22  ;;  %597 = vmatpush.msrb.mxu1 %v257_v23  ;;  %s662_s27 = sshll.u32 %s734_s2, 4  ;;  %s663_s27 = int_to_ptr.vmem [resolvable:$true] %s662_s27 }
  0x72   :  { %618 = vmatpush.msrb.mxu2 %v272_v24  ;;  %637 = vmatpush.msrb.mxu3 %v289_v25 }
  0x73   :  { %579 = vmatpush.msrb.mxu0 %v239_v26  ;;  %598 = vmatpush.msrb.mxu1 %v256_v27 }
  0x74   :  { %619 = vmatpush.msrb.mxu2 %v271_v28  ;;  %638 = vmatpush.msrb.mxu3 %v288_v29 }
  0x75   :  { %580 = vmatpush.msrb.mxu0 %v238_v30  ;;  %599 = vmatpush.msrb.mxu1 %v255_v31 }
  0x76   :  { %620 = vmatpush.msrb.mxu2 %v270_v32  ;;  %639 = vmatpush.msrb.mxu3 %v287_v33 }
  0x77   :  { %581 = vmatpush.msrb.mxu0 %v237_v34  ;;  %600 = vmatpush.msrb.mxu1 %v254_v35 }
  0x78   :  { %621 = vmatpush.msrb.mxu2 %v269_v36  ;;  %640 = vmatpush.msrb.mxu3 %v286_v37 }
  0x79   :  { %582 = vmatpush.msrb.mxu0 %v236_v38  ;;  %601 = vmatpush.msrb.mxu1 %v253_v39 }
  0x7a   :  { %622 = vmatpush.msrb.mxu2 %v268_v40  ;;  %641 = vmatpush.msrb.mxu3 %v285_v41 }
  0x7b   :  { %583 = vmatpush.msrb.mxu0 %v235_v42  ;;  %602 = vmatpush.msrb.mxu1 %v252_v43 }
  0x7c   :  { %623 = vmatpush.msrb.mxu2 %v267_v44  ;;  %642 = vmatpush.msrb.mxu3 %v284_v45 }
  0x7d   :  { %584 = vmatpush.msrb.mxu0 %v234_v46  ;;  %603 = vmatpush.msrb.mxu1 %v251_v47 }
  0x7e   :  { %624 = vmatpush.msrb.mxu2 %v266_v48  ;;  %643 = vmatpush.msrb.mxu3 %v283_v49 }
  0x7f   :  { %585 = vmatpush.msrb.mxu0 %v233_v50  ;;  %604 = vmatpush.msrb.mxu1 %v250_v51 }
  0x80   :  { %625 = vmatpush.msrb.mxu2 %v265_v52  ;;  %644 = vmatpush.msrb.mxu3 %v282_v53 }
  0x81   :  { %586 = vmatpush.msrb.mxu0 %v232_v54  ;;  %605 = vmatpush.msrb.mxu1 %v249_v55 }
  0x82   :  { %626 = vmatpush.msrb.mxu2 %v264_v56  ;;  %645 = vmatpush.msrb.mxu3 %v281_v57 }
  0x83   :  { %587 = vmatpush.msrb.mxu0 %v231_v58  ;;  %606 = vmatpush.msrb.mxu1 %v248_v59 }
  0x84   :  { %627 = vmatpush.msrb.mxu2 %v263_v60  ;;  %646 = vmatpush.msrb.mxu3 %v280_v61 }
  0x85   :  { %588 = vmatpush.msrb.mxu0 %v230_v62  ;;  %607 = vmatpush.msrb.mxu1 %v247_v63 }
  0x86   :  { %628 = vmatpush.msrb.mxu2 %v262_v0  ;;  %647 = vmatpush.msrb.mxu3 %v279_v1 }
  0x87   :  { %589 = vmatpush.msrb.mxu0 %v229_v2  ;;  %608 = vmatpush.msrb.mxu1 %v246_v3 }
  0x88   :  { %629 = vmatpush.msrb.mxu2 %v261_v4  ;;  %648 = vmatpush.msrb.mxu3 %v278_v5 }
  0x89   :  { %590 = vmatpush.msrb.mxu0 %v228_v6  ;;  %609 = vmatpush.msrb.mxu1 %v245_v7 }
  0x8a   :  { %630 = vmatpush.msrb.mxu2 %v260_v8  ;;  %649 = vmatpush.msrb.mxu3 %v277_v9 }
  0x8b   :  { %591 = vmatpush.msrb.mxu0 %v227_v10  ;;  %610 = vmatpush.msrb.mxu1 %v244_v11 }
  0x8c   :  { %631 = vmatpush.msrb.mxu2 %v259_v12  ;;  %650 = vmatpush.msrb.mxu3 %v276_v13 }
  0x8d   :  { %592 = vmatmul.f32.vlgmr.msrb.gmra.mxu0 %v316_v14  ;;  %632 = vmatmul.f32.vlgmr.msrb.gmra.mxu2 %v318_v15 }
  0x8e   :  { %611 = vmatpush.msrb.mxu1 %v243_v16  ;;  %651 = vmatpush.msrb.mxu3 %v275_v17 }
  0x8f   :  { %612 = vmatmul.f32.vlgmr.msrb.gmra.mxu1 %v317_v18  ;;  %652 = vmatmul.f32.vlgmr.msrb.gmra.mxu3 %v319_v19 }
  0xc4   :  { %v353_v21 = vpop.f32.mrf.mxu0 }
  0xc5   :  { %v354_v22 = vadd.f32 %v678_v20, %v353_v21 }
  0xc7   :  { %v373_v23 = vpop.f32.mrf.mxu1 }
  0xc8   :  { %v374_v24 = vadd.f32 %v373_v23, %v354_v22 }
  0xca   :  { %v393_v25 = vpop.f32.mrf.mxu2 }
  0xcb   :  { %v394_v26 = vadd.f32 %v393_v25, %v374_v24 }
  0xcd   :  { %v413_v27 = vpop.f32.mrf.mxu3 }
  0xce   :  { %v414_v28 = vadd.f32 %v413_v27, %v394_v26 }
  0xd0   :  { %v433_v29 = vpop.f32.mrf.mxu0 }
  0xd1   :  { %v434_v30 = vadd.f32 %v433_v29, %v414_v28 }
  0xd3   :  { %v453_v31 = vpop.f32.mrf.mxu1 }
  0xd4   :  { %v454_v32 = vadd.f32 %v453_v31, %v434_v30  ;;  %v473_v33 = vpop.f32.mrf.mxu2 }
  0xd6   :  { %v474_v34 = vadd.f32 %v473_v33, %v454_v32 }
  0xd7   :  { %v493_v35 = vpop.f32.mrf.mxu3 }
  0xd8   :  { %v494_v37 = vadd.f32 %v493_v35, %v474_v34 }
  0xe8   :  { %v513_v36 = vpop.f32.mrf.mxu0 }
  0xe9   :  { %v514_v38 = vadd.f32 %v513_v36, %v494_v37 }
  0xeb   :  { %v533_v39 = vpop.f32.mrf.mxu1 }
  0xec   :  { %v534_v41 = vadd.f32 %v533_v39, %v514_v38 }
  0xee   :  { %v553_v40 = vpop.f32.mrf.mxu2 }
  0xef   :  { %v554_v42 = vadd.f32 %v553_v40, %v534_v41 }
  0xf1   :  { %v573_v43 = vpop.f32.mrf.mxu3 }
  0xf2   :  { %v574_v44 = vadd.f32 %v573_v43, %v554_v42 }
 0x10a   :  { %v593_v45 = vpop.f32.mrf.mxu0 }
 0x10b   :  { %v594_v46 = vadd.f32 %v593_v45, %v574_v44 }
 0x10c   :  { %v613_v47 = vpop.f32.mrf.mxu1 }
 0x10d   :  { %v614_v48 = vadd.f32 %v613_v47, %v594_v46 }
 0x110   :  { %v633_v49 = vpop.f32.mrf.mxu2 }
 0x111   :  { %v634_v50 = vadd.f32 %v633_v49, %v614_v48 }
 0x112   :  { %v653_v51 = vpop.f32.mrf.mxu3 }
 0x113   :  { %v654_v52 = vadd.f32 %v653_v51, %v634_v50 }
 0x115   :  { %656 = vst [vmem:[#allocation5] sm:$0x3] %v654_v52 }
 0x116   :  { %667 = dma.vmem_to_hbm [thread:$0]  %s663_s27, 32, %s665_s30, [#allocation4]  }
 0x117   :  { %729 = dma.done.wait [#allocation4], 32  }
 0x118   :  { %730 = vsyncadd [#allocation4], 4294967264 }
 0x119   :  { %672 = vsyncpa [#allocation3], 1 }
 0x11a   :  { %673 = vsyncpa [#allocation4], 1 }

// kernel: tinyvgg_forward.4
= control target key start
LH: loop header
LB: loop body
LE: loop exit
PB: predicated region body
PF: predicated region fallthrough
CT: control target
= control target key end

     0   :  { %11 = vsyncpa [#allocation5], 0  ;;  %s2105_s21 = smov 0   ;;  %s3012_s0 = inlined_call_operand.vmem [shape: f32[2,8,8,128], index: 0, kind: input, shape index: {}]   ;;  %s3013_s1 = inlined_call_operand.hbm [shape: f32[9,128,128], index: 1, kind: input, shape index: {}]   ;;  %s3014_s2 = inlined_call_operand.vmem [shape: f32[1,128], index: 2, kind: input, shape index: {}]   ;;  %s3015_s3 = inlined_call_operand.vmem [shape: f32[9,128,128], index: 3, kind: input, shape index: {}]   ;;  %s3016_s4 = inlined_call_operand.vmem [shape: f32[1,128], index: 4, kind: input, shape index: {}]   ;;  %s3017_s5 = inlined_call_operand.vmem [shape: f32[16,55], index: 5, kind: input, shape index: {}]   ;;  %s3018_s6 = inlined_call_operand.vmem [shape: f32[2,16,128], index: 6, kind: output, shape index: {}]  }
   0x1 LB: > { %s190_s24 = sshll.u32 %s3013_s1, 4  ;;  %s2114_s25 = sadd.s32 4294967295, %s2064_s21   ;;  %s2064_s21 = sphi %s2105_s21, %s17_s21   ;;  %s191_s24 = int_to_ptr.hbm [resolvable:$true] %s190_s24 }
   0x2   : > { %p1823_p0 = scmp.ge.s32.totalorder %s2064_s21, 1  ;;  %p179_p1 = scmp.lt.s32.totalorder %s2064_s21, 3 }
   0x3   : > { %p2007_p2 = scmp.eq.s32.totalorder %s2114_s25, 0  ;;  %s2066_s26 = smov [#allocation4]  }
   0x4   : > { %p180_p3 = pnand %p1823_p0, %p179_p1  ;;  %s192_s27 = sshll.u32 %s2066_s26, 4  ;;  %s193_s27 = int_to_ptr.vmem [resolvable:$true] %s192_s27 }
   0x5   : > { %s2067_s28 = smov 128   ;;  %s2068_s29 = smov 8  }
   0x6   : > { %p2003_p4 = pneg %p180_p3  ;;  %228 = sbr.rel (%p180_p3) target bundleno = 723 (0x2d3), region = 44 }
   0x8   : > { %p2004_p5 = pnand %p2007_p2, %p2003_p4 }
   0xa   : > { %2006 = dma.hbm_to_vmem [thread:$0]  (!%p2004_p5), %s191_s24, 18432, %s193_s27, [#allocation5], %s2067_s28, %s2067_s28, %s2068_s29  }
   0xb   : > { %2059 = dma.done.wait (%p2007_p2), [#allocation5], 18432  }
   0xc   : > { %2061 = vsyncadd (%p2007_p2), [#allocation5], 4294948864  ;;  %v2069_v0 = vmov 0.0   ;;  %v354_v1 = vld [vmem:[#allocation4 + $0xf8] sm:$0xff]  ;;  %v353_v4 = vld [vmem:[#allocation4 + $0xf0] sm:$0xff]  ;;  %p259_p6 = scmp.lt.s32.totalorder %s2114_s25, 1 }
   0xd   : > { %277 = vst [vmem:[#allocation2 + $0x40] sm:$0xff] %v2069_v0  ;;  %v329_v2 = vld [vmem:[#allocation4 + $0x78] sm:$0xff]  ;;  %1967 = vmatpush.msra.mxu3 %v354_v1  ;;  %v328_v5 = vld [vmem:[#allocation4 + $0x70] sm:$0xff]  ;;  %v352_v7 = vld [vmem:[#allocation4 + $0xe8] sm:$0xff]  ;;  %355 = vmatpush.msra.mxu0 %v354_v1  ;;  %vm1689_vm0 = vcmask 1046528   ;;  %vm1719_vm1 = vcmask 449536  }
   0xe   : > { %278 = vst [vmem:[#allocation2 + $0x48] sm:$0x3] %v2069_v0  ;;  %v461_v3 = vld [vmem:[#allocation4 + $0x178] sm:$0xff]  ;;  %396 = vmatpush.msra.mxu1 %v329_v2  ;;  %v460_v6 = vld [vmem:[#allocation4 + $0x170] sm:$0xff]  ;;  %v327_v8 = vld [vmem:[#allocation4 + $0x68] sm:$0xff]  ;;  %s3020_s25 = smov (!%p259_p6, %s2114_s25), 1 }
   0xf   : > { %269 = vst [vmem:[#allocation2] sm:$0xff] %v2069_v0  ;;  %462 = vmatpush.msra.mxu2 %v461_v3  ;;  %1968 = vmatpush.msra.mxu3 %v353_v4  ;;  %v459_v9 = vld [vmem:[#allocation4 + $0x168] sm:$0xff]  ;;  %v351_v10 = vld [vmem:[#allocation4 + $0xe0] sm:$0xff]  ;;  %v350_v13 = vld [vmem:[#allocation4 + $0xd8] sm:$0xff]  ;;  %s1965_s30 = sshll.u32 %s3020_s25, 6  ;;  %s1966_s20 = sshll.u32 %s3020_s25, 4 }
  0x10   : > { %270 = vst [vmem:[#allocation2 + $0x8] sm:$0x3] %v2069_v0  ;;  %397 = vmatpush.msra.mxu1 %v328_v5  ;;  %v326_v11 = vld [vmem:[#allocation4 + $0x60] sm:$0xff]  ;;  %356 = vmatpush.msra.mxu0 %v353_v4  ;;  %v325_v14 = vld [vmem:[#allocation4 + $0x58] sm:$0xff]  ;;  %v349_v16 = vld [vmem:[#allocation4 + $0xd0] sm:$0xff]  ;;  %s2148_s9 = scalar_lea.vmem %s3012_s0, %s1965_s30  ;;  %s268_s24 = scalar_lea.vmem %s3018_s6, %s1966_s20 }
  0x11   : > { %271 = vst [vmem:[#allocation2 + $0x10] sm:$0xff] %v2069_v0  ;;  %463 = vmatpush.msra.mxu2 %v460_v6  ;;  %1969 = vmatpush.msra.mxu3 %v352_v7  ;;  %v458_v12 = vld [vmem:[#allocation4 + $0x160] sm:$0xff]  ;;  %v457_v15 = vld [vmem:[#allocation4 + $0x158] sm:$0xff]  ;;  %v324_v17 = vld [vmem:[#allocation4 + $0x50] sm:$0xff] }
  0x12   : > { %272 = vst [vmem:[#allocation2 + $0x18] sm:$0x3] %v2069_v0  ;;  %398 = vmatpush.msra.mxu1 %v327_v8  ;;  %357 = vmatpush.msra.mxu0 %v352_v7  ;;  %v456_v18 = vld [vmem:[#allocation4 + $0x150] sm:$0xff]  ;;  %v348_v19 = vld [vmem:[#allocation4 + $0xc8] sm:$0xff]  ;;  %v347_v22 = vld [vmem:[#allocation4 + $0xc0] sm:$0xff] }
  0x13   : > { %273 = vst [vmem:[#allocation2 + $0x20] sm:$0xff] %v2069_v0  ;;  %464 = vmatpush.msra.mxu2 %v459_v9  ;;  %1970 = vmatpush.msra.mxu3 %v351_v10  ;;  %v323_v20 = vld [vmem:[#allocation4 + $0x48] sm:$0xff]  ;;  %v322_v23 = vld [vmem:[#allocation4 + $0x40] sm:$0xff]  ;;  %v346_v25 = vld [vmem:[#allocation4 + $0xb8] sm:$0xff] }
  0x14   : > { %274 = vst [vmem:[#allocation2 + $0x28] sm:$0x3] %v2069_v0  ;;  %399 = vmatpush.msra.mxu1 %v326_v11  ;;  %358 = vmatpush.msra.mxu0 %v351_v10  ;;  %v455_v21 = vld [vmem:[#allocation4 + $0x148] sm:$0xff]  ;;  %v454_v24 = vld [vmem:[#allocation4 + $0x140] sm:$0xff]  ;;  %v321_v26 = vld [vmem:[#allocation4 + $0x38] sm:$0xff] }
  0x15   : > { %275 = vst [vmem:[#allocation2 + $0x30] sm:$0xff] %v2069_v0  ;;  %465 = vmatpush.msra.mxu2 %v458_v12  ;;  %1971 = vmatpush.msra.mxu3 %v350_v13  ;;  %v453_v27 = vld [vmem:[#allocation4 + $0x138] sm:$0xff]  ;;  %v345_v28 = vld [vmem:[#allocation4 + $0xb0] sm:$0xff]  ;;  %v344_v32 = vld [vmem:[#allocation4 + $0xa8] sm:$0xff] }
  0x16   : > { %276 = vst [vmem:[#allocation2 + $0x38] sm:$0x3] %v2069_v0  ;;  %400 = vmatpush.msra.mxu1 %v325_v14  ;;  %359 = vmatpush.msra.mxu0 %v350_v13  ;;  %v320_v29 = vld [vmem:[#allocation4 + $0x30] sm:$0xff]  ;;  %v2154_v30 = vld [vmem:[%s2148_s9 + $0x18] sm:$0xff]  ;;  %v319_v33 = vld [vmem:[#allocation4 + $0x28] sm:$0xff] }
  0x17   : > { %279 = vst [vmem:[#allocation2 + $0x50] sm:$0xff] %v2069_v0  ;;  %466 = vmatpush.msra.mxu2 %v457_v15  ;;  %1972 = vmatpush.msra.mxu3 %v349_v16  ;;  %v452_v31 = vld [vmem:[#allocation4 + $0x130] sm:$0xff]  ;;  %v451_v34 = vld [vmem:[#allocation4 + $0x128] sm:$0xff]  ;;  %v343_v35 = vld [vmem:[#allocation4 + $0xa0] sm:$0xff] }
  0x18   : > { %280 = vst [vmem:[#allocation2 + $0x58] sm:$0x3] %v2069_v0  ;;  %401 = vmatpush.msra.mxu1 %v324_v17  ;;  %360 = vmatpush.msra.mxu0 %v349_v16  ;;  %v318_v36 = vld [vmem:[#allocation4 + $0x20] sm:$0xff]  ;;  %v342_v38 = vld [vmem:[#allocation4 + $0x98] sm:$0xff]  ;;  %v341_v41 = vld [vmem:[#allocation4 + $0x90] sm:$0xff] }
  0x19   : > { %281 = vst [vmem:[#allocation2 + $0x60] sm:$0xff] %v2069_v0  ;;  %467 = vmatpush.msra.mxu2 %v456_v18  ;;  %1973 = vmatpush.msra.mxu3 %v348_v19  ;;  %v450_v37 = vld [vmem:[#allocation4 + $0x120] sm:$0xff]  ;;  %v317_v39 = vld [vmem:[#allocation4 + $0x18] sm:$0xff]  ;;  %v316_v42 = vld [vmem:[#allocation4 + $0x10] sm:$0xff] }
  0x1a   : > { %282 = vst [vmem:[#allocation2 + $0x68] sm:$0x3] %v2069_v0  ;;  %402 = vmatpush.msra.mxu1 %v323_v20  ;;  %361 = vmatpush.msra.mxu0 %v348_v19  ;;  %v449_v40 = vld [vmem:[#allocation4 + $0x118] sm:$0xff]  ;;  %v448_v43 = vld [vmem:[#allocation4 + $0x110] sm:$0xff]  ;;  %v340_v44 = vld [vmem:[#allocation4 + $0x88] sm:$0xff] }
  0x1b   : > { %283 = vst [vmem:[#allocation2 + $0x70] sm:$0xff] %v2069_v0  ;;  %468 = vmatpush.msra.mxu2 %v455_v21  ;;  %1974 = vmatpush.msra.mxu3 %v347_v22  ;;  %v315_v45 = vld [vmem:[#allocation4 + $0x8] sm:$0xff]  ;;  %v339_v47 = vld [vmem:[#allocation4 + $0x80] sm:$0xff]  ;;  %v535_v51 = vld [vmem:[#allocation4 + $0x1f8] sm:$0xff] }
  0x1c   : > { %284 = vst [vmem:[#allocation2 + $0x78] sm:$0x3] %v2069_v0  ;;  %403 = vmatpush.msra.mxu1 %v322_v23  ;;  %362 = vmatpush.msra.mxu0 %v347_v22  ;;  %v447_v46 = vld [vmem:[#allocation4 + $0x108] sm:$0xff]  ;;  %v314_v48 = vld [vmem:[#allocation4] sm:$0xff]  ;;  %v534_v53 = vld [vmem:[#allocation4 + $0x1f0] sm:$0xff] }
  0x1d   : > { %285 = vst [vmem:[#allocation2 + $0x80] sm:$0xff] %v2069_v0  ;;  %469 = vmatpush.msra.mxu2 %v454_v24  ;;  %1975 = vmatpush.msra.mxu3 %v346_v25  ;;  %v446_v49 = vld [vmem:[#allocation4 + $0x100] sm:$0xff]  ;;  %v609_v55 = vld [vmem:[#allocation4 + $0x278] sm:$0xff]  ;;  %v533_v56 = vld [vmem:[#allocation4 + $0x1e8] sm:$0xff] }
  0x1e   : > { %286 = vst [vmem:[#allocation2 + $0x88] sm:$0x3] %v2069_v0  ;;  %404 = vmatpush.msra.mxu1 %v321_v26  ;;  %363 = vmatpush.msra.mxu0 %v346_v25  ;;  %v437_v50 = vld [vmem:[#allocation2 + $0x2] sm:$0xff]  ;;  %v608_v59 = vld [vmem:[#allocation4 + $0x270] sm:$0xff]  ;;  %v683_v63 = vld [vmem:[#allocation4 + $0x2f8] sm:$0xff] }
  0x1f   : > { %287 = vst [vmem:[#allocation2 + $0x90] sm:$0xff] %v2069_v0  ;;  %470 = vmatpush.msra.mxu2 %v453_v27  ;;  %1976 = vmatpush.msra.mxu3 %v345_v28  ;;  %v330_v52 = vld [vmem:[#allocation2 + $0x1] sm:$0xff]  ;;  %v758_v1 = vld [vmem:[#allocation4 + $0x378] sm:$0xff]  ;;  %v2193_v2 = vld [vmem:[%s2148_s9 + $0x10] sm:$0xff] }
  0x20   : > { %288 = vst [vmem:[#allocation2 + $0x98] sm:$0x3] %v2069_v0  ;;  %405 = vmatpush.msra.mxu1 %v320_v29  ;;  %364 = vmatpush.msra.mxu0 %v345_v28  ;;  %v2177_v54 = vld [vmem:[%s2148_s9] sm:$0xff]  ;;  %v607_v60 = vld [vmem:[#allocation4 + $0x268] sm:$0xff]  ;;  %v682_v3 = vld [vmem:[#allocation4 + $0x2f0] sm:$0xff] }
  0x21   : > { %976 = vst [vmem:[#allocation3] sm:$0xff] %v2069_v0  ;;  %471 = vmatpush.msra.mxu2 %v452_v31  ;;  %1977 = vmatpush.msra.mxu3 %v344_v32  ;;  %v2181_v57 = vld [vmem:[%s2148_s9 + $0x20] sm:$0xff]  ;;  %v2185_v61 = vld [vmem:[%s2148_s9 + $0x8] sm:$0xff]  ;;  %v757_v4 = vld [vmem:[#allocation4 + $0x370] sm:$0xff] }
  0x22   : > { %977 = vst [vmem:[#allocation3 + $0x8] sm:$0x3] %v2069_v0  ;;  %406 = vmatpush.msra.mxu1 %v319_v33  ;;  %365 = vmatpush.msra.mxu0 %v344_v32  ;;  %v532_v58 = vld [vmem:[#allocation4 + $0x1e0] sm:$0xff]  ;;  %v2189_v62 = vld [vmem:[%s2148_s9 + $0x28] sm:$0xff]  ;;  %v2197_v5 = vld [vmem:[%s2148_s9 + $0x30] sm:$0xff] }
  0x23   : > { %978 = vst [vmem:[#allocation3 + $0x10] sm:$0xff] %v2069_v0  ;;  %472 = vmatpush.msra.mxu2 %v451_v34  ;;  %1978 = vmatpush.msra.mxu3 %v343_v35  ;;  %v681_v6 = vld [vmem:[#allocation4 + $0x2e8] sm:$0xff]  ;;  %v531_v7 = vld [vmem:[#allocation4 + $0x1d8] sm:$0xff]  ;;  %v606_v8 = vld [vmem:[#allocation4 + $0x260] sm:$0xff] }
  0x24   : > { %301 = vst [vmem:[#allocation2 + $0x41] sm:$0xff] %v2154_v30  ;;  %407 = vmatpush.msra.mxu1 %v318_v36  ;;  %366 = vmatpush.msra.mxu0 %v343_v35  ;;  %v756_v9 = vld [vmem:[#allocation4 + $0x368] sm:$0xff]  ;;  %v530_v10 = vld [vmem:[#allocation4 + $0x1d0] sm:$0xff]  ;;  %v605_v11 = vld [vmem:[#allocation4 + $0x258] sm:$0xff] }
  0x25   : > { %979 = vst [vmem:[#allocation3 + $0x18] sm:$0x3] %v2069_v0  ;;  %473 = vmatpush.msra.mxu2 %v450_v37  ;;  %1979 = vmatpush.msra.mxu3 %v342_v38  ;;  %v680_v12 = vld [vmem:[#allocation4 + $0x2e0] sm:$0xff]  ;;  %v529_v16 = vld [vmem:[#allocation4 + $0x1c8] sm:$0xff]  ;;  %v604_v17 = vld [vmem:[#allocation4 + $0x250] sm:$0xff] }
  0x26   : > { %980 = vst [vmem:[#allocation3 + $0x20] sm:$0xff] %v2069_v0  ;;  %408 = vmatpush.msra.mxu1 %v317_v39  ;;  %367 = vmatpush.msra.mxu0 %v342_v38  ;;  %v755_v15 = vld [vmem:[#allocation4 + $0x360] sm:$0xff]  ;;  %v679_v18 = vld [vmem:[#allocation4 + $0x2d8] sm:$0xff]  ;;  %v603_v21 = vld [vmem:[#allocation4 + $0x248] sm:$0xff] }
  0x27   : > { %981 = vst [vmem:[#allocation3 + $0x28] sm:$0x3] %v2069_v0  ;;  %474 = vmatpush.msra.mxu2 %v449_v40  ;;  %1980 = vmatpush.msra.mxu3 %v341_v41  ;;  %v754_v19 = vld [vmem:[#allocation4 + $0x358] sm:$0xff]  ;;  %v528_v20 = vld [vmem:[#allocation4 + $0x1c0] sm:$0xff]  ;;  %v678_v22 = vld [vmem:[#allocation4 + $0x2d0] sm:$0xff] }
  0x28   : > { %982 = vst [vmem:[#allocation3 + $0x30] sm:$0xff] %v2069_v0  ;;  %409 = vmatpush.msra.mxu1 %v316_v42  ;;  %368 = vmatpush.msra.mxu0 %v341_v41  ;;  %v527_v23 = vld [vmem:[#allocation4 + $0x1b8] sm:$0xff]  ;;  %v602_v24 = vld [vmem:[#allocation4 + $0x240] sm:$0xff]  ;;  %v526_v27 = vld [vmem:[#allocation4 + $0x1b0] sm:$0xff] }
  0x29   : > { %983 = vst [vmem:[#allocation3 + $0x38] sm:$0x3] %v2069_v0  ;;  %475 = vmatpush.msra.mxu2 %v448_v43  ;;  %1981 = vmatpush.msra.mxu3 %v340_v44  ;;  %v601_v28 = vld [vmem:[#allocation4 + $0x238] sm:$0xff]  ;;  %v753_v29 = vld [vmem:[#allocation4 + $0x350] sm:$0xff]  ;;  %v525_v31 = vld [vmem:[#allocation4 + $0x1a8] sm:$0xff] }
  0x2a   : > { %984 = vst [vmem:[#allocation3 + $0x40] sm:$0xff] %v2069_v0  ;;  %410 = vmatpush.msra.mxu1 %v315_v45  ;;  %369 = vmatpush.msra.mxu0 %v340_v44  ;;  %v677_v32 = vld [vmem:[#allocation4 + $0x2c8] sm:$0xff]  ;;  %v600_v33 = vld [vmem:[#allocation4 + $0x230] sm:$0xff]  ;;  %v524_v35 = vld [vmem:[#allocation4 + $0x1a0] sm:$0xff] }
  0x2b   : > { %985 = vst [vmem:[#allocation3 + $0x48] sm:$0x3] %v2069_v0  ;;  %476 = vmatpush.msra.mxu2 %v447_v46  ;;  %1982 = vmatpush.msra.mxu3 %v339_v47  ;;  %v752_v34 = vld [vmem:[#allocation4 + $0x348] sm:$0xff]  ;;  %v676_v36 = vld [vmem:[#allocation4 + $0x2c0] sm:$0xff]  ;;  %v523_v38 = vld [vmem:[#allocation4 + $0x198] sm:$0xff] }
  0x2c   : > { %986 = vst [vmem:[#allocation3 + $0x50] sm:$0xff] %v2069_v0  ;;  %411 = vmatpush.msra.mxu1 %v314_v48  ;;  %383 = vmatmul.f32.vlgmr.msra.gmra.mxu3 %v2154_v30  ;;  %v599_v37 = vld [vmem:[#allocation4 + $0x228] sm:$0xff]  ;;  %v751_v39 = vld [vmem:[#allocation4 + $0x340] sm:$0xff]  ;;  %v522_v42 = vld [vmem:[#allocation4 + $0x190] sm:$0xff] }
  0x2d   : > { %987 = vst [vmem:[#allocation3 + $0x58] sm:$0x3] %v2069_v0  ;;  %477 = vmatpush.msra.mxu2 %v446_v49  ;;  %412 = vmatmul.f32.vlgmr.msra.gmra.mxu1 %v2069_v0  ;;  %v598_v43 = vld [vmem:[#allocation4 + $0x220] sm:$0xff]  ;;  %v675_v44 = vld [vmem:[#allocation4 + $0x2b8] sm:$0xff]  ;;  %v521_v45 = vld [vmem:[#allocation4 + $0x188] sm:$0xff] }
  0x2e   : > { %988 = vst [vmem:[#allocation3 + $0x60] sm:$0xff] %v2069_v0  ;;  %478 = vmatmul.f32.vlgmr.msra.gmra.mxu2 %v437_v50  ;;  %536 = vmatpush.msrb.mxu3 %v535_v51  ;;  %v597_v46 = vld [vmem:[#allocation4 + $0x218] sm:$0xff]  ;;  %v674_v48 = vld [vmem:[#allocation4 + $0x2b0] sm:$0xff]  ;;  %v520_v49 = vld [vmem:[#allocation4 + $0x180] sm:$0xff] }
  0x2f   : > { %989 = vst [vmem:[#allocation3 + $0x68] sm:$0x3] %v2069_v0  ;;  %370 = vmatpush.msra.mxu0 %v339_v47  ;;  %684 = vmatpush.msrb.mxu1 %v683_v63  ;;  %v750_v47 = vld [vmem:[#allocation4 + $0x338] sm:$0xff]  ;;  %v596_v50 = vld [vmem:[#allocation4 + $0x210] sm:$0xff]  ;;  %v830_v63 = vld [vmem:[#allocation4 + $0x3e8] sm:$0xff] }
  0x30   : > { %990 = vst [vmem:[#allocation3 + $0x70] sm:$0xff] %v2069_v0  ;;  %371 = vmatmul.f32.vlgmr.msra.gmra.mxu0 %v330_v52  ;;  %537 = vmatpush.msrb.mxu3 %v534_v53  ;;  %v749_v51 = vld [vmem:[#allocation4 + $0x330] sm:$0xff]  ;;  %v595_v52 = vld [vmem:[#allocation4 + $0x208] sm:$0xff]  ;;  %v832_v53 = vld [vmem:[#allocation4 + $0x3f8] sm:$0xff] }
  0x31   : > { %991 = vst [vmem:[#allocation3 + $0x78] sm:$0x3] %v2069_v0  ;;  %610 = vmatpush.msrb.mxu0 %v609_v55  ;;  %759 = vmatpush.msrb.mxu2 %v758_v1  ;;  %v2225_v55 = vld [vmem:[#allocation2 + $0x40] sm:$0xff]  ;;  %v906_v1 = vld [vmem:[#allocation4 + $0x478] sm:$0xff] }
  0x32   : > { %992 = vst [vmem:[#allocation3 + $0x80] sm:$0xff] %v2069_v0  ;;  %538 = vmatpush.msrb.mxu3 %v533_v56  ;;  %685 = vmatpush.msrb.mxu1 %v682_v3  ;;  %v2227_v56 = vld [vmem:[#allocation2 + $0x42] sm:$0xff] }
  0x33   : > { %993 = vst [vmem:[#allocation3 + $0x88] sm:$0x3] %v2069_v0  ;;  %611 = vmatpush.msrb.mxu0 %v608_v59  ;;  %760 = vmatpush.msrb.mxu2 %v757_v4  ;;  %v831_v59 = vld [vmem:[#allocation4 + $0x3f0] sm:$0xff]  ;;  %v748_v3 = vld [vmem:[#allocation4 + $0x328] sm:$0xff]  ;;  %v672_v4 = vld [vmem:[#allocation4 + $0x2a0] sm:$0xff] }
  0x34   : > { %994 = vst [vmem:[#allocation3 + $0x90] sm:$0xff] %v2069_v0  ;;  %539 = vmatpush.msrb.mxu3 %v532_v58  ;;  %686 = vmatpush.msrb.mxu1 %v681_v6  ;;  %v594_v58 = vld [vmem:[#allocation4 + $0x200] sm:$0xff] }
  0x35   : > { %995 = vst [vmem:[#allocation3 + $0x98] sm:$0x3] %v2069_v0  ;;  %612 = vmatpush.msrb.mxu0 %v607_v60  ;;  %386 = vmatmul.f32.gmra.mxu3 %v2181_v57  ;;  %v673_v60 = vld [vmem:[#allocation4 + $0x2a8] sm:$0xff]  ;;  %v829_v6 = vld [vmem:[#allocation4 + $0x3e0] sm:$0xff] }
  0x36   : > { %302 = vst [vmem:[#allocation2 + $0x51] sm:$0xff] %v2181_v57  ;;  %540 = vmatpush.msrb.mxu3 %v531_v7  ;;  %761 = vmatpush.msrb.mxu2 %v756_v9  ;;  %v905_v7 = vld [vmem:[#allocation4 + $0x470] sm:$0xff]  ;;  %v828_v9 = vld [vmem:[#allocation4 + $0x3d8] sm:$0xff] }
  0x37   : > { %298 = vst [vmem:[#allocation2 + $0x11] sm:$0xff] %v2177_v54  ;;  %613 = vmatpush.msrb.mxu0 %v606_v8  ;;  %687 = vmatpush.msrb.mxu1 %v680_v12  ;;  %v747_v8 = vld [vmem:[#allocation4 + $0x320] sm:$0xff] }
  0x38   : > { %303 = vst [vmem:[#allocation2 + $0x61] sm:$0xff] %v2189_v62  ;;  %374 = vmatmul.f32.gmra.mxu0 %v2177_v54  ;;  %541 = vmatpush.msrb.mxu3 %v530_v10  ;;  %v904_v10 = vld [vmem:[#allocation4 + $0x468] sm:$0xff] }
  0x39   : > { %299 = vst [vmem:[#allocation2 + $0x21] sm:$0xff] %v2185_v61  ;;  %614 = vmatpush.msrb.mxu0 %v605_v11  ;;  %762 = vmatpush.msrb.mxu2 %v755_v15  ;;  %v827_v15 = vld [vmem:[#allocation4 + $0x3d0] sm:$0xff] }
  0x3a   : > { %304 = vst [vmem:[#allocation2 + $0x71] sm:$0xff] %v2197_v5  ;;  %542 = vmatpush.msrb.mxu3 %v529_v16  ;;  %688 = vmatpush.msrb.mxu1 %v679_v18  ;;  %v670_v16 = vld [vmem:[#allocation4 + $0x290] sm:$0xff]  ;;  %v903_v18 = vld [vmem:[#allocation4 + $0x460] sm:$0xff] }
  0x3b   : > { %300 = vst [vmem:[#allocation2 + $0x31] sm:$0xff] %v2193_v2  ;;  %615 = vmatpush.msrb.mxu0 %v604_v17  ;;  %763 = vmatpush.msrb.mxu2 %v754_v19  ;;  %v745_v17 = vld [vmem:[#allocation4 + $0x310] sm:$0xff]  ;;  %v826_v19 = vld [vmem:[#allocation4 + $0x3c8] sm:$0xff] }
  0x3c   : > { %543 = vmatpush.msrb.mxu3 %v528_v20  ;;  %689 = vmatpush.msrb.mxu1 %v678_v22  ;;  %v669_v20 = vld [vmem:[#allocation4 + $0x288] sm:$0xff]  ;;  %v902_v22 = vld [vmem:[#allocation4 + $0x458] sm:$0xff] }
  0x3d   : > { %616 = vmatpush.msrb.mxu0 %v603_v21  ;;  %389 = vmatmul.f32.gmra.mxu3 %v2189_v62  ;;  %v2233_v11 = vld [vmem:[#allocation2 + $0x50] sm:$0xff]  ;;  %v744_v21 = vld [vmem:[#allocation4 + $0x308] sm:$0xff] }
  0x3e   : > { %v2202_v13 = vld [vmem:[#allocation2 + $0x10] sm:$0xff]  ;;  %544 = vmatpush.msrb.mxu3 %v527_v23  ;;  %764 = vmatpush.msrb.mxu2 %v753_v29  ;;  %v668_v23 = vld [vmem:[#allocation4 + $0x280] sm:$0xff] }
  0x3f   : > { %v2204_v14 = vld [vmem:[#allocation2 + $0x12] sm:$0xff]  ;;  %415 = vmatmul.f32.gmra.mxu1 %v2202_v13  ;;  %617 = vmatpush.msrb.mxu0 %v602_v24  ;;  %v743_v24 = vld [vmem:[#allocation4 + $0x300] sm:$0xff] }
  0x40   : > { %481 = vmatmul.f32.gmra.mxu2 %v2204_v14  ;;  %v2209_v25 = vld [vmem:[#allocation2 + $0x20] sm:$0xff]  ;;  %545 = vmatpush.msrb.mxu3 %v526_v27  ;;  %v2235_v12 = vld [vmem:[#allocation2 + $0x52] sm:$0xff] }
  0x41   : > { %v2211_v26 = vld [vmem:[#allocation2 + $0x22] sm:$0xff]  ;;  %377 = vmatmul.f32.gmra.mxu0 %v2185_v61  ;;  %690 = vmatpush.msrb.mxu1 %v677_v32  ;;  %v2247_v32 = vld [vmem:[%s2148_s9 + $0x38] sm:$0xff] }
  0x42   : > { %618 = vmatpush.msrb.mxu0 %v601_v28  ;;  %546 = vmatpush.msrb.mxu3 %v525_v31  ;;  %v2217_v40 = vld [vmem:[#allocation2 + $0x30] sm:$0xff]  ;;  %v2241_v27 = vld [vmem:[#allocation2 + $0x60] sm:$0xff]  ;;  %305 = vst [vmem:[#allocation2 + $0x81] sm:$0xff] %v2247_v32 }
  0x43   : > { %765 = vmatpush.msrb.mxu2 %v752_v34  ;;  %v2219_v41 = vld [vmem:[#allocation2 + $0x32] sm:$0xff]  ;;  %691 = vmatpush.msrb.mxu1 %v676_v36  ;;  %v2243_v28 = vld [vmem:[#allocation2 + $0x62] sm:$0xff] }
  0x44   : > { %619 = vmatpush.msrb.mxu0 %v600_v33  ;;  %547 = vmatpush.msrb.mxu3 %v524_v35  ;;  %v825_v29 = vld [vmem:[#allocation4 + $0x3c0] sm:$0xff]  ;;  %v901_v31 = vld [vmem:[#allocation4 + $0x450] sm:$0xff]  ;;  %v824_v33 = vld [vmem:[#allocation4 + $0x3b8] sm:$0xff] }
  0x45   : > { %392 = vmatmul.f32.gmra.mxu3 %v2197_v5  ;;  %766 = vmatpush.msrb.mxu2 %v751_v39  ;;  %v900_v34 = vld [vmem:[#allocation4 + $0x448] sm:$0xff]  ;;  %v823_v35 = vld [vmem:[#allocation4 + $0x3b0] sm:$0xff]  ;;  %v899_v36 = vld [vmem:[#allocation4 + $0x440] sm:$0xff] }
  0x46   : > { %620 = vmatpush.msrb.mxu0 %v599_v37  ;;  %548 = vmatpush.msrb.mxu3 %v523_v38  ;;  %v822_v37 = vld [vmem:[#allocation4 + $0x3a8] sm:$0xff]  ;;  %v898_v38 = vld [vmem:[#allocation4 + $0x438] sm:$0xff]  ;;  %v313_v39 = vld [vmem:[#allocation2 + $0x70] sm:$0xff] }
  0x47   : > { %418 = vmatmul.f32.gmra.mxu1 %v2209_v25  ;;  %767 = vmatpush.msrb.mxu2 %v750_v47  ;;  %v819_v47 = vld [vmem:[#allocation4 + $0x390] sm:$0xff] }
  0x48   : > { %484 = vmatmul.f32.gmra.mxu2 %v2211_v26  ;;  %549 = vmatpush.msrb.mxu3 %v522_v42  ;;  %v2253_v42 = vld [vmem:[#allocation2 + $0x72] sm:$0xff] }
  0x49   : > { %621 = vmatpush.msrb.mxu0 %v598_v43  ;;  %692 = vmatpush.msrb.mxu1 %v675_v44  ;;  %v821_v43 = vld [vmem:[#allocation4 + $0x3a0] sm:$0xff]  ;;  %v897_v44 = vld [vmem:[#allocation4 + $0x430] sm:$0xff] }
  0x4a   : > { %380 = vmatmul.f32.gmra.mxu0 %v2193_v2  ;;  %550 = vmatpush.msrb.mxu3 %v521_v45  ;;  %v820_v45 = vld [vmem:[#allocation4 + $0x398] sm:$0xff] }
  0x4b   : > { %622 = vmatpush.msrb.mxu0 %v597_v46  ;;  %693 = vmatpush.msrb.mxu1 %v674_v48  ;;  %v896_v46 = vld [vmem:[#allocation4 + $0x428] sm:$0xff]  ;;  %v895_v48 = vld [vmem:[#allocation4 + $0x420] sm:$0xff] }
  0x4c   : > { %551 = vmatpush.msrb.mxu3 %v520_v49  ;;  %768 = vmatpush.msrb.mxu2 %v749_v51  ;;  %v818_v49 = vld [vmem:[#allocation4 + $0x388] sm:$0xff]  ;;  %v894_v51 = vld [vmem:[#allocation4 + $0x418] sm:$0xff] }
  0x4d   : > { %623 = vmatpush.msrb.mxu0 %v596_v50  ;;  %552 = vmatmul.f32.vlgmr.msrb.gmra.mxu3 %v2202_v13  ;;  %v746_v13 = vld [vmem:[#allocation4 + $0x318] sm:$0xff]  ;;  %v817_v50 = vld [vmem:[#allocation4 + $0x380] sm:$0xff] }
  0x4e   : > { %833 = vmatpush.msra.mxu3 %v832_v53  ;;  %694 = vmatpush.msrb.mxu1 %v673_v60  ;;  %v892_v53 = vld [vmem:[#allocation4 + $0x408] sm:$0xff]  ;;  %v1847_v60 = vld [vmem:[%s3015_s3 + $0xf8] sm:$0xff] }
  0x4f   : > { %421 = vmatmul.f32.gmra.mxu1 %v2217_v40  ;;  %624 = vmatpush.msrb.mxu0 %v595_v52  ;;  %v893_v52 = vld [vmem:[#allocation4 + $0x410] sm:$0xff] }
  0x50   : > { %487 = vmatmul.f32.gmra.mxu2 %v2219_v41  ;;  %834 = vmatpush.msra.mxu3 %v831_v59 }
  0x51   : > { %625 = vmatpush.msrb.mxu0 %v594_v58  ;;  %769 = vmatpush.msrb.mxu2 %v748_v3  ;;  %v891_v58 = vld [vmem:[#allocation4 + $0x400] sm:$0xff]  ;;  %v889_v3 = vld [vmem:[#allocation2 + $0x92] sm:$0xff] }
  0x52   : > { %626 = vmatmul.f32.vlgmr.msrb.gmra.mxu0 %v2177_v54  ;;  %835 = vmatpush.msra.mxu3 %v830_v63  ;;  %v671_v54 = vld [vmem:[#allocation4 + $0x298] sm:$0xff]  ;;  %v1846_v63 = vld [vmem:[%s3015_s3 + $0xf0] sm:$0xff] }
  0x53   : > { %907 = vmatpush.msra.mxu0 %v906_v1  ;;  %695 = vmatpush.msrb.mxu1 %v672_v4 }
  0x54   : > { %836 = vmatpush.msra.mxu3 %v829_v6  ;;  %770 = vmatpush.msrb.mxu2 %v747_v8  ;;  %v1845_v8 = vld [vmem:[%s3015_s3 + $0xe8] sm:$0xff] }
  0x55   : > { %908 = vmatpush.msra.mxu0 %v905_v7  ;;  %555 = vmatmul.f32.gmra.mxu3 %v2209_v25  ;;  %v1028_v7 = vld [vmem:[%s3015_s3 + $0x78] sm:$0xff] }
  0x56   : > { %837 = vmatpush.msra.mxu3 %v828_v9  ;;  %696 = vmatpush.msrb.mxu1 %v671_v54 }
  0x57   : > { %424 = vmatmul.f32.gmra.mxu1 %v2225_v55  ;;  %909 = vmatpush.msra.mxu0 %v904_v10  ;;  %v1027_v10 = vld [vmem:[%s3015_s3 + $0x70] sm:$0xff] }
  0x58   : > { %490 = vmatmul.f32.gmra.mxu2 %v2227_v56  ;;  %838 = vmatpush.msra.mxu3 %v827_v15  ;;  %v1026_v15 = vld [vmem:[%s3015_s3 + $0x68] sm:$0xff] }
  0x59   : > { %771 = vmatpush.msrb.mxu2 %v746_v13  ;;  %697 = vmatpush.msrb.mxu1 %v670_v16  ;;  %v1863_v13 = vld [vmem:[%s3015_s3 + $0x178] sm:$0xff]  ;;  %v1862_v16 = vld [vmem:[%s3015_s3 + $0x170] sm:$0xff] }
  0x5a   : > { %629 = vmatmul.f32.gmra.mxu0 %v2185_v61  ;;  %839 = vmatpush.msra.mxu3 %v826_v19  ;;  %v1025_v19 = vld [vmem:[%s3015_s3 + $0x60] sm:$0xff] }
  0x5b   : > { %772 = vmatpush.msrb.mxu2 %v745_v17  ;;  %910 = vmatpush.msra.mxu0 %v903_v18  ;;  %v1843_v17 = vld [vmem:[%s3015_s3 + $0xd8] sm:$0xff] }
  0x5c   : > { %698 = vmatpush.msrb.mxu1 %v669_v20  ;;  %840 = vmatpush.msra.mxu3 %v825_v29  ;;  %v1861_v20 = vld [vmem:[%s3015_s3 + $0x168] sm:$0xff]  ;;  %v1023_v29 = vld [vmem:[%s3015_s3 + $0x50] sm:$0xff] }
  0x5d   : > { %773 = vmatpush.msrb.mxu2 %v744_v21  ;;  %558 = vmatmul.f32.gmra.mxu3 %v2217_v40  ;;  %v1842_v21 = vld [vmem:[%s3015_s3 + $0xd0] sm:$0xff] }
  0x5e   : > { %911 = vmatpush.msra.mxu0 %v902_v22  ;;  %699 = vmatpush.msrb.mxu1 %v668_v23 }
  0x5f   : > { %427 = vmatmul.f32.gmra.mxu1 %v2233_v11  ;;  %774 = vmatpush.msrb.mxu2 %v743_v24  ;;  %v1024_v24 = vld [vmem:[%s3015_s3 + $0x58] sm:$0xff] }
  0x60   : > { %493 = vmatmul.f32.gmra.mxu2 %v2235_v12  ;;  %912 = vmatpush.msra.mxu0 %v901_v31  ;;  %v1859_v31 = vld [vmem:[%s3015_s3 + $0x158] sm:$0xff] }
  0x61   : > { %841 = vmatpush.msra.mxu3 %v824_v33  ;;  %1054 = vmatpush.msra.mxu1 %v1847_v60  ;;  %v1858_v33 = vld [vmem:[%s3015_s3 + $0x150] sm:$0xff]  ;;  %v1016_v60 = vld [vmem:[%s3015_s3 + $0x18] sm:$0xff] }
  0x62   : > { %632 = vmatmul.f32.gmra.mxu0 %v2193_v2  ;;  %1095 = vmatpush.msra.mxu2 %v1028_v7 }
  0x63   : > { %913 = vmatpush.msra.mxu0 %v900_v34  ;;  %842 = vmatpush.msra.mxu3 %v823_v35  ;;  %v1841_v34 = vld [vmem:[%s3015_s3 + $0xc8] sm:$0xff]  ;;  %v1021_v35 = vld [vmem:[%s3015_s3 + $0x40] sm:$0xff] }
  0x64   : > { %1055 = vmatpush.msra.mxu1 %v1846_v63  ;;  %1096 = vmatpush.msra.mxu2 %v1027_v10  ;;  %v1852_v63 = vld [vmem:[%s3015_s3 + $0x120] sm:$0xff]  ;;  %v1015_v10 = vld [vmem:[%s3015_s3 + $0x10] sm:$0xff] }
  0x65   : > { %914 = vmatpush.msra.mxu0 %v899_v36  ;;  %561 = vmatmul.f32.gmra.mxu3 %v2225_v55  ;;  %v1857_v36 = vld [vmem:[%s3015_s3 + $0x148] sm:$0xff] }
  0x66   : > { %843 = vmatpush.msra.mxu3 %v822_v37  ;;  %1056 = vmatpush.msra.mxu1 %v1845_v8  ;;  %v1840_v37 = vld [vmem:[%s3015_s3 + $0xc0] sm:$0xff] }
  0x67   : > { %430 = vmatmul.f32.gmra.mxu1 %v2241_v27  ;;  %915 = vmatpush.msra.mxu0 %v898_v38 }
  0x68   : > { %496 = vmatmul.f32.gmra.mxu2 %v2243_v28  ;;  %844 = vmatpush.msra.mxu3 %v821_v43  ;;  %v1856_v43 = vld [vmem:[%s3015_s3 + $0x140] sm:$0xff] }
  0x69   : > { %916 = vmatpush.msra.mxu0 %v897_v44  ;;  %1097 = vmatpush.msra.mxu2 %v1026_v15  ;;  %v1836_v15 = vld [vmem:[%s3015_s3 + $0xa0] sm:$0xff] }
  0x6a   : > { %635 = vmatmul.f32.gmra.mxu0 %v2154_v30  ;;  %845 = vmatpush.msra.mxu3 %v820_v45 }
  0x6b   : > { %917 = vmatpush.msra.mxu0 %v896_v46  ;;  %1098 = vmatpush.msra.mxu2 %v1025_v19  ;;  %v1019_v46 = vld [vmem:[%s3015_s3 + $0x30] sm:$0xff] }
  0x6c   : > { %846 = vmatpush.msra.mxu3 %v819_v47  ;;  %v1855_v47 = vld [vmem:[%s3015_s3 + $0x138] sm:$0xff]  ;;  %v1850_v19 = vld [vmem:[%s3015_s3 + $0x110] sm:$0xff] }
  0x6d   : > { %918 = vmatpush.msra.mxu0 %v895_v48  ;;  %564 = vmatmul.f32.gmra.mxu3 %v2233_v11  ;;  %v1018_v48 = vld [vmem:[%s3015_s3 + $0x28] sm:$0xff] }
  0x6e   : > { %847 = vmatpush.msra.mxu3 %v818_v49  ;;  %1099 = vmatpush.msra.mxu2 %v1024_v24  ;;  %v1854_v49 = vld [vmem:[%s3015_s3 + $0x130] sm:$0xff]  ;;  %v1013_v24 = vld [vmem:[%s3015_s3] sm:$0xff] }
  0x6f   : > { %433 = vmatmul.f32.gmra.mxu1 %v313_v39  ;;  %919 = vmatpush.msra.mxu0 %v894_v51  ;;  %v1879_v51 = vld [vmem:[%s3015_s3 + $0x1f8] sm:$0xff] }
  0x70   : > { %499 = vmatmul.f32.gmra.mxu2 %v2253_v42  ;;  %848 = vmatpush.msra.mxu3 %v817_v50  ;;  %v1839_v50 = vld [vmem:[%s3015_s3 + $0xb8] sm:$0xff] }
  0x71   : > { %920 = vmatpush.msra.mxu0 %v893_v52  ;;  %1100 = vmatpush.msra.mxu2 %v1023_v29  ;;  %v1017_v52 = vld [vmem:[%s3015_s3 + $0x20] sm:$0xff]  ;;  %v1874_v29 = vld [vmem:[%s3015_s3 + $0x1d0] sm:$0xff] }
  0x72   : > { %638 = vmatmul.f32.gmra.mxu0 %v2181_v57  ;;  %1161 = vmatpush.msrb.mxu3 %v1863_v13  ;;  %v1876_v13 = vld [vmem:[%s3015_s3 + $0x1e0] sm:$0xff] }
  0x73   : > { %921 = vmatpush.msra.mxu0 %v892_v53  ;;  %v1853_v53 = vld [vmem:[%s3015_s3 + $0x128] sm:$0xff] }
  0x74   : > { %1162 = vmatpush.msrb.mxu3 %v1862_v16 }
  0x75   : > { %567 = vmatmul.f32.gmra.mxu3 %v2241_v27  ;;  %922 = vmatpush.msra.mxu0 %v891_v58  ;;  %v1878_v58 = vld [vmem:[%s3015_s3 + $0x1f0] sm:$0xff] }
  0x76   : > { %1163 = vmatpush.msrb.mxu3 %v1861_v20  ;;  %v1875_v20 = vld [vmem:[%s3015_s3 + $0x1d8] sm:$0xff] }
  0x77   : > { %700 = vmatmul.f32.vlgmr.msrb.gmra.mxu1 %v2204_v14  ;;  %v518_v14 = vld [vmem:[#allocation2 + $0x80] sm:$0xff]  ;;  %1235 = vmatpush.msrb.mxu0 %v1879_v51  ;;  %v1870_v51 = vld [vmem:[%s3015_s3 + $0x1b0] sm:$0xff] }
  0x78   : > { %775 = vmatmul.f32.vlgmr.msrb.gmra.mxu2 %v2209_v25 }
  0x79   : > { %1236 = vmatpush.msrb.mxu0 %v1878_v58 }
  0x7a   : > { %641 = vmatmul.f32.gmra.mxu0 %v2189_v62 }
  0x7d   : > { %570 = vmatmul.f32.gmra.mxu3 %v313_v39 }
  0x7f   : > { %703 = vmatmul.f32.gmra.mxu1 %v2211_v26 }
  0x80   : > { %778 = vmatmul.f32.gmra.mxu2 %v2217_v40 }
  0x82   : > { %644 = vmatmul.f32.gmra.mxu0 %v2197_v5 }
  0x85   : > { %573 = vmatmul.f32.gmra.mxu3 %v518_v14 }
  0x87   : > { %706 = vmatmul.f32.gmra.mxu1 %v2219_v41 }
  0x88   : > { %781 = vmatmul.f32.gmra.mxu2 %v2225_v55 }
  0x8a   : > { %647 = vmatmul.f32.gmra.mxu0 %v2247_v32 }
  0x8d   : > { %849 = vmatmul.f32.vlgmr.msra.gmra.mxu3 %v2185_v61  ;;  %v666_v61 = vld [vmem:[#allocation2 + $0x82] sm:$0xff] }
  0x8f   : > { %709 = vmatmul.f32.gmra.mxu1 %v2227_v56 }
  0x90   : > { %784 = vmatmul.f32.gmra.mxu2 %v2233_v11  ;;  %v1844_v11 = vld [vmem:[%s3015_s3 + $0xe0] sm:$0xff] }
  0x91   : > { %1057 = vmatpush.msra.mxu1 %v1844_v11  ;;  %v1851_v11 = vld [vmem:[%s3015_s3 + $0x118] sm:$0xff] }
  0x92   : > { %923 = vmatmul.f32.vlgmr.msra.gmra.mxu0 %v2211_v26 }
  0x93   : > { %1058 = vmatpush.msra.mxu1 %v1843_v17  ;;  %v1014_v17 = vld [vmem:[%s3015_s3 + $0x8] sm:$0xff] }
  0x95   : > { %852 = vmatmul.f32.gmra.mxu3 %v2193_v2  ;;  %1059 = vmatpush.msra.mxu1 %v1842_v21  ;;  %v1835_v21 = vld [vmem:[%s3015_s3 + $0x98] sm:$0xff] }
  0x97   : > { %712 = vmatmul.f32.gmra.mxu1 %v2235_v12 }
  0x98   : > { %787 = vmatmul.f32.gmra.mxu2 %v2241_v27  ;;  %v1860_v27 = vld [vmem:[%s3015_s3 + $0x160] sm:$0xff]  ;;  %1060 = vmatpush.msra.mxu1 %v1841_v34 }
  0x99   : > { %1164 = vmatpush.msrb.mxu3 %v1860_v27  ;;  %v1849_v27 = vld [vmem:[%s3015_s3 + $0x108] sm:$0xff]  ;;  %v2508_v34 = vld [vmem:[#allocation2] sm:$0xff] }
  0x9a   : > { %926 = vmatmul.f32.gmra.mxu0 %v2219_v41  ;;  %1061 = vmatpush.msra.mxu1 %v1840_v37  ;;  %v1833_v37 = vld [vmem:[%s3015_s3 + $0x88] sm:$0xff] }
  0x9b   : > { %1165 = vmatpush.msrb.mxu3 %v1859_v31  ;;  %v1873_v31 = vld [vmem:[%s3015_s3 + $0x1c8] sm:$0xff] }
  0x9c   : > { %1062 = vmatpush.msra.mxu1 %v1839_v50 }
  0x9d   : > { %855 = vmatmul.f32.gmra.mxu3 %v2154_v30 }
  0x9e   : > { %1166 = vmatpush.msrb.mxu3 %v1858_v33 }
  0x9f   : > { %715 = vmatmul.f32.gmra.mxu1 %v2243_v28 }
  0xa0   : > { %790 = vmatmul.f32.gmra.mxu2 %v313_v39  ;;  %1167 = vmatpush.msrb.mxu3 %v1857_v36  ;;  %v1136_v36 = vld [vmem:[#allocation3 + $0x2] sm:$0xff] }
  0xa2   : > { %929 = vmatmul.f32.gmra.mxu0 %v2227_v56  ;;  %1168 = vmatpush.msrb.mxu3 %v1856_v43  ;;  %v1872_v43 = vld [vmem:[%s3015_s3 + $0x1c0] sm:$0xff] }
  0xa4   : > { %1169 = vmatpush.msrb.mxu3 %v1855_v47 }
  0xa5   : > { %858 = vmatmul.f32.gmra.mxu3 %v2181_v57 }
  0xa6   : > { %1170 = vmatpush.msrb.mxu3 %v1854_v49  ;;  %v1871_v49 = vld [vmem:[%s3015_s3 + $0x1b8] sm:$0xff] }
  0xa7   : > { %718 = vmatmul.f32.gmra.mxu1 %v2253_v42 }
  0xa8   : > { %793 = vmatmul.f32.gmra.mxu2 %v518_v14  ;;  %v1838_v14 = vld [vmem:[%s3015_s3 + $0xb0] sm:$0xff]  ;;  %1171 = vmatpush.msrb.mxu3 %v1853_v53  ;;  %v1869_v53 = vld [vmem:[%s3015_s3 + $0x1a8] sm:$0xff] }
  0xa9   : > { %1063 = vmatpush.msra.mxu1 %v1838_v14  ;;  %v1868_v14 = vld [vmem:[%s3015_s3 + $0x1a0] sm:$0xff] }
  0xaa   : > { %932 = vmatmul.f32.gmra.mxu0 %v2235_v12  ;;  %v2287_v25 = vpop.f32.mrf.mxu1  ;;  %1172 = vmatpush.msrb.mxu3 %v1852_v63  ;;  %v1866_v63 = vld [vmem:[%s3015_s3 + $0x190] sm:$0xff] }
  0xac   : > { %1173 = vmatpush.msrb.mxu3 %v1851_v11  ;;  %v1865_v11 = vld [vmem:[%s3015_s3 + $0x188] sm:$0xff] }
  0xad   : > { %v2285_v2 = vpop.f32.mrf.mxu0  ;;  %861 = vmatmul.f32.gmra.mxu3 %v2189_v62 }
  0xae   : > { %1174 = vmatpush.msrb.mxu3 %v1850_v19  ;;  %v1895_v19 = vld [vmem:[%s3015_s3 + $0x278] sm:$0xff] }
  0xaf   : > { %721 = vmatmul.f32.gmra.mxu1 %v666_v61  ;;  %v2290_v30 = vpop.f32.mrf.mxu3 }
  0xb0   : > { %796 = vmatmul.f32.gmra.mxu2 %v2069_v0  ;;  %1175 = vmatpush.msrb.mxu3 %v1849_v27 }
  0xb1   : > { %v2292_v26 = vpop.f32.mrf.mxu2 }
  0xb2   : > { %935 = vmatmul.f32.gmra.mxu0 %v2243_v28 }
  0xb5   : > { %v2295_v40 = vpop.f32.mrf.mxu0  ;;  %864 = vmatmul.f32.gmra.mxu3 %v2197_v5  ;;  %v815_v5 = vld [vmem:[#allocation2 + $0x91] sm:$0xff] }
  0xb8   : > { %v2300_v0 = vpop.f32.mrf.mxu3 }
  0xba   : > { %938 = vmatmul.f32.gmra.mxu0 %v2253_v42  ;;  %v1020_v42 = vld [vmem:[%s3015_s3 + $0x38] sm:$0xff] }
  0xbc   : > { %v2298_v57 = vpop.f32.mrf.mxu1 }
  0xbd   : > { %867 = vmatmul.f32.gmra.mxu3 %v2247_v32  ;;  %v1022_v32 = vld [vmem:[%s3015_s3 + $0x48] sm:$0xff] }
  0xbe   : > { %v2306_v62 = vpop.f32.mrf.mxu0  ;;  %1101 = vmatpush.msra.mxu2 %v1022_v32  ;;  %v1834_v32 = vld [vmem:[%s3015_s3 + $0x90] sm:$0xff] }
  0xc0   : > { %v2310_v56 = vpop.f32.mrf.mxu3  ;;  %1102 = vmatpush.msra.mxu2 %v1021_v35  ;;  %v1848_v35 = vld [vmem:[%s3015_s3 + $0x100] sm:$0xff] }
  0xc1   : > { %1176 = vmatpush.msrb.mxu3 %v1848_v35 }
  0xc2   : > { %941 = vmatmul.f32.gmra.mxu0 %v666_v61  ;;  %1103 = vmatpush.msra.mxu2 %v1020_v42  ;;  %v1877_v61 = vld [vmem:[%s3015_s3 + $0x1e8] sm:$0xff] }
  0xc3   : > { %v2303_v41 = vpop.f32.mrf.mxu2  ;;  %1237 = vmatpush.msrb.mxu0 %v1877_v61  ;;  %v1867_v61 = vld [vmem:[%s3015_s3 + $0x198] sm:$0xff] }
  0xc4   : > { %v2308_v55 = vpop.f32.mrf.mxu1  ;;  %1104 = vmatpush.msra.mxu2 %v1019_v46  ;;  %v1832_v46 = vld [vmem:[%s3015_s3 + $0x80] sm:$0xff] }
  0xc5   : > { %870 = vmatmul.f32.gmra.mxu3 %v815_v5  ;;  %1238 = vmatpush.msrb.mxu0 %v1876_v13 }
  0xc6   : > { %1105 = vmatpush.msra.mxu2 %v1018_v48  ;;  %v1029_v48 = vld [vmem:[#allocation3 + $0x1] sm:$0xff] }
  0xc7   : > { %v2320_v1 = vpop.f32.mrf.mxu0  ;;  %1239 = vmatpush.msrb.mxu0 %v1875_v20 }
  0xc8   : > { %v2322_v4 = vpop.f32.mrf.mxu3  ;;  %1106 = vmatpush.msra.mxu2 %v1017_v52 }
  0xc9   : > { %1240 = vmatpush.msrb.mxu0 %v1874_v29 }
  0xca   : > { %944 = vmatmul.f32.gmra.mxu0 %v889_v3  ;;  %v1837_v3 = vld [vmem:[%s3015_s3 + $0xa8] sm:$0xff]  ;;  %1107 = vmatpush.msra.mxu2 %v1016_v60 }
  0xcb   : > { %v2312_v59 = vpop.f32.mrf.mxu2  ;;  %1064 = vmatpush.msra.mxu1 %v1837_v3  ;;  %1241 = vmatpush.msrb.mxu0 %v1873_v31 }
  0xcc   : > { %v2324_v6 = vpop.f32.mrf.mxu1  ;;  %1108 = vmatpush.msra.mxu2 %v1015_v10 }
  0xcd   : > { %1065 = vmatpush.msra.mxu1 %v1836_v15  ;;  %1177 = vmatmul.f32.vlgmr.msrb.gmra.mxu3 %v1136_v36  ;;  %v414_v15 = vadd.f32 %v2287_v25, %v2285_v2  ;;  %v417_v2 = vadd.f32 %v2298_v57, %v2295_v40  ;;  %v1894_v25 = vld [vmem:[%s3015_s3 + $0x270] sm:$0xff] }
  0xce   : > { %1109 = vmatpush.msra.mxu2 %v1014_v17  ;;  %1242 = vmatpush.msrb.mxu0 %v1872_v43  ;;  %v1864_v17 = vld [vmem:[%s3015_s3 + $0x180] sm:$0xff] }
  0xcf   : > { %v2340_v12 = vpop.f32.mrf.mxu0  ;;  %1066 = vmatpush.msra.mxu1 %v1835_v21  ;;  %v503_v20 = vadd.f32 %v2292_v26, %v414_v15  ;;  %v1911_v26 = vld [vmem:[%s3015_s3 + $0x2f8] sm:$0xff]  ;;  %v504_v35 = vadd.f32 %v2303_v41, %v417_v2  ;;  %v1910_v41 = vld [vmem:[%s3015_s3 + $0x2f0] sm:$0xff] }
  0xd0   : > { %v2342_v54 = vpop.f32.mrf.mxu3  ;;  %1110 = vmatpush.msra.mxu2 %v1013_v24  ;;  %1243 = vmatpush.msrb.mxu0 %v1871_v49  ;;  %v1927_v2 = vld [vmem:[%s3015_s3 + $0x378] sm:$0xff] }
  0xd1   : > { %1111 = vmatmul.f32.vlgmr.msra.gmra.mxu2 %v2508_v34  ;;  %1067 = vmatpush.msra.mxu1 %v1834_v32  ;;  %v577_v27 = vadd.f32 %v2342_v54, %v503_v20  ;;  %v1893_v54 = vld [vmem:[%s3015_s3 + $0x268] sm:$0xff]  ;;  %v423_v20 = vadd.f32 %v2324_v6, %v2320_v1 }
  0xd2   : > { %1244 = vmatpush.msrb.mxu0 %v1870_v51  ;;  %1383 = vmatpush.msrb.mxu2 %v1911_v26  ;;  %v1909_v51 = vld [vmem:[%s3015_s3 + $0x2e8] sm:$0xff] }
  0xd3   : > { %v2332_v9 = vpop.f32.mrf.mxu2  ;;  %1068 = vmatpush.msra.mxu1 %v1833_v37  ;;  %v651_v32 = vadd.f32 %v2340_v12, %v577_v27  ;;  %v2589_v12 = vld [vmem:[%s3014_s2] ss:$0 sm:$0xff]  ;;  %v1889_v1 = vld [vmem:[%s3015_s3 + $0x248] sm:$0xff]  ;;  %1458 = vmatpush.msra.mxu3 %v1927_v2  ;;  %v1903_v2 = vld [vmem:[%s3015_s3 + $0x2b8] sm:$0xff] }
  0xd4   : > { %v2356_v18 = vpop.f32.mrf.mxu1  ;;  %1245 = vmatpush.msrb.mxu0 %v1869_v53  ;;  %1384 = vmatpush.msrb.mxu2 %v1910_v41  ;;  %v1905_v41 = vld [vmem:[%s3015_s3 + $0x2c8] sm:$0xff] }
  0xd5   : > { %1069 = vmatpush.msra.mxu1 %v1832_v46 }
  0xd6   : > { %1070 = vmatmul.f32.vlgmr.msra.gmra.mxu1 %v1029_v48  ;;  %1246 = vmatpush.msrb.mxu0 %v1868_v14  ;;  %v420_v48 = vadd.f32 %v2308_v55, %v2306_v62  ;;  %v1891_v62 = vld [vmem:[%s3015_s3 + $0x258] sm:$0xff] }
  0xd7   : > { %v2369_v23 = vpop.f32.mrf.mxu0  ;;  %1309 = vmatpush.msrb.mxu1 %v1895_v19  ;;  %1385 = vmatpush.msrb.mxu2 %v1909_v51  ;;  %v426_v51 = vadd.f32 %v2356_v18, %v2290_v30  ;;  %v1923_v18 = vld [vmem:[%s3015_s3 + $0x358] sm:$0xff] }
  0xd8   : > { %v2377_v28 = vpop.f32.mrf.mxu3  ;;  %1247 = vmatpush.msrb.mxu0 %v1867_v61  ;;  %v505_v61 = vadd.f32 %v2312_v59, %v420_v48  ;;  %v1908_v59 = vld [vmem:[%s3015_s3 + $0x2e0] sm:$0xff] }
  0xd9   : > { %1310 = vmatpush.msrb.mxu1 %v1894_v25  ;;  %v578_v36 = vadd.f32 %v2377_v28, %v504_v35  ;;  %v1892_v28 = vld [vmem:[%s3015_s3 + $0x260] sm:$0xff]  ;;  %1386 = vmatpush.msrb.mxu2 %v1908_v59  ;;  %v1926_v35 = vld [vmem:[%s3015_s3 + $0x370] sm:$0xff] }
  0xda   : > { %1248 = vmatpush.msrb.mxu0 %v1866_v63  ;;  %1459 = vmatpush.msra.mxu3 %v1926_v35  ;;  %v1939_v35 = vld [vmem:[%s3015_s3 + $0x3d8] sm:$0xff] }
  0xdb   : > { %v2367_v22 = vpop.f32.mrf.mxu2  ;;  %1311 = vmatpush.msrb.mxu1 %v1893_v54  ;;  %v652_v55 = vadd.f32 %v2369_v23, %v578_v36 }
  0xdc   : > { %v2403_v38 = vpop.f32.mrf.mxu1  ;;  %1249 = vmatpush.msrb.mxu0 %v1865_v11 }
  0xdd   : > { %1312 = vmatpush.msrb.mxu1 %v1892_v28  ;;  %v1887_v28 = vld [vmem:[%s3015_s3 + $0x238] sm:$0xff] }
  0xde   : > { %1250 = vmatpush.msrb.mxu0 %v1864_v17 }
  0xdf   : > { %v2405_v39 = vpop.f32.mrf.mxu0  ;;  %1313 = vmatpush.msrb.mxu1 %v1891_v62 }
  0xe0   : > { %v2415_v45 = vpop.f32.mrf.mxu3 }
  0xe1   : > { %v579_v11 = vadd.f32 %v2415_v45, %v505_v61  ;;  %v1890_v45 = vld [vmem:[%s3015_s3 + $0x250] sm:$0xff] }
  0xe2   : > { %1314 = vmatpush.msrb.mxu1 %v1890_v45 }
  0xe3   : > { %v2413_v44 = vpop.f32.mrf.mxu2  ;;  %v653_v6 = vadd.f32 %v2405_v39, %v579_v11 }
  0xe4   : > { %v2461_v7 = vpop.f32.mrf.mxu1  ;;  %1315 = vmatpush.msrb.mxu1 %v1889_v1  ;;  %v1904_v1 = vld [vmem:[%s3015_s3 + $0x2c0] sm:$0xff] }
  0xe7   : > { %v2450_v5 = vpop.f32.mrf.mxu0 }
  0xe8   : > { %v2463_v8 = vpop.f32.mrf.mxu3 }
  0xeb   : > { %v2477_v16 = vpop.f32.mrf.mxu2 }
  0xec   : > { %v2525_v47 = vpop.f32.mrf.mxu1 }
  0xef   : > { %v2506_v33 = vpop.f32.mrf.mxu0 }
  0xf0   : > { %v2517_v42 = vpop.f32.mrf.mxu3 }
  0xf3   : > { %v2530_v50 = vpop.f32.mrf.mxu2 }
  0xf4   : > { %v701_v60 = vpop.f32.mrf.mxu1 }
  0xf5   : > { %v725_v40 = vadd.f32 %v701_v60, %v651_v32  ;;  %v506_v32 = vadd.f32 %v2332_v9, %v423_v20 }
  0xf7   : > { %v2535_v52 = vpop.f32.mrf.mxu0  ;;  %v580_v39 = vadd.f32 %v2463_v8, %v506_v32  ;;  %v1888_v8 = vld [vmem:[%s3015_s3 + $0x240] sm:$0xff]  ;;  %v429_v32 = vadd.f32 %v2403_v38, %v2300_v0 }
  0xf8   : > { %v2540_v58 = vpop.f32.mrf.mxu3  ;;  %1316 = vmatpush.msrb.mxu1 %v1888_v8 }
  0xf9   : > { %v508_v0 = vadd.f32 %v2413_v44, %v429_v32 }
  0xfa   : > { %1317 = vmatpush.msrb.mxu1 %v1887_v28 }
  0xfb   : > { %v776_v3 = vpop.f32.mrf.mxu2  ;;  %v582_v44 = vadd.f32 %v2540_v58, %v508_v0  ;;  %v1901_v58 = vld [vmem:[%s3015_s3 + $0x2a8] sm:$0xff] }
  0xfc   : > { %v704_v21 = vpop.f32.mrf.mxu1  ;;  %v800_v37 = vadd.f32 %v776_v3, %v725_v40 }
  0xfd   : > { %v726_v60 = vadd.f32 %v704_v21, %v652_v55  ;;  %v1907_v21 = vld [vmem:[%s3015_s3 + $0x2d8] sm:$0xff]  ;;  %v1924_v55 = vld [vmem:[%s3015_s3 + $0x360] sm:$0xff] }
  0xfe   : > { %1387 = vmatpush.msrb.mxu2 %v1907_v21 }
  0xff   : > { %v2551_v10 = vpop.f32.mrf.mxu0 }
 0x100   : > { %v2556_v13 = vpop.f32.mrf.mxu3 }
 0x103   : > { %v779_v29 = vpop.f32.mrf.mxu2 }
 0x104   : > { %v707_v43 = vpop.f32.mrf.mxu1  ;;  %v801_v15 = vadd.f32 %v779_v29, %v726_v60  ;;  %v507_v60 = vadd.f32 %v2367_v22, %v426_v51 }
 0x105   : > { %v727_v26 = vadd.f32 %v707_v43, %v653_v6  ;;  %v1906_v43 = vld [vmem:[%s3015_s3 + $0x2d0] sm:$0xff]  ;;  %v1885_v6 = vld [vmem:[%s3015_s3 + $0x228] sm:$0xff] }
 0x106   : > { %1388 = vmatpush.msrb.mxu2 %v1906_v43  ;;  %v581_v22 = vadd.f32 %v2517_v42, %v507_v60  ;;  %v1918_v60 = vld [vmem:[%s3015_s3 + $0x330] sm:$0xff] }
 0x107   : > { %v2567_v24 = vpop.f32.mrf.mxu0 }
 0x108   : > { %v2570_v31 = vpop.f32.mrf.mxu3  ;;  %1389 = vmatpush.msrb.mxu2 %v1905_v41  ;;  %v1919_v41 = vld [vmem:[%s3015_s3 + $0x338] sm:$0xff] }
 0x10a   : > { %1390 = vmatpush.msrb.mxu2 %v1904_v1  ;;  %v1916_v1 = vld [vmem:[%s3015_s3 + $0x320] sm:$0xff] }
 0x10b   : > { %v782_v53 = vpop.f32.mrf.mxu2 }
 0x10c   : > { %v710_v27 = vpop.f32.mrf.mxu1  ;;  %1391 = vmatpush.msrb.mxu2 %v1903_v2 }
 0x10f   : > { %v924_v57 = vpop.f32.mrf.mxu0 }
 0x110   : > { %v850_v46 = vpop.f32.mrf.mxu3 }
 0x111   : > { %v874_v49 = vadd.f32 %v850_v46, %v800_v37 }
 0x113   : > { %v948_v14 = vadd.f32 %v924_v57, %v874_v49  ;;  %v785_v25 = vpop.f32.mrf.mxu2  ;;  %v802_v57 = vadd.f32 %v782_v53, %v727_v26  ;;  %v1925_v49 = vld [vmem:[%s3015_s3 + $0x368] sm:$0xff]  ;;  %v654_v53 = vadd.f32 %v2450_v5, %v580_v39  ;;  %v1942_v5 = vld [vmem:[%s3015_s3 + $0x3f0] sm:$0xff]  ;;  %v655_v26 = vadd.f32 %v2506_v33, %v581_v22  ;;  %v1920_v39 = vld [vmem:[%s3015_s3 + $0x340] sm:$0xff] }
 0x114   : > { %v713_v61 = vpop.f32.mrf.mxu1  ;;  %1460 = vmatpush.msra.mxu3 %v1925_v49 }
 0x115   : > { %v960_v63 = vadd.f32 %v2589_v12, %v948_v14  ;;  %v1943_v14 = vld [vmem:[%s3015_s3 + $0x3f8] sm:$0xff]  ;;  %v729_v38 = vadd.f32 %v713_v61, %v655_v26  ;;  %v1882_v61 = vld [vmem:[%s3015_s3 + $0x210] sm:$0xff] }
 0x116   : > { %1532 = vmatpush.msra.mxu0 %v1943_v14  ;;  %1461 = vmatpush.msra.mxu3 %v1924_v55  ;;  %v1937_v14 = vld [vmem:[%s3015_s3 + $0x3c8] sm:$0xff]  ;;  %v1934_v26 = vld [vmem:[%s3015_s3 + $0x3b0] sm:$0xff] }
 0x117   : > { %v927_v3 = vpop.f32.mrf.mxu0  ;;  %v2609_v17 = vmax.f32 %v960_v63, 0.0  ;;  %v728_v63 = vadd.f32 %v710_v27, %v654_v53  ;;  %v1922_v27 = vld [vmem:[%s3015_s3 + $0x350] sm:$0xff] }
 0x118   : > { %v853_v19 = vpop.f32.mrf.mxu3  ;;  %1533 = vmatpush.msra.mxu0 %v1942_v5  ;;  %1462 = vmatpush.msra.mxu3 %v1923_v18  ;;  %v656_v18 = vadd.f32 %v2535_v52, %v582_v44 }
 0x119   : > { %997 = vst [vmem:[#allocation3 + $0x11] sm:$0xff] %v2609_v17  ;;  %v875_v23 = vadd.f32 %v853_v19, %v801_v15  ;;  %1073 = vmatmul.f32.gmra.mxu1 %v2609_v17  ;;  %v803_v19 = vadd.f32 %v785_v25, %v728_v63  ;;  %v1940_v25 = vld [vmem:[%s3015_s3 + $0x3e0] sm:$0xff] }
 0x11a   : > { %1463 = vmatpush.msra.mxu3 %v1922_v27  ;;  %v1900_v63 = vld [vmem:[%s3015_s3 + $0x2a0] sm:$0xff] }
 0x11b   : > { %v949_v29 = vadd.f32 %v927_v3, %v875_v23  ;;  %v1886_v3 = vld [vmem:[%s3015_s3 + $0x230] sm:$0xff]  ;;  %v788_v11 = vpop.f32.mrf.mxu2  ;;  %v1941_v23 = vld [vmem:[%s3015_s3 + $0x3e8] sm:$0xff] }
 0x11c   : > { %1318 = vmatpush.msrb.mxu1 %v1886_v3  ;;  %1534 = vmatpush.msra.mxu0 %v1941_v23  ;;  %v804_v8 = vadd.f32 %v788_v11, %v729_v38  ;;  %v1936_v3 = vld [vmem:[%s3015_s3 + $0x3c0] sm:$0xff]  ;;  %v1881_v11 = vld [vmem:[%s3015_s3 + $0x208] sm:$0xff] }
 0x11d   : > { %v961_v54 = vadd.f32 %v2589_v12, %v949_v29  ;;  %v1921_v29 = vld [vmem:[%s3015_s3 + $0x348] sm:$0xff]  ;;  %v1880_v23 = vld [vmem:[%s3015_s3 + $0x200] sm:$0xff] }
 0x11e   : > { %1535 = vmatpush.msra.mxu0 %v1940_v25  ;;  %1319 = vmatpush.msrb.mxu1 %v1885_v6 }
 0x11f   : > { %v930_v40 = vpop.f32.mrf.mxu0  ;;  %v2637_v36 = vmax.f32 %v961_v54, 0.0  ;;  %1464 = vmatpush.msra.mxu3 %v1921_v29 }
 0x120   : > { %v856_v37 = vpop.f32.mrf.mxu3  ;;  %v1006_v46 = vld [vmem:[#allocation3 + $0x10] sm:$0xff]  ;;  %1536 = vmatpush.msra.mxu0 %v1939_v35  ;;  %v1915_v35 = vld [vmem:[%s3015_s3 + $0x318] sm:$0xff] }
 0x121   : > { %v2639_v48 = vld [vmem:[#allocation3 + $0x12] sm:$0xff]  ;;  %998 = vst [vmem:[#allocation3 + $0x21] sm:$0xff] %v2637_v36  ;;  %v876_v9 = vadd.f32 %v856_v37, %v802_v57  ;;  %1114 = vmatmul.f32.gmra.mxu2 %v1006_v46  ;;  %1251 = vmatmul.f32.vlgmr.msrb.gmra.mxu0 %v1006_v46 }
 0x122   : > { %1180 = vmatmul.f32.gmra.mxu3 %v2639_v48  ;;  %1076 = vmatmul.f32.gmra.mxu1 %v2637_v36  ;;  %v1902_v57 = vld [vmem:[%s3015_s3 + $0x2b0] sm:$0xff]  ;;  %v1883_v46 = vld [vmem:[%s3015_s3 + $0x218] sm:$0xff] }
 0x123   : > { %v950_v62 = vadd.f32 %v930_v40, %v876_v9  ;;  %v1884_v40 = vld [vmem:[%s3015_s3 + $0x220] sm:$0xff]  ;;  %v1938_v37 = vld [vmem:[%s3015_s3 + $0x3d0] sm:$0xff]  ;;  %v716_v9 = vpop.f32.mrf.mxu1  ;;  %1465 = vmatpush.msra.mxu3 %v1920_v39  ;;  %1392 = vmatpush.msrb.mxu2 %v1902_v57  ;;  %v791_v28 = vpop.f32.mrf.mxu2  ;;  %v435_v39 = vadd.f32 %v2525_v47, %v2322_v4 }
 0x124   : > { %1320 = vmatpush.msrb.mxu1 %v1884_v40  ;;  %1537 = vmatpush.msra.mxu0 %v1938_v37  ;;  %v730_v52 = vadd.f32 %v716_v9, %v656_v18  ;;  %v1897_v40 = vld [vmem:[%s3015_s3 + $0x288] sm:$0xff]  ;;  %v1914_v57 = vld [vmem:[%s3015_s3 + $0x310] sm:$0xff]  ;;  %v1896_v37 = vld [vmem:[%s3015_s3 + $0x280] sm:$0xff] }
 0x125   : > { %v962_v30 = vadd.f32 %v2589_v12, %v950_v62  ;;  %1466 = vmatpush.msra.mxu3 %v1919_v41  ;;  %1393 = vmatpush.msrb.mxu2 %v1901_v58  ;;  %v510_v4 = vadd.f32 %v2530_v50, %v435_v39  ;;  %v1913_v50 = vld [vmem:[%s3015_s3 + $0x308] sm:$0xff]  ;;  %v1931_v58 = vld [vmem:[%s3015_s3 + $0x398] sm:$0xff]  ;;  %v1958_v18 = vld [vmem:[%s3015_s3 + $0x470] sm:$0xff] }
 0x126   : > { %1321 = vmatpush.msrb.mxu1 %v1883_v46  ;;  %1538 = vmatpush.msra.mxu0 %v1937_v14  ;;  %v1932_v46 = vld [vmem:[%s3015_s3 + $0x3a0] sm:$0xff] }
 0x127   : > { %v933_v15 = vpop.f32.mrf.mxu0  ;;  %v2680_v20 = vmax.f32 %v962_v30, 0.0  ;;  %v432_v30 = vadd.f32 %v2461_v7, %v2310_v56  ;;  %v1899_v56 = vld [vmem:[%s3015_s3 + $0x298] sm:$0xff]  ;;  %1467 = vmatpush.msra.mxu3 %v1918_v60  ;;  %1394 = vmatpush.msrb.mxu2 %v1900_v63  ;;  %v1912_v14 = vld [vmem:[%s3015_s3 + $0x300] sm:$0xff] }
 0x128   : > { %v859_v59 = vpop.f32.mrf.mxu3  ;;  %v2685_v45 = vld [vmem:[#allocation3 + $0x20] sm:$0xff]  ;;  %1322 = vmatpush.msrb.mxu1 %v1882_v61  ;;  %1539 = vmatpush.msra.mxu0 %v1936_v3  ;;  %v1930_v61 = vld [vmem:[%s3015_s3 + $0x390] sm:$0xff]  ;;  %v1959_v60 = vld [vmem:[%s3015_s3 + $0x478] sm:$0xff] }
 0x129   : > { %v2687_v21 = vld [vmem:[#allocation3 + $0x22] sm:$0xff]  ;;  %999 = vst [vmem:[#allocation3 + $0x31] sm:$0xff] %v2680_v20  ;;  %v877_v42 = vadd.f32 %v859_v59, %v803_v19  ;;  %1117 = vmatmul.f32.gmra.mxu2 %v2685_v45  ;;  %1254 = vmatmul.f32.gmra.mxu0 %v2685_v45  ;;  %v509_v7 = vadd.f32 %v2477_v16, %v432_v30  ;;  %v1935_v19 = vld [vmem:[%s3015_s3 + $0x3b8] sm:$0xff] }
 0x12a   : > { %1183 = vmatmul.f32.gmra.mxu3 %v2687_v21  ;;  %1079 = vmatmul.f32.gmra.mxu1 %v2680_v20  ;;  %v1929_v3 = vld [vmem:[%s3015_s3 + $0x388] sm:$0xff] }
 0x12b   : > { %v951_v54 = vadd.f32 %v933_v15, %v877_v42  ;;  %v1917_v15 = vld [vmem:[%s3015_s3 + $0x328] sm:$0xff]  ;;  %1323 = vmatpush.msrb.mxu1 %v1881_v11  ;;  %v583_v27 = vadd.f32 %v2556_v13, %v509_v7  ;;  %v805_v42 = vadd.f32 %v791_v28, %v730_v52  ;;  %1395 = vmatpush.msrb.mxu2 %v1899_v56  ;;  %v719_v6 = vpop.f32.mrf.mxu1  ;;  %v1898_v13 = vld [vmem:[%s3015_s3 + $0x290] sm:$0xff] }
 0x12c   : > { %1468 = vmatpush.msra.mxu3 %v1917_v15  ;;  %1540 = vmatpush.msra.mxu0 %v1935_v19 }
 0x12d   : > { %v963_v33 = vadd.f32 %v2589_v12, %v951_v54  ;;  %1324 = vmatpush.msrb.mxu1 %v1880_v23  ;;  %v794_v54 = vpop.f32.mrf.mxu2  ;;  %v657_v0 = vadd.f32 %v2551_v10, %v583_v27  ;;  %1396 = vmatpush.msrb.mxu2 %v1898_v13  ;;  %v1928_v23 = vld [vmem:[%s3015_s3 + $0x380] sm:$0xff]  ;;  %v1957_v27 = vld [vmem:[%s3015_s3 + $0x468] sm:$0xff] }
 0x12e   : > { %1469 = vmatpush.msra.mxu3 %v1916_v1  ;;  %1541 = vmatpush.msra.mxu0 %v1934_v26  ;;  %v1954_v26 = vld [vmem:[%s3015_s3 + $0x450] sm:$0xff] }
 0x12f   : > { %v936_v43 = vpop.f32.mrf.mxu0  ;;  %v2736_v49 = vmax.f32 %v963_v33, 0.0  ;;  %v1933_v33 = vld [vmem:[%s3015_s3 + $0x3a8] sm:$0xff]  ;;  %v731_v47 = vadd.f32 %v719_v6, %v657_v0  ;;  %1397 = vmatpush.msrb.mxu2 %v1897_v40  ;;  %1606 = vmatpush.msra.mxu1 %v1959_v60  ;;  %v1947_v40 = vld [vmem:[%s3015_s3 + $0x418] sm:$0xff] }
 0x130   : > { %v862_v51 = vpop.f32.mrf.mxu3  ;;  %v2741_v53 = vld [vmem:[#allocation3 + $0x30] sm:$0xff]  ;;  %1470 = vmatpush.msra.mxu3 %v1915_v35  ;;  %1542 = vmatpush.msra.mxu0 %v1933_v33  ;;  %v1952_v35 = vld [vmem:[%s3015_s3 + $0x440] sm:$0xff] }
 0x131   : > { %v2743_v62 = vld [vmem:[#allocation3 + $0x32] sm:$0xff]  ;;  %1000 = vst [vmem:[#allocation3 + $0x41] sm:$0xff] %v2736_v49  ;;  %v878_v55 = vadd.f32 %v862_v51, %v804_v8  ;;  %1120 = vmatmul.f32.gmra.mxu2 %v2741_v53  ;;  %1257 = vmatmul.f32.gmra.mxu0 %v2741_v53  ;;  %v806_v44 = vadd.f32 %v794_v54, %v731_v47  ;;  %v1944_v33 = vld [vmem:[%s3015_s3 + $0x400] sm:$0xff] }
 0x132   : > { %1186 = vmatmul.f32.gmra.mxu3 %v2743_v62  ;;  %1082 = vmatmul.f32.gmra.mxu1 %v2736_v49 }
 0x133   : > { %v952_v5 = vadd.f32 %v936_v43, %v878_v55  ;;  %v584_v43 = vadd.f32 %v2570_v31, %v510_v4  ;;  %1471 = vmatpush.msra.mxu3 %v1914_v57  ;;  %1398 = vmatpush.msrb.mxu2 %v1896_v37  ;;  %v722_v55 = vpop.f32.mrf.mxu1  ;;  %v1514_v4 = vld [vmem:[#allocation3 + $0x91] sm:$0xff] }
 0x134   : > { %1543 = vmatpush.msra.mxu0 %v1932_v46  ;;  %1607 = vmatpush.msra.mxu1 %v1958_v18 }
 0x135   : > { %v964_v22 = vadd.f32 %v2589_v12, %v952_v5  ;;  %v658_v63 = vadd.f32 %v2567_v24, %v584_v43  ;;  %1472 = vmatpush.msra.mxu3 %v1913_v50  ;;  %v797_v5 = vpop.f32.mrf.mxu2  ;;  %1983 = vmatpush.msra.mxu2 %v1959_v60 }
 0x136   : > { %1544 = vmatpush.msra.mxu0 %v1931_v58  ;;  %1608 = vmatpush.msra.mxu1 %v1957_v27 }
 0x137   : > { %v939_v59 = vpop.f32.mrf.mxu0  ;;  %v2789_v16 = vmax.f32 %v964_v22, 0.0  ;;  %v732_v11 = vadd.f32 %v722_v55, %v658_v63  ;;  %1473 = vmatpush.msra.mxu3 %v1912_v14  ;;  %1984 = vmatpush.msra.mxu2 %v1958_v18 }
 0x138   : > { %v865_v29 = vpop.f32.mrf.mxu3  ;;  %v2794_v2 = vld [vmem:[#allocation3 + $0x40] sm:$0xff]  ;;  %1545 = vmatpush.msra.mxu0 %v1930_v61 }
 0x139   : > { %v2796_v25 = vld [vmem:[#allocation3 + $0x42] sm:$0xff]  ;;  %1001 = vst [vmem:[#allocation3 + $0x51] sm:$0xff] %v2789_v16  ;;  %v879_v32 = vadd.f32 %v865_v29, %v805_v42  ;;  %1123 = vmatmul.f32.gmra.mxu2 %v2794_v2  ;;  %1260 = vmatmul.f32.gmra.mxu0 %v2794_v2  ;;  %v807_v24 = vadd.f32 %v797_v5, %v732_v11 }
 0x13a   : > { %1189 = vmatmul.f32.gmra.mxu3 %v2796_v25  ;;  %1085 = vmatmul.f32.gmra.mxu1 %v2789_v16  ;;  %v1956_v42 = vld [vmem:[%s3015_s3 + $0x460] sm:$0xff] }
 0x13b   : > { %v953_v38 = vadd.f32 %v939_v59, %v879_v32  ;;  %1546 = vmatpush.msra.mxu0 %v1929_v3  ;;  %1985 = vmatpush.msra.mxu2 %v1957_v27 }
 0x13c   : > { %1609 = vmatpush.msra.mxu1 %v1956_v42 }
 0x13d   : > { %v965_v10 = vadd.f32 %v2589_v12, %v953_v38  ;;  %1547 = vmatpush.msra.mxu0 %v1928_v23  ;;  %1986 = vmatpush.msra.mxu2 %v1956_v42 }
 0x13f   : > { %v942_v9 = vpop.f32.mrf.mxu0  ;;  %v2833_v8 = vmax.f32 %v965_v10, 0.0 }
 0x140   : > { %v868_v41 = vpop.f32.mrf.mxu3  ;;  %v2838_v28 = vld [vmem:[#allocation3 + $0x50] sm:$0xff] }
 0x141   : > { %v2840_v51 = vld [vmem:[#allocation3 + $0x52] sm:$0xff]  ;;  %1002 = vst [vmem:[#allocation3 + $0x61] sm:$0xff] %v2833_v8  ;;  %v880_v31 = vadd.f32 %v868_v41, %v806_v44  ;;  %1126 = vmatmul.f32.gmra.mxu2 %v2838_v28  ;;  %1263 = vmatmul.f32.gmra.mxu0 %v2838_v28 }
 0x142   : > { %1192 = vmatmul.f32.gmra.mxu3 %v2840_v51  ;;  %1088 = vmatmul.f32.gmra.mxu1 %v2833_v8  ;;  %v1588_v44 = vld [vmem:[#allocation3 + $0x92] sm:$0xff] }
 0x143   : > { %v954_v30 = vadd.f32 %v942_v9, %v880_v31 }
 0x145   : > { %v966_v15 = vadd.f32 %v2589_v12, %v954_v30 }
 0x147   : > { %v2867_v56 = vmax.f32 %v966_v15, 0.0  ;;  %v945_v19 = vpop.f32.mrf.mxu0 }
 0x148   : > { %v871_v7 = vpop.f32.mrf.mxu3  ;;  %v2869_v52 = vld [vmem:[#allocation3 + $0x60] sm:$0xff] }
 0x149   : > { %v2871_v22 = vld [vmem:[#allocation3 + $0x62] sm:$0xff]  ;;  %1003 = vst [vmem:[#allocation3 + $0x71] sm:$0xff] %v2867_v56  ;;  %v881_v59 = vadd.f32 %v871_v7, %v807_v24  ;;  %1129 = vmatmul.f32.gmra.mxu2 %v2869_v52  ;;  %1266 = vmatmul.f32.gmra.mxu0 %v2869_v52 }
 0x14a   : > { %1195 = vmatmul.f32.gmra.mxu3 %v2871_v22  ;;  %1091 = vmatmul.f32.gmra.mxu1 %v2867_v56 }
 0x14b   : > { %v955_v1 = vadd.f32 %v945_v19, %v881_v59 }
 0x14d   : > { %v967_v6 = vadd.f32 %v2589_v12, %v955_v1  ;;  %v1955_v12 = vld [vmem:[%s3015_s3 + $0x458] sm:$0xff] }
 0x14e   : > { %1610 = vmatpush.msra.mxu1 %v1955_v12  ;;  %1987 = vmatpush.msra.mxu2 %v1955_v12 }
 0x14f   : > { %v2888_v29 = vmax.f32 %v967_v6, 0.0 }
 0x150   : > { %v2890_v13 = vld [vmem:[#allocation3 + $0x70] sm:$0xff]  ;;  %1611 = vmatpush.msra.mxu1 %v1954_v26  ;;  %1988 = vmatpush.msra.mxu2 %v1954_v26  ;;  %v1178_v57 = vpop.f32.mrf.mxu3 }
 0x151   : > { %v2892_v32 = vld [vmem:[#allocation3 + $0x72] sm:$0xff]  ;;  %1004 = vst [vmem:[#allocation3 + $0x81] sm:$0xff] %v2888_v29  ;;  %1132 = vmatmul.f32.gmra.mxu2 %v2890_v13  ;;  %1269 = vmatmul.f32.gmra.mxu0 %v2890_v13 }
 0x152   : > { %1198 = vmatmul.f32.gmra.mxu3 %v2892_v32  ;;  %1325 = vmatmul.f32.vlgmr.msrb.gmra.mxu1 %v2609_v17  ;;  %v1953_v17 = vld [vmem:[%s3015_s3 + $0x448] sm:$0xff] }
 0x153   : > { %1612 = vmatpush.msra.mxu1 %v1953_v17  ;;  %1989 = vmatpush.msra.mxu2 %v1953_v17  ;;  %v1071_v39 = vpop.f32.mrf.mxu1 }
 0x154   : > { %v1112_v0 = vpop.f32.mrf.mxu2 }
 0x155   : > { %1613 = vmatpush.msra.mxu1 %v1952_v35  ;;  %1990 = vmatpush.msra.mxu2 %v1952_v35  ;;  %v1113_v38 = vadd.f32 %v1112_v0, %v1071_v39 }
 0x157   : > { %v1202_v37 = vadd.f32 %v1178_v57, %v1113_v38 }
 0x158   : > { %v1217_v54 = vld [vmem:[#allocation3 + $0x80] sm:$0xff] }
 0x159   : > { %1399 = vmatmul.f32.vlgmr.msrb.gmra.mxu2 %v2639_v48  ;;  %1272 = vmatmul.f32.gmra.mxu0 %v1217_v54  ;;  %v1951_v48 = vld [vmem:[%s3015_s3 + $0x438] sm:$0xff] }
 0x15a   : > { %1474 = vmatmul.f32.vlgmr.msra.gmra.mxu3 %v2685_v45  ;;  %1328 = vmatmul.f32.gmra.mxu1 %v2637_v36  ;;  %v1950_v45 = vld [vmem:[%s3015_s3 + $0x430] sm:$0xff] }
 0x15b   : > { %1614 = vmatpush.msra.mxu1 %v1951_v48  ;;  %1991 = vmatpush.msra.mxu2 %v1951_v48 }
 0x15d   : > { %1615 = vmatpush.msra.mxu1 %v1950_v45  ;;  %1992 = vmatpush.msra.mxu2 %v1950_v45 }
 0x161   : > { %1402 = vmatmul.f32.gmra.mxu2 %v2687_v21  ;;  %1548 = vmatmul.f32.vlgmr.msra.gmra.mxu0 %v2637_v36  ;;  %v1948_v36 = vld [vmem:[%s3015_s3 + $0x420] sm:$0xff] }
 0x162   : > { %1477 = vmatmul.f32.gmra.mxu3 %v2741_v53  ;;  %1331 = vmatmul.f32.gmra.mxu1 %v2680_v20  ;;  %v1949_v53 = vld [vmem:[%s3015_s3 + $0x428] sm:$0xff] }
 0x163   : > { %1616 = vmatpush.msra.mxu1 %v1949_v53  ;;  %1993 = vmatpush.msra.mxu2 %v1949_v53 }
 0x165   : > { %1617 = vmatpush.msra.mxu1 %v1948_v36  ;;  %1994 = vmatpush.msra.mxu2 %v1948_v36 }
 0x167   : > { %1618 = vmatpush.msra.mxu1 %v1947_v40  ;;  %1995 = vmatpush.msra.mxu2 %v1947_v40 }
 0x169   : > { %1405 = vmatmul.f32.gmra.mxu2 %v2743_v62  ;;  %1551 = vmatmul.f32.gmra.mxu0 %v2680_v20  ;;  %v1945_v20 = vld [vmem:[%s3015_s3 + $0x408] sm:$0xff] }
 0x16a   : > { %1480 = vmatmul.f32.gmra.mxu3 %v2794_v2  ;;  %1334 = vmatmul.f32.gmra.mxu1 %v2736_v49  ;;  %v1946_v2 = vld [vmem:[%s3015_s3 + $0x410] sm:$0xff] }
 0x16b   : > { %1619 = vmatpush.msra.mxu1 %v1946_v2  ;;  %1996 = vmatpush.msra.mxu2 %v1946_v2 }
 0x16d   : > { %1620 = vmatpush.msra.mxu1 %v1945_v20  ;;  %1997 = vmatpush.msra.mxu2 %v1945_v20 }
 0x16f   : > { %1621 = vmatpush.msra.mxu1 %v1944_v33  ;;  %1998 = vmatpush.msra.mxu2 %v1944_v33 }
 0x171   : > { %1408 = vmatmul.f32.gmra.mxu2 %v2796_v25  ;;  %1554 = vmatmul.f32.gmra.mxu0 %v2736_v49  ;;  %v1365_v49 = vld [vmem:[#allocation3 + $0x82] sm:$0xff] }
 0x172   : > { %1483 = vmatmul.f32.gmra.mxu3 %v2838_v28  ;;  %1337 = vmatmul.f32.gmra.mxu1 %v2789_v16 }
 0x179   : > { %1411 = vmatmul.f32.gmra.mxu2 %v2840_v51  ;;  %1557 = vmatmul.f32.gmra.mxu0 %v2789_v16 }
 0x17a   : > { %1486 = vmatmul.f32.gmra.mxu3 %v2869_v52  ;;  %1340 = vmatmul.f32.gmra.mxu1 %v2833_v8 }
 0x181   : > { %1414 = vmatmul.f32.gmra.mxu2 %v2871_v22  ;;  %1560 = vmatmul.f32.gmra.mxu0 %v2833_v8 }
 0x182   : > { %1489 = vmatmul.f32.gmra.mxu3 %v2890_v13  ;;  %1343 = vmatmul.f32.gmra.mxu1 %v2867_v56 }
 0x189   : > { %1417 = vmatmul.f32.gmra.mxu2 %v2892_v32  ;;  %1563 = vmatmul.f32.gmra.mxu0 %v2867_v56 }
 0x18a   : > { %1492 = vmatmul.f32.gmra.mxu3 %v1217_v54  ;;  %1346 = vmatmul.f32.gmra.mxu1 %v2888_v29 }
 0x191   : > { %1420 = vmatmul.f32.gmra.mxu2 %v1365_v49  ;;  %1566 = vmatmul.f32.gmra.mxu0 %v2888_v29 }
 0x192   : > { %1495 = vmatmul.f32.gmra.mxu3 %v2508_v34  ;;  %1622 = vmatmul.f32.vlgmr.msra.gmra.mxu1 %v2687_v21 }
 0x196   : > { %v1074_v16 = vpop.f32.mrf.mxu1 }
 0x199   : > { %1637 = vmatmul.f32.vlgmr.msra.gmra.mxu2 %v2892_v32  ;;  %1569 = vmatmul.f32.gmra.mxu0 %v1514_v4 }
 0x19a   : > { %1625 = vmatmul.f32.gmra.mxu1 %v2743_v62 }
 0x19e   : > { %v1252_v47 = vpop.f32.mrf.mxu0 }
 0x19f   : > { %v1077_v10 = vpop.f32.mrf.mxu1  ;;  %v1276_v46 = vadd.f32 %v1252_v47, %v1202_v37 }
 0x1a1   : > { %1640 = vmatmul.f32.gmra.mxu2 %v1365_v49 }
 0x1a2   : > { %1628 = vmatmul.f32.gmra.mxu1 %v2796_v25 }
 0x1a4   : > { %v1115_v9 = vpop.f32.mrf.mxu2 }
 0x1a5   : > { %v1181_v43 = vpop.f32.mrf.mxu3  ;;  %v1116_v34 = vadd.f32 %v1115_v9, %v1074_v16 }
 0x1a6   : > { %v1255_v50 = vpop.f32.mrf.mxu0 }
 0x1a7   : > { %v1203_v8 = vadd.f32 %v1181_v43, %v1116_v34  ;;  %v1080_v21 = vpop.f32.mrf.mxu1 }
 0x1a9   : > { %v1277_v41 = vadd.f32 %v1255_v50, %v1203_v8  ;;  %1643 = vmatmul.f32.gmra.mxu2 %v1588_v44 }
 0x1aa   : > { %1631 = vmatmul.f32.gmra.mxu1 %v2840_v51 }
 0x1ac   : > { %v1118_v28 = vpop.f32.mrf.mxu2 }
 0x1ad   : > { %v1184_v58 = vpop.f32.mrf.mxu3  ;;  %v1119_v62 = vadd.f32 %v1118_v28, %v1077_v10 }
 0x1ae   : > { %v1258_v55 = vpop.f32.mrf.mxu0 }
 0x1af   : > { %v1204_v31 = vadd.f32 %v1184_v58, %v1119_v62  ;;  %v1083_v14 = vpop.f32.mrf.mxu1 }
 0x1b1   : > { %v1278_v61 = vadd.f32 %v1258_v55, %v1204_v31 }
 0x1b2   : > { %1634 = vmatmul.f32.gmra.mxu1 %v2871_v22 }
 0x1b4   : > { %v1121_v25 = vpop.f32.mrf.mxu2 }
 0x1b5   : > { %v1187_v60 = vpop.f32.mrf.mxu3  ;;  %v1122_v63 = vadd.f32 %v1121_v25, %v1080_v21 }
 0x1b6   : > { %v1261_v18 = vpop.f32.mrf.mxu0 }
 0x1b7   : > { %v1205_v30 = vadd.f32 %v1187_v60, %v1122_v63  ;;  %v1086_v5 = vpop.f32.mrf.mxu1 }
 0x1b9   : > { %v1279_v3 = vadd.f32 %v1261_v18, %v1205_v30 }
 0x1bc   : > { %v1124_v11 = vpop.f32.mrf.mxu2 }
 0x1bd   : > { %v1190_v15 = vpop.f32.mrf.mxu3  ;;  %v1125_v24 = vadd.f32 %v1124_v11, %v1083_v14 }
 0x1be   : > { %v1264_v56 = vpop.f32.mrf.mxu0 }
 0x1bf   : > { %v1206_v51 = vadd.f32 %v1190_v15, %v1125_v24  ;;  %v1089_v7 = vpop.f32.mrf.mxu1 }
 0x1c1   : > { %v2969_v52 = vadd.f32 %v1264_v56, %v1206_v51 }
 0x1c4   : > { %v1127_v19 = vpop.f32.mrf.mxu2 }
 0x1c5   : > { %v1193_v23 = vpop.f32.mrf.mxu3  ;;  %v1128_v59 = vadd.f32 %v1127_v19, %v1086_v5 }
 0x1c6   : > { %v1267_v22 = vpop.f32.mrf.mxu0 }
 0x1c7   : > { %v1207_v27 = vadd.f32 %v1193_v23, %v1128_v59  ;;  %v1092_v42 = vpop.f32.mrf.mxu1 }
 0x1c9   : > { %v1281_v1 = vadd.f32 %v1267_v22, %v1207_v27 }
 0x1cc   : > { %v1130_v6 = vpop.f32.mrf.mxu2 }
 0x1cd   : > { %v1196_v29 = vpop.f32.mrf.mxu3  ;;  %v1131_v13 = vadd.f32 %v1130_v6, %v1089_v7 }
 0x1ce   : > { %v1270_v12 = vpop.f32.mrf.mxu0 }
 0x1cf   : > { %v1208_v32 = vadd.f32 %v1196_v29, %v1131_v13  ;;  %v1326_v26 = vpop.f32.mrf.mxu1 }
 0x1d0   : > { %v1350_v54 = vadd.f32 %v1326_v26, %v1276_v46 }
 0x1d1   : > { %v1282_v17 = vadd.f32 %v1270_v12, %v1208_v32 }
 0x1d4   : > { %v1133_v35 = vpop.f32.mrf.mxu2 }
 0x1d5   : > { %v1199_v48 = vpop.f32.mrf.mxu3  ;;  %v1134_v45 = vadd.f32 %v1133_v35, %v1092_v42 }
 0x1d6   : > { %v1273_v53 = vpop.f32.mrf.mxu0 }
 0x1d7   : > { %v1329_v36 = vpop.f32.mrf.mxu1  ;;  %v1209_v22 = vadd.f32 %v1199_v48, %v1134_v45 }
 0x1d8   : > { %v1351_v40 = vadd.f32 %v1329_v36, %v1277_v41 }
 0x1d9   : > { %v1283_v35 = vadd.f32 %v1273_v53, %v1209_v22 }
 0x1dc   : > { %v1400_v2 = vpop.f32.mrf.mxu2 }
 0x1dd   : > { %v1424_v20 = vadd.f32 %v1400_v2, %v1350_v54  ;;  %v1475_v39 = vpop.f32.mrf.mxu3 }
 0x1de   : > { %v1549_v33 = vpop.f32.mrf.mxu0 }
 0x1df   : > { %v1499_v0 = vadd.f32 %v1475_v39, %v1424_v20  ;;  %v1332_v38 = vpop.f32.mrf.mxu1 }
 0x1e0   : > { %v1352_v57 = vadd.f32 %v1332_v38, %v1278_v61 }
 0x1e1   : > { %v1573_v37 = vadd.f32 %v1549_v33, %v1499_v0 }
 0x1e4   : > { %v1403_v49 = vpop.f32.mrf.mxu2 }
 0x1e5   : > { %v1425_v16 = vadd.f32 %v1403_v49, %v1351_v40  ;;  %v1478_v10 = vpop.f32.mrf.mxu3 }
 0x1e6   : > { %v1552_v43 = vpop.f32.mrf.mxu0 }
 0x1e7   : > { %v1335_v4 = vpop.f32.mrf.mxu1  ;;  %v1500_v63 = vadd.f32 %v1478_v10, %v1425_v16 }
 0x1e8   : > { %v1353_v47 = vadd.f32 %v1335_v4, %v1279_v3  ;;  %v2976_v3 = vld [vmem:[%s3016_s4] ss:$0 sm:$0xff] }
 0x1e9   : > { %v1574_v15 = vadd.f32 %v1552_v43, %v1500_v63 }
 0x1ec   : > { %v1406_v46 = vpop.f32.mrf.mxu2 }
 0x1ed   : > { %v1426_v9 = vadd.f32 %v1406_v46, %v1352_v57  ;;  %v1481_v44 = vpop.f32.mrf.mxu3 }
 0x1ee   : > { %v1555_v21 = vpop.f32.mrf.mxu0 }
 0x1ef   : > { %v1338_v34 = vpop.f32.mrf.mxu1  ;;  %v1501_v59 = vadd.f32 %v1481_v44, %v1426_v9 }
 0x1f0   : > { %v1354_v57 = vadd.f32 %v1338_v34, %v2969_v52 }
 0x1f1   : > { %v1575_v26 = vadd.f32 %v1555_v21, %v1501_v59 }
 0x1f4   : > { %v1409_v8 = vpop.f32.mrf.mxu2 }
 0x1f5   : > { %v1484_v28 = vpop.f32.mrf.mxu3 }
 0x1f6   : > { %v1558_v62 = vpop.f32.mrf.mxu0 }
 0x1f7   : > { %v1341_v50 = vpop.f32.mrf.mxu1 }
 0x1f8   : > { %v1355_v11 = vadd.f32 %v1341_v50, %v1281_v1  ;;  %v1427_v1 = vadd.f32 %v1409_v8, %v1353_v47 }
 0x1fa   : > { %v1502_v38 = vadd.f32 %v1484_v28, %v1427_v1 }
 0x1fc   : > { %v1412_v41 = vpop.f32.mrf.mxu2  ;;  %v1576_v47 = vadd.f32 %v1558_v62, %v1502_v38 }
 0x1fd   : > { %v1487_v14 = vpop.f32.mrf.mxu3  ;;  %v1428_v10 = vadd.f32 %v1412_v41, %v1354_v57 }
 0x1fe   : > { %v2971_v61 = vpop.f32.mrf.mxu0 }
 0x1ff   : > { %v1344_v58 = vpop.f32.mrf.mxu1 }
 0x200   : > { %v1356_v23 = vadd.f32 %v1344_v58, %v1282_v17  ;;  %v1503_v58 = vadd.f32 %v1487_v14, %v1428_v10 }
 0x204   : > { %v1415_v31 = vpop.f32.mrf.mxu2 }
 0x205   : > { %v1490_v30 = vpop.f32.mrf.mxu3  ;;  %v1429_v51 = vadd.f32 %v1415_v31, %v1355_v11 }
 0x206   : > { %v1564_v24 = vpop.f32.mrf.mxu0 }
 0x207   : > { %v1347_v55 = vpop.f32.mrf.mxu1  ;;  %v1504_v42 = vadd.f32 %v1490_v30, %v1429_v51 }
 0x208   : > { %v1357_v39 = vadd.f32 %v1347_v55, %v1283_v35 }
 0x209   : > { %v1578_v36 = vadd.f32 %v1564_v24, %v1504_v42 }
 0x20c   : > { %v1418_v25 = vpop.f32.mrf.mxu2 }
 0x20d   : > { %v1430_v6 = vadd.f32 %v1418_v25, %v1356_v23  ;;  %v1493_v29 = vpop.f32.mrf.mxu3 }
 0x20e   : > { %v1567_v20 = vpop.f32.mrf.mxu0 }
 0x20f   : > { %v1623_v60 = vpop.f32.mrf.mxu1  ;;  %v1505_v40 = vadd.f32 %v1493_v29, %v1430_v6 }
 0x210   : > { %v1647_v5 = vadd.f32 %v1623_v60, %v1573_v37 }
 0x211   : > { %v1579_v45 = vadd.f32 %v1567_v20, %v1505_v40  ;;  %v1717_v40 = vld [vmem:[%s3017_s5] sm:$0xff] }
 0x212   : > { %v1659_v7 = vadd.f32 %v2976_v3, %v1647_v5 }
 0x214   : > { %v1421_v18 = vpop.f32.mrf.mxu2  ;;  %v1667_v13 = vmax.f32 %v1659_v7, 0.0 }
 0x215   : > { %v1431_v33 = vadd.f32 %v1421_v18, %v1357_v39  ;;  %v1496_v37 = vpop.f32.mrf.mxu3  ;;  %v1577_v18 = vadd.f32 %v2971_v61, %v1503_v58 }
 0x216   : > { %v1570_v8 = vpop.f32.mrf.mxu0 }
 0x217   : > { %v1626_v56 = vpop.f32.mrf.mxu1  ;;  %v1506_v9 = vadd.f32 %v1496_v37, %v1431_v33 }
 0x218   : > { %v1648_v19 = vadd.f32 %v1626_v56, %v1574_v15 }
 0x219   : > { %v1580_v62 = vadd.f32 %v1570_v8, %v1506_v9 }
 0x21a   : > { %v1660_v27 = vadd.f32 %v2976_v3, %v1648_v19 }
 0x21c   : > { %v1638_v32 = vpop.f32.mrf.mxu2  ;;  %v1668_v12 = vmax.f32 %v1660_v27, 0.0 }
 0x21d   : > { %v1652_v0 = vadd.f32 %v1638_v32, %v1578_v36 }
 0x21e   : > { %v2980_v54 = vmax.f32 %v1667_v13, %v1668_v12 }
 0x21f   : > { %v1629_v2 = vpop.f32.mrf.mxu1  ;;  %v1664_v4 = vadd.f32 %v2976_v3, %v1652_v0 }
 0x220   : > { %v1649_v17 = vadd.f32 %v1629_v2, %v1575_v26  ;;  %v1690_v50 = vrot.slane %v2980_v54, 1  ;;  %v1718_v2 = vld [vmem:[%s3017_s5 + $0x8] sm:$0xff] }
 0x221   : > { %v1672_v52 = vmax.f32 %v1664_v4, 0.0 }
 0x222   : > { %v1661_v48 = vadd.f32 %v2976_v3, %v1649_v17 }
 0x224   : > { %v1641_v49 = vpop.f32.mrf.mxu2  ;;  %v1669_v16 = vmax.f32 %v1661_v48, 0.0 }
 0x225   : > { %v1653_v53 = vadd.f32 %v1641_v49, %v1579_v45 }
 0x226   : > { %v1676_v46 = vmax.f32 %v1668_v12, %v1669_v16 }
 0x227   : > { %v1665_v43 = vadd.f32 %v2976_v3, %v1653_v53  ;;  %v1632_v44 = vpop.f32.mrf.mxu1 }
 0x228   : > { %v1691_v21 = vrot.slane %v1676_v46, 1  ;;  %v1650_v28 = vadd.f32 %v1632_v44, %v1576_v47 }
 0x229   : > { %v1673_v34 = vmax.f32 %v1665_v43, 0.0 }
 0x22a   : > { %v1662_v31 = vadd.f32 %v2976_v3, %v1650_v28  ;;  %v1692_v55 = vsel %vm1689_vm0, %v1690_v50, %v1691_v21 }
 0x22b   : > { %v1680_v41 = vmax.f32 %v1672_v52, %v1673_v34  ;;  %v1710_v25 = vmax.f32 %v2980_v54, %v1692_v55 }
 0x22c   : > { %v1644_v60 = vpop.f32.mrf.mxu2  ;;  %v1670_v63 = vmax.f32 %v1662_v31, 0.0 }
 0x22d   : > { %v1654_v30 = vadd.f32 %v1644_v60, %v1580_v62  ;;  %v1699_v27 = vrot.slane %v1680_v41, 1 }
 0x22e   : > { %v1677_v5 = vmax.f32 %v1669_v16, %v1670_v63 }
 0x22f   : > { %v1666_v11 = vadd.f32 %v2976_v3, %v1654_v30  ;;  %v1635_v15 = vpop.f32.mrf.mxu1 }
 0x230   : > { %v1693_v24 = vrot.slane %v1677_v5, 1  ;;  %v1651_v51 = vadd.f32 %v1635_v15, %v1577_v18 }
 0x231   : > { %v1674_v14 = vmax.f32 %v1666_v11, 0.0 }
 0x232   : > { %v1663_v56 = vadd.f32 %v2976_v3, %v1651_v51  ;;  %v1694_v7 = vsel %vm1689_vm0, %v1691_v21, %v1693_v24 }
 0x233   : > { %v1681_v19 = vmax.f32 %v1673_v34, %v1674_v14  ;;  %v1711_v23 = vmax.f32 %v1676_v46, %v1694_v7 }
 0x234   : > { %v1671_v59 = vmax.f32 %v1663_v56, 0.0 }
 0x235   : > { %v1701_v22 = vrot.slane %v1681_v19, 1 }
 0x236   : > { %v1678_v42 = vmax.f32 %v1670_v63, %v1671_v59  ;;  %v1679_v6 = vmax.f32 %v1671_v59, %v1672_v52 }
 0x237   : > { %v1716_v29 = vmax.f32 %v1681_v19, %v1701_v22  ;;  %v1702_v61 = vsel %vm1689_vm0, %v1699_v27, %v1701_v22 }
 0x238   : > { %v1695_v13 = vrot.slane %v1678_v42, 1  ;;  %v1697_v32 = vrot.slane %v1679_v6, 1  ;;  %v1715_v12 = vmax.f32 %v1680_v41, %v1702_v61 }
 0x239   : > { %1960 = vmatpush.msk.msrb.mxu2 %vm1689_vm0, %v1716_v29 }
 0x23a   : > { %v1700_v26 = vsel %vm1689_vm0, %v1697_v32, %v1699_v27  ;;  %v1698_v3 = vsel %vm1689_vm0, %v1695_v13, %v1697_v32  ;;  %v1696_v1 = vsel %vm1689_vm0, %v1693_v24, %v1695_v13 }
 0x23b   : > { %1739 = vmatpush.msrb.mxu2 %v1715_v12  ;;  %v1714_v54 = vmax.f32 %v1679_v6, %v1700_v26  ;;  %v1713_v35 = vmax.f32 %v1678_v42, %v1698_v3  ;;  %v1712_v36 = vmax.f32 %v1677_v5, %v1696_v1 }
 0x23d   : > { %1740 = vmatpush.msrb.mxu2 %v1714_v54 }
 0x23f   : > { %1741 = vmatpush.msrb.mxu2 %v1713_v35 }
 0x241   : > { %1742 = vmatpush.msrb.mxu2 %v1712_v36 }
 0x243   : > { %1743 = vmatpush.msrb.mxu2 %v1711_v23 }
 0x245   : > { %1744 = vmatpush.msrb.mxu2 %v1710_v25 }
 0x246   : > { %1961 = vmatmul.msk.f32.vlgmr.msrb.gmra.mxu2 %vm1719_vm1, %v1717_v40 }
 0x24e   : > { %1962 = vmatmul.msk.f32.gmra.mxu2 %vm1719_vm1, %v1718_v2 }
 0x2c9   : > { %v1746_v20 = vpop.f32.mrf.mxu2 }
 0x2ca   : > { %1752 = vst [vmem:[%s268_s24] sm:$0xff] %v1746_v20 }
 0x2d1   : > { %v1749_v17 = vpop.f32.mrf.mxu2 }
 0x2d2   : > { %1753 = vst [vmem:[%s268_s24 + $0x8] sm:$0xff] %v1749_v17 }
 0x2d3 PF: > { %s17_s21 = sadd.s32 1, %s2064_s21  }
 0x2d4   : > { %p14_p7 = scmp.ge.s32.totalorder %s17_s21, 4  }
 0x2d6   :  { %16 = sbr.rel (!%p14_p7) target bundleno = 1 (0x1), region = 99 }
 0x2db   :  { %1775 = vsyncpa [#allocation5], 1 }
 0x2dc   :  { %1777 = vsyncpa [#allocation5 + $0x1], 1 }

// kernel: tinyvgg_forward.3
= control target key start
LH: loop header
LB: loop body
LE: loop exit
PB: predicated region body
PF: predicated region fallthrough
CT: control target
= control target key end

     0   :  { %11 = vsyncpa [#allocation5], 0  ;;  %s5517_s21 = smov 0   ;;  %s8321_s0 = inlined_call_operand.vmem [shape: f32[2,16,16,8], index: 0, kind: input, shape index: {}]   ;;  %s8322_s1 = inlined_call_operand.vmem [shape: f32[9,8,128], index: 1, kind: input, shape index: {}]   ;;  %s8323_s2 = inlined_call_operand.vmem [shape: f32[1,128], index: 2, kind: input, shape index: {}]   ;;  %s8324_s3 = inlined_call_operand.hbm [shape: f32[9,128,128], index: 3, kind: input, shape index: {}]   ;;  %s8325_s4 = inlined_call_operand.vmem [shape: f32[1,128], index: 4, kind: input, shape index: {}]   ;;  %s8326_s5 = inlined_call_operand.vmem [shape: f32[64,239], index: 5, kind: input, shape index: {}]   ;;  %s8327_s6 = inlined_call_operand.vmem [shape: f32[2,64,128], index: 6, kind: output, shape index: {}]  }
   0x1 LB: > { %s196_s24 = sshll.u32 %s8324_s3, 4  ;;  %s5526_s25 = sadd.s32 4294967295, %s5476_s21   ;;  %s5476_s21 = sphi %s5517_s21, %s17_s21   ;;  %s197_s24 = int_to_ptr.hbm [resolvable:$true] %s196_s24 }
   0x2   : > { %p5089_p0 = scmp.ge.s32.totalorder %s5476_s21, 1  ;;  %p179_p1 = scmp.lt.s32.totalorder %s5476_s21, 3 }
   0x3   : > { %p5417_p2 = scmp.eq.s32.totalorder %s5526_s25, 0  ;;  %s5478_s26 = smov [#allocation4]  }
   0x4   : > { %p180_p3 = pnand %p5089_p0, %p179_p1  ;;  %s198_s27 = sshll.u32 %s5478_s26, 4  ;;  %s199_s27 = int_to_ptr.vmem [resolvable:$true] %s198_s27 }
   0x5   : > { %s5479_s28 = smov 128   ;;  %s5480_s29 = smov 8  }
   0x6   : > { %p5413_p4 = pneg %p180_p3  ;;  %228 = sbr.rel (%p180_p3) target bundleno = 1764 (0x6e4), region = 44 }
   0x8   : > { %p5414_p5 = pnand %p5417_p2, %p5413_p4 }
   0xa   : > { %5416 = dma.hbm_to_vmem [thread:$0]  (!%p5414_p5), %s197_s24, 18432, %s199_s27, [#allocation5], %s5479_s28, %s5479_s28, %s5480_s29  }
   0xb   : > { %5471 = dma.done.wait (%p5417_p2), [#allocation5], 18432  }
   0xc   : > { %5473 = vsyncadd (%p5417_p2), [#allocation5], 4294948864  ;;  %vm269_vm0 = vcmask 64512   ;;  %v5481_v0 = vmov 0.0   ;;  %v5098_v1 = vld [vmem:[%s8322_s1 + $0x8] sm:$0xff]  ;;  %v422_v2 = vld [vmem:[%s8322_s1] sm:$0xff] }
   0xd   : > { %270 = vst.msk [vmem:[#allocation2] sm:$0xff] %vm269_vm0, %v5481_v0  ;;  %568 = vmatpush.msra.mxu0 %v5098_v1  ;;  %777 = vmatpush.msra.mxu1 %v422_v2  ;;  %p259_p6 = scmp.lt.s32.totalorder %s5526_s25, 1  ;;  %vm272_vm1 = vcmask 58368   ;;  %v5163_v61 = vld [vmem:[%s8322_s1 + $0x10] sm:$0xff]  ;;  %v5196_v62 = vld [vmem:[%s8322_s1 + $0x18] sm:$0xff]  ;;  %vm4766_vm2 = vcmask 1046528  }
   0xe   : > { %271 = vst.msk [vmem:[#allocation2 + $0x8] sm:$0xff] %vm269_vm0, %v5481_v0  ;;  %5407 = vmatpush.msra.mxu2 %v5098_v1  ;;  %5408 = vmatpush.msra.mxu3 %v422_v2  ;;  %vm4902_vm3 = vcmask 908288  }
   0xf   : > { %274 = vst.msk [vmem:[#allocation2 + $0x18] sm:$0xff] %vm269_vm0, %v5481_v0  ;;  %s8606_s25 = smov (!%p259_p6, %s5526_s25), 1 }
  0x10   : > { %275 = vst.msk [vmem:[#allocation2 + $0x20] sm:$0xff] %vm269_vm0, %v5481_v0  ;;  %s5405_s10 = sshll.u32 %s8606_s25, 8  ;;  %1020 = vmatpush.msrb.mxu2 %v5163_v61  ;;  %1295 = vmatpush.msrb.mxu3 %v5196_v62  ;;  %s5406_s23 = sshll.u32 %s8606_s25, 6 }
  0x11   : > { %277 = vst.msk [vmem:[#allocation2 + $0x30] sm:$0xff] %vm269_vm0, %v5481_v0  ;;  %s5669_s13 = scalar_lea.vmem %s8321_s0, %s5405_s10  ;;  %s268_s27 = scalar_lea.vmem %s8327_s6, %s5406_s23 }
  0x12   : > { %278 = vst.msk [vmem:[#allocation2 + $0x38] sm:$0xff] %vm269_vm0, %v5481_v0  ;;  %v343_v6 = vld [vmem:[%s5669_s13 + $0x90] sm:$0xff]  ;;  %v344_v10 = vld [vmem:[%s5669_s13 + $0x98] sm:$0xff]  ;;  %v325_v11 = vld [vmem:[%s5669_s13] sm:$0xff] }
  0x13   : > { %280 = vst.msk [vmem:[#allocation2 + $0x48] sm:$0xff] %vm269_vm0, %v5481_v0  ;;  %v345_v12 = vld [vmem:[%s5669_s13 + $0xa0] sm:$0xff]  ;;  %v326_v13 = vld [vmem:[%s5669_s13 + $0x8] sm:$0xff]  ;;  %v327_v15 = vld [vmem:[%s5669_s13 + $0x10] sm:$0xff] }
  0x14   : > { %281 = vst.msk [vmem:[#allocation2 + $0x50] sm:$0xff] %vm269_vm0, %v5481_v0  ;;  %v390_v3 = vld [vmem:[#allocation2] sm:$0xff]  ;;  %v346_v14 = vld [vmem:[%s5669_s13 + $0xa8] sm:$0xff]  ;;  %v347_v16 = vld [vmem:[%s5669_s13 + $0xb0] sm:$0xff] }
  0x15   : > { %v423_v4 = vld [vmem:[#allocation2 + $0x1] sm:$0xff]  ;;  %283 = vst.msk [vmem:[#allocation2 + $0x60] sm:$0xff] %vm269_vm0, %v5481_v0  ;;  %5131 = vmatmul.msk.f32.vlgmr.msra.gmra.mxu1 %vm269_vm0, %v390_v3  ;;  %v328_v17 = vld [vmem:[%s5669_s13 + $0x18] sm:$0xff]  ;;  %v331_v31 = vld [vmem:[%s5669_s13 + $0x30] sm:$0xff] }
  0x16   : > { %5099 = vmatmul.msk.f32.vlgmr.msra.gmra.mxu0 %vm269_vm0, %v423_v4  ;;  %284 = vst.msk [vmem:[#allocation2 + $0x68] sm:$0xff] %vm269_vm0, %v5481_v0  ;;  %v391_v5 = vld [vmem:[#allocation2 + $0x8] sm:$0xff]  ;;  %v348_v18 = vld [vmem:[%s5669_s13 + $0xb8] sm:$0xff]  ;;  %v329_v19 = vld [vmem:[%s5669_s13 + $0x20] sm:$0xff] }
  0x17   : > { %286 = vst.msk [vmem:[#allocation2 + $0x78] sm:$0xff] %vm269_vm0, %v5481_v0  ;;  %v349_v22 = vld [vmem:[%s5669_s13 + $0xc0] sm:$0xff]  ;;  %v330_v25 = vld [vmem:[%s5669_s13 + $0x28] sm:$0xff]  ;;  %v351_v36 = vld [vmem:[%s5669_s13 + $0xd0] sm:$0xff] }
  0x18   : > { %287 = vst.msk [vmem:[#allocation2 + $0x80] sm:$0xff] %vm269_vm0, %v5481_v0  ;;  %v350_v30 = vld [vmem:[%s5669_s13 + $0xc8] sm:$0xff]  ;;  %v332_v37 = vld [vmem:[%s5669_s13 + $0x38] sm:$0xff]  ;;  %v333_v43 = vld [vmem:[%s5669_s13 + $0x40] sm:$0xff] }
  0x19   : > { %289 = vst.msk [vmem:[#allocation2 + $0x90] sm:$0xff] %vm269_vm0, %v5481_v0  ;;  %v352_v42 = vld [vmem:[%s5669_s13 + $0xd8] sm:$0xff]  ;;  %v353_v48 = vld [vmem:[%s5669_s13 + $0xe0] sm:$0xff]  ;;  %v334_v49 = vld [vmem:[%s5669_s13 + $0x48] sm:$0xff] }
  0x1a   : > { %290 = vst.msk [vmem:[#allocation2 + $0x98] sm:$0xff] %vm269_vm0, %v5481_v0  ;;  %v354_v54 = vld [vmem:[%s5669_s13 + $0xe8] sm:$0xff]  ;;  %v335_v55 = vld [vmem:[%s5669_s13 + $0x50] sm:$0xff]  ;;  %v336_v60 = vld [vmem:[%s5669_s13 + $0x58] sm:$0xff] }
  0x1b   : > { %292 = vst.msk [vmem:[#allocation2 + $0xa8] sm:$0xff] %vm269_vm0, %v5481_v0  ;;  %v337_v3 = vld [vmem:[%s5669_s13 + $0x60] sm:$0xff] }
  0x1c   : > { %293 = vst.msk [vmem:[#allocation2 + $0xb0] sm:$0xff] %vm269_vm0, %v5481_v0 }
  0x1d   : > { %295 = vst.msk [vmem:[#allocation2 + $0xc0] sm:$0xff] %vm269_vm0, %v5481_v0  ;;  %5132 = vmatmul.msk.f32.gmra.mxu1 %vm269_vm0, %v391_v5 }
  0x1e   : > { %296 = vst.msk [vmem:[#allocation2 + $0xc8] sm:$0xff] %vm269_vm0, %v5481_v0 }
  0x1f   : > { %298 = vst.msk [vmem:[#allocation2 + $0xd8] sm:$0xff] %vm269_vm0, %v5481_v0 }
  0x20   : > { %299 = vst.msk [vmem:[#allocation2 + $0xe0] sm:$0xff] %vm269_vm0, %v5481_v0 }
  0x21   : > { %301 = vst.msk [vmem:[#allocation2 + $0xf0] sm:$0xff] %vm269_vm0, %v5481_v0 }
  0x22   : > { %302 = vst.msk [vmem:[#allocation2 + $0xf8] sm:$0xff] %vm269_vm0, %v5481_v0 }
  0x23   : > { %304 = vst.msk [vmem:[#allocation2 + $0x108] sm:$0xff] %vm269_vm0, %v5481_v0 }
  0x24   : > { %305 = vst.msk [vmem:[#allocation2 + $0x110] sm:$0xff] %vm269_vm0, %v5481_v0 }
  0x25   : > { %307 = vst.msk [vmem:[#allocation2 + $0x120] sm:$0xff] %vm269_vm0, %v5481_v0 }
  0x26   : > { %308 = vst.msk [vmem:[#allocation2 + $0x128] sm:$0xff] %vm269_vm0, %v5481_v0 }
  0x27   : > { %310 = vst.msk [vmem:[#allocation2 + $0x138] sm:$0xff] %vm269_vm0, %v5481_v0 }
  0x28   : > { %311 = vst.msk [vmem:[#allocation2 + $0x140] sm:$0xff] %vm269_vm0, %v5481_v0 }
  0x29   : > { %313 = vst.msk [vmem:[#allocation2 + $0x150] sm:$0xff] %vm269_vm0, %v5481_v0 }
  0x2a   : > { %314 = vst.msk [vmem:[#allocation2 + $0x158] sm:$0xff] %vm269_vm0, %v5481_v0 }
  0x2b   : > { %316 = vst.msk [vmem:[#allocation2 + $0x168] sm:$0xff] %vm269_vm0, %v5481_v0 }
  0x2c   : > { %317 = vst.msk [vmem:[#allocation2 + $0x170] sm:$0xff] %vm269_vm0, %v5481_v0 }
  0x2d   : > { %319 = vst.msk [vmem:[#allocation2 + $0x180] sm:$0xff] %vm269_vm0, %v5481_v0 }
  0x2e   : > { %320 = vst.msk [vmem:[#allocation2 + $0x188] sm:$0xff] %vm269_vm0, %v5481_v0 }
  0x2f   : > { %322 = vst.msk [vmem:[#allocation2 + $0x198] sm:$0xff] %vm269_vm0, %v5481_v0 }
  0x30   : > { %323 = vst.msk [vmem:[#allocation2 + $0x1a0] sm:$0xff] %vm269_vm0, %v5481_v0 }
  0x31   : > { %2869 = vst [vmem:[#allocation3] sm:$0xff] %v5481_v0 }
  0x32   : > { %2870 = vst [vmem:[#allocation3 + $0x8] sm:$0xff] %v5481_v0 }
  0x33   : > { %2871 = vst [vmem:[#allocation3 + $0x10] sm:$0x3] %v5481_v0 }
  0x34   : > { %2872 = vst [vmem:[#allocation3 + $0x18] sm:$0xff] %v5481_v0 }
  0x35   : > { %2873 = vst [vmem:[#allocation3 + $0x20] sm:$0xff] %v5481_v0 }
  0x36   : > { %2874 = vst [vmem:[#allocation3 + $0x28] sm:$0x3] %v5481_v0 }
  0x37   : > { %2875 = vst [vmem:[#allocation3 + $0x30] sm:$0xff] %v5481_v0 }
  0x38   : > { %2876 = vst [vmem:[#allocation3 + $0x38] sm:$0xff] %v5481_v0 }
  0x39   : > { %2877 = vst [vmem:[#allocation3 + $0x40] sm:$0x3] %v5481_v0 }
  0x3a   : > { %2878 = vst [vmem:[#allocation3 + $0x48] sm:$0xff] %v5481_v0 }
  0x3b   : > { %2879 = vst [vmem:[#allocation3 + $0x50] sm:$0xff] %v5481_v0 }
  0x3c   : > { %2880 = vst [vmem:[#allocation3 + $0x58] sm:$0x3] %v5481_v0 }
  0x3d   : > { %2881 = vst [vmem:[#allocation3 + $0x60] sm:$0xff] %v5481_v0 }
  0x3e   : > { %2882 = vst [vmem:[#allocation3 + $0x68] sm:$0xff] %v5481_v0 }
  0x3f   : > { %2883 = vst [vmem:[#allocation3 + $0x70] sm:$0x3] %v5481_v0 }
  0x40   : > { %2884 = vst [vmem:[#allocation3 + $0x78] sm:$0xff] %v5481_v0 }
  0x41   : > { %2885 = vst [vmem:[#allocation3 + $0x80] sm:$0xff] %v5481_v0 }
  0x42   : > { %2886 = vst [vmem:[#allocation3 + $0x88] sm:$0x3] %v5481_v0 }
  0x43   : > { %2887 = vst [vmem:[#allocation3 + $0x90] sm:$0xff] %v5481_v0 }
  0x44   : > { %2888 = vst [vmem:[#allocation3 + $0x98] sm:$0xff] %v5481_v0 }
  0x45   : > { %2889 = vst [vmem:[#allocation3 + $0xa0] sm:$0x3] %v5481_v0 }
  0x46   : > { %2890 = vst [vmem:[#allocation3 + $0xa8] sm:$0xff] %v5481_v0 }
  0x47   : > { %2891 = vst [vmem:[#allocation3 + $0xb0] sm:$0xff] %v5481_v0 }
  0x48   : > { %2892 = vst [vmem:[#allocation3 + $0xb8] sm:$0x3] %v5481_v0 }
  0x49   : > { %2893 = vst [vmem:[#allocation3 + $0xc0] sm:$0xff] %v5481_v0 }
  0x4a   : > { %2894 = vst [vmem:[#allocation3 + $0xc8] sm:$0xff] %v5481_v0 }
  0x4b   : > { %2895 = vst [vmem:[#allocation3 + $0xd0] sm:$0x3] %v5481_v0 }
  0x4c   : > { %2896 = vst [vmem:[#allocation3 + $0xd8] sm:$0xff] %v5481_v0 }
  0x4d   : > { %2897 = vst [vmem:[#allocation3 + $0xe0] sm:$0xff] %v5481_v0 }
  0x4e   : > { %2898 = vst [vmem:[#allocation3 + $0xe8] sm:$0x3] %v5481_v0 }
  0x4f   : > { %2899 = vst [vmem:[#allocation3 + $0xf0] sm:$0xff] %v5481_v0 }
  0x50   : > { %2900 = vst [vmem:[#allocation3 + $0xf8] sm:$0xff] %v5481_v0 }
  0x51   : > { %2901 = vst [vmem:[#allocation3 + $0x100] sm:$0x3] %v5481_v0 }
  0x52   : > { %2902 = vst [vmem:[#allocation3 + $0x108] sm:$0xff] %v5481_v0 }
  0x53   : > { %2903 = vst [vmem:[#allocation3 + $0x110] sm:$0xff] %v5481_v0 }
  0x54   : > { %2904 = vst [vmem:[#allocation3 + $0x118] sm:$0x3] %v5481_v0 }
  0x55   : > { %2905 = vst [vmem:[#allocation3 + $0x120] sm:$0xff] %v5481_v0 }
  0x56   : > { %2906 = vst [vmem:[#allocation3 + $0x128] sm:$0xff] %v5481_v0 }
  0x57   : > { %2907 = vst [vmem:[#allocation3 + $0x130] sm:$0x3] %v5481_v0 }
  0x58   : > { %2908 = vst [vmem:[#allocation3 + $0x138] sm:$0xff] %v5481_v0 }
  0x59   : > { %2909 = vst [vmem:[#allocation3 + $0x140] sm:$0xff] %v5481_v0 }
  0x5a   : > { %2910 = vst [vmem:[#allocation3 + $0x148] sm:$0x3] %v5481_v0 }
  0x5b   : > { %2911 = vst [vmem:[#allocation3 + $0x150] sm:$0xff] %v5481_v0 }
  0x5c   : > { %2912 = vst [vmem:[#allocation3 + $0x158] sm:$0xff] %v5481_v0 }
  0x5d   : > { %2913 = vst [vmem:[#allocation3 + $0x160] sm:$0x3] %v5481_v0 }
  0x5e   : > { %2914 = vst [vmem:[#allocation3 + $0x168] sm:$0xff] %v5481_v0 }
  0x5f   : > { %2915 = vst [vmem:[#allocation3 + $0x170] sm:$0xff] %v5481_v0 }
  0x60   : > { %2916 = vst [vmem:[#allocation3 + $0x178] sm:$0x3] %v5481_v0 }
  0x61   : > { %2917 = vst [vmem:[#allocation3 + $0x180] sm:$0xff] %v5481_v0 }
  0x62   : > { %2918 = vst [vmem:[#allocation3 + $0x188] sm:$0xff] %v5481_v0 }
  0x63   : > { %2919 = vst [vmem:[#allocation3 + $0x190] sm:$0x3] %v5481_v0 }
  0x64   : > { %2920 = vst [vmem:[#allocation3 + $0x198] sm:$0xff] %v5481_v0 }
  0x65   : > { %2921 = vst [vmem:[#allocation3 + $0x1a0] sm:$0xff] %v5481_v0 }
  0x66   : > { %2922 = vst [vmem:[#allocation3 + $0x1a8] sm:$0x3] %v5481_v0 }
  0x67   : > { %376 = vst.msk [vmem:[#allocation2 + $0xf1] sm:$0xff] %vm269_vm0, %v343_v6 }
  0x68   : > { %273 = vst.msk [vmem:[#allocation2 + $0x10] sm:$0x3] %vm272_vm1, %v5481_v0 }
  0x69   : > { %276 = vst.msk [vmem:[#allocation2 + $0x28] sm:$0x3] %vm272_vm1, %v5481_v0 }
  0x6a   : > { %279 = vst.msk [vmem:[#allocation2 + $0x40] sm:$0x3] %vm272_vm1, %v5481_v0 }
  0x6b   : > { %282 = vst.msk [vmem:[#allocation2 + $0x58] sm:$0x3] %vm272_vm1, %v5481_v0 }
  0x6c   : > { %285 = vst.msk [vmem:[#allocation2 + $0x70] sm:$0x3] %vm272_vm1, %v5481_v0 }
  0x6d   : > { %288 = vst.msk [vmem:[#allocation2 + $0x88] sm:$0x3] %vm272_vm1, %v5481_v0 }
  0x6e   : > { %v443_v7 = vld [vmem:[#allocation2 + $0xf1] sm:$0xff]  ;;  %291 = vst.msk [vmem:[#allocation2 + $0xa0] sm:$0x3] %vm272_vm1, %v5481_v0 }
  0x6f   : > { %v5690_v8 = vld [vmem:[#allocation2 + $0xf0] sm:$0xff]  ;;  %5119 = vmatmul.msk.f32.vlgmr.msra.gmra.mxu2 %vm269_vm0, %v443_v7  ;;  %294 = vst.msk [vmem:[#allocation2 + $0xb8] sm:$0x3] %vm272_vm1, %v5481_v0 }
  0x70   : > { %5151 = vmatmul.msk.f32.vlgmr.msra.gmra.mxu3 %vm269_vm0, %v5690_v8  ;;  %v424_v9 = vld [vmem:[#allocation2 + $0x9] sm:$0xff]  ;;  %297 = vst.msk [vmem:[#allocation2 + $0xd0] sm:$0x3] %vm272_vm1, %v5481_v0 }
  0x71   : > { %5100 = vmatmul.msk.f32.gmra.mxu0 %vm269_vm0, %v424_v9  ;;  %300 = vst.msk [vmem:[#allocation2 + $0xe8] sm:$0x3] %vm272_vm1, %v5481_v0  ;;  %v338_v9 = vld [vmem:[%s5669_s13 + $0x68] sm:$0xff] }
  0x72   : > { %303 = vst.msk [vmem:[#allocation2 + $0x100] sm:$0x3] %vm272_vm1, %v5481_v0 }
  0x73   : > { %306 = vst.msk [vmem:[#allocation2 + $0x118] sm:$0x3] %vm272_vm1, %v5481_v0 }
  0x74   : > { %309 = vst.msk [vmem:[#allocation2 + $0x130] sm:$0x3] %vm272_vm1, %v5481_v0 }
  0x75   : > { %312 = vst.msk [vmem:[#allocation2 + $0x148] sm:$0x3] %vm272_vm1, %v5481_v0 }
  0x76   : > { %315 = vst.msk [vmem:[#allocation2 + $0x160] sm:$0x3] %vm272_vm1, %v5481_v0 }
  0x77   : > { %318 = vst.msk [vmem:[#allocation2 + $0x178] sm:$0x3] %vm272_vm1, %v5481_v0 }
  0x78   : > { %321 = vst.msk [vmem:[#allocation2 + $0x190] sm:$0x3] %vm272_vm1, %v5481_v0 }
  0x79   : > { %324 = vst.msk [vmem:[#allocation2 + $0x1a8] sm:$0x3] %vm272_vm1, %v5481_v0 }
  0x7a   : > { %377 = vst.msk [vmem:[#allocation2 + $0xf9] sm:$0xff] %vm269_vm0, %v344_v10 }
  0x7b   : > { %358 = vst.msk [vmem:[#allocation2 + $0x19] sm:$0xff] %vm269_vm0, %v325_v11 }
  0x7c   : > { %378 = vst.msk [vmem:[#allocation2 + $0x109] sm:$0xff] %vm269_vm0, %v345_v12 }
  0x7d   : > { %359 = vst.msk [vmem:[#allocation2 + $0x21] sm:$0xff] %vm269_vm0, %v326_v13 }
  0x7e   : > { %379 = vst.msk [vmem:[#allocation2 + $0x111] sm:$0xff] %vm269_vm0, %v346_v14  ;;  %v339_v14 = vld [vmem:[%s5669_s13 + $0x70] sm:$0xff] }
  0x7f   : > { %360 = vst.msk [vmem:[#allocation2 + $0x31] sm:$0xff] %vm269_vm0, %v327_v15 }
  0x80   : > { %380 = vst.msk [vmem:[#allocation2 + $0x121] sm:$0xff] %vm269_vm0, %v347_v16 }
  0x81   : > { %v444_v20 = vld [vmem:[#allocation2 + $0xf9] sm:$0xff]  ;;  %361 = vst.msk [vmem:[#allocation2 + $0x39] sm:$0xff] %vm269_vm0, %v328_v17 }
  0x82   : > { %v5737_v21 = vld [vmem:[#allocation2 + $0xf8] sm:$0xff]  ;;  %5120 = vmatmul.msk.f32.gmra.mxu2 %vm269_vm0, %v444_v20  ;;  %381 = vst.msk [vmem:[#allocation2 + $0x129] sm:$0xff] %vm269_vm0, %v348_v18  ;;  %v875_v20 = vld [vmem:[#allocation2 + $0x2] sm:$0xff] }
  0x83   : > { %5152 = vmatmul.msk.f32.gmra.mxu3 %vm269_vm0, %v5737_v21  ;;  %v5744_v23 = vld [vmem:[#allocation2 + $0x19] sm:$0xff]  ;;  %362 = vst.msk [vmem:[#allocation2 + $0x49] sm:$0xff] %vm269_vm0, %v329_v19  ;;  %v445_v26 = vld [vmem:[#allocation2 + $0x109] sm:$0xff] }
  0x84   : > { %v5746_v24 = vld [vmem:[#allocation2 + $0x18] sm:$0xff]  ;;  %5101 = vmatmul.msk.f32.gmra.mxu0 %vm269_vm0, %v5744_v23  ;;  %382 = vst.msk [vmem:[#allocation2 + $0x139] sm:$0xff] %vm269_vm0, %v349_v22  ;;  %v5757_v27 = vld [vmem:[#allocation2 + $0x108] sm:$0xff]  ;;  %v5761_v29 = vld [vmem:[#allocation2 + $0x20] sm:$0xff] }
  0x85   : > { %5133 = vmatmul.msk.f32.gmra.mxu1 %vm269_vm0, %v5746_v24  ;;  %363 = vst.msk [vmem:[#allocation2 + $0x51] sm:$0xff] %vm269_vm0, %v330_v25  ;;  %v5759_v28 = vld [vmem:[#allocation2 + $0x21] sm:$0xff]  ;;  %v446_v32 = vld [vmem:[#allocation2 + $0x111] sm:$0xff] }
  0x86   : > { %383 = vst.msk [vmem:[#allocation2 + $0x141] sm:$0xff] %vm269_vm0, %v350_v30  ;;  %v5774_v33 = vld [vmem:[#allocation2 + $0x110] sm:$0xff]  ;;  %v340_v19 = vld [vmem:[%s5669_s13 + $0x78] sm:$0xff] }
  0x87   : > { %364 = vst.msk [vmem:[#allocation2 + $0x61] sm:$0xff] %vm269_vm0, %v331_v31  ;;  %v5776_v34 = vld [vmem:[#allocation2 + $0x31] sm:$0xff]  ;;  %v447_v38 = vld [vmem:[#allocation2 + $0x121] sm:$0xff] }
  0x88   : > { %v5778_v35 = vld [vmem:[#allocation2 + $0x30] sm:$0xff]  ;;  %384 = vst.msk [vmem:[#allocation2 + $0x151] sm:$0xff] %vm269_vm0, %v351_v36  ;;  %v5791_v39 = vld [vmem:[#allocation2 + $0x120] sm:$0xff]  ;;  %v5795_v41 = vld [vmem:[#allocation2 + $0x38] sm:$0xff] }
  0x89   : > { %365 = vst.msk [vmem:[#allocation2 + $0x69] sm:$0xff] %vm269_vm0, %v332_v37  ;;  %v5793_v40 = vld [vmem:[#allocation2 + $0x39] sm:$0xff]  ;;  %v448_v44 = vld [vmem:[#allocation2 + $0x129] sm:$0xff] }
  0x8a   : > { %5121 = vmatmul.msk.f32.gmra.mxu2 %vm269_vm0, %v445_v26  ;;  %385 = vst.msk [vmem:[#allocation2 + $0x159] sm:$0xff] %vm269_vm0, %v352_v42  ;;  %v5808_v45 = vld [vmem:[#allocation2 + $0x128] sm:$0xff]  ;;  %v341_v26 = vld [vmem:[%s5669_s13 + $0x80] sm:$0xff] }
  0x8b   : > { %5153 = vmatmul.msk.f32.gmra.mxu3 %vm269_vm0, %v5757_v27  ;;  %366 = vst.msk [vmem:[#allocation2 + $0x79] sm:$0xff] %vm269_vm0, %v333_v43  ;;  %v5810_v46 = vld [vmem:[#allocation2 + $0x49] sm:$0xff]  ;;  %v449_v50 = vld [vmem:[#allocation2 + $0x139] sm:$0xff] }
  0x8c   : > { %5102 = vmatmul.msk.f32.gmra.mxu0 %vm269_vm0, %v5759_v28  ;;  %v5812_v47 = vld [vmem:[#allocation2 + $0x48] sm:$0xff]  ;;  %386 = vst.msk [vmem:[#allocation2 + $0x169] sm:$0xff] %vm269_vm0, %v353_v48  ;;  %v5825_v51 = vld [vmem:[#allocation2 + $0x138] sm:$0xff]  ;;  %v5829_v53 = vld [vmem:[#allocation2 + $0x50] sm:$0xff] }
  0x8d   : > { %5134 = vmatmul.msk.f32.gmra.mxu1 %vm269_vm0, %v5761_v29  ;;  %367 = vst.msk [vmem:[#allocation2 + $0x81] sm:$0xff] %vm269_vm0, %v334_v49  ;;  %v5827_v52 = vld [vmem:[#allocation2 + $0x51] sm:$0xff]  ;;  %v450_v56 = vld [vmem:[#allocation2 + $0x141] sm:$0xff] }
  0x8e   : > { %387 = vst.msk [vmem:[#allocation2 + $0x171] sm:$0xff] %vm269_vm0, %v354_v54  ;;  %v5842_v57 = vld [vmem:[#allocation2 + $0x140] sm:$0xff]  ;;  %v876_v30 = vld [vmem:[#allocation2 + $0xa] sm:$0xff] }
  0x8f   : > { %368 = vst.msk [vmem:[#allocation2 + $0x91] sm:$0xff] %vm269_vm0, %v335_v55  ;;  %v5844_v58 = vld [vmem:[#allocation2 + $0x61] sm:$0xff]  ;;  %v451_v63 = vld [vmem:[#allocation2 + $0x151] sm:$0xff] }
  0x90   : > { %v5846_v59 = vld [vmem:[#allocation2 + $0x60] sm:$0xff]  ;;  %369 = vst.msk [vmem:[#allocation2 + $0x99] sm:$0xff] %vm269_vm0, %v336_v60  ;;  %v5863_v0 = vld [vmem:[#allocation2 + $0x150] sm:$0xff]  ;;  %v5867_v2 = vld [vmem:[#allocation2 + $0x68] sm:$0xff] }
  0x91   : > { %v5865_v1 = vld [vmem:[#allocation2 + $0x69] sm:$0xff]  ;;  %370 = vst.msk [vmem:[#allocation2 + $0xa9] sm:$0xff] %vm269_vm0, %v337_v3  ;;  %v452_v4 = vld [vmem:[#allocation2 + $0x159] sm:$0xff] }
  0x92   : > { %5122 = vmatmul.msk.f32.gmra.mxu2 %vm269_vm0, %v446_v32  ;;  %v5878_v5 = vld [vmem:[#allocation2 + $0x158] sm:$0xff]  ;;  %371 = vst.msk [vmem:[#allocation2 + $0xb1] sm:$0xff] %vm269_vm0, %v338_v9  ;;  %v5962_v42 = vpop.f32.mrf.mxu1  ;;  %v878_v43 = vld [vmem:[#allocation2 + $0x22] sm:$0xff] }
  0x93   : > { %5154 = vmatmul.msk.f32.gmra.mxu3 %vm269_vm0, %v5774_v33  ;;  %v5880_v6 = vld [vmem:[#allocation2 + $0x79] sm:$0xff]  ;;  %v453_v10 = vld [vmem:[#allocation2 + $0x169] sm:$0xff]  ;;  %372 = vst.msk [vmem:[#allocation2 + $0xc1] sm:$0xff] %vm269_vm0, %v339_v14 }
  0x94   : > { %5103 = vmatmul.msk.f32.gmra.mxu0 %vm269_vm0, %v5776_v34  ;;  %v5882_v7 = vld [vmem:[#allocation2 + $0x78] sm:$0xff]  ;;  %v5893_v11 = vld [vmem:[#allocation2 + $0x168] sm:$0xff]  ;;  %v5897_v13 = vld [vmem:[#allocation2 + $0x80] sm:$0xff]  ;;  %373 = vst.msk [vmem:[#allocation2 + $0xc9] sm:$0xff] %vm269_vm0, %v340_v19 }
  0x95   : > { %5135 = vmatmul.msk.f32.gmra.mxu1 %vm269_vm0, %v5778_v35  ;;  %v5895_v12 = vld [vmem:[#allocation2 + $0x81] sm:$0xff]  ;;  %v454_v15 = vld [vmem:[#allocation2 + $0x171] sm:$0xff]  ;;  %374 = vst.msk [vmem:[#allocation2 + $0xd9] sm:$0xff] %vm269_vm0, %v341_v26 }
  0x96   : > { %v5908_v16 = vld [vmem:[#allocation2 + $0x170] sm:$0xff]  ;;  %v877_v36 = vld [vmem:[#allocation2 + $0x1a] sm:$0xff] }
  0x97   : > { %v5910_v17 = vld [vmem:[#allocation2 + $0x91] sm:$0xff]  ;;  %v5923_v22 = vld [vmem:[#allocation2 + $0x99] sm:$0xff] }
  0x98   : > { %v5912_v18 = vld [vmem:[#allocation2 + $0x90] sm:$0xff]  ;;  %v5925_v25 = vld [vmem:[#allocation2 + $0x98] sm:$0xff]  ;;  %v5938_v32 = vld [vmem:[#allocation2 + $0xa8] sm:$0xff] }
  0x99   : > { %v5936_v31 = vld [vmem:[#allocation2 + $0xa9] sm:$0xff]  ;;  %v5949_v37 = vld [vmem:[#allocation2 + $0xb1] sm:$0xff]  ;;  %v5229_v49 = vld [vmem:[%s8322_s1 + $0x20] sm:$0xff] }
  0x9a   : > { %5123 = vmatmul.msk.f32.gmra.mxu2 %vm269_vm0, %v447_v38  ;;  %v5951_v38 = vld [vmem:[#allocation2 + $0xb0] sm:$0xff]  ;;  %v5966_v48 = vld [vmem:[#allocation2 + $0xc0] sm:$0xff]  ;;  %1570 = vmatpush.msrb.mxu0 %v5229_v49  ;;  %v5983_v54 = vpop.f32.mrf.mxu1 }
  0x9b   : > { %5155 = vmatmul.msk.f32.gmra.mxu3 %vm269_vm0, %v5791_v39  ;;  %v879_v55 = vld [vmem:[#allocation2 + $0x32] sm:$0xff]  ;;  %v880_v62 = vld [vmem:[#allocation2 + $0x3a] sm:$0xff] }
  0x9c   : > { %5104 = vmatmul.msk.f32.gmra.mxu0 %vm269_vm0, %v5793_v40  ;;  %v6006_v9 = vld [vmem:[#allocation2 + $0xd8] sm:$0xff] }
  0x9d   : > { %5136 = vmatmul.msk.f32.gmra.mxu1 %vm269_vm0, %v5795_v41 }
  0xa2   : > { %5124 = vmatmul.msk.f32.gmra.mxu2 %vm269_vm0, %v448_v44  ;;  %v5964_v44 = vld [vmem:[#allocation2 + $0xc1] sm:$0xff] }
  0xa3   : > { %5156 = vmatmul.msk.f32.gmra.mxu3 %vm269_vm0, %v5808_v45 }
  0xa4   : > { %5105 = vmatmul.msk.f32.gmra.mxu0 %vm269_vm0, %v5810_v46 }
  0xa5   : > { %5137 = vmatmul.msk.f32.gmra.mxu1 %vm269_vm0, %v5812_v47 }
  0xaa   : > { %5125 = vmatmul.msk.f32.gmra.mxu2 %vm269_vm0, %v449_v50 }
  0xab   : > { %5157 = vmatmul.msk.f32.gmra.mxu3 %vm269_vm0, %v5825_v51 }
  0xac   : > { %5106 = vmatmul.msk.f32.gmra.mxu0 %vm269_vm0, %v5827_v52 }
  0xad   : > { %5138 = vmatmul.msk.f32.gmra.mxu1 %vm269_vm0, %v5829_v53 }
  0xb2   : > { %5126 = vmatmul.msk.f32.gmra.mxu2 %vm269_vm0, %v450_v56  ;;  %v5985_v56 = vld [vmem:[#allocation2 + $0xc9] sm:$0xff] }
  0xb3   : > { %5158 = vmatmul.msk.f32.gmra.mxu3 %vm269_vm0, %v5842_v57 }
  0xb4   : > { %5107 = vmatmul.msk.f32.gmra.mxu0 %vm269_vm0, %v5844_v58 }
  0xb5   : > { %5139 = vmatmul.msk.f32.gmra.mxu1 %vm269_vm0, %v5846_v59 }
  0xba   : > { %5127 = vmatmul.msk.f32.gmra.mxu2 %vm269_vm0, %v451_v63 }
  0xbb   : > { %5159 = vmatmul.msk.f32.gmra.mxu3 %vm269_vm0, %v5863_v0 }
  0xbc   : > { %5108 = vmatmul.msk.f32.gmra.mxu0 %vm269_vm0, %v5865_v1 }
  0xbd   : > { %5140 = vmatmul.msk.f32.gmra.mxu1 %vm269_vm0, %v5867_v2 }
  0xc2   : > { %5128 = vmatmul.msk.f32.gmra.mxu2 %vm269_vm0, %v452_v4  ;;  %v6004_v4 = vld [vmem:[#allocation2 + $0xd9] sm:$0xff] }
  0xc3   : > { %5160 = vmatmul.msk.f32.gmra.mxu3 %vm269_vm0, %v5878_v5 }
  0xc4   : > { %5109 = vmatmul.msk.f32.gmra.mxu0 %vm269_vm0, %v5880_v6 }
  0xc5   : > { %5141 = vmatmul.msk.f32.gmra.mxu1 %vm269_vm0, %v5882_v7 }
  0xca   : > { %5129 = vmatmul.msk.f32.gmra.mxu2 %vm269_vm0, %v453_v10 }
  0xcb   : > { %5161 = vmatmul.msk.f32.gmra.mxu3 %vm269_vm0, %v5893_v11 }
  0xcc   : > { %5110 = vmatmul.msk.f32.gmra.mxu0 %vm269_vm0, %v5895_v12 }
  0xcd   : > { %5142 = vmatmul.msk.f32.gmra.mxu1 %vm269_vm0, %v5897_v13 }
  0xd2   : > { %5130 = vmatmul.msk.f32.gmra.mxu2 %vm269_vm0, %v454_v15  ;;  %v881_v15 = vld [vmem:[#allocation2 + $0x4a] sm:$0xff] }
  0xd3   : > { %5162 = vmatmul.msk.f32.gmra.mxu3 %vm269_vm0, %v5908_v16 }
  0xd4   : > { %5111 = vmatmul.msk.f32.gmra.mxu0 %vm269_vm0, %v5910_v17 }
  0xd5   : > { %5143 = vmatmul.msk.f32.gmra.mxu1 %vm269_vm0, %v5912_v18 }
  0xda   : > { %5164 = vmatmul.msk.f32.vlgmr.msrb.gmra.mxu2 %vm269_vm0, %v875_v20 }
  0xdb   : > { %5197 = vmatmul.msk.f32.vlgmr.msrb.gmra.mxu3 %vm269_vm0, %v5746_v24  ;;  %v342_v24 = vld [vmem:[%s5669_s13 + $0x88] sm:$0xff] }
  0xdc   : > { %5112 = vmatmul.msk.f32.gmra.mxu0 %vm269_vm0, %v5923_v22  ;;  %375 = vst.msk [vmem:[#allocation2 + $0xe1] sm:$0xff] %vm269_vm0, %v342_v24 }
  0xdd   : > { %5144 = vmatmul.msk.f32.gmra.mxu1 %vm269_vm0, %v5925_v25 }
  0xe2   : > { %5165 = vmatmul.msk.f32.gmra.mxu2 %vm269_vm0, %v876_v30 }
  0xe3   : > { %5198 = vmatmul.msk.f32.gmra.mxu3 %vm269_vm0, %v5761_v29  ;;  %v5960_v29 = vpop.f32.mrf.mxu0  ;;  %v6021_v26 = vld [vmem:[#allocation2 + $0xe1] sm:$0xff] }
  0xe4   : > { %5113 = vmatmul.msk.f32.gmra.mxu0 %vm269_vm0, %v5936_v31  ;;  %v6023_v30 = vld [vmem:[#allocation2 + $0xe0] sm:$0xff] }
  0xe5   : > { %5145 = vmatmul.msk.f32.gmra.mxu1 %vm269_vm0, %v5938_v32 }
  0xea   : > { %5166 = vmatmul.msk.f32.gmra.mxu2 %vm269_vm0, %v877_v36 }
  0xeb   : > { %5199 = vmatmul.msk.f32.gmra.mxu3 %vm269_vm0, %v5778_v35  ;;  %v5262_v35 = vld [vmem:[%s8322_s1 + $0x28] sm:$0xff] }
  0xec   : > { %5114 = vmatmul.msk.f32.gmra.mxu0 %vm269_vm0, %v5949_v37  ;;  %1845 = vmatpush.msrb.mxu1 %v5262_v35  ;;  %v882_v35 = vld [vmem:[#allocation2 + $0x52] sm:$0xff] }
  0xed   : > { %5146 = vmatmul.msk.f32.gmra.mxu1 %vm269_vm0, %v5951_v38 }
  0xee   : > { %v5981_v50 = vpop.f32.mrf.mxu0 }
  0xf2   : > { %5167 = vmatmul.msk.f32.gmra.mxu2 %vm269_vm0, %v878_v43  ;;  %v5996_v60 = vpop.f32.mrf.mxu2 }
  0xf3   : > { %5200 = vmatmul.msk.f32.gmra.mxu3 %vm269_vm0, %v5795_v41  ;;  %v5987_v41 = vld [vmem:[#allocation2 + $0xc8] sm:$0xff]  ;;  %8339 = vst [vmem:[#allocation7_spill] sm:$0xff] %v5996_v60  ;;  %v5998_v61 = vpop.f32.mrf.mxu3 }
  0xf4   : > { %5115 = vmatmul.msk.f32.gmra.mxu0 %vm269_vm0, %v5964_v44  ;;  %8340 = vst [vmem:[#allocation8_spill] sm:$0xff] %v5998_v61 }
  0xf5   : > { %5147 = vmatmul.msk.f32.gmra.mxu1 %vm269_vm0, %v5966_v48 }
  0xfa   : > { %5168 = vmatmul.msk.f32.gmra.mxu2 %vm269_vm0, %v879_v55 }
  0xfb   : > { %5201 = vmatmul.msk.f32.gmra.mxu3 %vm269_vm0, %v5812_v47 }
  0xfc   : > { %5116 = vmatmul.msk.f32.gmra.mxu0 %vm269_vm0, %v5985_v56 }
  0xfd   : > { %5148 = vmatmul.msk.f32.gmra.mxu1 %vm269_vm0, %v5987_v41 }
 0x101   : > { %v6000_v63 = vpop.f32.mrf.mxu0 }
 0x102   : > { %v6002_v3 = vpop.f32.mrf.mxu1  ;;  %5169 = vmatmul.msk.f32.gmra.mxu2 %vm269_vm0, %v880_v62 }
 0x103   : > { %5202 = vmatmul.msk.f32.gmra.mxu3 %vm269_vm0, %v5829_v53 }
 0x104   : > { %5117 = vmatmul.msk.f32.gmra.mxu0 %vm269_vm0, %v6004_v4 }
 0x105   : > { %5149 = vmatmul.msk.f32.gmra.mxu1 %vm269_vm0, %v6006_v9  ;;  %v633_v47 = vpop.f32.mrf.mxu2 }
 0x106   : > { %v842_v10 = vpop.f32.mrf.mxu3 }
 0x107   : > { %v6015_v14 = vadd.f32 %v842_v10, %v633_v47 }
 0x109   : > { %8341 = vst [vmem:[#allocation9_spill] sm:$0xff] %v6015_v14  ;;  %v6017_v19 = vpop.f32.mrf.mxu0 }
 0x10a   : > { %v6019_v20 = vpop.f32.mrf.mxu1  ;;  %5170 = vmatmul.msk.f32.gmra.mxu2 %vm269_vm0, %v881_v15 }
 0x10b   : > { %5203 = vmatmul.msk.f32.gmra.mxu3 %vm269_vm0, %v5846_v59 }
 0x10c   : > { %5118 = vmatmul.msk.f32.gmra.mxu0 %vm269_vm0, %v6021_v26 }
 0x10d   : > { %5150 = vmatmul.msk.f32.gmra.mxu1 %vm269_vm0, %v6023_v30  ;;  %v636_v53 = vpop.f32.mrf.mxu2 }
 0x10e   : > { %v845_v24 = vpop.f32.mrf.mxu3 }
 0x10f   : > { %v6032_v49 = vadd.f32 %v845_v24, %v636_v53  ;;  %v883_v53 = vld [vmem:[#allocation2 + $0x62] sm:$0xff] }
 0x111   : > { %8342 = vst [vmem:[#allocation10_spill] sm:$0xff] %v6032_v49  ;;  %v6034_v47 = vpop.f32.mrf.mxu0 }
 0x112   : > { %v6036_v10 = vpop.f32.mrf.mxu1  ;;  %5171 = vmatmul.msk.f32.gmra.mxu2 %vm269_vm0, %v882_v35 }
 0x113   : > { %5204 = vmatmul.msk.f32.gmra.mxu3 %vm269_vm0, %v5867_v2 }
 0x114   : > { %5230 = vmatmul.msk.f32.vlgmr.msrb.gmra.mxu0 %vm269_vm0, %v5744_v23 }
 0x115   : > { %5263 = vmatmul.msk.f32.vlgmr.msrb.gmra.mxu1 %vm269_vm0, %v877_v36  ;;  %v639_v59 = vpop.f32.mrf.mxu2 }
 0x116   : > { %v848_v14 = vpop.f32.mrf.mxu3 }
 0x117   : > { %v6044_v61 = vadd.f32 %v848_v14, %v639_v59  ;;  %v884_v14 = vld [vmem:[#allocation2 + $0x6a] sm:$0xff] }
 0x119   : > { %8343 = vst [vmem:[#allocation11_spill] sm:$0xff] %v6044_v61  ;;  %v6046_v24 = vpop.f32.mrf.mxu0 }
 0x11a   : > { %v6048_v49 = vpop.f32.mrf.mxu1  ;;  %5172 = vmatmul.msk.f32.gmra.mxu2 %vm269_vm0, %v883_v53 }
 0x11b   : > { %5205 = vmatmul.msk.f32.gmra.mxu3 %vm269_vm0, %v5882_v7 }
 0x11c   : > { %5231 = vmatmul.msk.f32.gmra.mxu0 %vm269_vm0, %v5759_v28 }
 0x11d   : > { %5264 = vmatmul.msk.f32.gmra.mxu1 %vm269_vm0, %v878_v43  ;;  %v642_v23 = vpop.f32.mrf.mxu2 }
 0x11e   : > { %v851_v2 = vpop.f32.mrf.mxu3 }
 0x11f   : > { %v6056_v36 = vadd.f32 %v851_v2, %v642_v23  ;;  %v885_v23 = vld [vmem:[#allocation2 + $0x7a] sm:$0xff] }
 0x121   : > { %8344 = vst [vmem:[#allocation12_spill] sm:$0xff] %v6056_v36  ;;  %v6058_v59 = vpop.f32.mrf.mxu0 }
 0x122   : > { %v6060_v61 = vpop.f32.mrf.mxu1  ;;  %5173 = vmatmul.msk.f32.gmra.mxu2 %vm269_vm0, %v884_v14 }
 0x123   : > { %5206 = vmatmul.msk.f32.gmra.mxu3 %vm269_vm0, %v5897_v13 }
 0x124   : > { %5232 = vmatmul.msk.f32.gmra.mxu0 %vm269_vm0, %v5776_v34 }
 0x125   : > { %5265 = vmatmul.msk.f32.gmra.mxu1 %vm269_vm0, %v879_v55  ;;  %v645_v28 = vpop.f32.mrf.mxu2 }
 0x126   : > { %v854_v7 = vpop.f32.mrf.mxu3 }
 0x127   : > { %v6068_v43 = vadd.f32 %v854_v7, %v645_v28  ;;  %v886_v28 = vld [vmem:[#allocation2 + $0x82] sm:$0xff] }
 0x129   : > { %8345 = vst [vmem:[#allocation13_spill] sm:$0xff] %v6068_v43  ;;  %v6070_v2 = vpop.f32.mrf.mxu0 }
 0x12a   : > { %v6072_v36 = vpop.f32.mrf.mxu1  ;;  %5174 = vmatmul.msk.f32.gmra.mxu2 %vm269_vm0, %v885_v23 }
 0x12b   : > { %5207 = vmatmul.msk.f32.gmra.mxu3 %vm269_vm0, %v5912_v18 }
 0x12c   : > { %5233 = vmatmul.msk.f32.gmra.mxu0 %vm269_vm0, %v5793_v40 }
 0x12d   : > { %5266 = vmatmul.msk.f32.gmra.mxu1 %vm269_vm0, %v880_v62  ;;  %v648_v34 = vpop.f32.mrf.mxu2 }
 0x12e   : > { %v857_v13 = vpop.f32.mrf.mxu3 }
 0x12f   : > { %v6080_v55 = vadd.f32 %v857_v13, %v648_v34  ;;  %v887_v34 = vld [vmem:[#allocation2 + $0x92] sm:$0xff] }
 0x131   : > { %8346 = vst [vmem:[#allocation14_spill] sm:$0xff] %v6080_v55  ;;  %v6082_v7 = vpop.f32.mrf.mxu0 }
 0x132   : > { %v6084_v43 = vpop.f32.mrf.mxu1  ;;  %5175 = vmatmul.msk.f32.gmra.mxu2 %vm269_vm0, %v886_v28 }
 0x133   : > { %5208 = vmatmul.msk.f32.gmra.mxu3 %vm269_vm0, %v5925_v25 }
 0x134   : > { %5234 = vmatmul.msk.f32.gmra.mxu0 %vm269_vm0, %v5810_v46 }
 0x135   : > { %5267 = vmatmul.msk.f32.gmra.mxu1 %vm269_vm0, %v881_v15  ;;  %v651_v40 = vpop.f32.mrf.mxu2 }
 0x136   : > { %v860_v18 = vpop.f32.mrf.mxu3 }
 0x137   : > { %v6092_v62 = vadd.f32 %v860_v18, %v651_v40  ;;  %v888_v40 = vld [vmem:[#allocation2 + $0x9a] sm:$0xff] }
 0x139   : > { %8347 = vst [vmem:[#allocation15_spill] sm:$0xff] %v6092_v62  ;;  %v6094_v13 = vpop.f32.mrf.mxu0 }
 0x13a   : > { %v6096_v55 = vpop.f32.mrf.mxu1  ;;  %5176 = vmatmul.msk.f32.gmra.mxu2 %vm269_vm0, %v887_v34 }
 0x13b   : > { %5209 = vmatmul.msk.f32.gmra.mxu3 %vm269_vm0, %v5938_v32 }
 0x13c   : > { %5235 = vmatmul.msk.f32.gmra.mxu0 %vm269_vm0, %v5827_v52 }
 0x13d   : > { %5268 = vmatmul.msk.f32.gmra.mxu1 %vm269_vm0, %v882_v35  ;;  %v654_v46 = vpop.f32.mrf.mxu2 }
 0x13e   : > { %v863_v25 = vpop.f32.mrf.mxu3 }
 0x13f   : > { %v6104_v15 = vadd.f32 %v863_v25, %v654_v46  ;;  %v889_v46 = vld [vmem:[#allocation2 + $0xaa] sm:$0xff] }
 0x141   : > { %8348 = vst [vmem:[#allocation16_spill] sm:$0xff] %v6104_v15  ;;  %v6106_v18 = vpop.f32.mrf.mxu0 }
 0x142   : > { %v6108_v62 = vpop.f32.mrf.mxu1  ;;  %5177 = vmatmul.msk.f32.gmra.mxu2 %vm269_vm0, %v888_v40 }
 0x143   : > { %5210 = vmatmul.msk.f32.gmra.mxu3 %vm269_vm0, %v5951_v38 }
 0x144   : > { %5236 = vmatmul.msk.f32.gmra.mxu0 %vm269_vm0, %v5844_v58 }
 0x145   : > { %5269 = vmatmul.msk.f32.gmra.mxu1 %vm269_vm0, %v883_v53  ;;  %v657_v52 = vpop.f32.mrf.mxu2 }
 0x146   : > { %v866_v32 = vpop.f32.mrf.mxu3 }
 0x147   : > { %v6116_v35 = vadd.f32 %v866_v32, %v657_v52  ;;  %v6130_v52 = vld [vmem:[#allocation2 + $0xb2] sm:$0xff] }
 0x149   : > { %8349 = vst [vmem:[#allocation17_spill] sm:$0xff] %v6116_v35  ;;  %v6118_v25 = vpop.f32.mrf.mxu0 }
 0x14a   : > { %v6120_v15 = vpop.f32.mrf.mxu1  ;;  %5178 = vmatmul.msk.f32.gmra.mxu2 %vm269_vm0, %v889_v46 }
 0x14b   : > { %5211 = vmatmul.msk.f32.gmra.mxu3 %vm269_vm0, %v5966_v48 }
 0x14c   : > { %5237 = vmatmul.msk.f32.gmra.mxu0 %vm269_vm0, %v5865_v1 }
 0x14d   : > { %5270 = vmatmul.msk.f32.gmra.mxu1 %vm269_vm0, %v884_v14  ;;  %v660_v58 = vpop.f32.mrf.mxu2 }
 0x14e   : > { %v869_v38 = vpop.f32.mrf.mxu3 }
 0x14f   : > { %v6128_v53 = vadd.f32 %v869_v38, %v660_v58  ;;  %v6145_v58 = vld [vmem:[#allocation2 + $0xc2] sm:$0xff] }
 0x151   : > { %8350 = vst [vmem:[#allocation18_spill] sm:$0xff] %v6128_v53  ;;  %v6132_v32 = vpop.f32.mrf.mxu0 }
 0x152   : > { %v6134_v35 = vpop.f32.mrf.mxu1  ;;  %5179 = vmatmul.msk.f32.gmra.mxu2 %vm269_vm0, %v6130_v52 }
 0x153   : > { %5212 = vmatmul.msk.f32.gmra.mxu3 %vm269_vm0, %v5987_v41 }
 0x154   : > { %5238 = vmatmul.msk.f32.gmra.mxu0 %vm269_vm0, %v5880_v6  ;;  %v780_v6 = vadd.f32 %v5962_v42, %v5960_v29 }
 0x155   : > { %5271 = vmatmul.msk.f32.gmra.mxu1 %vm269_vm0, %v885_v23  ;;  %v663_v1 = vpop.f32.mrf.mxu2 }
 0x156   : > { %v872_v48 = vpop.f32.mrf.mxu3 }
 0x157   : > { %v6143_v14 = vadd.f32 %v872_v48, %v663_v1  ;;  %v6160_v48 = vld [vmem:[#allocation2 + $0xca] sm:$0xff] }
 0x159   : > { %8351 = vst [vmem:[#allocation19_spill] sm:$0xff] %v6143_v14  ;;  %v6147_v38 = vpop.f32.mrf.mxu0 }
 0x15a   : > { %v6149_v53 = vpop.f32.mrf.mxu1  ;;  %5180 = vmatmul.msk.f32.gmra.mxu2 %vm269_vm0, %v6145_v58 }
 0x15b   : > { %8352 = vst [vmem:[#allocation20_spill] sm:$0xff] %v6149_v53  ;;  %5213 = vmatmul.msk.f32.gmra.mxu3 %vm269_vm0, %v6006_v9 }
 0x15c   : > { %5239 = vmatmul.msk.f32.gmra.mxu0 %vm269_vm0, %v5895_v12  ;;  %v783_v12 = vadd.f32 %v5983_v54, %v5981_v50 }
 0x15d   : > { %5272 = vmatmul.msk.f32.gmra.mxu1 %vm269_vm0, %v886_v28  ;;  %v1022_v41 = vpop.f32.mrf.mxu2  ;;  %v6177_v28 = vld [vmem:[#allocation2 + $0xda] sm:$0xff] }
 0x15e   : > { %v1297_v23 = vpop.f32.mrf.mxu3  ;;  %v1118_v1 = vadd.f32 %v1022_v41, %v780_v6 }
 0x160   : > { %v6162_v14 = vadd.f32 %v1297_v23, %v1118_v1 }
 0x161   : > { %v6164_v60 = vpop.f32.mrf.mxu0 }
 0x162   : > { %v6166_v53 = vpop.f32.mrf.mxu1  ;;  %5181 = vmatmul.msk.f32.gmra.mxu2 %vm269_vm0, %v6160_v48 }
 0x163   : > { %5214 = vmatmul.msk.f32.gmra.mxu3 %vm269_vm0, %v6023_v30 }
 0x164   : > { %5240 = vmatmul.msk.f32.gmra.mxu0 %vm269_vm0, %v5910_v17  ;;  %v786_v17 = vadd.f32 %v6002_v3, %v6000_v63 }
 0x165   : > { %5273 = vmatmul.msk.f32.gmra.mxu1 %vm269_vm0, %v887_v34  ;;  %v1025_v29 = vpop.f32.mrf.mxu2  ;;  %v6194_v34 = vld [vmem:[#allocation2 + $0xe2] sm:$0xff] }
 0x166   : > { %v1300_v42 = vpop.f32.mrf.mxu3  ;;  %v1119_v9 = vadd.f32 %v1025_v29, %v783_v12 }
 0x168   : > { %v6179_v6 = vadd.f32 %v1300_v42, %v1119_v9 }
 0x169   : > { %v6181_v41 = vpop.f32.mrf.mxu0 }
 0x16a   : > { %v6183_v23 = vpop.f32.mrf.mxu1  ;;  %5182 = vmatmul.msk.f32.gmra.mxu2 %vm269_vm0, %v6177_v28 }
 0x16b   : > { %5215 = vmatmul.msk.f32.gmra.mxu3 %vm269_vm0, %v5690_v8  ;;  %v789_v8 = vadd.f32 %v6019_v20, %v6017_v19 }
 0x16c   : > { %5241 = vmatmul.msk.f32.gmra.mxu0 %vm269_vm0, %v5923_v22 }
 0x16d   : > { %5274 = vmatmul.msk.f32.gmra.mxu1 %vm269_vm0, %v888_v40  ;;  %v1028_v50 = vpop.f32.mrf.mxu2  ;;  %v6211_v40 = vld [vmem:[#allocation2 + $0xf2] sm:$0xff] }
 0x16e   : > { %v1303_v54 = vpop.f32.mrf.mxu3  ;;  %v1120_v30 = vadd.f32 %v1028_v50, %v786_v17 }
 0x170   : > { %v6196_v1 = vadd.f32 %v1303_v54, %v1120_v30 }
 0x171   : > { %v6198_v12 = vpop.f32.mrf.mxu0 }
 0x172   : > { %v6200_v29 = vpop.f32.mrf.mxu1  ;;  %5183 = vmatmul.msk.f32.gmra.mxu2 %vm269_vm0, %v6194_v34 }
 0x173   : > { %5216 = vmatmul.msk.f32.gmra.mxu3 %vm269_vm0, %v5737_v21  ;;  %v792_v21 = vadd.f32 %v6036_v10, %v6034_v47 }
 0x174   : > { %5242 = vmatmul.msk.f32.gmra.mxu0 %vm269_vm0, %v5936_v31 }
 0x175   : > { %5275 = vmatmul.msk.f32.gmra.mxu1 %vm269_vm0, %v889_v46  ;;  %v1031_v22 = vpop.f32.mrf.mxu2  ;;  %v6229_v46 = vld [vmem:[#allocation2 + $0xfa] sm:$0xff] }
 0x176   : > { %v1306_v63 = vpop.f32.mrf.mxu3  ;;  %v1121_v3 = vadd.f32 %v1031_v22, %v789_v8 }
 0x178   : > { %v6213_v42 = vadd.f32 %v1306_v63, %v1121_v3 }
 0x179   : > { %v6215_v9 = vpop.f32.mrf.mxu0 }
 0x17a   : > { %v6217_v17 = vpop.f32.mrf.mxu1  ;;  %5184 = vmatmul.msk.f32.gmra.mxu2 %vm269_vm0, %v6211_v40 }
 0x17b   : > { %5217 = vmatmul.msk.f32.gmra.mxu3 %vm269_vm0, %v5757_v27  ;;  %v795_v27 = vadd.f32 %v6048_v49, %v6046_v24 }
 0x17c   : > { %5243 = vmatmul.msk.f32.gmra.mxu0 %vm269_vm0, %v5949_v37 }
 0x17d   : > { %5276 = vmatmul.msk.f32.gmra.mxu1 %vm269_vm0, %v6130_v52  ;;  %v1034_v31 = vpop.f32.mrf.mxu2  ;;  %v6247_v52 = vld [vmem:[#allocation2 + $0x10a] sm:$0xff] }
 0x17e   : > { %v1309_v19 = vpop.f32.mrf.mxu3  ;;  %v1122_v20 = vadd.f32 %v1034_v31, %v792_v21 }
 0x180   : > { %v6231_v50 = vadd.f32 %v1309_v19, %v1122_v20  ;;  %v6282_v19 = vld [vmem:[#allocation2 + $0x122] sm:$0xff] }
 0x181   : > { %v6233_v54 = vpop.f32.mrf.mxu0 }
 0x182   : > { %v6235_v30 = vpop.f32.mrf.mxu1  ;;  %5185 = vmatmul.msk.f32.gmra.mxu2 %vm269_vm0, %v6229_v46 }
 0x183   : > { %5218 = vmatmul.msk.f32.gmra.mxu3 %vm269_vm0, %v5774_v33  ;;  %v798_v33 = vadd.f32 %v6060_v61, %v6058_v59  ;;  %v801_v61 = vadd.f32 %v6072_v36, %v6070_v2  ;;  %v804_v36 = vadd.f32 %v6084_v43, %v6082_v7  ;;  %v807_v7 = vadd.f32 %v6096_v55, %v6094_v13 }
 0x184   : > { %5244 = vmatmul.msk.f32.gmra.mxu0 %vm269_vm0, %v5964_v44  ;;  %v810_v13 = vadd.f32 %v6108_v62, %v6106_v18  ;;  %v813_v18 = vadd.f32 %v6120_v15, %v6118_v25 }
 0x185   : > { %5277 = vmatmul.msk.f32.gmra.mxu1 %vm269_vm0, %v6145_v58  ;;  %v1037_v37 = vpop.f32.mrf.mxu2  ;;  %v6265_v58 = vld [vmem:[#allocation2 + $0x112] sm:$0xff] }
 0x186   : > { %v1312_v47 = vpop.f32.mrf.mxu3  ;;  %v1123_v10 = vadd.f32 %v1037_v37, %v795_v27 }
 0x188   : > { %v6249_v8 = vadd.f32 %v1312_v47, %v1123_v10  ;;  %v6299_v47 = vld [vmem:[#allocation2 + $0x12a] sm:$0xff] }
 0x189   : > { %v6251_v22 = vpop.f32.mrf.mxu0 }
 0x18a   : > { %v6253_v63 = vpop.f32.mrf.mxu1  ;;  %5186 = vmatmul.msk.f32.gmra.mxu2 %vm269_vm0, %v6247_v52 }
 0x18b   : > { %5219 = vmatmul.msk.f32.gmra.mxu3 %vm269_vm0, %v5791_v39 }
 0x18c   : > { %5245 = vmatmul.msk.f32.gmra.mxu0 %vm269_vm0, %v5985_v56 }
 0x18d   : > { %5278 = vmatmul.msk.f32.gmra.mxu1 %vm269_vm0, %v6160_v48  ;;  %v1040_v44 = vpop.f32.mrf.mxu2 }
 0x18e   : > { %v1315_v49 = vpop.f32.mrf.mxu3  ;;  %v1124_v24 = vadd.f32 %v1040_v44, %v798_v33  ;;  %v6303_v44 = vld [vmem:[#allocation2 + $0xf1] sm:$0xff] }
 0x190   : > { %v6267_v3 = vadd.f32 %v1315_v49, %v1124_v24 }
 0x191   : > { %v1572_v21 = vpop.f32.mrf.mxu0 }
 0x192   : > { %v1847_v31 = vpop.f32.mrf.mxu1  ;;  %v1668_v39 = vadd.f32 %v1572_v21, %v6162_v14  ;;  %5187 = vmatmul.msk.f32.gmra.mxu2 %vm269_vm0, %v6265_v58  ;;  %v6320_v21 = vld [vmem:[#allocation2 + $0x13a] sm:$0xff] }
 0x193   : > { %5220 = vmatmul.msk.f32.gmra.mxu3 %vm269_vm0, %v5808_v45 }
 0x194   : > { %v6274_v56 = vadd.f32 %v1847_v31, %v1668_v39  ;;  %5246 = vmatmul.msk.f32.gmra.mxu0 %vm269_vm0, %v6004_v4 }
 0x195   : > { %5279 = vmatmul.msk.f32.gmra.mxu1 %vm269_vm0, %v6177_v28  ;;  %v1043_v59 = vpop.f32.mrf.mxu2 }
 0x196   : > { %v1318_v48 = vpop.f32.mrf.mxu3  ;;  %v1125_v14 = vadd.f32 %v1043_v59, %v801_v61  ;;  %v6324_v61 = vld [vmem:[#allocation2 + $0xf9] sm:$0xff] }
 0x198   : > { %v6284_v20 = vadd.f32 %v1318_v48, %v1125_v14  ;;  %v356_v48 = vld [vmem:[%s5669_s13 + $0xf8] sm:$0xff] }
 0x199   : > { %v1575_v27 = vpop.f32.mrf.mxu0  ;;  %389 = vst.msk [vmem:[#allocation2 + $0x189] sm:$0xff] %vm269_vm0, %v356_v48 }
 0x19a   : > { %v1850_v45 = vpop.f32.mrf.mxu1  ;;  %v1669_v37 = vadd.f32 %v1575_v27, %v6179_v6  ;;  %5188 = vmatmul.msk.f32.gmra.mxu2 %vm269_vm0, %v6282_v19  ;;  %v6341_v27 = vld [vmem:[#allocation2 + $0x142] sm:$0xff] }
 0x19b   : > { %5221 = vmatmul.msk.f32.gmra.mxu3 %vm269_vm0, %v5825_v51 }
 0x19c   : > { %v6291_v4 = vadd.f32 %v1850_v45, %v1669_v37  ;;  %5247 = vmatmul.msk.f32.gmra.mxu0 %vm269_vm0, %v6021_v26  ;;  %v355_v26 = vld [vmem:[%s5669_s13 + $0xf0] sm:$0xff] }
 0x19d   : > { %5280 = vmatmul.msk.f32.gmra.mxu1 %vm269_vm0, %v6194_v34  ;;  %v1046_v2 = vpop.f32.mrf.mxu2  ;;  %388 = vst.msk [vmem:[#allocation2 + $0x181] sm:$0xff] %vm269_vm0, %v355_v26  ;;  %v5295_v26 = vld [vmem:[%s8322_s1 + $0x30] sm:$0xff] }
 0x19e   : > { %v1321_v28 = vpop.f32.mrf.mxu3  ;;  %v1126_v6 = vadd.f32 %v1046_v2, %v804_v36  ;;  %v6345_v36 = vld [vmem:[#allocation2 + $0x109] sm:$0xff]  ;;  %2121 = vmatpush.msra.mxu2 %v5295_v26 }
 0x1a0   : > { %v6301_v10 = vadd.f32 %v1321_v28, %v1126_v6  ;;  %v6360_v6 = vld [vmem:[#allocation2 + $0x152] sm:$0xff] }
 0x1a1   : > { %v1578_v33 = vpop.f32.mrf.mxu0 }
 0x1a2   : > { %v1853_v51 = vpop.f32.mrf.mxu1  ;;  %v1670_v49 = vadd.f32 %v1578_v33, %v6196_v1  ;;  %5189 = vmatmul.msk.f32.gmra.mxu2 %vm269_vm0, %v6299_v47 }
 0x1a3   : > { %5222 = vmatmul.msk.f32.gmra.mxu3 %vm269_vm0, %v5842_v57 }
 0x1a4   : > { %v6312_v43 = vadd.f32 %v1853_v51, %v1670_v49  ;;  %5248 = vmatmul.msk.f32.gmra.mxu0 %vm269_vm0, %v6303_v44  ;;  %v6364_v49 = vld [vmem:[#allocation2 + $0x111] sm:$0xff] }
 0x1a5   : > { %5281 = vmatmul.msk.f32.gmra.mxu1 %vm269_vm0, %v6211_v40  ;;  %v1049_v34 = vpop.f32.mrf.mxu2 }
 0x1a6   : > { %v1324_v1 = vpop.f32.mrf.mxu3  ;;  %v1127_v24 = vadd.f32 %v1049_v34, %v807_v7  ;;  %v816_v7 = vadd.f32 %v6134_v35, %v6132_v32  ;;  %v8353_v32 = vld [vmem:[#allocation20_spill] sm:$0xff] }
 0x1a8   : > { %v6322_v31 = vadd.f32 %v1324_v1, %v1127_v24  ;;  %v6385_v24 = vld [vmem:[#allocation2 + $0x15a] sm:$0xff] }
 0x1a9   : > { %v1581_v57 = vpop.f32.mrf.mxu0 }
 0x1aa   : > { %v1856_v39 = vpop.f32.mrf.mxu1  ;;  %v1671_v59 = vadd.f32 %v1581_v57, %v6213_v42  ;;  %5190 = vmatmul.msk.f32.gmra.mxu2 %vm269_vm0, %v6320_v21 }
 0x1ab   : > { %5223 = vmatmul.msk.f32.gmra.mxu3 %vm269_vm0, %v5863_v0 }
 0x1ac   : > { %v6333_v55 = vadd.f32 %v1856_v39, %v1671_v59  ;;  %5249 = vmatmul.msk.f32.gmra.mxu0 %vm269_vm0, %v6324_v61  ;;  %v6389_v59 = vld [vmem:[#allocation2 + $0x121] sm:$0xff] }
 0x1ad   : > { %5282 = vmatmul.msk.f32.gmra.mxu1 %vm269_vm0, %v6229_v46  ;;  %v1052_v40 = vpop.f32.mrf.mxu2 }
 0x1ae   : > { %v1327_v42 = vpop.f32.mrf.mxu3  ;;  %v1128_v14 = vadd.f32 %v1052_v40, %v810_v13 }
 0x1b0   : > { %v6343_v45 = vadd.f32 %v1327_v42, %v1128_v14  ;;  %v6404_v42 = vld [vmem:[#allocation2 + $0x16a] sm:$0xff]  ;;  %v6406_v14 = vld [vmem:[#allocation2 + $0x180] sm:$0xff] }
 0x1b1   : > { %v1584_v0 = vpop.f32.mrf.mxu0 }
 0x1b2   : > { %v1859_v37 = vpop.f32.mrf.mxu1  ;;  %v1672_v2 = vadd.f32 %v1584_v0, %v6231_v50  ;;  %5191 = vmatmul.msk.f32.gmra.mxu2 %vm269_vm0, %v6341_v27 }
 0x1b3   : > { %5224 = vmatmul.msk.f32.gmra.mxu3 %vm269_vm0, %v5878_v5 }
 0x1b4   : > { %v6352_v62 = vadd.f32 %v1859_v37, %v1672_v2  ;;  %5250 = vmatmul.msk.f32.gmra.mxu0 %vm269_vm0, %v6345_v36  ;;  %v6410_v2 = vld [vmem:[#allocation2 + $0x129] sm:$0xff] }
 0x1b5   : > { %5283 = vmatmul.msk.f32.gmra.mxu1 %vm269_vm0, %v6247_v52  ;;  %v1055_v46 = vpop.f32.mrf.mxu2  ;;  %v5328_v52 = vld [vmem:[%s8322_s1 + $0x38] sm:$0xff] }
 0x1b6   : > { %v1330_v28 = vpop.f32.mrf.mxu3  ;;  %v1129_v50 = vadd.f32 %v1055_v46, %v813_v18  ;;  %2396 = vmatpush.msra.mxu3 %v5328_v52  ;;  %v6431_v52 = vld [vmem:[#allocation2 + $0x139] sm:$0xff] }
 0x1b8   : > { %v6362_v33 = vadd.f32 %v1330_v28, %v1129_v50  ;;  %v6425_v50 = vld [vmem:[#allocation2 + $0x172] sm:$0xff] }
 0x1b9   : > { %v1587_v51 = vpop.f32.mrf.mxu0 }
 0x1ba   : > { %v1862_v5 = vpop.f32.mrf.mxu1  ;;  %v1673_v15 = vadd.f32 %v1587_v51, %v6249_v8  ;;  %5192 = vmatmul.msk.f32.gmra.mxu2 %vm269_vm0, %v6360_v6  ;;  %v1181_v51 = vld [vmem:[#allocation2 + $0x188] sm:$0xff] }
 0x1bb   : > { %5225 = vmatmul.msk.f32.gmra.mxu3 %vm269_vm0, %v5893_v11 }
 0x1bc   : > { %v6377_v25 = vadd.f32 %v1862_v5, %v1673_v15  ;;  %5251 = vmatmul.msk.f32.gmra.mxu0 %vm269_vm0, %v6364_v49 }
 0x1bd   : > { %5284 = vmatmul.msk.f32.gmra.mxu1 %vm269_vm0, %v6265_v58  ;;  %v1058_v8 = vpop.f32.mrf.mxu2  ;;  %v819_v58 = vadd.f32 %v8353_v32, %v6147_v38  ;;  %v1977_v32 = vld [vmem:[#allocation2 + $0x38] sm:$0xff] }
 0x1be   : > { %v1333_v34 = vpop.f32.mrf.mxu3  ;;  %v1130_v1 = vadd.f32 %v1058_v8, %v816_v7  ;;  %v1976_v7 = vld [vmem:[#allocation2 + $0x30] sm:$0xff] }
 0x1bf   : > { %v2251_v8 = vld [vmem:[#allocation2 + $0x31] sm:$0xff] }
 0x1c0   : > { %v6387_v57 = vadd.f32 %v1333_v34, %v1130_v1 }
 0x1c1   : > { %v1590_v39 = vpop.f32.mrf.mxu0 }
 0x1c2   : > { %v1865_v11 = vpop.f32.mrf.mxu1  ;;  %v1674_v48 = vadd.f32 %v1590_v39, %v6267_v3  ;;  %5193 = vmatmul.msk.f32.gmra.mxu2 %vm269_vm0, %v6385_v24  ;;  %v6446_v39 = vld [vmem:[#allocation2 + $0x141] sm:$0xff] }
 0x1c3   : > { %5226 = vmatmul.msk.f32.gmra.mxu3 %vm269_vm0, %v5908_v16 }
 0x1c4   : > { %v6396_v35 = vadd.f32 %v1865_v11, %v1674_v48  ;;  %5252 = vmatmul.msk.f32.gmra.mxu0 %vm269_vm0, %v6389_v59  ;;  %v5361_v11 = vld [vmem:[%s8322_s1 + $0x40] sm:$0xff] }
 0x1c5   : > { %5285 = vmatmul.msk.f32.gmra.mxu1 %vm269_vm0, %v6282_v19  ;;  %v1061_v13 = vpop.f32.mrf.mxu2  ;;  %v822_v19 = vadd.f32 %v6166_v53, %v6164_v60  ;;  %v825_v60 = vadd.f32 %v6183_v23, %v6181_v41  ;;  %v828_v41 = vadd.f32 %v6200_v29, %v6198_v12  ;;  %2671 = vmatpush.msra.mxu0 %v5361_v11  ;;  %v2255_v11 = vld [vmem:[#allocation2 + $0x61] sm:$0xff] }
 0x1c6   : > { %v1336_v40 = vpop.f32.mrf.mxu3  ;;  %v1131_v3 = vadd.f32 %v1061_v13, %v819_v58  ;;  %v2252_v58 = vld [vmem:[#allocation2 + $0x39] sm:$0xff]  ;;  %v831_v12 = vadd.f32 %v6217_v17, %v6215_v9  ;;  %v834_v9 = vadd.f32 %v6235_v30, %v6233_v54  ;;  %v837_v54 = vadd.f32 %v6253_v63, %v6251_v22  ;;  %v8359_v63 = vld [vmem:[#allocation8_spill] sm:$0xff] }
 0x1c7   : > { %v8358_v22 = vld [vmem:[#allocation7_spill] sm:$0xff] }
 0x1c8   : > { %v6408_v0 = vadd.f32 %v1336_v40, %v1131_v3  ;;  %v6463_v3 = vld [vmem:[#allocation2 + $0x151] sm:$0xff] }
 0x1c9   : > { %v1593_v16 = vpop.f32.mrf.mxu0 }
 0x1ca   : > { %v1868_v37 = vpop.f32.mrf.mxu1  ;;  %v1675_v18 = vadd.f32 %v1593_v16, %v6284_v20  ;;  %5194 = vmatmul.msk.f32.gmra.mxu2 %vm269_vm0, %v6404_v42 }
 0x1cb   : > { %5227 = vmatmul.msk.f32.gmra.mxu3 %vm269_vm0, %v6406_v14 }
 0x1cc   : > { %v6417_v38 = vadd.f32 %v1868_v37, %v1675_v18  ;;  %5253 = vmatmul.msk.f32.gmra.mxu0 %vm269_vm0, %v6410_v2  ;;  %v1978_v37 = vld [vmem:[#allocation2 + $0x48] sm:$0xff] }
 0x1cd   : > { %5286 = vmatmul.msk.f32.gmra.mxu1 %vm269_vm0, %v6299_v47  ;;  %v1064_v46 = vpop.f32.mrf.mxu2  ;;  %v2253_v18 = vld [vmem:[#allocation2 + $0x49] sm:$0xff] }
 0x1ce   : > { %v1339_v28 = vpop.f32.mrf.mxu3  ;;  %v1132_v20 = vadd.f32 %v1064_v46, %v822_v19 }
 0x1d0   : > { %v6427_v5 = vadd.f32 %v1339_v28, %v1132_v20  ;;  %v6477_v28 = vld [vmem:[#allocation2 + $0x159] sm:$0xff] }
 0x1d1   : > { %v6429_v26 = vpop.f32.mrf.mxu0 }
 0x1d2   : > { %5195 = vmatmul.msk.f32.gmra.mxu2 %vm269_vm0, %v6425_v50 }
 0x1d3   : > { %5228 = vmatmul.msk.f32.gmra.mxu3 %vm269_vm0, %v1181_v51  ;;  %v1979_v51 = vld [vmem:[#allocation2 + $0x50] sm:$0xff] }
 0x1d4   : > { %5254 = vmatmul.msk.f32.gmra.mxu0 %vm269_vm0, %v6431_v52 }
 0x1d5   : > { %5287 = vmatmul.msk.f32.gmra.mxu1 %vm269_vm0, %v6320_v21  ;;  %v1067_v53 = vpop.f32.mrf.mxu2 }
 0x1d6   : > { %v1342_v47 = vpop.f32.mrf.mxu3  ;;  %v1133_v15 = vadd.f32 %v1067_v53, %v825_v60  ;;  %v2254_v60 = vld [vmem:[#allocation2 + $0x51] sm:$0xff] }
 0x1d8   : > { %v6442_v34 = vadd.f32 %v1342_v47, %v1133_v15  ;;  %v6491_v15 = vld [vmem:[#allocation2 + $0x169] sm:$0xff] }
 0x1d9   : > { %v6444_v1 = vpop.f32.mrf.mxu0 }
 0x1da   : > { %5296 = vmatmul.msk.f32.vlgmr.msra.gmra.mxu2 %vm269_vm0, %v1976_v7 }
 0x1db   : > { %5329 = vmatmul.msk.f32.vlgmr.msra.gmra.mxu3 %vm269_vm0, %v2251_v8  ;;  %v1980_v8 = vld [vmem:[#allocation2 + $0x60] sm:$0xff] }
 0x1dc   : > { %5255 = vmatmul.msk.f32.gmra.mxu0 %vm269_vm0, %v6446_v39 }
 0x1dd   : > { %5288 = vmatmul.msk.f32.gmra.mxu1 %vm269_vm0, %v6341_v27  ;;  %v1070_v23 = vpop.f32.mrf.mxu2 }
 0x1de   : > { %v1345_v21 = vpop.f32.mrf.mxu3  ;;  %v1134_v48 = vadd.f32 %v1070_v23, %v828_v41 }
 0x1e0   : > { %v6459_v13 = vadd.f32 %v1345_v21, %v1134_v48  ;;  %v6505_v21 = vld [vmem:[#allocation2 + $0x171] sm:$0xff] }
 0x1e1   : > { %v6461_v40 = vpop.f32.mrf.mxu0 }
 0x1e2   : > { %8354 = vst [vmem:[#allocation20_spill] sm:$0xff] %v6459_v13  ;;  %5297 = vmatmul.msk.f32.gmra.mxu2 %vm269_vm0, %v1977_v32 }
 0x1e3   : > { %5330 = vmatmul.msk.f32.gmra.mxu3 %vm269_vm0, %v2252_v58 }
 0x1e4   : > { %5256 = vmatmul.msk.f32.gmra.mxu0 %vm269_vm0, %v6463_v3 }
 0x1e5   : > { %5289 = vmatmul.msk.f32.gmra.mxu1 %vm269_vm0, %v6360_v6  ;;  %v1073_v29 = vpop.f32.mrf.mxu2 }
 0x1e6   : > { %v1348_v27 = vpop.f32.mrf.mxu3  ;;  %v1135_v16 = vadd.f32 %v1073_v29, %v831_v12  ;;  %v1981_v12 = vld [vmem:[#allocation2 + $0x68] sm:$0xff] }
 0x1e7   : > { %v2256_v29 = vld [vmem:[#allocation2 + $0x69] sm:$0xff] }
 0x1e8   : > { %v6473_v19 = vadd.f32 %v1348_v27, %v1135_v16 }
 0x1e9   : > { %v6475_v46 = vpop.f32.mrf.mxu0 }
 0x1ea   : > { %8355 = vst [vmem:[#allocation21_spill] sm:$0xff] %v6473_v19  ;;  %5298 = vmatmul.msk.f32.gmra.mxu2 %vm269_vm0, %v1978_v37  ;;  %v6519_v37 = vld [vmem:[#allocation2 + $0x181] sm:$0xff] }
 0x1eb   : > { %5331 = vmatmul.msk.f32.gmra.mxu3 %vm269_vm0, %v2253_v18  ;;  %v1730_v18 = vld [vmem:[#allocation2 + $0x182] sm:$0xff] }
 0x1ec   : > { %5257 = vmatmul.msk.f32.gmra.mxu0 %vm269_vm0, %v6477_v28  ;;  %v2541_v19 = vld [vmem:[#allocation2 + $0xe2] sm:$0xff] }
 0x1ed   : > { %5290 = vmatmul.msk.f32.gmra.mxu1 %vm269_vm0, %v6385_v24  ;;  %v1076_v17 = vpop.f32.mrf.mxu2 }
 0x1ee   : > { %v1351_v6 = vpop.f32.mrf.mxu3  ;;  %v1136_v20 = vadd.f32 %v1076_v17, %v834_v9  ;;  %v8361_v17 = vld [vmem:[#allocation9_spill] sm:$0xff] }
 0x1f0   : > { %v6487_v53 = vadd.f32 %v1351_v6, %v1136_v20  ;;  %v1982_v20 = vld [vmem:[#allocation2 + $0x78] sm:$0xff] }
 0x1f1   : > { %v6489_v47 = vpop.f32.mrf.mxu0 }
 0x1f2   : > { %8356 = vst [vmem:[#allocation22_spill] sm:$0xff] %v6487_v53  ;;  %5299 = vmatmul.msk.f32.gmra.mxu2 %vm269_vm0, %v1979_v51  ;;  %v2257_v51 = vld [vmem:[#allocation2 + $0x79] sm:$0xff] }
 0x1f3   : > { %5332 = vmatmul.msk.f32.gmra.mxu3 %vm269_vm0, %v2254_v60 }
 0x1f4   : > { %5258 = vmatmul.msk.f32.gmra.mxu0 %vm269_vm0, %v6491_v15 }
 0x1f5   : > { %5291 = vmatmul.msk.f32.gmra.mxu1 %vm269_vm0, %v6404_v42  ;;  %v1079_v30 = vpop.f32.mrf.mxu2  ;;  %v840_v42 = vadd.f32 %v8359_v63, %v8358_v22  ;;  %v1983_v63 = vld [vmem:[#allocation2 + $0x80] sm:$0xff] }
 0x1f6   : > { %v1354_v24 = vpop.f32.mrf.mxu3  ;;  %v1137_v7 = vadd.f32 %v1079_v30, %v837_v54  ;;  %v6531_v30 = vld [vmem:[#allocation2 + $0x189] sm:$0xff] }
 0x1f8   : > { %v6501_v41 = vadd.f32 %v1354_v24, %v1137_v7  ;;  %v1731_v24 = vld [vmem:[#allocation2 + $0x18a] sm:$0xff] }
 0x1f9   : > { %v6503_v23 = vpop.f32.mrf.mxu0 }
 0x1fa   : > { %8357 = vst [vmem:[#allocation23_spill] sm:$0xff] %v6501_v41  ;;  %5300 = vmatmul.msk.f32.gmra.mxu2 %vm269_vm0, %v1980_v8 }
 0x1fb   : > { %5333 = vmatmul.msk.f32.gmra.mxu3 %vm269_vm0, %v2255_v11  ;;  %v8363_v11 = vld [vmem:[#allocation10_spill] sm:$0xff] }
 0x1fc   : > { %5259 = vmatmul.msk.f32.gmra.mxu0 %vm269_vm0, %v6505_v21 }
 0x1fd   : > { %5292 = vmatmul.msk.f32.gmra.mxu1 %vm269_vm0, %v6425_v50  ;;  %v1082_v48 = vpop.f32.mrf.mxu2 }
 0x1fe   : > { %v1357_v32 = vpop.f32.mrf.mxu3  ;;  %v1138_v58 = vadd.f32 %v1082_v48, %v840_v42  ;;  %v2258_v42 = vld [vmem:[#allocation2 + $0x81] sm:$0xff] }
 0x200   : > { %v6515_v27 = vadd.f32 %v1357_v32, %v1138_v58  ;;  %v2526_v58 = vld [vmem:[#allocation2 + $0x32] sm:$0xff] }
 0x201   : > { %v6517_v16 = vpop.f32.mrf.mxu0 }
 0x202   : > { %8360 = vst [vmem:[#allocation7_spill] sm:$0xff] %v6515_v27  ;;  %5301 = vmatmul.msk.f32.gmra.mxu2 %vm269_vm0, %v1981_v12  ;;  %v6543_v12 = vpop.f32.mrf.mxu1  ;;  %v2262_v27 = vld [vmem:[#allocation2 + $0xb1] sm:$0xff] }
 0x203   : > { %5334 = vmatmul.msk.f32.gmra.mxu3 %vm269_vm0, %v2256_v29 }
 0x204   : > { %5260 = vmatmul.msk.f32.gmra.mxu0 %vm269_vm0, %v6519_v37 }
 0x205   : > { %5293 = vmatmul.msk.f32.gmra.mxu1 %vm269_vm0, %v1730_v18  ;;  %v1085_v50 = vpop.f32.mrf.mxu2 }
 0x206   : > { %v1360_v9 = vpop.f32.mrf.mxu3  ;;  %v1139_v6 = vadd.f32 %v1085_v50, %v8361_v17  ;;  %v8366_v50 = vld [vmem:[#allocation11_spill] sm:$0xff]  ;;  %v1984_v17 = vld [vmem:[#allocation2 + $0x90] sm:$0xff] }
 0x208   : > { %v6527_v60 = vadd.f32 %v1360_v9, %v1139_v6  ;;  %v2259_v6 = vld [vmem:[#allocation2 + $0x91] sm:$0xff] }
 0x209   : > { %v6529_v54 = vpop.f32.mrf.mxu0 }
 0x20a   : > { %8362 = vst [vmem:[#allocation8_spill] sm:$0xff] %v6527_v60  ;;  %5302 = vmatmul.msk.f32.gmra.mxu2 %vm269_vm0, %v1982_v20  ;;  %v1987_v60 = vld [vmem:[#allocation2 + $0xb0] sm:$0xff] }
 0x20b   : > { %5335 = vmatmul.msk.f32.gmra.mxu3 %vm269_vm0, %v2257_v51 }
 0x20c   : > { %5261 = vmatmul.msk.f32.gmra.mxu0 %vm269_vm0, %v6531_v30 }
 0x20d   : > { %5294 = vmatmul.msk.f32.gmra.mxu1 %vm269_vm0, %v1731_v24  ;;  %v1088_v7 = vpop.f32.mrf.mxu2  ;;  %v2527_v24 = vld [vmem:[#allocation2 + $0x3a] sm:$0xff] }
 0x20e   : > { %v1363_v8 = vpop.f32.mrf.mxu3  ;;  %v1140_v22 = vadd.f32 %v1088_v7, %v8363_v11  ;;  %v6556_v7 = vpop.f32.mrf.mxu1 }
 0x210   : > { %v6539_v48 = vadd.f32 %v1363_v8, %v1140_v22  ;;  %v8369_v22 = vld [vmem:[#allocation12_spill] sm:$0xff] }
 0x211   : > { %v6541_v32 = vpop.f32.mrf.mxu0 }
 0x212   : > { %8364 = vst [vmem:[#allocation9_spill] sm:$0xff] %v6539_v48  ;;  %5303 = vmatmul.msk.f32.gmra.mxu2 %vm269_vm0, %v1983_v63 }
 0x213   : > { %8365 = vst [vmem:[#allocation10_spill] sm:$0xff] %v6541_v32  ;;  %5336 = vmatmul.msk.f32.gmra.mxu3 %vm269_vm0, %v2258_v42  ;;  %v1985_v42 = vld [vmem:[#allocation2 + $0x98] sm:$0xff] }
 0x214   : > { %5362 = vmatmul.msk.f32.vlgmr.msra.gmra.mxu0 %vm269_vm0, %v2526_v58  ;;  %v2260_v58 = vld [vmem:[#allocation2 + $0x99] sm:$0xff] }
 0x215   : > { %v1091_v29 = vpop.f32.mrf.mxu2 }
 0x216   : > { %v1366_v18 = vpop.f32.mrf.mxu3  ;;  %v1141_v9 = vadd.f32 %v1091_v29, %v8366_v50  ;;  %v2528_v50 = vld [vmem:[#allocation2 + $0x4a] sm:$0xff] }
 0x218   : > { %v6549_v20 = vadd.f32 %v1366_v18, %v1141_v9 }
 0x219   : > { %v6551_v51 = vpop.f32.mrf.mxu0 }
 0x21a   : > { %8367 = vst [vmem:[#allocation11_spill] sm:$0xff] %v6549_v20  ;;  %5304 = vmatmul.msk.f32.gmra.mxu2 %vm269_vm0, %v1984_v17 }
 0x21b   : > { %8368 = vst [vmem:[#allocation24_spill] sm:$0xff] %v6551_v51  ;;  %5337 = vmatmul.msk.f32.gmra.mxu3 %vm269_vm0, %v2259_v6  ;;  %v6566_v6 = vpop.f32.mrf.mxu1  ;;  %v2539_v51 = vld [vmem:[#allocation2 + $0xca] sm:$0xff] }
 0x21c   : > { %5363 = vmatmul.msk.f32.gmra.mxu0 %vm269_vm0, %v2527_v24  ;;  %v8372_v24 = vld [vmem:[#allocation13_spill] sm:$0xff] }
 0x21d   : > { %v1094_v8 = vpop.f32.mrf.mxu2 }
 0x21e   : > { %v1369_v11 = vpop.f32.mrf.mxu3  ;;  %v1142_v63 = vadd.f32 %v1094_v8, %v8369_v22  ;;  %v1986_v8 = vld [vmem:[#allocation2 + $0xa8] sm:$0xff] }
 0x21f   : > { %v2261_v22 = vld [vmem:[#allocation2 + $0xa9] sm:$0xff] }
 0x220   : > { %v6559_v29 = vadd.f32 %v1369_v11, %v1142_v63  ;;  %v2529_v63 = vld [vmem:[#allocation2 + $0x52] sm:$0xff] }
 0x221   : > { %v6561_v18 = vpop.f32.mrf.mxu0 }
 0x222   : > { %8370 = vst [vmem:[#allocation12_spill] sm:$0xff] %v6559_v29  ;;  %5305 = vmatmul.msk.f32.gmra.mxu2 %vm269_vm0, %v1985_v42 }
 0x223   : > { %8371 = vst [vmem:[#allocation25_spill] sm:$0xff] %v6561_v18  ;;  %5338 = vmatmul.msk.f32.gmra.mxu3 %vm269_vm0, %v2260_v58  ;;  %v3052_v18 = vld [vmem:[#allocation4 + $0xf8] sm:$0xff] }
 0x224   : > { %5364 = vmatmul.msk.f32.gmra.mxu0 %vm269_vm0, %v2528_v50  ;;  %v8375_v50 = vld [vmem:[#allocation14_spill] sm:$0xff]  ;;  %3053 = vmatpush.msra.mxu1 %v3052_v18 }
 0x225   : > { %v1097_v9 = vpop.f32.mrf.mxu2  ;;  %v3048_v18 = vld [vmem:[#allocation4 + $0xd8] sm:$0xff] }
 0x226   : > { %v1372_v17 = vpop.f32.mrf.mxu3  ;;  %v1143_v20 = vadd.f32 %v1097_v9, %v8372_v24  ;;  %v6577_v9 = vpop.f32.mrf.mxu1 }
 0x228   : > { %v6569_v48 = vadd.f32 %v1372_v17, %v1143_v20  ;;  %v2530_v17 = vld [vmem:[#allocation2 + $0x62] sm:$0xff] }
 0x229   : > { %v6571_v11 = vpop.f32.mrf.mxu0 }
 0x22a   : > { %8373 = vst [vmem:[#allocation13_spill] sm:$0xff] %v6569_v48  ;;  %5306 = vmatmul.msk.f32.gmra.mxu2 %vm269_vm0, %v1986_v8 }
 0x22b   : > { %8374 = vst [vmem:[#allocation26_spill] sm:$0xff] %v6571_v11  ;;  %5339 = vmatmul.msk.f32.gmra.mxu3 %vm269_vm0, %v2261_v22 }
 0x22c   : > { %5365 = vmatmul.msk.f32.gmra.mxu0 %vm269_vm0, %v2529_v63  ;;  %v8378_v63 = vld [vmem:[#allocation15_spill] sm:$0xff] }
 0x22d   : > { %v1100_v42 = vpop.f32.mrf.mxu2 }
 0x22e   : > { %v1375_v58 = vpop.f32.mrf.mxu3  ;;  %v1144_v29 = vadd.f32 %v1100_v42, %v8375_v50  ;;  %v1988_v42 = vld [vmem:[#allocation2 + $0xc0] sm:$0xff] }
 0x22f   : > { %v2263_v50 = vld [vmem:[#allocation2 + $0xc1] sm:$0xff] }
 0x230   : > { %v6579_v24 = vadd.f32 %v1375_v58, %v1144_v29  ;;  %v2531_v29 = vld [vmem:[#allocation2 + $0x6a] sm:$0xff]  ;;  %v6591_v58 = vpop.f32.mrf.mxu1 }
 0x231   : > { %v6581_v20 = vpop.f32.mrf.mxu0 }
 0x232   : > { %8376 = vst [vmem:[#allocation14_spill] sm:$0xff] %v6579_v24  ;;  %5307 = vmatmul.msk.f32.gmra.mxu2 %vm269_vm0, %v1987_v60 }
 0x233   : > { %8377 = vst [vmem:[#allocation27_spill] sm:$0xff] %v6581_v20  ;;  %5340 = vmatmul.msk.f32.gmra.mxu3 %vm269_vm0, %v2262_v27 }
 0x234   : > { %5366 = vmatmul.msk.f32.gmra.mxu0 %vm269_vm0, %v2530_v17  ;;  %v8381_v17 = vld [vmem:[#allocation16_spill] sm:$0xff] }
 0x235   : > { %v1103_v8 = vpop.f32.mrf.mxu2 }
 0x236   : > { %v1378_v22 = vpop.f32.mrf.mxu3  ;;  %v1145_v48 = vadd.f32 %v1103_v8, %v8378_v63  ;;  %v1989_v8 = vld [vmem:[#allocation2 + $0xc8] sm:$0xff] }
 0x237   : > { %v2264_v63 = vld [vmem:[#allocation2 + $0xc9] sm:$0xff] }
 0x238   : > { %v6587_v11 = vadd.f32 %v1378_v22, %v1145_v48  ;;  %v2532_v22 = vld [vmem:[#allocation2 + $0x7a] sm:$0xff] }
 0x239   : > { %v6589_v41 = vpop.f32.mrf.mxu0 }
 0x23a   : > { %8379 = vst [vmem:[#allocation15_spill] sm:$0xff] %v6587_v11  ;;  %5308 = vmatmul.msk.f32.gmra.mxu2 %vm269_vm0, %v1988_v42  ;;  %v6604_v42 = vpop.f32.mrf.mxu1  ;;  %v8384_v11 = vld [vmem:[#allocation17_spill] sm:$0xff] }
 0x23b   : > { %8380 = vst [vmem:[#allocation28_spill] sm:$0xff] %v6589_v41  ;;  %5341 = vmatmul.msk.f32.gmra.mxu3 %vm269_vm0, %v2263_v50 }
 0x23c   : > { %5367 = vmatmul.msk.f32.gmra.mxu0 %vm269_vm0, %v2531_v29 }
 0x23d   : > { %v1106_v27 = vpop.f32.mrf.mxu2 }
 0x23e   : > { %v1381_v60 = vpop.f32.mrf.mxu3  ;;  %v1146_v24 = vadd.f32 %v1106_v27, %v8381_v17  ;;  %v1990_v27 = vld [vmem:[#allocation2 + $0xd8] sm:$0xff] }
 0x23f   : > { %v2265_v17 = vld [vmem:[#allocation2 + $0xd9] sm:$0xff] }
 0x240   : > { %v6597_v20 = vadd.f32 %v1381_v60, %v1146_v24 }
 0x241   : > { %v6599_v48 = vpop.f32.mrf.mxu0 }
 0x242   : > { %8382 = vst [vmem:[#allocation16_spill] sm:$0xff] %v6597_v20  ;;  %5309 = vmatmul.msk.f32.gmra.mxu2 %vm269_vm0, %v1989_v8  ;;  %v2533_v20 = vld [vmem:[#allocation2 + $0x82] sm:$0xff]  ;;  %v3051_v8 = vld [vmem:[#allocation4 + $0xf0] sm:$0xff] }
 0x243   : > { %8383 = vst [vmem:[#allocation29_spill] sm:$0xff] %v6599_v48  ;;  %5342 = vmatmul.msk.f32.gmra.mxu3 %vm269_vm0, %v2264_v63  ;;  %3054 = vmatpush.msra.mxu1 %v3051_v8  ;;  %v3050_v63 = vld [vmem:[#allocation4 + $0xe8] sm:$0xff]  ;;  %v6614_v48 = vpop.f32.mrf.mxu1 }
 0x244   : > { %5368 = vmatmul.msk.f32.gmra.mxu0 %vm269_vm0, %v2532_v22  ;;  %v3046_v8 = vld [vmem:[#allocation4 + $0xc8] sm:$0xff] }
 0x245   : > { %v1109_v50 = vpop.f32.mrf.mxu2  ;;  %3055 = vmatpush.msra.mxu1 %v3050_v63 }
 0x246   : > { %v1384_v29 = vpop.f32.mrf.mxu3  ;;  %v1147_v41 = vadd.f32 %v1109_v50, %v8384_v11  ;;  %v3049_v50 = vld [vmem:[#allocation4 + $0xe0] sm:$0xff] }
 0x247   : > { %3056 = vmatpush.msra.mxu1 %v3049_v50  ;;  %v3045_v50 = vld [vmem:[#allocation4 + $0xc0] sm:$0xff] }
 0x248   : > { %v6607_v24 = vadd.f32 %v1384_v29, %v1147_v41  ;;  %v8387_v41 = vld [vmem:[#allocation18_spill] sm:$0xff] }
 0x249   : > { %v6609_v60 = vpop.f32.mrf.mxu0  ;;  %3057 = vmatpush.msra.mxu1 %v3048_v18 }
 0x24a   : > { %8385 = vst [vmem:[#allocation17_spill] sm:$0xff] %v6607_v24  ;;  %5310 = vmatmul.msk.f32.gmra.mxu2 %vm269_vm0, %v1990_v27  ;;  %v1991_v24 = vld [vmem:[#allocation2 + $0xe0] sm:$0xff] }
 0x24b   : > { %8386 = vst [vmem:[#allocation30_spill] sm:$0xff] %v6609_v60  ;;  %5343 = vmatmul.msk.f32.gmra.mxu3 %vm269_vm0, %v2265_v17  ;;  %v2266_v60 = vld [vmem:[#allocation2 + $0xe1] sm:$0xff]  ;;  %v2534_v17 = vld [vmem:[#allocation2 + $0x92] sm:$0xff] }
 0x24c   : > { %5369 = vmatmul.msk.f32.gmra.mxu0 %vm269_vm0, %v2533_v20  ;;  %v3047_v20 = vld [vmem:[#allocation4 + $0xd0] sm:$0xff] }
 0x24d   : > { %v1112_v22 = vpop.f32.mrf.mxu2  ;;  %3058 = vmatpush.msra.mxu1 %v3047_v20  ;;  %v3042_v20 = vld [vmem:[#allocation4 + $0xa8] sm:$0xff] }
 0x24e   : > { %v1387_v11 = vpop.f32.mrf.mxu3  ;;  %v1148_v29 = vadd.f32 %v1112_v22, %v8387_v41  ;;  %v8390_v41 = vld [vmem:[#allocation19_spill] sm:$0xff] }
 0x24f   : > { %3059 = vmatpush.msra.mxu1 %v3046_v8 }
 0x250   : > { %v6617_v53 = vadd.f32 %v1387_v11, %v1148_v29  ;;  %v1992_v29 = vld [vmem:[#allocation2 + $0xf0] sm:$0xff] }
 0x251   : > { %v6619_v27 = vpop.f32.mrf.mxu0  ;;  %3060 = vmatpush.msra.mxu1 %v3045_v50  ;;  %v1993_v50 = vld [vmem:[#allocation2 + $0xf8] sm:$0xff] }
 0x252   : > { %8388 = vst [vmem:[#allocation18_spill] sm:$0xff] %v6617_v53  ;;  %5311 = vmatmul.msk.f32.gmra.mxu2 %vm269_vm0, %v1991_v24  ;;  %v3044_v53 = vld [vmem:[#allocation4 + $0xb8] sm:$0xff] }
 0x253   : > { %8389 = vst [vmem:[#allocation31_spill] sm:$0xff] %v6619_v27  ;;  %5344 = vmatmul.msk.f32.gmra.mxu3 %vm269_vm0, %v2266_v60  ;;  %v6625_v27 = vpop.f32.mrf.mxu1  ;;  %v2535_v60 = vld [vmem:[#allocation2 + $0x9a] sm:$0xff]  ;;  %3061 = vmatpush.msra.mxu1 %v3044_v53 }
 0x254   : > { %5370 = vmatmul.msk.f32.gmra.mxu0 %vm269_vm0, %v2534_v17  ;;  %v3043_v17 = vld [vmem:[#allocation4 + $0xb0] sm:$0xff] }
 0x255   : > { %v1115_v63 = vpop.f32.mrf.mxu2  ;;  %3062 = vmatpush.msra.mxu1 %v3043_v17 }
 0x256   : > { %v1390_v22 = vpop.f32.mrf.mxu3  ;;  %v1149_v11 = vadd.f32 %v1115_v63, %v8390_v41  ;;  %v3040_v41 = vld [vmem:[#allocation4 + $0x98] sm:$0xff] }
 0x257   : > { %3063 = vmatpush.msra.mxu1 %v3042_v20  ;;  %v3037_v20 = vld [vmem:[#allocation4 + $0x80] sm:$0xff] }
 0x258   : > { %v6627_v18 = vadd.f32 %v1390_v22, %v1149_v11  ;;  %v3041_v22 = vld [vmem:[#allocation4 + $0xa0] sm:$0xff]  ;;  %v2536_v11 = vld [vmem:[#allocation2 + $0xaa] sm:$0xff] }
 0x259   : > { %v6629_v24 = vpop.f32.mrf.mxu0  ;;  %3064 = vmatpush.msra.mxu1 %v3041_v22  ;;  %v3004_v22 = vld [vmem:[#allocation3 + $0x1] sm:$0xff] }
 0x25a   : > { %8391 = vst [vmem:[#allocation19_spill] sm:$0xff] %v6627_v18  ;;  %5312 = vmatmul.msk.f32.gmra.mxu2 %vm269_vm0, %v1992_v29  ;;  %v3039_v29 = vld [vmem:[#allocation4 + $0x90] sm:$0xff] }
 0x25b   : > { %8392 = vst [vmem:[#allocation32_spill] sm:$0xff] %v6629_v24  ;;  %5345 = vmatmul.msk.f32.gmra.mxu3 %vm269_vm0, %v6303_v44  ;;  %3065 = vmatpush.msra.mxu1 %v3040_v41  ;;  %v6641_v18 = vpop.f32.mrf.mxu1  ;;  %v3038_v44 = vld [vmem:[#allocation4 + $0x88] sm:$0xff]  ;;  %v2537_v24 = vld [vmem:[#allocation2 + $0xb2] sm:$0xff] }
 0x25c   : > { %5371 = vmatmul.msk.f32.gmra.mxu0 %vm269_vm0, %v2535_v60  ;;  %8394 = vst [vmem:[#allocation34_spill] sm:$0xff] %v6641_v18 }
 0x25d   : > { %v6635_v8 = vpop.f32.mrf.mxu2  ;;  %3066 = vmatpush.msra.mxu1 %v3039_v29  ;;  %v3005_v29 = vld [vmem:[#allocation3 + $0x9] sm:$0xff] }
 0x25e   : > { %v6637_v63 = vpop.f32.mrf.mxu3 }
 0x25f   : > { %3067 = vmatpush.msra.mxu1 %v3038_v44  ;;  %v1995_v44 = vld [vmem:[#allocation2 + $0x110] sm:$0xff] }
 0x261   : > { %v6639_v53 = vpop.f32.mrf.mxu0  ;;  %3068 = vmatpush.msra.mxu1 %v3037_v20 }
 0x262   : > { %8393 = vst [vmem:[#allocation33_spill] sm:$0xff] %v6639_v53  ;;  %5313 = vmatmul.msk.f32.gmra.mxu2 %vm269_vm0, %v1993_v50  ;;  %v1994_v53 = vld [vmem:[#allocation2 + $0x108] sm:$0xff]  ;;  %3069 = vmatmul.f32.vlgmr.msra.gmra.mxu1 %v3004_v22  ;;  %v1996_v22 = vld [vmem:[#allocation2 + $0x120] sm:$0xff] }
 0x263   : > { %5346 = vmatmul.msk.f32.gmra.mxu3 %vm269_vm0, %v6324_v61  ;;  %v6655_v61 = vpop.f32.mrf.mxu1 }
 0x264   : > { %5372 = vmatmul.msk.f32.gmra.mxu0 %vm269_vm0, %v2536_v11  ;;  %8396 = vst [vmem:[#allocation36_spill] sm:$0xff] %v6655_v61 }
 0x265   : > { %v2126_v60 = vpop.f32.mrf.mxu2 }
 0x266   : > { %v6647_v17 = vpop.f32.mrf.mxu3 }
 0x269   : > { %v6649_v41 = vpop.f32.mrf.mxu0 }
 0x26a   : > { %8395 = vst [vmem:[#allocation35_spill] sm:$0xff] %v6649_v41  ;;  %5314 = vmatmul.msk.f32.gmra.mxu2 %vm269_vm0, %v1994_v53  ;;  %v2538_v41 = vld [vmem:[#allocation2 + $0xc2] sm:$0xff]  ;;  %3072 = vmatmul.f32.gmra.mxu1 %v3005_v29 }
 0x26b   : > { %5347 = vmatmul.msk.f32.gmra.mxu3 %vm269_vm0, %v6345_v36  ;;  %v6671_v53 = vpop.f32.mrf.mxu1  ;;  %v1997_v29 = vld [vmem:[#allocation2 + $0x128] sm:$0xff] }
 0x26c   : > { %5373 = vmatmul.msk.f32.gmra.mxu0 %vm269_vm0, %v2537_v24  ;;  %8398 = vst [vmem:[#allocation38_spill] sm:$0xff] %v6671_v53  ;;  %v2540_v53 = vld [vmem:[#allocation2 + $0xda] sm:$0xff] }
 0x26d   : > { %v6657_v50 = vpop.f32.mrf.mxu2 }
 0x26e   : > { %v6659_v11 = vpop.f32.mrf.mxu3 }
 0x271   : > { %v6661_v20 = vpop.f32.mrf.mxu0 }
 0x272   : > { %8397 = vst [vmem:[#allocation37_spill] sm:$0xff] %v6661_v20  ;;  %5315 = vmatmul.msk.f32.gmra.mxu2 %vm269_vm0, %v1995_v44 }
 0x273   : > { %5348 = vmatmul.msk.f32.gmra.mxu3 %vm269_vm0, %v6364_v49  ;;  %v6683_v44 = vpop.f32.mrf.mxu1 }
 0x274   : > { %5374 = vmatmul.msk.f32.gmra.mxu0 %vm269_vm0, %v2538_v41  ;;  %8400 = vst [vmem:[#allocation40_spill] sm:$0xff] %v6683_v44  ;;  %v2542_v44 = vld [vmem:[#allocation2 + $0xf2] sm:$0xff] }
 0x275   : > { %v6667_v36 = vpop.f32.mrf.mxu2 }
 0x276   : > { %v6669_v24 = vpop.f32.mrf.mxu3 }
 0x279   : > { %v6673_v61 = vpop.f32.mrf.mxu0 }
 0x27a   : > { %8399 = vst [vmem:[#allocation39_spill] sm:$0xff] %v6673_v61  ;;  %5316 = vmatmul.msk.f32.gmra.mxu2 %vm269_vm0, %v1996_v22  ;;  %v1998_v22 = vld [vmem:[#allocation2 + $0x138] sm:$0xff] }
 0x27b   : > { %5349 = vmatmul.msk.f32.gmra.mxu3 %vm269_vm0, %v6389_v59  ;;  %v6697_v18 = vpop.f32.mrf.mxu1 }
 0x27c   : > { %5375 = vmatmul.msk.f32.gmra.mxu0 %vm269_vm0, %v2539_v51  ;;  %8403 = vst [vmem:[#allocation43_spill] sm:$0xff] %v6697_v18 }
 0x27d   : > { %v6679_v49 = vpop.f32.mrf.mxu2 }
 0x27e   : > { %v6681_v41 = vpop.f32.mrf.mxu3 }
 0x281   : > { %v6685_v20 = vpop.f32.mrf.mxu0 }
 0x282   : > { %8401 = vst [vmem:[#allocation41_spill] sm:$0xff] %v6685_v20  ;;  %5317 = vmatmul.msk.f32.gmra.mxu2 %vm269_vm0, %v1997_v29 }
 0x283   : > { %5350 = vmatmul.msk.f32.gmra.mxu3 %vm269_vm0, %v6410_v2  ;;  %v2219_v2 = vadd.f32 %v6635_v8, %v6274_v56  ;;  %v2220_v56 = vadd.f32 %v2126_v60, %v6291_v4  ;;  %v6721_v8 = vpop.f32.mrf.mxu1  ;;  %v3003_v4 = vld [vmem:[#allocation4 + $0x78] sm:$0xff] }
 0x284   : > { %5376 = vmatmul.msk.f32.gmra.mxu0 %vm269_vm0, %v2540_v53  ;;  %v3327_v60 = vld [vmem:[#allocation4 + $0x178] sm:$0xff]  ;;  %3166 = vmatpush.msrb.mxu2 %v3003_v4  ;;  %v3000_v4 = vld [vmem:[#allocation4 + $0x60] sm:$0xff] }
 0x285   : > { %v6691_v59 = vpop.f32.mrf.mxu2  ;;  %v2494_v20 = vadd.f32 %v6637_v63, %v2219_v2  ;;  %3328 = vmatpush.msrb.mxu3 %v3327_v60  ;;  %v3324_v60 = vld [vmem:[#allocation4 + $0x160] sm:$0xff] }
 0x286   : > { %v6693_v51 = vpop.f32.mrf.mxu3 }
 0x289   : > { %v6695_v61 = vpop.f32.mrf.mxu0 }
 0x28a   : > { %8402 = vst [vmem:[#allocation42_spill] sm:$0xff] %v6695_v61  ;;  %5318 = vmatmul.msk.f32.gmra.mxu2 %vm269_vm0, %v1998_v22  ;;  %v6713_v61 = vld [vmem:[%s8323_s2] ss:$0 sm:$0xff] }
 0x28b   : > { %5351 = vmatmul.msk.f32.gmra.mxu3 %vm269_vm0, %v6431_v52  ;;  %v1999_v22 = vld [vmem:[#allocation2 + $0x140] sm:$0xff] }
 0x28c   : > { %5377 = vmatmul.msk.f32.gmra.mxu0 %vm269_vm0, %v2541_v19 }
 0x28d   : > { %v6705_v53 = vpop.f32.mrf.mxu2 }
 0x28e   : > { %v6707_v29 = vpop.f32.mrf.mxu3 }
 0x291   : > { %v2673_v18 = vpop.f32.mrf.mxu0 }
 0x292   : > { %v2769_v52 = vadd.f32 %v2673_v18, %v2494_v20  ;;  %5319 = vmatmul.msk.f32.gmra.mxu2 %vm269_vm0, %v1999_v22  ;;  %v2495_v18 = vadd.f32 %v6647_v17, %v2220_v56  ;;  %v2000_v20 = vld [vmem:[#allocation2 + $0x150] sm:$0xff] }
 0x293   : > { %5352 = vmatmul.msk.f32.gmra.mxu3 %vm269_vm0, %v6446_v39  ;;  %v2543_v39 = vld [vmem:[#allocation2 + $0xfa] sm:$0xff]  ;;  %v3002_v17 = vld [vmem:[#allocation4 + $0x70] sm:$0xff] }
 0x294   : > { %v2805_v19 = vadd.f32 %v6713_v61, %v2769_v52  ;;  %5378 = vmatmul.msk.f32.gmra.mxu0 %vm269_vm0, %v2542_v44  ;;  %v2221_v44 = vadd.f32 %v6657_v50, %v6312_v43  ;;  %v3326_v56 = vld [vmem:[#allocation4 + $0x170] sm:$0xff]  ;;  %3167 = vmatpush.msrb.mxu2 %v3002_v17  ;;  %v2999_v17 = vld [vmem:[#allocation4 + $0x58] sm:$0xff] }
 0x295   : > { %v6723_v2 = vpop.f32.mrf.mxu2  ;;  %3329 = vmatpush.msrb.mxu3 %v3326_v56  ;;  %v3323_v56 = vld [vmem:[#allocation4 + $0x158] sm:$0xff] }
 0x296   : > { %v2837_v63 = vmax.f32 %v2805_v19, 0.0  ;;  %v6725_v32 = vpop.f32.mrf.mxu3  ;;  %v2496_v43 = vadd.f32 %v6659_v11, %v2221_v44  ;;  %v2222_v11 = vadd.f32 %v6667_v36, %v6333_v55  ;;  %v2002_v55 = vld [vmem:[#allocation2 + $0x168] sm:$0xff] }
 0x298   : > { %2924 = vst [vmem:[#allocation3 + $0x19] sm:$0xff] %v2837_v63  ;;  %3075 = vmatmul.f32.gmra.mxu1 %v2837_v63 }
 0x299   : > { %v2676_v22 = vpop.f32.mrf.mxu0 }
 0x29a   : > { %v2770_v13 = vadd.f32 %v2676_v22, %v2495_v18  ;;  %5320 = vmatmul.msk.f32.gmra.mxu2 %vm269_vm0, %v2000_v20  ;;  %v3001_v20 = vld [vmem:[#allocation4 + $0x68] sm:$0xff] }
 0x29b   : > { %5353 = vmatmul.msk.f32.gmra.mxu3 %vm269_vm0, %v6463_v3  ;;  %v6739_v3 = vpop.f32.mrf.mxu1  ;;  %v3325_v22 = vld [vmem:[#allocation4 + $0x168] sm:$0xff]  ;;  %3168 = vmatpush.msrb.mxu2 %v3001_v20  ;;  %v3322_v20 = vld [vmem:[#allocation4 + $0x150] sm:$0xff] }
 0x29c   : > { %v2806_v52 = vadd.f32 %v6713_v61, %v2770_v13  ;;  %5379 = vmatmul.msk.f32.gmra.mxu0 %vm269_vm0, %v2543_v39  ;;  %v2001_v13 = vld [vmem:[#allocation2 + $0x158] sm:$0xff]  ;;  %v2544_v39 = vld [vmem:[#allocation2 + $0x10a] sm:$0xff]  ;;  %3330 = vmatpush.msrb.mxu3 %v3325_v22 }
 0x29d   : > { %v6735_v63 = vpop.f32.mrf.mxu2  ;;  %3169 = vmatpush.msrb.mxu2 %v3000_v4  ;;  %v2497_v4 = vadd.f32 %v6669_v24, %v2222_v11  ;;  %v2223_v24 = vadd.f32 %v6679_v49, %v6352_v62  ;;  %v2003_v62 = vld [vmem:[#allocation2 + $0x170] sm:$0xff] }
 0x29e   : > { %v2838_v19 = vmax.f32 %v2806_v52, 0.0  ;;  %v6737_v18 = vpop.f32.mrf.mxu3  ;;  %3331 = vmatpush.msrb.mxu3 %v3324_v60  ;;  %v2545_v60 = vld [vmem:[#allocation2 + $0x112] sm:$0xff] }
 0x29f   : > { %3170 = vmatpush.msrb.mxu2 %v2999_v17 }
 0x2a0   : > { %2925 = vst [vmem:[#allocation3 + $0x21] sm:$0xff] %v2838_v19  ;;  %3078 = vmatmul.f32.gmra.mxu1 %v2838_v19  ;;  %v2998_v19 = vld [vmem:[#allocation4 + $0x50] sm:$0xff]  ;;  %3332 = vmatpush.msrb.mxu3 %v3323_v56  ;;  %v2995_v56 = vld [vmem:[#allocation4 + $0x38] sm:$0xff] }
 0x2a1   : > { %v2679_v50 = vpop.f32.mrf.mxu0  ;;  %3171 = vmatpush.msrb.mxu2 %v2998_v19  ;;  %v3319_v19 = vld [vmem:[#allocation4 + $0x138] sm:$0xff] }
 0x2a2   : > { %v2771_v52 = vadd.f32 %v2679_v50, %v2496_v43  ;;  %5321 = vmatmul.msk.f32.gmra.mxu2 %vm269_vm0, %v2001_v13  ;;  %v3321_v50 = vld [vmem:[#allocation4 + $0x148] sm:$0xff]  ;;  %3333 = vmatpush.msrb.mxu3 %v3322_v20  ;;  %v2994_v20 = vld [vmem:[#allocation4 + $0x30] sm:$0xff] }
 0x2a3   : > { %5354 = vmatmul.msk.f32.gmra.mxu3 %vm269_vm0, %v6477_v28  ;;  %v2997_v28 = vld [vmem:[#allocation4 + $0x48] sm:$0xff]  ;;  %v6754_v36 = vpop.f32.mrf.mxu1 }
 0x2a4   : > { %v2807_v44 = vadd.f32 %v6713_v61, %v2771_v52  ;;  %5380 = vmatmul.msk.f32.gmra.mxu0 %vm269_vm0, %v2544_v39  ;;  %3172 = vmatpush.msrb.mxu2 %v2997_v28  ;;  %v2996_v52 = vld [vmem:[#allocation4 + $0x40] sm:$0xff] }
 0x2a5   : > { %v6749_v43 = vpop.f32.mrf.mxu2  ;;  %3334 = vmatpush.msrb.mxu3 %v3321_v50 }
 0x2a6   : > { %v2839_v22 = vmax.f32 %v2807_v44, 0.0  ;;  %v6751_v13 = vpop.f32.mrf.mxu3  ;;  %v3320_v44 = vld [vmem:[#allocation4 + $0x140] sm:$0xff]  ;;  %3173 = vmatpush.msrb.mxu2 %v2996_v52 }
 0x2a7   : > { %3335 = vmatpush.msrb.mxu3 %v3320_v44 }
 0x2a8   : > { %2926 = vst [vmem:[#allocation3 + $0x31] sm:$0xff] %v2839_v22  ;;  %3081 = vmatmul.f32.gmra.mxu1 %v2839_v22  ;;  %3174 = vmatpush.msrb.mxu2 %v2995_v56  ;;  %v3316_v56 = vld [vmem:[#allocation4 + $0x120] sm:$0xff] }
 0x2a9   : > { %v2682_v39 = vpop.f32.mrf.mxu0  ;;  %3336 = vmatpush.msrb.mxu3 %v3319_v19  ;;  %v3315_v19 = vld [vmem:[#allocation4 + $0x118] sm:$0xff] }
 0x2aa   : > { %v2772_v17 = vadd.f32 %v2682_v39, %v2497_v4  ;;  %5322 = vmatmul.msk.f32.gmra.mxu2 %vm269_vm0, %v2002_v55  ;;  %v3318_v4 = vld [vmem:[#allocation4 + $0x130] sm:$0xff]  ;;  %v2498_v55 = vadd.f32 %v6681_v41, %v2223_v24  ;;  %v2546_v39 = vld [vmem:[#allocation2 + $0x122] sm:$0xff]  ;;  %v2224_v41 = vadd.f32 %v6691_v59, %v6377_v25 }
 0x2ab   : > { %5355 = vmatmul.msk.f32.gmra.mxu3 %vm269_vm0, %v6491_v15  ;;  %v2993_v15 = vld [vmem:[#allocation4 + $0x28] sm:$0xff]  ;;  %3175 = vmatpush.msrb.mxu2 %v2994_v20  ;;  %v6768_v44 = vpop.f32.mrf.mxu1 }
 0x2ac   : > { %v2808_v11 = vadd.f32 %v6713_v61, %v2772_v17  ;;  %5381 = vmatmul.msk.f32.gmra.mxu0 %vm269_vm0, %v2545_v60  ;;  %3337 = vmatpush.msrb.mxu3 %v3318_v4  ;;  %v3317_v60 = vld [vmem:[#allocation4 + $0x128] sm:$0xff]  ;;  %v2992_v17 = vld [vmem:[#allocation4 + $0x20] sm:$0xff] }
 0x2ad   : > { %v6763_v28 = vpop.f32.mrf.mxu2  ;;  %3176 = vmatpush.msrb.mxu2 %v2993_v15  ;;  %v2990_v15 = vld [vmem:[#allocation4 + $0x10] sm:$0xff] }
 0x2ae   : > { %v2840_v22 = vmax.f32 %v2808_v11, 0.0  ;;  %v6765_v50 = vpop.f32.mrf.mxu3  ;;  %3338 = vmatpush.msrb.mxu3 %v3317_v60  ;;  %v2991_v11 = vld [vmem:[#allocation4 + $0x18] sm:$0xff]  ;;  %v2547_v59 = vld [vmem:[#allocation2 + $0x12a] sm:$0xff]  ;;  %v2988_v60 = vld [vmem:[#allocation4] sm:$0xff] }
 0x2af   : > { %3177 = vmatpush.msrb.mxu2 %v2992_v17  ;;  %v3312_v17 = vld [vmem:[#allocation4 + $0x100] sm:$0xff] }
 0x2b0   : > { %2927 = vst [vmem:[#allocation3 + $0x39] sm:$0xff] %v2840_v22  ;;  %3084 = vmatmul.f32.gmra.mxu1 %v2840_v22  ;;  %3339 = vmatpush.msrb.mxu3 %v3316_v56 }
 0x2b1   : > { %v2685_v49 = vpop.f32.mrf.mxu0  ;;  %3178 = vmatpush.msrb.mxu2 %v2991_v11  ;;  %v2548_v11 = vld [vmem:[#allocation2 + $0x13a] sm:$0xff] }
 0x2b2   : > { %v2773_v52 = vadd.f32 %v2685_v49, %v2498_v55  ;;  %5323 = vmatmul.msk.f32.gmra.mxu2 %vm269_vm0, %v2003_v62  ;;  %v2499_v55 = vadd.f32 %v6693_v51, %v2224_v41  ;;  %3340 = vmatpush.msrb.mxu3 %v3315_v19  ;;  %v2989_v62 = vld [vmem:[#allocation4 + $0x8] sm:$0xff]  ;;  %v2225_v51 = vadd.f32 %v6705_v53, %v6396_v35 }
 0x2b3   : > { %5356 = vmatmul.msk.f32.gmra.mxu3 %vm269_vm0, %v6505_v21  ;;  %v3314_v21 = vld [vmem:[#allocation4 + $0x110] sm:$0xff]  ;;  %3179 = vmatpush.msrb.mxu2 %v2990_v15  ;;  %v6790_v56 = vpop.f32.mrf.mxu1  ;;  %v2005_v35 = vld [vmem:[#allocation2 + $0x188] sm:$0xff] }
 0x2b4   : > { %v2809_v24 = vadd.f32 %v6713_v61, %v2773_v52  ;;  %5382 = vmatmul.msk.f32.gmra.mxu0 %vm269_vm0, %v2546_v39  ;;  %3341 = vmatpush.msrb.mxu3 %v3314_v21  ;;  %v3313_v39 = vld [vmem:[#allocation4 + $0x108] sm:$0xff] }
 0x2b5   : > { %v6777_v22 = vpop.f32.mrf.mxu2  ;;  %3180 = vmatpush.msrb.mxu2 %v2989_v62 }
 0x2b6   : > { %v2841_v20 = vmax.f32 %v2809_v24, 0.0  ;;  %v6779_v4 = vpop.f32.mrf.mxu3  ;;  %3342 = vmatpush.msrb.mxu3 %v3313_v39 }
 0x2b7   : > { %3181 = vmatpush.msrb.mxu2 %v2988_v60 }
 0x2b8   : > { %2928 = vst [vmem:[#allocation3 + $0x49] sm:$0xff] %v2841_v20  ;;  %3087 = vmatmul.f32.gmra.mxu1 %v2841_v20  ;;  %3343 = vmatpush.msrb.mxu3 %v3312_v17  ;;  %v2226_v20 = vadd.f32 %v6723_v2, %v6417_v38  ;;  %v2549_v2 = vld [vmem:[#allocation2 + $0x142] sm:$0xff] }
 0x2b9   : > { %v2688_v25 = vpop.f32.mrf.mxu0 }
 0x2ba   : > { %v2774_v49 = vadd.f32 %v2688_v25, %v2499_v55  ;;  %5324 = vmatmul.msk.f32.gmra.mxu2 %vm269_vm0, %v6406_v14  ;;  %v2501_v62 = vadd.f32 %v6725_v32, %v2226_v20  ;;  %v1677_v32 = vadd.f32 %v6444_v1, %v6322_v31  ;;  %v1678_v20 = vadd.f32 %v6461_v40, %v6343_v45  ;;  %v5433_v40 = vld [vmem:[#allocation3] sm:$0xff] }
 0x2bb   : > { %5357 = vmatmul.msk.f32.gmra.mxu3 %vm269_vm0, %v6519_v37  ;;  %v2500_v37 = vadd.f32 %v6707_v29, %v2225_v51  ;;  %v1676_v29 = vadd.f32 %v6429_v26, %v6301_v10 }
 0x2bc   : > { %v2810_v52 = vadd.f32 %v6713_v61, %v2774_v49  ;;  %5383 = vmatmul.msk.f32.gmra.mxu0 %vm269_vm0, %v2547_v59  ;;  %v6810_v59 = vpop.f32.mrf.mxu1  ;;  %v2281_v49 = vld [vmem:[#allocation2 + $0x199] sm:$0xff] }
 0x2bd   : > { %v6792_v24 = vpop.f32.mrf.mxu2  ;;  %v1951_v39 = vadd.f32 %v6543_v12, %v1676_v29 }
 0x2be   : > { %v2842_v41 = vmax.f32 %v2810_v52, 0.0  ;;  %v6794_v14 = vpop.f32.mrf.mxu3 }
 0x2bf   : > { %v2227_v10 = vadd.f32 %v6735_v63, %v1951_v39 }
 0x2c0   : > { %2929 = vst [vmem:[#allocation3 + $0x51] sm:$0xff] %v2842_v41  ;;  %3090 = vmatmul.f32.gmra.mxu1 %v2842_v41  ;;  %v2007_v41 = vld [vmem:[#allocation2 + $0x1a0] sm:$0xff] }
 0x2c1   : > { %v2691_v53 = vpop.f32.mrf.mxu0  ;;  %v2502_v12 = vadd.f32 %v6737_v18, %v2227_v10  ;;  %v3521_v18 = vld [vmem:[#allocation4 + $0x1f8] sm:$0xff] }
 0x2c2   : > { %v2775_v19 = vadd.f32 %v2691_v53, %v2500_v37  ;;  %5325 = vmatmul.msk.f32.gmra.mxu2 %vm269_vm0, %v2005_v35  ;;  %v2282_v37 = vld [vmem:[#allocation2 + $0x1a1] sm:$0xff]  ;;  %v2550_v53 = vld [vmem:[#allocation2 + $0x152] sm:$0xff]  ;;  %3522 = vmatpush.msrb.mxu0 %v3521_v18  ;;  %v1680_v18 = vadd.f32 %v6489_v47, %v6387_v57  ;;  %v3281_v57 = vld [vmem:[#allocation3 + $0x1a] sm:$0xff] }
 0x2c3   : > { %5358 = vmatmul.msk.f32.gmra.mxu3 %vm269_vm0, %v6531_v30  ;;  %v2006_v30 = vld [vmem:[#allocation2 + $0x198] sm:$0xff]  ;;  %v3512_v47 = vld [vmem:[#allocation4 + $0x1b0] sm:$0xff] }
 0x2c4   : > { %v2811_v15 = vadd.f32 %v6713_v61, %v2775_v19  ;;  %5384 = vmatmul.msk.f32.gmra.mxu0 %vm269_vm0, %v2548_v11  ;;  %v6826_v35 = vpop.f32.mrf.mxu1  ;;  %v1952_v11 = vadd.f32 %v6556_v7, %v1677_v32  ;;  %v3520_v7 = vld [vmem:[#allocation4 + $0x1f0] sm:$0xff]  ;;  %v1679_v32 = vadd.f32 %v6475_v46, %v6362_v33 }
 0x2c5   : > { %v6806_v55 = vpop.f32.mrf.mxu2  ;;  %3523 = vmatpush.msrb.mxu0 %v3520_v7  ;;  %v3513_v7 = vld [vmem:[#allocation4 + $0x1b8] sm:$0xff] }
 0x2c6   : > { %v2843_v21 = vmax.f32 %v2811_v15, 0.0  ;;  %v6808_v25 = vpop.f32.mrf.mxu3  ;;  %v2228_v31 = vadd.f32 %v6749_v43, %v1952_v11  ;;  %v1954_v11 = vadd.f32 %v6577_v9, %v1679_v32 }
 0x2c8   : > { %2930 = vst [vmem:[#allocation3 + $0x61] sm:$0xff] %v2843_v21  ;;  %3093 = vmatmul.f32.gmra.mxu1 %v2843_v21  ;;  %v2230_v33 = vadd.f32 %v6777_v22, %v1954_v11  ;;  %v1682_v11 = vadd.f32 %v6517_v16, %v6427_v5  ;;  %v6900_v5 = vld [vmem:[#allocation3 + $0x30] sm:$0xff] }
 0x2c9   : > { %v2694_v38 = vpop.f32.mrf.mxu0  ;;  %v3283_v16 = vld [vmem:[#allocation3 + $0x32] sm:$0xff] }
 0x2ca   : > { %v2776_v60 = vadd.f32 %v2694_v38, %v2501_v62  ;;  %5326 = vmatmul.msk.f32.gmra.mxu2 %vm269_vm0, %v2006_v30  ;;  %v2503_v62 = vadd.f32 %v6751_v13, %v2228_v31  ;;  %v3279_v30 = vld [vmem:[#allocation3 + $0x2] sm:$0xff]  ;;  %v3519_v38 = vld [vmem:[#allocation4 + $0x1e8] sm:$0xff]  ;;  %v2505_v22 = vadd.f32 %v6779_v4, %v2230_v33 }
 0x2cb   : > { %5359 = vmatmul.msk.f32.gmra.mxu3 %vm269_vm0, %v2281_v49  ;;  %v2551_v49 = vld [vmem:[#allocation2 + $0x15a] sm:$0xff]  ;;  %3524 = vmatpush.msrb.mxu0 %v3519_v38  ;;  %v3515_v31 = vld [vmem:[#allocation4 + $0x1c8] sm:$0xff] }
 0x2cc   : > { %v2812_v26 = vadd.f32 %v6713_v61, %v2776_v60  ;;  %5385 = vmatmul.msk.f32.gmra.mxu0 %vm269_vm0, %v2549_v2  ;;  %v1953_v2 = vadd.f32 %v6566_v6, %v1678_v20  ;;  %v6842_v45 = vpop.f32.mrf.mxu1  ;;  %v3518_v60 = vld [vmem:[#allocation4 + $0x1e0] sm:$0xff]  ;;  %v6868_v38 = vld [vmem:[#allocation3 + $0x18] sm:$0xff] }
 0x2cd   : > { %v6821_v52 = vpop.f32.mrf.mxu2  ;;  %3525 = vmatpush.msrb.mxu0 %v3518_v60  ;;  %v3511_v4 = vld [vmem:[#allocation4 + $0x1a8] sm:$0xff] }
 0x2ce   : > { %v2844_v51 = vmax.f32 %v2812_v26, 0.0  ;;  %v6823_v17 = vpop.f32.mrf.mxu3  ;;  %v2229_v10 = vadd.f32 %v6763_v28, %v1953_v2  ;;  %v3517_v26 = vld [vmem:[#allocation4 + $0x1d8] sm:$0xff]  ;;  %v3507_v33 = vld [vmem:[#allocation4 + $0x188] sm:$0xff] }
 0x2cf   : > { %3526 = vmatpush.msrb.mxu0 %v3517_v26  ;;  %v3280_v28 = vld [vmem:[#allocation3 + $0xa] sm:$0xff] }
 0x2d0   : > { %2931 = vst [vmem:[#allocation3 + $0x69] sm:$0xff] %v2844_v51  ;;  %3096 = vmatmul.f32.gmra.mxu1 %v2844_v51 }
 0x2d1   : > { %v2697_v63 = vpop.f32.mrf.mxu0 }
 0x2d2   : > { %v2777_v19 = vadd.f32 %v2697_v63, %v2502_v12  ;;  %5327 = vmatmul.msk.f32.gmra.mxu2 %vm269_vm0, %v2007_v41  ;;  %v3516_v41 = vld [vmem:[#allocation4 + $0x1d0] sm:$0xff] }
 0x2d3   : > { %5360 = vmatmul.msk.f32.gmra.mxu3 %vm269_vm0, %v2282_v37  ;;  %v2504_v37 = vadd.f32 %v6765_v50, %v2229_v10  ;;  %3527 = vmatpush.msrb.mxu0 %v3516_v41 }
 0x2d4   : > { %v2813_v1 = vadd.f32 %v6713_v61, %v2777_v19  ;;  %5386 = vmatmul.msk.f32.gmra.mxu0 %vm269_vm0, %v2550_v53  ;;  %v2552_v53 = vld [vmem:[#allocation2 + $0x16a] sm:$0xff]  ;;  %v6858_v50 = vpop.f32.mrf.mxu1 }
 0x2d5   : > { %v6836_v29 = vpop.f32.mrf.mxu2  ;;  %3528 = vmatpush.msrb.mxu0 %v3515_v31 }
 0x2d6   : > { %v2845_v15 = vmax.f32 %v2813_v1, 0.0  ;;  %v6838_v21 = vpop.f32.mrf.mxu3  ;;  %v3514_v1 = vld [vmem:[#allocation4 + $0x1c0] sm:$0xff] }
 0x2d7   : > { %3529 = vmatpush.msrb.mxu0 %v3514_v1 }
 0x2d8   : > { %2932 = vst [vmem:[#allocation3 + $0x79] sm:$0xff] %v2845_v15  ;;  %3099 = vmatmul.f32.gmra.mxu1 %v2845_v15 }
 0x2d9   : > { %v2700_v43 = vpop.f32.mrf.mxu0  ;;  %3530 = vmatpush.msrb.mxu0 %v3513_v7 }
 0x2da   : > { %v2778_v39 = vadd.f32 %v2700_v43, %v2503_v62  ;;  %3182 = vmatmul.f32.vlgmr.msrb.gmra.mxu2 %v5433_v40  ;;  %v1955_v43 = vadd.f32 %v6591_v58, %v1680_v18  ;;  %v2555_v18 = vld [vmem:[#allocation2 + $0x18a] sm:$0xff] }
 0x2db   : > { %3344 = vmatmul.f32.vlgmr.msrb.gmra.mxu3 %v3279_v30  ;;  %v2553_v30 = vld [vmem:[#allocation2 + $0x172] sm:$0xff]  ;;  %3531 = vmatpush.msrb.mxu0 %v3512_v47 }
 0x2dc   : > { %v2814_v13 = vadd.f32 %v6713_v61, %v2778_v39  ;;  %5387 = vmatmul.msk.f32.gmra.mxu0 %vm269_vm0, %v2551_v49  ;;  %v2231_v2 = vadd.f32 %v6792_v24, %v1955_v43  ;;  %v6880_v26 = vpop.f32.mrf.mxu1 }
 0x2dd   : > { %v6849_v51 = vpop.f32.mrf.mxu2  ;;  %3532 = vmatpush.msrb.mxu0 %v3511_v4 }
 0x2de   : > { %v2846_v6 = vmax.f32 %v2814_v13, 0.0  ;;  %v6851_v12 = vpop.f32.mrf.mxu3  ;;  %v3510_v13 = vld [vmem:[#allocation4 + $0x1a0] sm:$0xff]  ;;  %v2506_v24 = vadd.f32 %v6794_v14, %v2231_v2  ;;  %v3508_v14 = vld [vmem:[#allocation4 + $0x190] sm:$0xff] }
 0x2df   : > { %3533 = vmatpush.msrb.mxu0 %v3510_v13  ;;  %v2556_v2 = vld [vmem:[#allocation2 + $0x19a] sm:$0xff] }
 0x2e0   : > { %2933 = vst [vmem:[#allocation3 + $0x81] sm:$0xff] %v2846_v6  ;;  %3102 = vmatmul.f32.gmra.mxu1 %v2846_v6  ;;  %v2554_v6 = vld [vmem:[#allocation2 + $0x182] sm:$0xff]  ;;  %v8405_v13 = vld [vmem:[#allocation10_spill] sm:$0xff] }
 0x2e1   : > { %v2703_v63 = vpop.f32.mrf.mxu0 }
 0x2e2   : > { %v2779_v19 = vadd.f32 %v2703_v63, %v2504_v37  ;;  %3185 = vmatmul.f32.gmra.mxu2 %v5433_v40  ;;  %v1681_v40 = vadd.f32 %v6503_v23, %v6408_v0  ;;  %v6884_v0 = vld [vmem:[#allocation3 + $0x20] sm:$0xff] }
 0x2e3   : > { %3347 = vmatmul.f32.gmra.mxu3 %v3280_v28  ;;  %v3282_v23 = vld [vmem:[#allocation3 + $0x22] sm:$0xff] }
 0x2e4   : > { %v2815_v46 = vadd.f32 %v6713_v61, %v2779_v19  ;;  %5388 = vmatmul.msk.f32.gmra.mxu0 %vm269_vm0, %v2552_v53  ;;  %v1956_v41 = vadd.f32 %v6604_v42, %v1681_v40  ;;  %v3509_v28 = vld [vmem:[#allocation4 + $0x198] sm:$0xff]  ;;  %v6916_v40 = vld [vmem:[#allocation3 + $0x38] sm:$0xff] }
 0x2e5   : > { %v6862_v15 = vpop.f32.mrf.mxu2  ;;  %3534 = vmatpush.msrb.mxu0 %v3509_v28  ;;  %v8406_v28 = vld [vmem:[#allocation34_spill] sm:$0xff] }
 0x2e6   : > { %v2847_v20 = vmax.f32 %v2815_v46, 0.0  ;;  %v6864_v9 = vpop.f32.mrf.mxu3  ;;  %v2232_v63 = vadd.f32 %v6806_v55, %v1956_v41  ;;  %v6897_v55 = vpop.f32.mrf.mxu1 }
 0x2e7   : > { %3535 = vmatpush.msrb.mxu0 %v3508_v14  ;;  %v3285_v14 = vld [vmem:[#allocation3 + $0x4a] sm:$0xff] }
 0x2e8   : > { %2934 = vst [vmem:[#allocation3 + $0x91] sm:$0xff] %v2847_v20  ;;  %3105 = vmatmul.f32.gmra.mxu1 %v2847_v20  ;;  %v2507_v46 = vadd.f32 %v6808_v25, %v2232_v63  ;;  %v1957_v20 = vadd.f32 %v6614_v48, %v1682_v11 }
 0x2e9   : > { %v2706_v62 = vpop.f32.mrf.mxu0  ;;  %3536 = vmatpush.msrb.mxu0 %v3507_v33 }
 0x2ea   : > { %v2780_v49 = vadd.f32 %v2706_v62, %v2505_v22  ;;  %3188 = vmatmul.f32.gmra.mxu2 %v6868_v38  ;;  %v3506_v22 = vld [vmem:[#allocation4 + $0x180] sm:$0xff]  ;;  %v2233_v62 = vadd.f32 %v6821_v52, %v1957_v20 }
 0x2eb   : > { %3350 = vmatmul.f32.gmra.mxu3 %v3281_v57  ;;  %3537 = vmatpush.msrb.mxu0 %v3506_v22 }
 0x2ec   : > { %v2816_v39 = vadd.f32 %v6713_v61, %v2780_v49  ;;  %5389 = vmatmul.msk.f32.gmra.mxu0 %vm269_vm0, %v2553_v30  ;;  %v1683_v30 = vadd.f32 %v6529_v54, %v6442_v34  ;;  %v2508_v57 = vadd.f32 %v6823_v17, %v2233_v62  ;;  %v8404_v17 = vld [vmem:[#allocation20_spill] sm:$0xff] }
 0x2ed   : > { %v6876_v60 = vpop.f32.mrf.mxu2  ;;  %v8409_v62 = vld [vmem:[#allocation36_spill] sm:$0xff] }
 0x2ee   : > { %v2848_v58 = vmax.f32 %v2816_v39, 0.0  ;;  %v6878_v10 = vpop.f32.mrf.mxu3  ;;  %v6913_v52 = vpop.f32.mrf.mxu1  ;;  %v1958_v39 = vadd.f32 %v6625_v27, %v1683_v30  ;;  %v6946_v30 = vld [vmem:[#allocation3 + $0x50] sm:$0xff] }
 0x2f0   : > { %2935 = vst [vmem:[#allocation3 + $0x99] sm:$0xff] %v2848_v58  ;;  %3108 = vmatmul.f32.gmra.mxu1 %v2848_v58  ;;  %v3284_v58 = vld [vmem:[#allocation3 + $0x3a] sm:$0xff]  ;;  %v2234_v34 = vadd.f32 %v6836_v29, %v1958_v39 }
 0x2f1   : > { %v2709_v32 = vpop.f32.mrf.mxu0  ;;  %v8411_v39 = vld [vmem:[#allocation25_spill] sm:$0xff] }
 0x2f2   : > { %v2781_v37 = vadd.f32 %v2709_v32, %v2506_v24  ;;  %3191 = vmatmul.f32.gmra.mxu2 %v6884_v0  ;;  %v1684_v24 = vadd.f32 %v8405_v13, %v8404_v17  ;;  %v2509_v41 = vadd.f32 %v6838_v21, %v2234_v34  ;;  %v8407_v21 = vld [vmem:[#allocation21_spill] sm:$0xff] }
 0x2f3   : > { %3353 = vmatmul.f32.gmra.mxu3 %v3282_v23  ;;  %v2557_v23 = vld [vmem:[#allocation2 + $0x1a2] sm:$0xff] }
 0x2f4   : > { %v2817_v53 = vadd.f32 %v6713_v61, %v2781_v37  ;;  %5390 = vmatmul.msk.f32.gmra.mxu0 %vm269_vm0, %v2554_v6  ;;  %v1959_v29 = vadd.f32 %v8406_v28, %v1684_v24 }
 0x2f5   : > { %v6892_v19 = vpop.f32.mrf.mxu2 }
 0x2f6   : > { %v2849_v42 = vmax.f32 %v2817_v53, 0.0  ;;  %v6894_v31 = vpop.f32.mrf.mxu3  ;;  %v6930_v53 = vld [vmem:[#allocation3 + $0x48] sm:$0xff]  ;;  %v6933_v11 = vpop.f32.mrf.mxu1 }
 0x2f8   : > { %2936 = vst [vmem:[#allocation3 + $0xa9] sm:$0xff] %v2849_v42  ;;  %3111 = vmatmul.f32.gmra.mxu1 %v2849_v42  ;;  %v2235_v42 = vadd.f32 %v6849_v51, %v1959_v29  ;;  %v8414_v29 = vld [vmem:[#allocation26_spill] sm:$0xff] }
 0x2f9   : > { %v2712_v1 = vpop.f32.mrf.mxu0 }
 0x2fa   : > { %v2782_v7 = vadd.f32 %v2712_v1, %v2507_v46  ;;  %3194 = vmatmul.f32.gmra.mxu2 %v6900_v5  ;;  %v8408_v46 = vld [vmem:[#allocation24_spill] sm:$0xff] }
 0x2fb   : > { %3356 = vmatmul.f32.gmra.mxu3 %v3283_v16  ;;  %v1685_v1 = vadd.f32 %v8408_v46, %v8407_v21  ;;  %v2510_v16 = vadd.f32 %v6851_v12, %v2235_v42  ;;  %v8410_v12 = vld [vmem:[#allocation22_spill] sm:$0xff] }
 0x2fc   : > { %v2818_v25 = vadd.f32 %v6713_v61, %v2782_v7  ;;  %5391 = vmatmul.msk.f32.gmra.mxu0 %vm269_vm0, %v2555_v18 }
 0x2fd   : > { %v6908_v48 = vpop.f32.mrf.mxu2 }
 0x2fe   : > { %v2850_v43 = vmax.f32 %v2818_v25, 0.0  ;;  %v6910_v49 = vpop.f32.mrf.mxu3  ;;  %v1960_v25 = vadd.f32 %v8409_v62, %v1685_v1 }
 0x300   : > { %2937 = vst [vmem:[#allocation3 + $0xb1] sm:$0xff] %v2850_v43  ;;  %3114 = vmatmul.f32.gmra.mxu1 %v2850_v43  ;;  %v3286_v43 = vld [vmem:[#allocation3 + $0x52] sm:$0xff] }
 0x301   : > { %v2715_v47 = vpop.f32.mrf.mxu0 }
 0x302   : > { %v2783_v4 = vadd.f32 %v2715_v47, %v2508_v57  ;;  %3197 = vmatmul.f32.gmra.mxu2 %v6916_v40  ;;  %v2236_v57 = vadd.f32 %v6862_v15, %v1960_v25  ;;  %v8412_v15 = vld [vmem:[#allocation38_spill] sm:$0xff] }
 0x303   : > { %3359 = vmatmul.f32.gmra.mxu3 %v3284_v58 }
 0x304   : > { %v2819_v54 = vadd.f32 %v6713_v61, %v2783_v4  ;;  %5392 = vmatmul.msk.f32.gmra.mxu0 %vm269_vm0, %v2556_v2  ;;  %v1686_v4 = vadd.f32 %v8411_v39, %v8410_v12  ;;  %v2511_v17 = vadd.f32 %v6864_v9, %v2236_v57  ;;  %v8413_v9 = vld [vmem:[#allocation23_spill] sm:$0xff] }
 0x305   : > { %v6924_v6 = vpop.f32.mrf.mxu2 }
 0x306   : > { %v2851_v32 = vmax.f32 %v2819_v54, 0.0  ;;  %v6926_v27 = vpop.f32.mrf.mxu3  ;;  %v1961_v24 = vadd.f32 %v8412_v15, %v1686_v4 }
 0x308   : > { %2938 = vst [vmem:[#allocation3 + $0xc1] sm:$0xff] %v2851_v32  ;;  %3117 = vmatmul.f32.gmra.mxu1 %v2851_v32 }
 0x309   : > { %v2718_v37 = vpop.f32.mrf.mxu0 }
 0x30a   : > { %v2784_v63 = vadd.f32 %v2718_v37, %v2509_v41  ;;  %3200 = vmatmul.f32.gmra.mxu2 %v6930_v53  ;;  %v6962_v41 = vld [vmem:[#allocation3 + $0x60] sm:$0xff]  ;;  %v2237_v37 = vadd.f32 %v6876_v60, %v1961_v24  ;;  %v8415_v60 = vld [vmem:[#allocation40_spill] sm:$0xff] }
 0x30b   : > { %3362 = vmatmul.f32.gmra.mxu3 %v3285_v14 }
 0x30c   : > { %v2820_v33 = vadd.f32 %v6713_v61, %v2784_v63  ;;  %5393 = vmatmul.msk.f32.gmra.mxu0 %vm269_vm0, %v2557_v23  ;;  %v1687_v63 = vadd.f32 %v8414_v29, %v8413_v9  ;;  %v2512_v21 = vadd.f32 %v6878_v10, %v2237_v37  ;;  %v8416_v10 = vld [vmem:[#allocation7_spill] sm:$0xff] }
 0x30d   : > { %v6940_v20 = vpop.f32.mrf.mxu2 }
 0x30e   : > { %v2852_v18 = vmax.f32 %v2820_v33, 0.0  ;;  %v6942_v7 = vpop.f32.mrf.mxu3  ;;  %v1962_v1 = vadd.f32 %v8415_v60, %v1687_v63 }
 0x310   : > { %2939 = vst [vmem:[#allocation3 + $0xc9] sm:$0xff] %v2852_v18  ;;  %3120 = vmatmul.f32.gmra.mxu1 %v2852_v18 }
 0x311   : > { %v2721_v22 = vpop.f32.mrf.mxu0 }
 0x312   : > { %v2785_v51 = vadd.f32 %v2721_v22, %v2510_v16  ;;  %3203 = vmatmul.f32.gmra.mxu2 %v6946_v30  ;;  %v6978_v16 = vld [vmem:[#allocation3 + $0x68] sm:$0xff]  ;;  %v2238_v22 = vadd.f32 %v6892_v19, %v1962_v1  ;;  %v8418_v19 = vld [vmem:[#allocation43_spill] sm:$0xff] }
 0x313   : > { %3365 = vmatmul.f32.gmra.mxu3 %v3286_v43 }
 0x314   : > { %v2821_v47 = vadd.f32 %v6713_v61, %v2785_v51  ;;  %3538 = vmatmul.f32.vlgmr.msrb.gmra.mxu0 %v6868_v38  ;;  %v3287_v38 = vld [vmem:[#allocation3 + $0x62] sm:$0xff]  ;;  %v8417_v51 = vld [vmem:[#allocation27_spill] sm:$0xff]  ;;  %v2513_v39 = vadd.f32 %v6894_v31, %v2238_v22  ;;  %v8419_v31 = vld [vmem:[#allocation8_spill] sm:$0xff] }
 0x315   : > { %v6952_v2 = vpop.f32.mrf.mxu1  ;;  %v6956_v34 = vpop.f32.mrf.mxu2  ;;  %v1688_v43 = vadd.f32 %v8417_v51, %v8416_v10 }
 0x316   : > { %v2853_v58 = vmax.f32 %v2821_v47, 0.0  ;;  %v6958_v54 = vpop.f32.mrf.mxu3 }
 0x318   : > { %2940 = vst [vmem:[#allocation3 + $0xd9] sm:$0xff] %v2853_v58  ;;  %3123 = vmatmul.f32.gmra.mxu1 %v2853_v58  ;;  %v1963_v58 = vadd.f32 %v8418_v19, %v1688_v43 }
 0x319   : > { %v2724_v13 = vpop.f32.mrf.mxu0 }
 0x31a   : > { %v2786_v32 = vadd.f32 %v2724_v13, %v2511_v17  ;;  %3206 = vmatmul.f32.gmra.mxu2 %v6962_v41  ;;  %v6994_v13 = vld [vmem:[#allocation3 + $0x78] sm:$0xff]  ;;  %v2239_v15 = vadd.f32 %v6908_v48, %v1963_v58 }
 0x31b   : > { %3368 = vmatmul.f32.gmra.mxu3 %v3287_v38  ;;  %v8420_v38 = vld [vmem:[#allocation28_spill] sm:$0xff] }
 0x31c   : > { %v2822_v23 = vadd.f32 %v6713_v61, %v2786_v32  ;;  %3541 = vmatmul.f32.gmra.mxu0 %v6884_v0  ;;  %v3288_v0 = vld [vmem:[#allocation3 + $0x6a] sm:$0xff]  ;;  %v1689_v37 = vadd.f32 %v8420_v38, %v8419_v31  ;;  %v2514_v63 = vadd.f32 %v6910_v49, %v2239_v15  ;;  %v8421_v49 = vld [vmem:[#allocation9_spill] sm:$0xff] }
 0x31d   : > { %v6968_v28 = vpop.f32.mrf.mxu1  ;;  %v6972_v42 = vpop.f32.mrf.mxu2 }
 0x31e   : > { %v2854_v14 = vmax.f32 %v2822_v23, 0.0  ;;  %v6974_v33 = vpop.f32.mrf.mxu3  ;;  %v1964_v48 = vadd.f32 %v6721_v8, %v1689_v37 }
 0x320   : > { %2941 = vst [vmem:[#allocation3 + $0xe1] sm:$0xff] %v2854_v14  ;;  %3126 = vmatmul.f32.gmra.mxu1 %v2854_v14  ;;  %v2240_v60 = vadd.f32 %v6924_v6, %v1964_v48 }
 0x321   : > { %v2727_v46 = vpop.f32.mrf.mxu0 }
 0x322   : > { %v2787_v18 = vadd.f32 %v2727_v46, %v2512_v21  ;;  %3209 = vmatmul.f32.gmra.mxu2 %v6978_v16  ;;  %v7010_v46 = vld [vmem:[#allocation3 + $0x80] sm:$0xff]  ;;  %v2515_v51 = vadd.f32 %v6926_v27, %v2240_v60  ;;  %v8423_v27 = vld [vmem:[#allocation11_spill] sm:$0xff] }
 0x323   : > { %3371 = vmatmul.f32.gmra.mxu3 %v3288_v0  ;;  %v8422_v0 = vld [vmem:[#allocation29_spill] sm:$0xff] }
 0x324   : > { %v2823_v62 = vadd.f32 %v6713_v61, %v2787_v18  ;;  %3544 = vmatmul.f32.gmra.mxu0 %v6900_v5  ;;  %v3289_v5 = vld [vmem:[#allocation3 + $0x7a] sm:$0xff]  ;;  %v1690_v22 = vadd.f32 %v8422_v0, %v8421_v49 }
 0x325   : > { %v6984_v25 = vpop.f32.mrf.mxu1  ;;  %v6988_v47 = vpop.f32.mrf.mxu2 }
 0x326   : > { %v2855_v57 = vmax.f32 %v2823_v62, 0.0  ;;  %v6990_v12 = vpop.f32.mrf.mxu3  ;;  %v1965_v6 = vadd.f32 %v6739_v3, %v1690_v22 }
 0x328   : > { %2942 = vst [vmem:[#allocation3 + $0xf1] sm:$0xff] %v2855_v57  ;;  %3129 = vmatmul.f32.gmra.mxu1 %v2855_v57 }
 0x329   : > { %v2730_v4 = vpop.f32.mrf.mxu0 }
 0x32a   : > { %v2788_v17 = vadd.f32 %v2730_v4, %v2513_v39  ;;  %3212 = vmatmul.f32.gmra.mxu2 %v6994_v13  ;;  %v7026_v39 = vld [vmem:[#allocation3 + $0x90] sm:$0xff]  ;;  %v2241_v4 = vadd.f32 %v6940_v20, %v1965_v6 }
 0x32b   : > { %3374 = vmatmul.f32.gmra.mxu3 %v3289_v5 }
 0x32c   : > { %v2824_v24 = vadd.f32 %v6713_v61, %v2788_v17  ;;  %3547 = vmatmul.f32.gmra.mxu0 %v6916_v40  ;;  %v3290_v40 = vld [vmem:[#allocation3 + $0x82] sm:$0xff]  ;;  %v2516_v31 = vadd.f32 %v6942_v7, %v2241_v4  ;;  %v8425_v7 = vld [vmem:[#allocation12_spill] sm:$0xff] }
 0x32d   : > { %v7000_v32 = vpop.f32.mrf.mxu1  ;;  %v7004_v9 = vpop.f32.mrf.mxu2  ;;  %v8424_v17 = vld [vmem:[#allocation30_spill] sm:$0xff]  ;;  %v8428_v4 = vld [vmem:[#allocation32_spill] sm:$0xff] }
 0x32e   : > { %v2856_v23 = vmax.f32 %v2824_v24, 0.0  ;;  %v7006_v29 = vpop.f32.mrf.mxu3  ;;  %v1691_v5 = vadd.f32 %v8424_v17, %v8423_v27 }
 0x330   : > { %2943 = vst [vmem:[#allocation3 + $0xf9] sm:$0xff] %v2856_v23  ;;  %3132 = vmatmul.f32.gmra.mxu1 %v2856_v23  ;;  %v1966_v20 = vadd.f32 %v6754_v36, %v1691_v5  ;;  %v7042_v23 = vld [vmem:[#allocation3 + $0x98] sm:$0xff]  ;;  %v3712_v5 = vld [vmem:[#allocation4 + $0x260] sm:$0xff] }
 0x331   : > { %v2733_v14 = vpop.f32.mrf.mxu0 }
 0x332   : > { %v2789_v21 = vadd.f32 %v2733_v14, %v2514_v63  ;;  %3215 = vmatmul.f32.gmra.mxu2 %v7010_v46  ;;  %v2242_v63 = vadd.f32 %v6956_v34, %v1966_v20  ;;  %v3715_v34 = vld [vmem:[#allocation4 + $0x278] sm:$0xff] }
 0x333   : > { %3377 = vmatmul.f32.gmra.mxu3 %v3290_v40  ;;  %3716 = vmatpush.msrb.mxu1 %v3715_v34  ;;  %v3709_v34 = vld [vmem:[#allocation4 + $0x248] sm:$0xff] }
 0x334   : > { %v2825_v1 = vadd.f32 %v6713_v61, %v2789_v21  ;;  %3550 = vmatmul.f32.gmra.mxu0 %v6930_v53  ;;  %v3291_v53 = vld [vmem:[#allocation3 + $0x92] sm:$0xff]  ;;  %v2517_v49 = vadd.f32 %v6958_v54, %v2242_v63  ;;  %v7065_v54 = vld [vmem:[%s8323_s2] ss:$0 sm:$0xff]  ;;  %v3710_v63 = vld [vmem:[#allocation4 + $0x250] sm:$0xff] }
 0x335   : > { %v7016_v18 = vpop.f32.mrf.mxu1  ;;  %v7020_v8 = vpop.f32.mrf.mxu2  ;;  %v8426_v21 = vld [vmem:[#allocation31_spill] sm:$0xff] }
 0x336   : > { %v2857_v62 = vmax.f32 %v2825_v1, 0.0  ;;  %v7022_v10 = vpop.f32.mrf.mxu3  ;;  %v1692_v40 = vadd.f32 %v8426_v21, %v8425_v7  ;;  %v8429_v21 = vld [vmem:[#allocation14_spill] sm:$0xff] }
 0x338   : > { %2944 = vst [vmem:[#allocation3 + $0x109] sm:$0xff] %v2857_v62  ;;  %3135 = vmatmul.f32.gmra.mxu1 %v2857_v62  ;;  %v3293_v62 = vld [vmem:[#allocation3 + $0xaa] sm:$0xff] }
 0x339   : > { %v2736_v43 = vpop.f32.mrf.mxu0 }
 0x33a   : > { %v2790_v57 = vadd.f32 %v2736_v43, %v2515_v51  ;;  %3218 = vmatmul.f32.gmra.mxu2 %v7026_v39  ;;  %v3714_v51 = vld [vmem:[#allocation4 + $0x270] sm:$0xff] }
 0x33b   : > { %3380 = vmatmul.f32.gmra.mxu3 %v3291_v53  ;;  %3717 = vmatpush.msrb.mxu1 %v3714_v51  ;;  %v8427_v53 = vld [vmem:[#allocation13_spill] sm:$0xff] }
 0x33c   : > { %v2826_v19 = vadd.f32 %v6713_v61, %v2790_v57  ;;  %3553 = vmatmul.f32.gmra.mxu0 %v6946_v30  ;;  %v3292_v30 = vld [vmem:[#allocation3 + $0x9a] sm:$0xff] }
 0x33d   : > { %v7032_v58 = vpop.f32.mrf.mxu1  ;;  %v7036_v3 = vpop.f32.mrf.mxu2  ;;  %v3713_v57 = vld [vmem:[#allocation4 + $0x268] sm:$0xff]  ;;  %v7095_v51 = vld [vmem:[#allocation3 + $0xc0] sm:$0xff] }
 0x33e   : > { %v2858_v15 = vmax.f32 %v2826_v19, 0.0  ;;  %v7038_v24 = vpop.f32.mrf.mxu3  ;;  %v1693_v19 = vadd.f32 %v8428_v4, %v8427_v53  ;;  %3718 = vmatpush.msrb.mxu1 %v3713_v57  ;;  %v8431_v4 = vld [vmem:[#allocation15_spill] sm:$0xff] }
 0x340   : > { %2945 = vst [vmem:[#allocation3 + $0x111] sm:$0xff] %v2858_v15  ;;  %3138 = vmatmul.f32.gmra.mxu1 %v2858_v15 }
 0x341   : > { %v2739_v38 = vpop.f32.mrf.mxu0  ;;  %3719 = vmatpush.msrb.mxu1 %v3712_v5 }
 0x342   : > { %v2791_v37 = vadd.f32 %v2739_v38, %v2516_v31  ;;  %3221 = vmatmul.f32.gmra.mxu2 %v7042_v23  ;;  %v1968_v38 = vadd.f32 %v6790_v56, %v1693_v19  ;;  %v8432_v19 = vld [vmem:[#allocation35_spill] sm:$0xff] }
 0x343   : > { %3383 = vmatmul.f32.gmra.mxu3 %v3292_v30  ;;  %v3294_v30 = vld [vmem:[#allocation3 + $0xb2] sm:$0xff] }
 0x344   : > { %v2827_v14 = vadd.f32 %v6713_v61, %v2791_v37  ;;  %3556 = vmatmul.f32.gmra.mxu0 %v6962_v41  ;;  %v1967_v61 = vadd.f32 %v6768_v44, %v1692_v40  ;;  %v7058_v41 = vld [vmem:[#allocation3 + $0xa8] sm:$0xff]  ;;  %v7079_v37 = vld [vmem:[#allocation3 + $0xb0] sm:$0xff]  ;;  %v8430_v40 = vld [vmem:[#allocation33_spill] sm:$0xff] }
 0x345   : > { %v7048_v48 = vpop.f32.mrf.mxu1  ;;  %v7052_v36 = vpop.f32.mrf.mxu2  ;;  %v1694_v56 = vadd.f32 %v8430_v40, %v8429_v21  ;;  %v3704_v21 = vld [vmem:[#allocation4 + $0x220] sm:$0xff] }
 0x346   : > { %v2859_v60 = vmax.f32 %v2827_v14, 0.0  ;;  %v7054_v1 = vpop.f32.mrf.mxu3  ;;  %v2243_v43 = vadd.f32 %v6972_v42, %v1967_v61  ;;  %v2244_v14 = vadd.f32 %v6988_v47, %v1968_v38 }
 0x348   : > { %2946 = vst [vmem:[#allocation3 + $0x121] sm:$0xff] %v2859_v60  ;;  %3141 = vmatmul.f32.gmra.mxu1 %v2859_v60  ;;  %v2518_v15 = vadd.f32 %v6974_v33, %v2243_v43  ;;  %v2519_v61 = vadd.f32 %v6990_v12, %v2244_v14  ;;  %v3295_v43 = vld [vmem:[#allocation3 + $0xc2] sm:$0xff] }
 0x349   : > { %v2742_v0 = vpop.f32.mrf.mxu0  ;;  %v7110_v14 = vld [vmem:[#allocation3 + $0xc8] sm:$0xff] }
 0x34a   : > { %v2792_v22 = vadd.f32 %v2742_v0, %v2517_v49  ;;  %3224 = vmatmul.f32.gmra.mxu2 %v7058_v41 }
 0x34b   : > { %3386 = vmatmul.f32.gmra.mxu3 %v3293_v62 }
 0x34c   : > { %v2828_v6 = vadd.f32 %v7065_v54, %v2792_v22  ;;  %3559 = vmatmul.f32.gmra.mxu0 %v6978_v16  ;;  %v3711_v16 = vld [vmem:[#allocation4 + $0x258] sm:$0xff]  ;;  %v1969_v22 = vadd.f32 %v6810_v59, %v1694_v56  ;;  %v1695_v59 = vadd.f32 %v8432_v19, %v8431_v4  ;;  %v8433_v56 = vld [vmem:[#allocation16_spill] sm:$0xff] }
 0x34d   : > { %v7069_v44 = vpop.f32.mrf.mxu1  ;;  %v7073_v17 = vpop.f32.mrf.mxu2  ;;  %3720 = vmatpush.msrb.mxu1 %v3711_v16  ;;  %v3297_v4 = vld [vmem:[#allocation3 + $0xda] sm:$0xff] }
 0x34e   : > { %v2860_v27 = vmax.f32 %v2828_v6, 0.0  ;;  %v7075_v42 = vpop.f32.mrf.mxu3  ;;  %v3707_v6 = vld [vmem:[#allocation4 + $0x238] sm:$0xff]  ;;  %v2245_v57 = vadd.f32 %v7004_v9, %v1969_v22  ;;  %v3701_v19 = vld [vmem:[#allocation4 + $0x208] sm:$0xff] }
 0x34f   : > { %3721 = vmatpush.msrb.mxu1 %v3710_v63 }
 0x350   : > { %2947 = vst [vmem:[#allocation3 + $0x129] sm:$0xff] %v2860_v27  ;;  %3144 = vmatmul.f32.gmra.mxu1 %v2860_v27  ;;  %v2520_v38 = vadd.f32 %v7006_v29, %v2245_v57 }
 0x351   : > { %v2745_v31 = vpop.f32.mrf.mxu0  ;;  %3722 = vmatpush.msrb.mxu1 %v3709_v34 }
 0x352   : > { %v2793_v20 = vadd.f32 %v2745_v31, %v2518_v15  ;;  %3227 = vmatmul.f32.gmra.mxu2 %v7079_v37  ;;  %v3706_v31 = vld [vmem:[#allocation4 + $0x230] sm:$0xff] }
 0x353   : > { %3389 = vmatmul.f32.gmra.mxu3 %v3294_v30  ;;  %v1970_v30 = vadd.f32 %v6826_v35, %v1695_v59 }
 0x354   : > { %v2829_v7 = vadd.f32 %v7065_v54, %v2793_v20  ;;  %3562 = vmatmul.f32.gmra.mxu0 %v6994_v13  ;;  %v3708_v13 = vld [vmem:[#allocation4 + $0x240] sm:$0xff]  ;;  %v3705_v20 = vld [vmem:[#allocation4 + $0x228] sm:$0xff] }
 0x355   : > { %v7085_v33 = vpop.f32.mrf.mxu1  ;;  %v7089_v49 = vpop.f32.mrf.mxu2  ;;  %3723 = vmatpush.msrb.mxu1 %v3708_v13  ;;  %v3703_v13 = vld [vmem:[#allocation4 + $0x218] sm:$0xff] }
 0x356   : > { %v2861_v60 = vmax.f32 %v2829_v7, 0.0  ;;  %v7091_v0 = vpop.f32.mrf.mxu3  ;;  %v3296_v7 = vld [vmem:[#allocation3 + $0xca] sm:$0xff] }
 0x357   : > { %3724 = vmatpush.msrb.mxu1 %v3707_v6 }
 0x358   : > { %2948 = vst [vmem:[#allocation3 + $0x139] sm:$0xff] %v2861_v60  ;;  %3147 = vmatmul.f32.gmra.mxu1 %v2861_v60  ;;  %v8434_v60 = vld [vmem:[#allocation37_spill] sm:$0xff] }
 0x359   : > { %v2748_v47 = vpop.f32.mrf.mxu0  ;;  %3725 = vmatpush.msrb.mxu1 %v3706_v31  ;;  %v1696_v35 = vadd.f32 %v8434_v60, %v8433_v56  ;;  %v8438_v56 = vld [vmem:[#allocation41_spill] sm:$0xff] }
 0x35a   : > { %v2794_v62 = vadd.f32 %v2748_v47, %v2519_v61  ;;  %3230 = vmatmul.f32.gmra.mxu2 %v7095_v51 }
 0x35b   : > { %3392 = vmatmul.f32.gmra.mxu3 %v3295_v43  ;;  %3726 = vmatpush.msrb.mxu1 %v3705_v20  ;;  %v3702_v43 = vld [vmem:[#allocation4 + $0x210] sm:$0xff]  ;;  %v1971_v6 = vadd.f32 %v6842_v45, %v1696_v35 }
 0x35c   : > { %v2830_v53 = vadd.f32 %v7065_v54, %v2794_v62  ;;  %3565 = vmatmul.f32.gmra.mxu0 %v7010_v46 }
 0x35d   : > { %v7101_v12 = vpop.f32.mrf.mxu1  ;;  %v3183_v5 = vpop.f32.mrf.mxu2  ;;  %3727 = vmatpush.msrb.mxu1 %v3704_v21  ;;  %v3298_v21 = vld [vmem:[#allocation3 + $0xe2] sm:$0xff] }
 0x35e   : > { %v2862_v27 = vmax.f32 %v2830_v53, 0.0  ;;  %v3345_v15 = vpop.f32.mrf.mxu3  ;;  %v3184_v16 = vadd.f32 %v3183_v5, %v6913_v52  ;;  %v2246_v52 = vadd.f32 %v7020_v8, %v1970_v30  ;;  %v7125_v53 = vld [vmem:[#allocation3 + $0xd8] sm:$0xff]  ;;  %v8436_v5 = vld [vmem:[#allocation39_spill] sm:$0xff] }
 0x35f   : > { %3728 = vmatpush.msrb.mxu1 %v3703_v13 }
 0x360   : > { %2949 = vst [vmem:[#allocation3 + $0x141] sm:$0xff] %v2862_v27  ;;  %3150 = vmatmul.f32.gmra.mxu1 %v2862_v27  ;;  %v7107_v9 = vadd.f32 %v3345_v15, %v3184_v16  ;;  %v2521_v62 = vadd.f32 %v7022_v10, %v2246_v52  ;;  %v8435_v27 = vld [vmem:[#allocation17_spill] sm:$0xff] }
 0x361   : > { %v2751_v46 = vpop.f32.mrf.mxu0  ;;  %3729 = vmatpush.msrb.mxu1 %v3702_v43  ;;  %v1697_v45 = vadd.f32 %v8436_v5, %v8435_v27 }
 0x362   : > { %v2795_v63 = vadd.f32 %v2751_v46, %v2520_v38  ;;  %3233 = vmatmul.f32.gmra.mxu2 %v7110_v14  ;;  %v3700_v38 = vld [vmem:[#allocation4 + $0x200] sm:$0xff] }
 0x363   : > { %3395 = vmatmul.f32.gmra.mxu3 %v3296_v7  ;;  %3730 = vmatpush.msrb.mxu1 %v3701_v19  ;;  %v1972_v30 = vadd.f32 %v6858_v50, %v1697_v45  ;;  %v7140_v7 = vld [vmem:[#allocation3 + $0xe0] sm:$0xff] }
 0x364   : > { %v2831_v29 = vadd.f32 %v7065_v54, %v2795_v63  ;;  %3568 = vmatmul.f32.gmra.mxu0 %v7026_v39 }
 0x365   : > { %v7116_v40 = vpop.f32.mrf.mxu1  ;;  %v3186_v61 = vpop.f32.mrf.mxu2  ;;  %3731 = vmatpush.msrb.mxu1 %v3700_v38  ;;  %v2248_v52 = vadd.f32 %v7052_v36, %v1972_v30 }
 0x366   : > { %v2863_v34 = vmax.f32 %v2831_v29, 0.0  ;;  %v3348_v47 = vpop.f32.mrf.mxu3  ;;  %v3187_v22 = vadd.f32 %v3186_v61, %v6933_v11  ;;  %v2247_v11 = vadd.f32 %v7036_v3, %v1971_v6  ;;  %v8437_v29 = vld [vmem:[#allocation18_spill] sm:$0xff]  ;;  %v8439_v6 = vld [vmem:[#allocation19_spill] sm:$0xff] }
 0x367   : > { %v1698_v60 = vadd.f32 %v8438_v56, %v8437_v29 }
 0x368   : > { %2950 = vst [vmem:[#allocation3 + $0x151] sm:$0xff] %v2863_v34  ;;  %3153 = vmatmul.f32.gmra.mxu1 %v2863_v34  ;;  %v7122_v8 = vadd.f32 %v3348_v47, %v3187_v22  ;;  %v2522_v20 = vadd.f32 %v7038_v24, %v2247_v11  ;;  %v2523_v47 = vadd.f32 %v7054_v1, %v2248_v52  ;;  %v7182_v52 = vld [vmem:[#allocation3 + $0x108] sm:$0xff] }
 0x369   : > { %v2754_v39 = vpop.f32.mrf.mxu0  ;;  %v1973_v22 = vadd.f32 %v6880_v26, %v1698_v60 }
 0x36a   : > { %v2796_v57 = vadd.f32 %v2754_v39, %v2521_v62  ;;  %3236 = vmatmul.f32.gmra.mxu2 %v7125_v53  ;;  %v7155_v62 = vld [vmem:[#allocation3 + $0xf0] sm:$0xff] }
 0x36b   : > { %3398 = vmatmul.f32.gmra.mxu3 %v3297_v4  ;;  %v3299_v39 = vld [vmem:[#allocation3 + $0xf2] sm:$0xff]  ;;  %v2249_v43 = vadd.f32 %v7073_v17, %v1973_v22 }
 0x36c   : > { %v2832_v10 = vadd.f32 %v7065_v54, %v2796_v57  ;;  %3571 = vmatmul.f32.gmra.mxu0 %v7042_v23  ;;  %v8440_v57 = vld [vmem:[#allocation42_spill] sm:$0xff]  ;;  %v7201_v22 = vld [vmem:[#allocation3 + $0x31] sm:$0xff] }
 0x36d   : > { %v7131_v59 = vpop.f32.mrf.mxu1  ;;  %v3189_v31 = vpop.f32.mrf.mxu2  ;;  %v1699_v4 = vadd.f32 %v8440_v57, %v8439_v6  ;;  %v2524_v27 = vadd.f32 %v7075_v42, %v2249_v43  ;;  %v7208_v43 = vld [vmem:[#allocation3 + $0x120] sm:$0xff]  ;;  %v4104_v6 = vld [vmem:[#allocation4 + $0x378] sm:$0xff] }
 0x36e   : > { %v2864_v15 = vmax.f32 %v2832_v10, 0.0  ;;  %v3351_v16 = vpop.f32.mrf.mxu3  ;;  %v3190_v46 = vadd.f32 %v3189_v31, %v6952_v2  ;;  %v3300_v31 = vld [vmem:[#allocation3 + $0xfa] sm:$0xff]  ;;  %4105 = vmatpush.msra.mxu3 %v4104_v6  ;;  %v7243_v6 = vld [vmem:[#allocation3 + $0x51] sm:$0xff] }
 0x36f   : > { %v1974_v45 = vadd.f32 %v6897_v55, %v1699_v4 }
 0x370   : > { %2951 = vst [vmem:[#allocation3 + $0x159] sm:$0xff] %v2864_v15  ;;  %3156 = vmatmul.f32.gmra.mxu1 %v2864_v15  ;;  %v7137_v3 = vadd.f32 %v3351_v16, %v3190_v46  ;;  %v7170_v15 = vld [vmem:[#allocation3 + $0xf8] sm:$0xff] }
 0x371   : > { %v2757_v23 = vpop.f32.mrf.mxu0  ;;  %v2250_v16 = vadd.f32 %v7089_v49, %v1974_v45 }
 0x372   : > { %v2797_v63 = vadd.f32 %v2757_v23, %v2522_v20  ;;  %3239 = vmatmul.f32.gmra.mxu2 %v7140_v7  ;;  %v3667_v23 = vld [vmem:[#allocation3 + $0x19] sm:$0xff] }
 0x373   : > { %3401 = vmatmul.f32.gmra.mxu3 %v3298_v21  ;;  %v2525_v30 = vadd.f32 %v7091_v0, %v2250_v16  ;;  %v3906_v16 = vld [vmem:[#allocation4 + $0x2e0] sm:$0xff] }
 0x374   : > { %v2833_v2 = vadd.f32 %v7065_v54, %v2797_v63  ;;  %3574 = vmatmul.f32.gmra.mxu0 %v7058_v41 }
 0x375   : > { %v7146_v24 = vpop.f32.mrf.mxu1  ;;  %v3192_v50 = vpop.f32.mrf.mxu2 }
 0x376   : > { %v2865_v35 = vmax.f32 %v2833_v2, 0.0  ;;  %v3354_v34 = vpop.f32.mrf.mxu3  ;;  %v3193_v61 = vadd.f32 %v3192_v50, %v6968_v28  ;;  %v3301_v2 = vld [vmem:[#allocation3 + $0x10a] sm:$0xff] }
 0x378   : > { %2952 = vst [vmem:[#allocation3 + $0x169] sm:$0xff] %v2865_v35  ;;  %3159 = vmatmul.f32.gmra.mxu1 %v2865_v35  ;;  %v7152_v13 = vadd.f32 %v3354_v34, %v3193_v61  ;;  %v3668_v35 = vld [vmem:[#allocation3 + $0x21] sm:$0xff]  ;;  %v7194_v61 = vld [vmem:[#allocation3 + $0x110] sm:$0xff] }
 0x379   : > { %v2760_v36 = vpop.f32.mrf.mxu0 }
 0x37a   : > { %v2798_v41 = vadd.f32 %v2760_v36, %v2523_v47  ;;  %3242 = vmatmul.f32.gmra.mxu2 %v7155_v62  ;;  %v3302_v47 = vld [vmem:[#allocation3 + $0x112] sm:$0xff] }
 0x37b   : > { %3404 = vmatmul.f32.gmra.mxu3 %v3299_v39 }
 0x37c   : > { %v2834_v28 = vadd.f32 %v7065_v54, %v2798_v41  ;;  %3577 = vmatmul.f32.gmra.mxu0 %v7079_v37 }
 0x37d   : > { %v7161_v1 = vpop.f32.mrf.mxu1  ;;  %v3195_v26 = vpop.f32.mrf.mxu2 }
 0x37e   : > { %v2866_v19 = vmax.f32 %v2834_v28, 0.0  ;;  %v3357_v11 = vpop.f32.mrf.mxu3  ;;  %v3196_v10 = vadd.f32 %v3195_v26, %v6984_v25  ;;  %v3303_v28 = vld [vmem:[#allocation3 + $0x122] sm:$0xff] }
 0x37f   : > { %v4103_v26 = vld [vmem:[#allocation4 + $0x370] sm:$0xff] }
 0x380   : > { %2953 = vst [vmem:[#allocation3 + $0x171] sm:$0xff] %v2866_v19  ;;  %3162 = vmatmul.f32.gmra.mxu1 %v2866_v19  ;;  %v7167_v5 = vadd.f32 %v3357_v11, %v3196_v10  ;;  %v3908_v19 = vld [vmem:[#allocation4 + $0x2f0] sm:$0xff]  ;;  %4106 = vmatpush.msra.mxu3 %v4103_v26 }
 0x381   : > { %v2763_v17 = vpop.f32.mrf.mxu0  ;;  %v7215_v10 = vld [vmem:[#allocation3 + $0x39] sm:$0xff] }
 0x382   : > { %v2799_v37 = vadd.f32 %v2763_v17, %v2524_v27  ;;  %3245 = vmatmul.f32.gmra.mxu2 %v7170_v15  ;;  %v3907_v27 = vld [vmem:[#allocation4 + $0x2e8] sm:$0xff]  ;;  %v7250_v26 = vld [vmem:[#allocation3 + $0x140] sm:$0xff] }
 0x383   : > { %3407 = vmatmul.f32.gmra.mxu3 %v3300_v31  ;;  %v3304_v31 = vld [vmem:[#allocation3 + $0x12a] sm:$0xff] }
 0x384   : > { %v2835_v25 = vadd.f32 %v7065_v54, %v2799_v37  ;;  %3580 = vmatmul.f32.gmra.mxu0 %v7095_v51  ;;  %v7222_v37 = vld [vmem:[#allocation3 + $0x128] sm:$0xff] }
 0x385   : > { %v7176_v42 = vpop.f32.mrf.mxu1  ;;  %v3198_v46 = vpop.f32.mrf.mxu2 }
 0x386   : > { %v2867_v38 = vmax.f32 %v2835_v25, 0.0  ;;  %v3360_v20 = vpop.f32.mrf.mxu3  ;;  %v3199_v55 = vadd.f32 %v3198_v46, %v7000_v32  ;;  %v4101_v25 = vld [vmem:[#allocation4 + $0x360] sm:$0xff] }
 0x388   : > { %2954 = vst [vmem:[#allocation3 + $0x181] sm:$0xff] %v2867_v38  ;;  %3732 = vmatmul.f32.vlgmr.msrb.gmra.mxu1 %v3667_v23  ;;  %v7180_v63 = vadd.f32 %v3360_v20, %v3199_v55  ;;  %v4100_v38 = vld [vmem:[#allocation4 + $0x358] sm:$0xff]  ;;  %v3904_v23 = vld [vmem:[#allocation4 + $0x2d0] sm:$0xff] }
 0x389   : > { %v2766_v21 = vpop.f32.mrf.mxu0 }
 0x38a   : > { %v2800_v49 = vadd.f32 %v2766_v21, %v2525_v30  ;;  %3248 = vmatmul.f32.gmra.mxu2 %v7182_v52  ;;  %v4099_v30 = vld [vmem:[#allocation4 + $0x350] sm:$0xff] }
 0x38b   : > { %3410 = vmatmul.f32.gmra.mxu3 %v3301_v2 }
 0x38c   : > { %v2836_v51 = vadd.f32 %v7065_v54, %v2800_v49  ;;  %3583 = vmatmul.f32.gmra.mxu0 %v7110_v14  ;;  %v7229_v49 = vld [vmem:[#allocation3 + $0x49] sm:$0xff] }
 0x38d   : > { %v7187_v32 = vpop.f32.mrf.mxu1  ;;  %v3201_v0 = vpop.f32.mrf.mxu2 }
 0x38e   : > { %v2868_v29 = vmax.f32 %v2836_v51, 0.0  ;;  %v3363_v56 = vpop.f32.mrf.mxu3  ;;  %v3202_v60 = vadd.f32 %v3201_v0, %v7016_v18  ;;  %v7236_v0 = vld [vmem:[#allocation3 + $0x138] sm:$0xff] }
 0x390   : > { %2955 = vst [vmem:[#allocation3 + $0x189] sm:$0xff] %v2868_v29  ;;  %3735 = vmatmul.f32.gmra.mxu1 %v3668_v35  ;;  %v7190_v50 = vadd.f32 %v3363_v56, %v3202_v60  ;;  %v4098_v29 = vld [vmem:[#allocation4 + $0x348] sm:$0xff]  ;;  %v3902_v60 = vld [vmem:[#allocation4 + $0x2c0] sm:$0xff]  ;;  %v3901_v35 = vld [vmem:[#allocation4 + $0x2b8] sm:$0xff] }
 0x391   : > { %v7192_v34 = vpop.f32.mrf.mxu0  ;;  %v3305_v56 = vld [vmem:[#allocation3 + $0x13a] sm:$0xff] }
 0x392   : > { %3251 = vmatmul.f32.gmra.mxu2 %v7194_v61 }
 0x393   : > { %3413 = vmatmul.f32.gmra.mxu3 %v3302_v47 }
 0x394   : > { %3586 = vmatmul.f32.gmra.mxu0 %v7125_v53  ;;  %v3909_v53 = vld [vmem:[#allocation4 + $0x2f8] sm:$0xff] }
 0x395   : > { %v7198_v54 = vpop.f32.mrf.mxu1  ;;  %v3204_v14 = vpop.f32.mrf.mxu2  ;;  %3910 = vmatpush.msra.mxu2 %v3909_v53 }
 0x396   : > { %v3366_v36 = vpop.f32.mrf.mxu3  ;;  %v3205_v18 = vadd.f32 %v3204_v14, %v7032_v58  ;;  %v4096_v14 = vld [vmem:[#allocation4 + $0x338] sm:$0xff] }
 0x397   : > { %3911 = vmatpush.msra.mxu2 %v3908_v19  ;;  %v3899_v19 = vld [vmem:[#allocation4 + $0x2a8] sm:$0xff] }
 0x398   : > { %3738 = vmatmul.f32.gmra.mxu1 %v7201_v22  ;;  %v7204_v41 = vadd.f32 %v3366_v36, %v3205_v18 }
 0x399   : > { %v7206_v39 = vpop.f32.mrf.mxu0  ;;  %3912 = vmatpush.msra.mxu2 %v3907_v27  ;;  %v4094_v27 = vld [vmem:[#allocation4 + $0x328] sm:$0xff] }
 0x39a   : > { %3254 = vmatmul.f32.gmra.mxu2 %v7208_v43 }
 0x39b   : > { %3416 = vmatmul.f32.gmra.mxu3 %v3303_v28  ;;  %3913 = vmatpush.msra.mxu2 %v3906_v16  ;;  %v3900_v28 = vld [vmem:[#allocation4 + $0x2b0] sm:$0xff]  ;;  %v3897_v16 = vld [vmem:[#allocation4 + $0x298] sm:$0xff] }
 0x39c   : > { %3589 = vmatmul.f32.gmra.mxu0 %v7140_v7  ;;  %v4102_v7 = vld [vmem:[#allocation4 + $0x368] sm:$0xff] }
 0x39d   : > { %v7212_v57 = vpop.f32.mrf.mxu1  ;;  %v3207_v58 = vpop.f32.mrf.mxu2  ;;  %4107 = vmatpush.msra.mxu3 %v4102_v7  ;;  %v4093_v7 = vld [vmem:[#allocation4 + $0x320] sm:$0xff] }
 0x39e   : > { %v3369_v4 = vpop.f32.mrf.mxu3  ;;  %v3208_v11 = vadd.f32 %v3207_v58, %v7048_v48  ;;  %v3905_v48 = vld [vmem:[#allocation4 + $0x2d8] sm:$0xff]  ;;  %v4095_v58 = vld [vmem:[#allocation4 + $0x330] sm:$0xff] }
 0x39f   : > { %4108 = vmatpush.msra.mxu3 %v4101_v25  ;;  %3914 = vmatpush.msra.mxu2 %v3905_v48 }
 0x3a0   : > { %3741 = vmatmul.f32.gmra.mxu1 %v7215_v10  ;;  %v7218_v17 = vadd.f32 %v3369_v4, %v3208_v11  ;;  %v3306_v11 = vld [vmem:[#allocation3 + $0x142] sm:$0xff] }
 0x3a1   : > { %v7220_v45 = vpop.f32.mrf.mxu0  ;;  %4109 = vmatpush.msra.mxu3 %v4100_v38  ;;  %3915 = vmatpush.msra.mxu2 %v3904_v23  ;;  %v4092_v38 = vld [vmem:[#allocation4 + $0x318] sm:$0xff]  ;;  %v3896_v23 = vld [vmem:[#allocation4 + $0x290] sm:$0xff] }
 0x3a2   : > { %8441 = vst [vmem:[#allocation20_spill] sm:$0xff] %v7218_v17  ;;  %3257 = vmatmul.f32.gmra.mxu2 %v7222_v37  ;;  %v7465_v17 = vld [vmem:[#allocation3 + $0x111] sm:$0xff] }
 0x3a3   : > { %3419 = vmatmul.f32.gmra.mxu3 %v3304_v31 }
 0x3a4   : > { %3592 = vmatmul.f32.gmra.mxu0 %v7155_v62  ;;  %v3903_v62 = vld [vmem:[#allocation4 + $0x2c8] sm:$0xff]  ;;  %4110 = vmatpush.msra.mxu3 %v4099_v30 }
 0x3a5   : > { %v7226_v46 = vpop.f32.mrf.mxu1  ;;  %v3210_v20 = vpop.f32.mrf.mxu2  ;;  %3916 = vmatpush.msra.mxu2 %v3903_v62  ;;  %v7264_v62 = vld [vmem:[#allocation3 + $0x150] sm:$0xff] }
 0x3a6   : > { %v3372_v55 = vpop.f32.mrf.mxu3  ;;  %v3211_v21 = vadd.f32 %v3210_v20, %v7069_v44  ;;  %v4097_v44 = vld [vmem:[#allocation4 + $0x340] sm:$0xff]  ;;  %4111 = vmatpush.msra.mxu3 %v4098_v29 }
 0x3a7   : > { %3917 = vmatpush.msra.mxu2 %v3902_v60  ;;  %v3307_v29 = vld [vmem:[#allocation3 + $0x152] sm:$0xff] }
 0x3a8   : > { %3744 = vmatmul.f32.gmra.mxu1 %v7229_v49  ;;  %v7232_v2 = vadd.f32 %v3372_v55, %v3211_v21  ;;  %4112 = vmatpush.msra.mxu3 %v4097_v44  ;;  %v7257_v55 = vld [vmem:[#allocation3 + $0x61] sm:$0xff]  ;;  %v3894_v60 = vld [vmem:[#allocation4 + $0x280] sm:$0xff] }
 0x3a9   : > { %v7234_v51 = vpop.f32.mrf.mxu0  ;;  %3918 = vmatpush.msra.mxu2 %v3901_v35  ;;  %v4091_v21 = vld [vmem:[#allocation4 + $0x310] sm:$0xff]  ;;  %v4089_v35 = vld [vmem:[#allocation4 + $0x300] sm:$0xff] }
 0x3aa   : > { %8442 = vst [vmem:[#allocation10_spill] sm:$0xff] %v7232_v2  ;;  %3260 = vmatmul.f32.gmra.mxu2 %v7236_v0  ;;  %4113 = vmatpush.msra.mxu3 %v4096_v14  ;;  %v7437_v2 = vld [vmem:[#allocation3 + $0xf9] sm:$0xff] }
 0x3ab   : > { %3422 = vmatmul.f32.gmra.mxu3 %v3305_v56  ;;  %3919 = vmatpush.msra.mxu2 %v3900_v28  ;;  %v3895_v56 = vld [vmem:[#allocation4 + $0x288] sm:$0xff]  ;;  %v7271_v28 = vld [vmem:[#allocation3 + $0x69] sm:$0xff] }
 0x3ac   : > { %3595 = vmatmul.f32.gmra.mxu0 %v7170_v15  ;;  %4114 = vmatpush.msra.mxu3 %v4095_v58  ;;  %v7278_v58 = vld [vmem:[#allocation3 + $0x158] sm:$0xff] }
 0x3ad   : > { %v7240_v47 = vpop.f32.mrf.mxu1  ;;  %v3213_v36 = vpop.f32.mrf.mxu2  ;;  %3920 = vmatpush.msra.mxu2 %v3899_v19  ;;  %v3308_v19 = vld [vmem:[#allocation3 + $0x15a] sm:$0xff] }
 0x3ae   : > { %v3375_v18 = vpop.f32.mrf.mxu3  ;;  %v3214_v53 = vadd.f32 %v3213_v36, %v7085_v33  ;;  %v3898_v33 = vld [vmem:[#allocation4 + $0x2a0] sm:$0xff]  ;;  %4115 = vmatpush.msra.mxu3 %v4094_v27 }
 0x3af   : > { %3921 = vmatpush.msra.mxu2 %v3898_v33 }
 0x3b0   : > { %3747 = vmatmul.f32.gmra.mxu1 %v7243_v6  ;;  %v7246_v15 = vadd.f32 %v3375_v18, %v3214_v53  ;;  %4116 = vmatpush.msra.mxu3 %v4093_v7  ;;  %v7285_v7 = vld [vmem:[#allocation3 + $0x79] sm:$0xff] }
 0x3b1   : > { %v7248_v4 = vpop.f32.mrf.mxu0  ;;  %3922 = vmatpush.msra.mxu2 %v3897_v16 }
 0x3b2   : > { %8443 = vst [vmem:[#allocation34_spill] sm:$0xff] %v7246_v15  ;;  %3263 = vmatmul.f32.gmra.mxu2 %v7250_v26  ;;  %4117 = vmatpush.msra.mxu3 %v4092_v38  ;;  %v3309_v38 = vld [vmem:[#allocation3 + $0x16a] sm:$0xff] }
 0x3b3   : > { %3425 = vmatmul.f32.gmra.mxu3 %v3306_v11  ;;  %3923 = vmatpush.msra.mxu2 %v3896_v23 }
 0x3b4   : > { %3598 = vmatmul.f32.gmra.mxu0 %v7182_v52  ;;  %4118 = vmatpush.msra.mxu3 %v4091_v21  ;;  %v7299_v21 = vld [vmem:[#allocation3 + $0x81] sm:$0xff] }
 0x3b5   : > { %v7254_v31 = vpop.f32.mrf.mxu1  ;;  %v3216_v25 = vpop.f32.mrf.mxu2  ;;  %3924 = vmatpush.msra.mxu2 %v3895_v56 }
 0x3b6   : > { %v3378_v48 = vpop.f32.mrf.mxu3  ;;  %v3217_v20 = vadd.f32 %v3216_v25, %v7101_v12  ;;  %v4090_v12 = vld [vmem:[#allocation4 + $0x308] sm:$0xff] }
 0x3b7   : > { %4119 = vmatpush.msra.mxu3 %v4090_v12  ;;  %3925 = vmatpush.msra.mxu2 %v3894_v60  ;;  %v7306_v12 = vld [vmem:[#allocation3 + $0x170] sm:$0xff] }
 0x3b8   : > { %3750 = vmatmul.f32.gmra.mxu1 %v7257_v55  ;;  %v7260_v52 = vadd.f32 %v3378_v48, %v3217_v20  ;;  %v7292_v48 = vld [vmem:[#allocation3 + $0x168] sm:$0xff]  ;;  %v3310_v60 = vld [vmem:[#allocation3 + $0x172] sm:$0xff] }
 0x3b9   : > { %v7262_v30 = vpop.f32.mrf.mxu0  ;;  %4120 = vmatpush.msra.mxu3 %v4089_v35 }
 0x3ba   : > { %8444 = vst [vmem:[#allocation21_spill] sm:$0xff] %v7260_v52  ;;  %3266 = vmatmul.f32.gmra.mxu2 %v7264_v62 }
 0x3bb   : > { %3428 = vmatmul.f32.gmra.mxu3 %v3307_v29 }
 0x3bc   : > { %3601 = vmatmul.f32.gmra.mxu0 %v7194_v61 }
 0x3bd   : > { %v7268_v44 = vpop.f32.mrf.mxu1  ;;  %v3219_v14 = vpop.f32.mrf.mxu2 }
 0x3be   : > { %v3381_v36 = vpop.f32.mrf.mxu3  ;;  %v3220_v18 = vadd.f32 %v3219_v14, %v7116_v40 }
 0x3c0   : > { %3753 = vmatmul.f32.gmra.mxu1 %v7271_v28  ;;  %v7274_v53 = vadd.f32 %v3381_v36, %v3220_v18  ;;  %v7313_v18 = vld [vmem:[#allocation3 + $0x91] sm:$0xff] }
 0x3c1   : > { %v7276_v61 = vpop.f32.mrf.mxu0 }
 0x3c2   : > { %8445 = vst [vmem:[#allocation24_spill] sm:$0xff] %v7274_v53  ;;  %3269 = vmatmul.f32.gmra.mxu2 %v7278_v58 }
 0x3c3   : > { %3431 = vmatmul.f32.gmra.mxu3 %v3308_v19 }
 0x3c4   : > { %3604 = vmatmul.f32.gmra.mxu0 %v7208_v43 }
 0x3c5   : > { %v7282_v11 = vpop.f32.mrf.mxu1  ;;  %v3222_v40 = vpop.f32.mrf.mxu2 }
 0x3c6   : > { %v3384_v27 = vpop.f32.mrf.mxu3  ;;  %v3223_v33 = vadd.f32 %v3222_v40, %v7131_v59 }
 0x3c8   : > { %3756 = vmatmul.f32.gmra.mxu1 %v7285_v7  ;;  %v7288_v16 = vadd.f32 %v3384_v27, %v3223_v33  ;;  %v4297_v27 = vld [vmem:[#allocation4 + $0x3f0] sm:$0xff] }
 0x3c9   : > { %v7290_v25 = vpop.f32.mrf.mxu0  ;;  %v3861_v33 = vld [vmem:[#allocation3 + $0x1a] sm:$0xff] }
 0x3ca   : > { %8446 = vst [vmem:[#allocation36_spill] sm:$0xff] %v7288_v16  ;;  %3272 = vmatmul.f32.gmra.mxu2 %v7292_v48 }
 0x3cb   : > { %3434 = vmatmul.f32.gmra.mxu3 %v3309_v38  ;;  %v4056_v38 = vld [vmem:[#allocation3 + $0x30] sm:$0xff] }
 0x3cc   : > { %3607 = vmatmul.f32.gmra.mxu0 %v7222_v37  ;;  %v4298_v37 = vld [vmem:[#allocation4 + $0x3f8] sm:$0xff] }
 0x3cd   : > { %v7296_v43 = vpop.f32.mrf.mxu1  ;;  %v3225_v20 = vpop.f32.mrf.mxu2  ;;  %4299 = vmatpush.msra.mxu0 %v4298_v37 }
 0x3ce   : > { %v3387_v59 = vpop.f32.mrf.mxu3  ;;  %v3226_v23 = vadd.f32 %v3225_v20, %v7146_v24  ;;  %v4295_v20 = vld [vmem:[#allocation4 + $0x3e0] sm:$0xff] }
 0x3cf   : > { %4300 = vmatpush.msra.mxu0 %v4297_v27  ;;  %v4057_v27 = vld [vmem:[#allocation3 + $0x38] sm:$0xff] }
 0x3d0   : > { %3759 = vmatmul.f32.gmra.mxu1 %v7299_v21  ;;  %v7302_v29 = vadd.f32 %v3387_v59, %v3226_v23 }
 0x3d1   : > { %v7304_v56 = vpop.f32.mrf.mxu0 }
 0x3d2   : > { %8447 = vst [vmem:[#allocation22_spill] sm:$0xff] %v7302_v29  ;;  %3275 = vmatmul.f32.gmra.mxu2 %v7306_v12  ;;  %v4287_v29 = vld [vmem:[#allocation4 + $0x3a0] sm:$0xff] }
 0x3d3   : > { %8448 = vst [vmem:[#allocation25_spill] sm:$0xff] %v7304_v56  ;;  %3437 = vmatmul.f32.gmra.mxu3 %v3310_v60  ;;  %v4294_v60 = vld [vmem:[#allocation4 + $0x3d8] sm:$0xff] }
 0x3d4   : > { %3610 = vmatmul.f32.gmra.mxu0 %v7236_v0  ;;  %v4296_v0 = vld [vmem:[#allocation4 + $0x3e8] sm:$0xff]  ;;  %v7451_v56 = vld [vmem:[#allocation3 + $0x109] sm:$0xff] }
 0x3d5   : > { %v7310_v35 = vpop.f32.mrf.mxu1  ;;  %v3228_v24 = vpop.f32.mrf.mxu2  ;;  %4301 = vmatpush.msra.mxu0 %v4296_v0 }
 0x3d6   : > { %v3390_v14 = vpop.f32.mrf.mxu3  ;;  %v3229_v36 = vadd.f32 %v3228_v24, %v7161_v1  ;;  %v7324_v24 = vld [vmem:[#allocation3 + $0x99] sm:$0xff] }
 0x3d7   : > { %4302 = vmatpush.msra.mxu0 %v4295_v20 }
 0x3d8   : > { %3762 = vmatmul.f32.gmra.mxu1 %v7313_v18  ;;  %v7316_v19 = vadd.f32 %v3390_v14, %v3229_v36 }
 0x3d9   : > { %v7318_v40 = vpop.f32.mrf.mxu0  ;;  %4303 = vmatpush.msra.mxu0 %v4294_v60 }
 0x3da   : > { %8449 = vst [vmem:[#allocation38_spill] sm:$0xff] %v7316_v19  ;;  %3926 = vmatmul.f32.vlgmr.msra.gmra.mxu2 %v3861_v33  ;;  %v4293_v33 = vld [vmem:[#allocation4 + $0x3d0] sm:$0xff] }
 0x3db   : > { %8450 = vst [vmem:[#allocation23_spill] sm:$0xff] %v7318_v40  ;;  %4121 = vmatmul.f32.vlgmr.msra.gmra.mxu3 %v4056_v38  ;;  %v4292_v38 = vld [vmem:[#allocation4 + $0x3c8] sm:$0xff]  ;;  %4304 = vmatpush.msra.mxu0 %v4293_v33 }
 0x3dc   : > { %3613 = vmatmul.f32.gmra.mxu0 %v7250_v26  ;;  %v3862_v26 = vld [vmem:[#allocation3 + $0x22] sm:$0xff]  ;;  %v7423_v40 = vld [vmem:[#allocation3 + $0xf1] sm:$0xff] }
 0x3dd   : > { %v7321_v59 = vpop.f32.mrf.mxu1  ;;  %v3231_v1 = vpop.f32.mrf.mxu2  ;;  %4305 = vmatpush.msra.mxu0 %v4292_v38 }
 0x3de   : > { %v3393_v23 = vpop.f32.mrf.mxu3  ;;  %v3232_v37 = vadd.f32 %v3231_v1, %v7176_v42  ;;  %v4291_v1 = vld [vmem:[#allocation4 + $0x3c0] sm:$0xff] }
 0x3df   : > { %4306 = vmatpush.msra.mxu0 %v4291_v1 }
 0x3e0   : > { %3765 = vmatmul.f32.gmra.mxu1 %v7324_v24  ;;  %v7327_v14 = vadd.f32 %v3393_v23, %v3232_v37  ;;  %v7335_v37 = vld [vmem:[#allocation3 + $0xa9] sm:$0xff] }
 0x3e1   : > { %v7329_v36 = vpop.f32.mrf.mxu0 }
 0x3e2   : > { %8451 = vst [vmem:[#allocation26_spill] sm:$0xff] %v7327_v14  ;;  %3929 = vmatmul.f32.gmra.mxu2 %v3862_v26  ;;  %v4290_v14 = vld [vmem:[#allocation4 + $0x3b8] sm:$0xff] }
 0x3e3   : > { %8452 = vst [vmem:[#allocation40_spill] sm:$0xff] %v7329_v36  ;;  %4124 = vmatmul.f32.gmra.mxu3 %v4057_v27  ;;  %v4058_v27 = vld [vmem:[#allocation3 + $0x48] sm:$0xff]  ;;  %4307 = vmatpush.msra.mxu0 %v4290_v14 }
 0x3e4   : > { %3616 = vmatmul.f32.gmra.mxu0 %v7264_v62  ;;  %v7342_v62 = vld [vmem:[#allocation3 + $0x32] sm:$0xff] }
 0x3e5   : > { %v7332_v0 = vpop.f32.mrf.mxu1  ;;  %v3234_v42 = vpop.f32.mrf.mxu2 }
 0x3e6   : > { %v3396_v20 = vpop.f32.mrf.mxu3  ;;  %v3235_v23 = vadd.f32 %v3234_v42, %v7187_v32  ;;  %v4289_v32 = vld [vmem:[#allocation4 + $0x3b0] sm:$0xff] }
 0x3e7   : > { %4308 = vmatpush.msra.mxu0 %v4289_v32 }
 0x3e8   : > { %3768 = vmatmul.f32.gmra.mxu1 %v7335_v37  ;;  %v7338_v60 = vadd.f32 %v3396_v20, %v3235_v23  ;;  %v4288_v20 = vld [vmem:[#allocation4 + $0x3a8] sm:$0xff] }
 0x3e9   : > { %v7340_v26 = vpop.f32.mrf.mxu0  ;;  %4309 = vmatpush.msra.mxu0 %v4288_v20 }
 0x3ea   : > { %8453 = vst [vmem:[#allocation7_spill] sm:$0xff] %v7338_v60  ;;  %3932 = vmatmul.f32.gmra.mxu2 %v7342_v62  ;;  %v7349_v60 = vld [vmem:[#allocation3 + $0xb1] sm:$0xff] }
 0x3eb   : > { %8454 = vst [vmem:[#allocation27_spill] sm:$0xff] %v7340_v26  ;;  %4127 = vmatmul.f32.gmra.mxu3 %v4058_v27  ;;  %v4059_v27 = vld [vmem:[#allocation3 + $0x50] sm:$0xff]  ;;  %4310 = vmatpush.msra.mxu0 %v4287_v29 }
 0x3ec   : > { %3619 = vmatmul.f32.gmra.mxu0 %v7278_v58  ;;  %v7356_v58 = vld [vmem:[#allocation3 + $0x3a] sm:$0xff] }
 0x3ed   : > { %v7346_v33 = vpop.f32.mrf.mxu1  ;;  %v3237_v38 = vpop.f32.mrf.mxu2 }
 0x3ee   : > { %v3399_v42 = vpop.f32.mrf.mxu3  ;;  %v3238_v23 = vadd.f32 %v3237_v38, %v7198_v54  ;;  %v4286_v54 = vld [vmem:[#allocation4 + $0x398] sm:$0xff] }
 0x3ef   : > { %4311 = vmatpush.msra.mxu0 %v4286_v54 }
 0x3f0   : > { %3771 = vmatmul.f32.gmra.mxu1 %v7349_v60  ;;  %v7352_v1 = vadd.f32 %v3399_v42, %v3238_v23  ;;  %v4285_v42 = vld [vmem:[#allocation4 + $0x390] sm:$0xff] }
 0x3f1   : > { %v7354_v19 = vpop.f32.mrf.mxu0  ;;  %4312 = vmatpush.msra.mxu0 %v4285_v42 }
 0x3f2   : > { %8455 = vst [vmem:[#allocation43_spill] sm:$0xff] %v7352_v1  ;;  %3935 = vmatmul.f32.gmra.mxu2 %v7356_v58  ;;  %v7363_v1 = vld [vmem:[#allocation3 + $0xc1] sm:$0xff] }
 0x3f3   : > { %8456 = vst [vmem:[#allocation8_spill] sm:$0xff] %v7354_v19  ;;  %4130 = vmatmul.f32.gmra.mxu3 %v4059_v27  ;;  %v4060_v27 = vld [vmem:[#allocation3 + $0x60] sm:$0xff]  ;;  %v4284_v19 = vld [vmem:[#allocation4 + $0x388] sm:$0xff] }
 0x3f4   : > { %3622 = vmatmul.f32.gmra.mxu0 %v7292_v48  ;;  %v7370_v48 = vld [vmem:[#allocation3 + $0x4a] sm:$0xff] }
 0x3f5   : > { %v7360_v14 = vpop.f32.mrf.mxu1  ;;  %v3240_v32 = vpop.f32.mrf.mxu2  ;;  %4313 = vmatpush.msra.mxu0 %v4284_v19  ;;  %v7387_v19 = vld [vmem:[#allocation3 + $0x180] sm:$0xff] }
 0x3f6   : > { %v3402_v38 = vpop.f32.mrf.mxu3  ;;  %v3241_v23 = vadd.f32 %v3240_v32, %v7212_v57  ;;  %v4283_v57 = vld [vmem:[#allocation4 + $0x380] sm:$0xff] }
 0x3f7   : > { %4314 = vmatpush.msra.mxu0 %v4283_v57 }
 0x3f8   : > { %3774 = vmatmul.f32.gmra.mxu1 %v7363_v1  ;;  %v7366_v20 = vadd.f32 %v3402_v38, %v3241_v23  ;;  %v7377_v23 = vld [vmem:[#allocation3 + $0xc9] sm:$0xff] }
 0x3f9   : > { %v7368_v16 = vpop.f32.mrf.mxu0 }
 0x3fa   : > { %8457 = vst [vmem:[#allocation28_spill] sm:$0xff] %v7366_v20  ;;  %3938 = vmatmul.f32.gmra.mxu2 %v7370_v48  ;;  %v7403_v20 = vld [vmem:[#allocation3 + $0x188] sm:$0xff] }
 0x3fb   : > { %8458 = vst [vmem:[#allocation9_spill] sm:$0xff] %v7368_v16  ;;  %4133 = vmatmul.f32.gmra.mxu3 %v4060_v27  ;;  %v7384_v27 = vld [vmem:[#allocation3 + $0x52] sm:$0xff] }
 0x3fc   : > { %3625 = vmatmul.f32.gmra.mxu0 %v7306_v12  ;;  %v4061_v12 = vld [vmem:[#allocation3 + $0x68] sm:$0xff] }
 0x3fd   : > { %v7374_v29 = vpop.f32.mrf.mxu1  ;;  %v3243_v54 = vpop.f32.mrf.mxu2 }
 0x3fe   : > { %v3405_v32 = vpop.f32.mrf.mxu3  ;;  %v3244_v38 = vadd.f32 %v3243_v54, %v7226_v46 }
 0x400   : > { %3777 = vmatmul.f32.gmra.mxu1 %v7377_v23  ;;  %v7380_v42 = vadd.f32 %v3405_v32, %v3244_v38  ;;  %v7393_v32 = vld [vmem:[#allocation3 + $0xd9] sm:$0xff] }
 0x401   : > { %v7382_v16 = vpop.f32.mrf.mxu0 }
 0x402   : > { %8459 = vst [vmem:[#allocation29_spill] sm:$0xff] %v7380_v42  ;;  %3941 = vmatmul.f32.gmra.mxu2 %v7384_v27  ;;  %v7400_v42 = vld [vmem:[#allocation3 + $0x62] sm:$0xff] }
 0x403   : > { %8460 = vst [vmem:[#allocation11_spill] sm:$0xff] %v7382_v16  ;;  %4136 = vmatmul.f32.gmra.mxu3 %v4061_v12  ;;  %v4062_v12 = vld [vmem:[#allocation3 + $0x78] sm:$0xff] }
 0x404   : > { %3628 = vmatmul.f32.gmra.mxu0 %v7387_v19 }
 0x405   : > { %v7390_v46 = vpop.f32.mrf.mxu1  ;;  %v3246_v54 = vpop.f32.mrf.mxu2 }
 0x406   : > { %v3408_v57 = vpop.f32.mrf.mxu3  ;;  %v3247_v53 = vadd.f32 %v3246_v54, %v7240_v47 }
 0x408   : > { %3780 = vmatmul.f32.gmra.mxu1 %v7393_v32  ;;  %v7396_v38 = vadd.f32 %v3408_v57, %v3247_v53  ;;  %v7409_v53 = vld [vmem:[#allocation3 + $0xe1] sm:$0xff] }
 0x409   : > { %v7398_v16 = vpop.f32.mrf.mxu0 }
 0x40a   : > { %8461 = vst [vmem:[#allocation30_spill] sm:$0xff] %v7396_v38  ;;  %3944 = vmatmul.f32.gmra.mxu2 %v7400_v42  ;;  %v7416_v38 = vld [vmem:[#allocation3 + $0x6a] sm:$0xff] }
 0x40b   : > { %8462 = vst [vmem:[#allocation12_spill] sm:$0xff] %v7398_v16  ;;  %4139 = vmatmul.f32.gmra.mxu3 %v4062_v12  ;;  %v4063_v12 = vld [vmem:[#allocation3 + $0x80] sm:$0xff] }
 0x40c   : > { %3631 = vmatmul.f32.gmra.mxu0 %v7403_v20 }
 0x40d   : > { %v7406_v26 = vpop.f32.mrf.mxu1  ;;  %v3249_v47 = vpop.f32.mrf.mxu2 }
 0x40e   : > { %v3411_v54 = vpop.f32.mrf.mxu3  ;;  %v3250_v52 = vadd.f32 %v3249_v47, %v7254_v31 }
 0x410   : > { %3783 = vmatmul.f32.gmra.mxu1 %v7409_v53  ;;  %v7412_v57 = vadd.f32 %v3411_v54, %v3250_v52 }
 0x411   : > { %v7414_v16 = vpop.f32.mrf.mxu0 }
 0x412   : > { %8463 = vst [vmem:[#allocation31_spill] sm:$0xff] %v7412_v57  ;;  %3947 = vmatmul.f32.gmra.mxu2 %v7416_v38  ;;  %v4064_v57 = vld [vmem:[#allocation3 + $0x90] sm:$0xff] }
 0x413   : > { %8464 = vst [vmem:[#allocation13_spill] sm:$0xff] %v7414_v16  ;;  %4142 = vmatmul.f32.gmra.mxu3 %v4063_v12  ;;  %v7430_v16 = vld [vmem:[#allocation3 + $0x7a] sm:$0xff] }
 0x414   : > { %4315 = vmatmul.f32.vlgmr.msra.gmra.mxu0 %v7201_v22 }
 0x415   : > { %v7420_v36 = vpop.f32.mrf.mxu1  ;;  %v3252_v15 = vpop.f32.mrf.mxu2 }
 0x416   : > { %v3414_v31 = vpop.f32.mrf.mxu3  ;;  %v3253_v47 = vadd.f32 %v3252_v15, %v7268_v44 }
 0x418   : > { %3786 = vmatmul.f32.gmra.mxu1 %v7423_v40  ;;  %v7426_v52 = vadd.f32 %v3414_v31, %v3253_v47 }
 0x419   : > { %v7428_v54 = vpop.f32.mrf.mxu0 }
 0x41a   : > { %8465 = vst [vmem:[#allocation32_spill] sm:$0xff] %v7426_v52  ;;  %3950 = vmatmul.f32.gmra.mxu2 %v7430_v16  ;;  %v4065_v52 = vld [vmem:[#allocation3 + $0x98] sm:$0xff] }
 0x41b   : > { %8466 = vst [vmem:[#allocation14_spill] sm:$0xff] %v7428_v54  ;;  %4145 = vmatmul.f32.gmra.mxu3 %v4064_v57  ;;  %v7444_v54 = vld [vmem:[#allocation3 + $0x82] sm:$0xff] }
 0x41c   : > { %4318 = vmatmul.f32.gmra.mxu0 %v7215_v10 }
 0x41d   : > { %v7434_v22 = vpop.f32.mrf.mxu1  ;;  %v3255_v12 = vpop.f32.mrf.mxu2 }
 0x41e   : > { %v3417_v15 = vpop.f32.mrf.mxu3  ;;  %v3256_v44 = vadd.f32 %v3255_v12, %v7282_v11 }
 0x420   : > { %3789 = vmatmul.f32.gmra.mxu1 %v7437_v2  ;;  %v7440_v31 = vadd.f32 %v3417_v15, %v3256_v44 }
 0x421   : > { %v7442_v47 = vpop.f32.mrf.mxu0 }
 0x422   : > { %8467 = vst [vmem:[#allocation33_spill] sm:$0xff] %v7440_v31  ;;  %3953 = vmatmul.f32.gmra.mxu2 %v7444_v54  ;;  %v4066_v31 = vld [vmem:[#allocation3 + $0xa8] sm:$0xff] }
 0x423   : > { %8468 = vst [vmem:[#allocation15_spill] sm:$0xff] %v7442_v47  ;;  %4148 = vmatmul.f32.gmra.mxu3 %v4065_v52  ;;  %v7458_v47 = vld [vmem:[#allocation3 + $0x92] sm:$0xff] }
 0x424   : > { %4321 = vmatmul.f32.gmra.mxu0 %v7229_v49  ;;  %8471 = vst [vmem:[#allocation37_spill] sm:$0xff] %v7458_v47 }
 0x425   : > { %v7448_v10 = vpop.f32.mrf.mxu1  ;;  %v3258_v57 = vpop.f32.mrf.mxu2 }
 0x426   : > { %v3420_v11 = vpop.f32.mrf.mxu3  ;;  %v3259_v12 = vadd.f32 %v3258_v57, %v7296_v43 }
 0x428   : > { %3792 = vmatmul.f32.gmra.mxu1 %v7451_v56  ;;  %v7454_v15 = vadd.f32 %v3420_v11, %v3259_v12 }
 0x429   : > { %v7456_v44 = vpop.f32.mrf.mxu0 }
 0x42a   : > { %8469 = vst [vmem:[#allocation35_spill] sm:$0xff] %v7454_v15  ;;  %3956 = vmatmul.f32.gmra.mxu2 %v7458_v47  ;;  %v7472_v15 = vld [vmem:[#allocation3 + $0x9a] sm:$0xff] }
 0x42b   : > { %8470 = vst [vmem:[#allocation16_spill] sm:$0xff] %v7456_v44  ;;  %4151 = vmatmul.f32.gmra.mxu3 %v4066_v31  ;;  %v4067_v44 = vld [vmem:[#allocation3 + $0xb0] sm:$0xff]  ;;  %v7479_v47 = vld [vmem:[#allocation3 + $0x121] sm:$0xff] }
 0x42c   : > { %4324 = vmatmul.f32.gmra.mxu0 %v7243_v6  ;;  %8474 = vst [vmem:[#allocation18_spill] sm:$0xff] %v7472_v15 }
 0x42d   : > { %v7462_v49 = vpop.f32.mrf.mxu1  ;;  %v3261_v52 = vpop.f32.mrf.mxu2 }
 0x42e   : > { %v3423_v43 = vpop.f32.mrf.mxu3  ;;  %v3262_v57 = vadd.f32 %v3261_v52, %v7310_v35 }
 0x430   : > { %3795 = vmatmul.f32.gmra.mxu1 %v7465_v17  ;;  %v7468_v11 = vadd.f32 %v3423_v43, %v3262_v57 }
 0x431   : > { %v7470_v12 = vpop.f32.mrf.mxu0 }
 0x432   : > { %8472 = vst [vmem:[#allocation17_spill] sm:$0xff] %v7468_v11  ;;  %3959 = vmatmul.f32.gmra.mxu2 %v7472_v15  ;;  %v7486_v11 = vld [vmem:[#allocation3 + $0xaa] sm:$0xff] }
 0x433   : > { %8473 = vst [vmem:[#allocation39_spill] sm:$0xff] %v7470_v12  ;;  %4154 = vmatmul.f32.gmra.mxu3 %v4067_v44  ;;  %v4068_v12 = vld [vmem:[#allocation3 + $0xc0] sm:$0xff]  ;;  %v7493_v15 = vld [vmem:[#allocation3 + $0x129] sm:$0xff] }
 0x434   : > { %4327 = vmatmul.f32.gmra.mxu0 %v7257_v55  ;;  %8477 = vst [vmem:[#allocation42_spill] sm:$0xff] %v7486_v11 }
 0x435   : > { %v7476_v6 = vpop.f32.mrf.mxu1  ;;  %v3264_v31 = vpop.f32.mrf.mxu2 }
 0x436   : > { %v3426_v35 = vpop.f32.mrf.mxu3  ;;  %v3265_v52 = vadd.f32 %v3264_v31, %v7321_v59 }
 0x438   : > { %3798 = vmatmul.f32.gmra.mxu1 %v7479_v47  ;;  %v7482_v43 = vadd.f32 %v3426_v35, %v3265_v52 }
 0x439   : > { %v7484_v57 = vpop.f32.mrf.mxu0 }
 0x43a   : > { %8475 = vst [vmem:[#allocation41_spill] sm:$0xff] %v7482_v43  ;;  %3962 = vmatmul.f32.gmra.mxu2 %v7486_v11  ;;  %v7500_v43 = vld [vmem:[#allocation3 + $0xb2] sm:$0xff] }
 0x43b   : > { %8476 = vst [vmem:[#allocation19_spill] sm:$0xff] %v7484_v57  ;;  %4157 = vmatmul.f32.gmra.mxu3 %v4068_v12  ;;  %v4069_v57 = vld [vmem:[#allocation3 + $0xc8] sm:$0xff]  ;;  %v7507_v11 = vld [vmem:[#allocation3 + $0x139] sm:$0xff] }
 0x43c   : > { %4330 = vmatmul.f32.gmra.mxu0 %v7271_v28  ;;  %8480 = vst [vmem:[#allocation46_spill] sm:$0xff] %v7500_v43 }
 0x43d   : > { %v7490_v55 = vpop.f32.mrf.mxu1  ;;  %v3267_v44 = vpop.f32.mrf.mxu2 }
 0x43e   : > { %v3429_v59 = vpop.f32.mrf.mxu3  ;;  %v3268_v31 = vadd.f32 %v3267_v44, %v7332_v0 }
 0x440   : > { %3801 = vmatmul.f32.gmra.mxu1 %v7493_v15  ;;  %v7496_v35 = vadd.f32 %v3429_v59, %v3268_v31 }
 0x441   : > { %v7498_v52 = vpop.f32.mrf.mxu0 }
 0x442   : > { %8478 = vst [vmem:[#allocation44_spill] sm:$0xff] %v7496_v35  ;;  %3965 = vmatmul.f32.gmra.mxu2 %v7500_v43  ;;  %v7514_v35 = vld [vmem:[#allocation3 + $0xc2] sm:$0xff] }
 0x443   : > { %8479 = vst [vmem:[#allocation45_spill] sm:$0xff] %v7498_v52  ;;  %4160 = vmatmul.f32.gmra.mxu3 %v4069_v57  ;;  %v4070_v52 = vld [vmem:[#allocation3 + $0xd8] sm:$0xff] }
 0x444   : > { %4333 = vmatmul.f32.gmra.mxu0 %v7285_v7  ;;  %8483 = vst [vmem:[#allocation49_spill] sm:$0xff] %v7514_v35  ;;  %v4492_v7 = vld [vmem:[#allocation4 + $0x478] sm:$0xff] }
 0x445   : > { %v7504_v28 = vpop.f32.mrf.mxu1  ;;  %v3270_v12 = vpop.f32.mrf.mxu2  ;;  %4493 = vmatpush.msra.mxu1 %v4492_v7  ;;  %v7528_v7 = vld [vmem:[#allocation3 + $0xca] sm:$0xff] }
 0x446   : > { %v3432_v0 = vpop.f32.mrf.mxu3  ;;  %v3271_v44 = vadd.f32 %v3270_v12, %v7346_v33  ;;  %v4491_v33 = vld [vmem:[#allocation4 + $0x470] sm:$0xff]  ;;  %8487 = vst [vmem:[#allocation53_spill] sm:$0xff] %v7528_v7 }
 0x447   : > { %4494 = vmatpush.msra.mxu1 %v4491_v33  ;;  %v4488_v33 = vld [vmem:[#allocation4 + $0x458] sm:$0xff] }
 0x448   : > { %3804 = vmatmul.f32.gmra.mxu1 %v7507_v11  ;;  %v7510_v59 = vadd.f32 %v3432_v0, %v3271_v44  ;;  %v7521_v44 = vld [vmem:[#allocation3 + $0x141] sm:$0xff] }
 0x449   : > { %v7512_v31 = vpop.f32.mrf.mxu0 }
 0x44a   : > { %8481 = vst [vmem:[#allocation47_spill] sm:$0xff] %v7510_v59  ;;  %3968 = vmatmul.f32.gmra.mxu2 %v7514_v35  ;;  %v4490_v59 = vld [vmem:[#allocation4 + $0x468] sm:$0xff]  ;;  %v4071_v35 = vld [vmem:[#allocation3 + $0xe0] sm:$0xff] }
 0x44b   : > { %8482 = vst [vmem:[#allocation48_spill] sm:$0xff] %v7512_v31  ;;  %4163 = vmatmul.f32.gmra.mxu3 %v4070_v52  ;;  %4495 = vmatpush.msra.mxu1 %v4490_v59  ;;  %v7535_v59 = vld [vmem:[#allocation3 + $0x151] sm:$0xff] }
 0x44c   : > { %4336 = vmatmul.f32.gmra.mxu0 %v7299_v21  ;;  %v4489_v21 = vld [vmem:[#allocation4 + $0x460] sm:$0xff] }
 0x44d   : > { %v7518_v57 = vpop.f32.mrf.mxu1  ;;  %v3273_v12 = vpop.f32.mrf.mxu2  ;;  %4496 = vmatpush.msra.mxu1 %v4489_v21  ;;  %v4072_v21 = vld [vmem:[#allocation3 + $0xf0] sm:$0xff] }
 0x44e   : > { %8484 = vst [vmem:[#allocation50_spill] sm:$0xff] %v7518_v57  ;;  %v3435_v43 = vpop.f32.mrf.mxu3  ;;  %v3274_v0 = vadd.f32 %v3273_v12, %v7360_v14 }
 0x44f   : > { %4497 = vmatpush.msra.mxu1 %v4488_v33 }
 0x450   : > { %3807 = vmatmul.f32.gmra.mxu1 %v7521_v44  ;;  %v7524_v31 = vadd.f32 %v3435_v43, %v3274_v0  ;;  %v4487_v43 = vld [vmem:[#allocation4 + $0x450] sm:$0xff] }
 0x451   : > { %v7526_v52 = vpop.f32.mrf.mxu0  ;;  %4498 = vmatpush.msra.mxu1 %v4487_v43 }
 0x452   : > { %8485 = vst [vmem:[#allocation51_spill] sm:$0xff] %v7524_v31  ;;  %3971 = vmatmul.f32.gmra.mxu2 %v7528_v7  ;;  %v3635_v7 = vadd.f32 %v7192_v34, %v7107_v9 }
 0x453   : > { %8486 = vst [vmem:[#allocation52_spill] sm:$0xff] %v7526_v52  ;;  %4166 = vmatmul.f32.gmra.mxu3 %v4071_v35  ;;  %v4486_v35 = vld [vmem:[#allocation4 + $0x448] sm:$0xff] }
 0x454   : > { %4339 = vmatmul.f32.gmra.mxu0 %v7313_v18  ;;  %v7542_v18 = vld [vmem:[#allocation3 + $0xda] sm:$0xff]  ;;  %4499 = vmatpush.msra.mxu1 %v4486_v35  ;;  %v7558_v35 = vld [vmem:[#allocation3 + $0xe2] sm:$0xff] }
 0x455   : > { %v7532_v14 = vpop.f32.mrf.mxu1  ;;  %v3276_v12 = vpop.f32.mrf.mxu2 }
 0x456   : > { %v3438_v57 = vpop.f32.mrf.mxu3  ;;  %v3277_v0 = vadd.f32 %v3276_v12, %v7374_v29  ;;  %v4485_v29 = vld [vmem:[#allocation4 + $0x440] sm:$0xff] }
 0x457   : > { %4500 = vmatpush.msra.mxu1 %v4485_v29 }
 0x458   : > { %3810 = vmatmul.f32.gmra.mxu1 %v7535_v59  ;;  %v7538_v31 = vadd.f32 %v3438_v57, %v3277_v0  ;;  %v3829_v57 = vadd.f32 %v7390_v46, %v3635_v7  ;;  %v4484_v0 = vld [vmem:[#allocation4 + $0x438] sm:$0xff]  ;;  %v4073_v46 = vld [vmem:[#allocation3 + $0xf8] sm:$0xff]  ;;  %v3636_v7 = vadd.f32 %v7206_v39, %v7122_v8 }
 0x459   : > { %v7540_v52 = vpop.f32.mrf.mxu0  ;;  %4501 = vmatpush.msra.mxu1 %v4484_v0 }
 0x45a   : > { %8488 = vst [vmem:[#allocation54_spill] sm:$0xff] %v7538_v31  ;;  %3974 = vmatmul.f32.gmra.mxu2 %v7542_v18 }
 0x45b   : > { %8489 = vst [vmem:[#allocation55_spill] sm:$0xff] %v7540_v52  ;;  %4169 = vmatmul.f32.gmra.mxu3 %v4072_v21  ;;  %v7551_v52 = vld [vmem:[#allocation3 + $0x159] sm:$0xff] }
 0x45c   : > { %4342 = vmatmul.f32.gmra.mxu0 %v7324_v24  ;;  %v4483_v24 = vld [vmem:[#allocation4 + $0x430] sm:$0xff]  ;;  %v4482_v21 = vld [vmem:[#allocation4 + $0x428] sm:$0xff] }
 0x45d   : > { %v7549_v33 = vpop.f32.mrf.mxu1  ;;  %v3927_v12 = vpop.f32.mrf.mxu2  ;;  %4502 = vmatpush.msra.mxu1 %v4483_v24  ;;  %v7574_v24 = vld [vmem:[#allocation3 + $0xf2] sm:$0xff] }
 0x45e   : > { %v4122_v43 = vpop.f32.mrf.mxu3  ;;  %v4023_v31 = vadd.f32 %v3927_v12, %v3829_v57 }
 0x45f   : > { %4503 = vmatpush.msra.mxu1 %v4482_v21 }
 0x460   : > { %3813 = vmatmul.f32.gmra.mxu1 %v7551_v52  ;;  %v7554_v9 = vadd.f32 %v4122_v43, %v4023_v31  ;;  %v3830_v31 = vadd.f32 %v7406_v26, %v3636_v7  ;;  %v4481_v43 = vld [vmem:[#allocation4 + $0x420] sm:$0xff]  ;;  %v4074_v26 = vld [vmem:[#allocation3 + $0x108] sm:$0xff]  ;;  %v4479_v7 = vld [vmem:[#allocation4 + $0x410] sm:$0xff] }
 0x461   : > { %v7556_v34 = vpop.f32.mrf.mxu0  ;;  %4504 = vmatpush.msra.mxu1 %v4481_v43  ;;  %v4478_v43 = vld [vmem:[#allocation4 + $0x408] sm:$0xff] }
 0x462   : > { %8490 = vst [vmem:[#allocation56_spill] sm:$0xff] %v7556_v34  ;;  %3977 = vmatmul.f32.gmra.mxu2 %v7558_v35  ;;  %v7567_v34 = vld [vmem:[#allocation3 + $0x169] sm:$0xff] }
 0x463   : > { %4172 = vmatmul.f32.gmra.mxu3 %v4073_v46  ;;  %v3637_v46 = vadd.f32 %v7220_v45, %v7137_v3 }
 0x464   : > { %4345 = vmatmul.f32.gmra.mxu0 %v7335_v37  ;;  %v4480_v37 = vld [vmem:[#allocation4 + $0x418] sm:$0xff] }
 0x465   : > { %v7565_v29 = vpop.f32.mrf.mxu1  ;;  %v3930_v57 = vpop.f32.mrf.mxu2  ;;  %4505 = vmatpush.msra.mxu1 %v4480_v37  ;;  %v3831_v21 = vadd.f32 %v7420_v36, %v3637_v46  ;;  %v7590_v37 = vld [vmem:[#allocation3 + $0xfa] sm:$0xff]  ;;  %v4075_v36 = vld [vmem:[#allocation3 + $0x110] sm:$0xff] }
 0x466   : > { %8491 = vst [vmem:[#allocation57_spill] sm:$0xff] %v7565_v29  ;;  %v4125_v12 = vpop.f32.mrf.mxu3  ;;  %v4024_v0 = vadd.f32 %v3930_v57, %v3830_v31 }
 0x467   : > { %4506 = vmatpush.msra.mxu1 %v4479_v7 }
 0x468   : > { %3816 = vmatmul.f32.gmra.mxu1 %v7567_v34  ;;  %v7570_v8 = vadd.f32 %v4125_v12, %v4024_v0 }
 0x469   : > { %v7572_v39 = vpop.f32.mrf.mxu0  ;;  %4507 = vmatpush.msra.mxu1 %v4478_v43  ;;  %v7599_v43 = vld [vmem:[#allocation3 + $0x181] sm:$0xff] }
 0x46a   : > { %8492 = vst [vmem:[#allocation58_spill] sm:$0xff] %v7572_v39  ;;  %3980 = vmatmul.f32.gmra.mxu2 %v7574_v24  ;;  %v7583_v39 = vld [vmem:[#allocation3 + $0x171] sm:$0xff] }
 0x46b   : > { %4175 = vmatmul.f32.gmra.mxu3 %v4074_v26  ;;  %v3638_v26 = vadd.f32 %v7234_v51, %v7152_v13  ;;  %v7606_v51 = vld [vmem:[#allocation3 + $0x10a] sm:$0xff] }
 0x46c   : > { %4348 = vmatmul.f32.gmra.mxu0 %v7349_v60  ;;  %v4477_v60 = vld [vmem:[#allocation4 + $0x400] sm:$0xff] }
 0x46d   : > { %v7581_v31 = vpop.f32.mrf.mxu1  ;;  %v3933_v57 = vpop.f32.mrf.mxu2  ;;  %4508 = vmatpush.msra.mxu1 %v4477_v60  ;;  %v3832_v46 = vadd.f32 %v7434_v22, %v3638_v26 }
 0x46e   : > { %8493 = vst [vmem:[#allocation59_spill] sm:$0xff] %v7581_v31  ;;  %v4128_v12 = vpop.f32.mrf.mxu3  ;;  %v4025_v0 = vadd.f32 %v3933_v57, %v3831_v21 }
 0x470   : > { %3819 = vmatmul.f32.gmra.mxu1 %v7583_v39  ;;  %v7586_v3 = vadd.f32 %v4128_v12, %v4025_v0 }
 0x471   : > { %v7588_v45 = vpop.f32.mrf.mxu0 }
 0x472   : > { %8494 = vst [vmem:[#allocation60_spill] sm:$0xff] %v7588_v45  ;;  %3983 = vmatmul.f32.gmra.mxu2 %v7590_v37 }
 0x473   : > { %4178 = vmatmul.f32.gmra.mxu3 %v4075_v36  ;;  %v4076_v36 = vld [vmem:[#allocation3 + $0x120] sm:$0xff] }
 0x474   : > { %4351 = vmatmul.f32.gmra.mxu0 %v7363_v1  ;;  %v3639_v1 = vadd.f32 %v7248_v4, %v7167_v5  ;;  %v7622_v5 = vld [vmem:[#allocation3 + $0x112] sm:$0xff]  ;;  %v4077_v4 = vld [vmem:[#allocation3 + $0x128] sm:$0xff] }
 0x475   : > { %v7597_v7 = vpop.f32.mrf.mxu1  ;;  %v3936_v21 = vpop.f32.mrf.mxu2 }
 0x476   : > { %8495 = vst [vmem:[#allocation61_spill] sm:$0xff] %v7597_v7  ;;  %v4131_v57 = vpop.f32.mrf.mxu3  ;;  %v4026_v12 = vadd.f32 %v3936_v21, %v3832_v46  ;;  %v3833_v22 = vadd.f32 %v7448_v10, %v3639_v1  ;;  %v8512_v7 = vld [vmem:[#allocation25_spill] sm:$0xff] }
 0x478   : > { %3822 = vmatmul.f32.gmra.mxu1 %v7599_v43  ;;  %v7602_v0 = vadd.f32 %v4131_v57, %v4026_v12  ;;  %v7615_v57 = vld [vmem:[#allocation3 + $0x189] sm:$0xff] }
 0x479   : > { %v7604_v13 = vpop.f32.mrf.mxu0 }
 0x47a   : > { %8496 = vst [vmem:[#allocation62_spill] sm:$0xff] %v7604_v13  ;;  %3986 = vmatmul.f32.gmra.mxu2 %v7606_v51 }
 0x47b   : > { %4181 = vmatmul.f32.gmra.mxu3 %v4076_v36 }
 0x47c   : > { %4354 = vmatmul.f32.gmra.mxu0 %v7377_v23  ;;  %v3640_v23 = vadd.f32 %v7262_v30, %v7180_v63  ;;  %v4078_v63 = vld [vmem:[#allocation3 + $0x138] sm:$0xff]  ;;  %v3641_v30 = vadd.f32 %v7276_v61, %v7190_v50  ;;  %v4079_v50 = vld [vmem:[#allocation3 + $0x140] sm:$0xff]  ;;  %v3642_v61 = vadd.f32 %v7290_v25, %v7204_v41  ;;  %v4080_v41 = vld [vmem:[#allocation3 + $0x150] sm:$0xff] }
 0x47d   : > { %v7613_v60 = vpop.f32.mrf.mxu1  ;;  %v3939_v26 = vpop.f32.mrf.mxu2 }
 0x47e   : > { %8497 = vst [vmem:[#allocation63_spill] sm:$0xff] %v7613_v60  ;;  %v4134_v46 = vpop.f32.mrf.mxu3  ;;  %v4027_v21 = vadd.f32 %v3939_v26, %v3833_v22  ;;  %v3834_v10 = vadd.f32 %v7462_v49, %v3640_v23  ;;  %v8511_v60 = vld [vmem:[#allocation20_spill] sm:$0xff] }
 0x47f   : > { %v3643_v31 = vadd.f32 %v8512_v7, %v8511_v60  ;;  %v8515_v60 = vld [vmem:[#allocation10_spill] sm:$0xff] }
 0x480   : > { %3825 = vmatmul.f32.gmra.mxu1 %v7615_v57  ;;  %v7618_v12 = vadd.f32 %v4134_v46, %v4027_v21 }
 0x481   : > { %v7620_v13 = vpop.f32.mrf.mxu0 }
 0x482   : > { %8498 = vst [vmem:[#allocation64_spill] sm:$0xff] %v7620_v13  ;;  %3989 = vmatmul.f32.gmra.mxu2 %v7622_v5  ;;  %v7636_v13 = vld [vmem:[#allocation3 + $0x122] sm:$0xff] }
 0x483   : > { %4184 = vmatmul.f32.gmra.mxu3 %v4077_v4 }
 0x484   : > { %4357 = vmatmul.f32.gmra.mxu0 %v7393_v32  ;;  %v3835_v32 = vadd.f32 %v7476_v6, %v3641_v30 }
 0x485   : > { %v7629_v36 = vpop.f32.mrf.mxu1  ;;  %v3942_v1 = vpop.f32.mrf.mxu2 }
 0x486   : > { %8499 = vst [vmem:[#allocation65_spill] sm:$0xff] %v7629_v36  ;;  %v4137_v22 = vpop.f32.mrf.mxu3  ;;  %v4028_v26 = vadd.f32 %v3942_v1, %v3834_v10 }
 0x488   : > { %4509 = vmatmul.f32.vlgmr.msra.gmra.mxu1 %v7342_v62  ;;  %v7632_v46 = vadd.f32 %v4137_v22, %v4028_v26  ;;  %v7650_v22 = vld [vmem:[#allocation3 + $0x12a] sm:$0xff] }
 0x489   : > { %v7634_v21 = vpop.f32.mrf.mxu0 }
 0x48a   : > { %8500 = vst [vmem:[#allocation66_spill] sm:$0xff] %v7634_v21  ;;  %3992 = vmatmul.f32.gmra.mxu2 %v7636_v13 }
 0x48b   : > { %4187 = vmatmul.f32.gmra.mxu3 %v4078_v63 }
 0x48c   : > { %4360 = vmatmul.f32.gmra.mxu0 %v7409_v53  ;;  %v3836_v53 = vadd.f32 %v7490_v55, %v3642_v61 }
 0x48d   : > { %v7643_v49 = vpop.f32.mrf.mxu1  ;;  %v3945_v62 = vpop.f32.mrf.mxu2 }
 0x48e   : > { %8501 = vst [vmem:[#allocation67_spill] sm:$0xff] %v7643_v49  ;;  %v4140_v4 = vpop.f32.mrf.mxu3  ;;  %v4029_v23 = vadd.f32 %v3945_v62, %v3835_v32  ;;  %v7664_v62 = vld [vmem:[#allocation3 + $0x13a] sm:$0xff] }
 0x490   : > { %4512 = vmatmul.f32.gmra.mxu1 %v7356_v58  ;;  %v7646_v10 = vadd.f32 %v4140_v4, %v4029_v23  ;;  %v7675_v4 = vld [vmem:[#allocation3 + $0x142] sm:$0xff]  ;;  %v4081_v23 = vld [vmem:[#allocation3 + $0x158] sm:$0xff] }
 0x491   : > { %v7648_v1 = vpop.f32.mrf.mxu0 }
 0x492   : > { %3995 = vmatmul.f32.gmra.mxu2 %v7650_v22 }
 0x493   : > { %4190 = vmatmul.f32.gmra.mxu3 %v4079_v50 }
 0x494   : > { %4363 = vmatmul.f32.gmra.mxu0 %v7423_v40 }
 0x495   : > { %v7657_v6 = vpop.f32.mrf.mxu1  ;;  %v3948_v58 = vpop.f32.mrf.mxu2 }
 0x496   : > { %8502 = vst [vmem:[#allocation68_spill] sm:$0xff] %v7657_v6  ;;  %v4143_v26 = vpop.f32.mrf.mxu3  ;;  %v4030_v63 = vadd.f32 %v3948_v58, %v3836_v53  ;;  %v4082_v58 = vld [vmem:[#allocation3 + $0x168] sm:$0xff] }
 0x498   : > { %4515 = vmatmul.f32.gmra.mxu1 %v7370_v48  ;;  %v7660_v30 = vadd.f32 %v4143_v26, %v4030_v63 }
 0x499   : > { %v7662_v32 = vpop.f32.mrf.mxu0 }
 0x49a   : > { %3998 = vmatmul.f32.gmra.mxu2 %v7664_v62 }
 0x49b   : > { %4193 = vmatmul.f32.gmra.mxu3 %v4080_v41 }
 0x49c   : > { %4366 = vmatmul.f32.gmra.mxu0 %v7437_v2 }
 0x49d   : > { %v7668_v25 = vpop.f32.mrf.mxu1  ;;  %v3951_v40 = vpop.f32.mrf.mxu2 }
 0x49e   : > { %v7670_v55 = vpop.f32.mrf.mxu3 }
 0x4a0   : > { %4518 = vmatmul.f32.gmra.mxu1 %v7384_v27  ;;  %v7686_v27 = vld [vmem:[#allocation3 + $0x152] sm:$0xff] }
 0x4a1   : > { %v7673_v48 = vpop.f32.mrf.mxu0  ;;  %8503 = vst [vmem:[#allocation69_spill] sm:$0xff] %v7686_v27 }
 0x4a2   : > { %4001 = vmatmul.f32.gmra.mxu2 %v7675_v4 }
 0x4a3   : > { %4196 = vmatmul.f32.gmra.mxu3 %v4081_v23  ;;  %v4083_v23 = vld [vmem:[#allocation3 + $0x170] sm:$0xff] }
 0x4a4   : > { %4369 = vmatmul.f32.gmra.mxu0 %v7451_v56 }
 0x4a5   : > { %v7679_v50 = vpop.f32.mrf.mxu1  ;;  %v3954_v2 = vpop.f32.mrf.mxu2 }
 0x4a6   : > { %v7681_v61 = vpop.f32.mrf.mxu3 }
 0x4a8   : > { %4521 = vmatmul.f32.gmra.mxu1 %v7400_v42  ;;  %v7699_v42 = vld [vmem:[#allocation3 + $0x15a] sm:$0xff] }
 0x4a9   : > { %v7684_v53 = vpop.f32.mrf.mxu0  ;;  %8504 = vst [vmem:[#allocation70_spill] sm:$0xff] %v7699_v42 }
 0x4aa   : > { %4004 = vmatmul.f32.gmra.mxu2 %v7686_v27 }
 0x4ab   : > { %4199 = vmatmul.f32.gmra.mxu3 %v4082_v58 }
 0x4ac   : > { %4372 = vmatmul.f32.gmra.mxu0 %v7465_v17 }
 0x4ad   : > { %v7690_v26 = vpop.f32.mrf.mxu1  ;;  %v7692_v56 = vpop.f32.mrf.mxu2 }
 0x4ae   : > { %v7694_v63 = vpop.f32.mrf.mxu3 }
 0x4b0   : > { %4524 = vmatmul.f32.gmra.mxu1 %v7416_v38  ;;  %v7712_v38 = vld [vmem:[#allocation3 + $0x16a] sm:$0xff] }
 0x4b1   : > { %v7697_v41 = vpop.f32.mrf.mxu0  ;;  %8505 = vst [vmem:[#allocation71_spill] sm:$0xff] %v7712_v38 }
 0x4b2   : > { %4007 = vmatmul.f32.gmra.mxu2 %v7699_v42 }
 0x4b3   : > { %4202 = vmatmul.f32.gmra.mxu3 %v4083_v23 }
 0x4b4   : > { %4375 = vmatmul.f32.gmra.mxu0 %v7479_v47 }
 0x4b5   : > { %v7703_v58 = vpop.f32.mrf.mxu1  ;;  %v7705_v17 = vpop.f32.mrf.mxu2 }
 0x4b6   : > { %v7707_v21 = vpop.f32.mrf.mxu3 }
 0x4b8   : > { %4527 = vmatmul.f32.gmra.mxu1 %v7430_v16  ;;  %v7726_v16 = vld [vmem:[#allocation3 + $0x172] sm:$0xff] }
 0x4b9   : > { %v7710_v45 = vpop.f32.mrf.mxu0  ;;  %8508 = vst [vmem:[#allocation74_spill] sm:$0xff] %v7726_v16 }
 0x4ba   : > { %4010 = vmatmul.f32.gmra.mxu2 %v7712_v38 }
 0x4bb   : > { %4205 = vmatmul.f32.gmra.mxu3 %v7387_v19 }
 0x4bc   : > { %4378 = vmatmul.f32.gmra.mxu0 %v7493_v15 }
 0x4bd   : > { %v7717_v23 = vpop.f32.mrf.mxu1  ;;  %v7719_v47 = vpop.f32.mrf.mxu2 }
 0x4be   : > { %8506 = vst [vmem:[#allocation72_spill] sm:$0xff] %v7719_v47  ;;  %v7721_v6 = vpop.f32.mrf.mxu3  ;;  %v3837_v47 = vadd.f32 %v7504_v28, %v3643_v31  ;;  %v8517_v31 = vld [vmem:[#allocation18_spill] sm:$0xff] }
 0x4bf   : > { %8507 = vst [vmem:[#allocation73_spill] sm:$0xff] %v7721_v6 }
 0x4c0   : > { %4530 = vmatmul.f32.gmra.mxu1 %v7444_v54  ;;  %v8513_v54 = vld [vmem:[#allocation37_spill] sm:$0xff] }
 0x4c1   : > { %v7724_v49 = vpop.f32.mrf.mxu0 }
 0x4c2   : > { %4013 = vmatmul.f32.gmra.mxu2 %v7726_v16  ;;  %v7743_v16 = vld [vmem:[#allocation3 + $0x182] sm:$0xff] }
 0x4c3   : > { %4208 = vmatmul.f32.gmra.mxu3 %v7403_v20  ;;  %8514 = vst [vmem:[#allocation20_spill] sm:$0xff] %v7743_v16  ;;  %v5435_v20 = vld [vmem:[#allocation3] sm:$0xff] }
 0x4c4   : > { %4381 = vmatmul.f32.gmra.mxu0 %v7507_v11  ;;  %v4031_v11 = vadd.f32 %v3951_v40, %v3837_v47  ;;  %v7760_v40 = vld [vmem:[#allocation3 + $0x18a] sm:$0xff] }
 0x4c5   : > { %v7731_v19 = vpop.f32.mrf.mxu1  ;;  %v7733_v15 = vpop.f32.mrf.mxu2 }
 0x4c6   : > { %8509 = vst [vmem:[#allocation75_spill] sm:$0xff] %v7733_v15  ;;  %v7735_v36 = vpop.f32.mrf.mxu3  ;;  %v4226_v28 = vadd.f32 %v7670_v55, %v4031_v11  ;;  %v8520_v11 = vld [vmem:[#allocation34_spill] sm:$0xff] }
 0x4c7   : > { %8510 = vst [vmem:[#allocation76_spill] sm:$0xff] %v7735_v36 }
 0x4c8   : > { %4533 = vmatmul.f32.gmra.mxu1 %v8513_v54  ;;  %v8516_v54 = vld [vmem:[#allocation23_spill] sm:$0xff] }
 0x4c9   : > { %v7740_v6 = vpop.f32.mrf.mxu0  ;;  %v3644_v29 = vadd.f32 %v8516_v54, %v8515_v60  ;;  %v8521_v54 = vld [vmem:[#allocation40_spill] sm:$0xff] }
 0x4ca   : > { %4016 = vmatmul.f32.gmra.mxu2 %v7743_v16  ;;  %v8518_v16 = vld [vmem:[#allocation50_spill] sm:$0xff] }
 0x4cb   : > { %4211 = vmatmul.f32.gmra.mxu3 %v5435_v20  ;;  %v3838_v42 = vadd.f32 %v8518_v16, %v3644_v29 }
 0x4cc   : > { %4384 = vmatmul.f32.gmra.mxu0 %v7521_v44 }
 0x4cd   : > { %v7747_v15 = vpop.f32.mrf.mxu1  ;;  %v7749_v36 = vpop.f32.mrf.mxu2  ;;  %v4032_v44 = vadd.f32 %v3954_v2, %v3838_v42 }
 0x4ce   : > { %v7751_v7 = vpop.f32.mrf.mxu3 }
 0x4cf   : > { %v4227_v29 = vadd.f32 %v7681_v61, %v4032_v44 }
 0x4d0   : > { %4536 = vmatmul.f32.gmra.mxu1 %v8517_v31  ;;  %v3645_v31 = vadd.f32 %v8521_v54, %v8520_v11  ;;  %v8524_v11 = vld [vmem:[#allocation21_spill] sm:$0xff]  ;;  %v8525_v54 = vld [vmem:[#allocation27_spill] sm:$0xff] }
 0x4d1   : > { %v4340_v38 = vpop.f32.mrf.mxu0  ;;  %v3646_v61 = vadd.f32 %v8525_v54, %v8524_v11 }
 0x4d2   : > { %v7758_v27 = vadd.f32 %v4340_v38, %v4226_v28  ;;  %4019 = vmatmul.f32.gmra.mxu2 %v7760_v40  ;;  %v8522_v38 = vld [vmem:[#allocation42_spill] sm:$0xff]  ;;  %v3839_v28 = vadd.f32 %v7532_v14, %v3645_v31 }
 0x4d3   : > { %4214 = vmatmul.f32.gmra.mxu3 %v5435_v20  ;;  %v3840_v31 = vadd.f32 %v7549_v33, %v3646_v61  ;;  %v8530_v61 = vld [vmem:[#allocation53_spill] sm:$0xff] }
 0x4d4   : > { %4387 = vmatmul.f32.gmra.mxu0 %v7535_v59  ;;  %v4033_v59 = vadd.f32 %v7692_v56, %v3839_v28 }
 0x4d5   : > { %v7764_v47 = vpop.f32.mrf.mxu1  ;;  %v7766_v60 = vpop.f32.mrf.mxu2 }
 0x4d6   : > { %8519 = vst [vmem:[#allocation25_spill] sm:$0xff] %v7764_v47  ;;  %v7768_v55 = vpop.f32.mrf.mxu3  ;;  %v4228_v44 = vadd.f32 %v7694_v63, %v4033_v59  ;;  %v8528_v63 = vld [vmem:[#allocation49_spill] sm:$0xff] }
 0x4d8   : > { %4539 = vmatmul.f32.gmra.mxu1 %v8522_v38  ;;  %v8526_v38 = vld [vmem:[#allocation46_spill] sm:$0xff] }
 0x4d9   : > { %v4343_v16 = vpop.f32.mrf.mxu0 }
 0x4da   : > { %v7775_v20 = vadd.f32 %v4343_v16, %v4227_v29 }
 0x4dc   : > { %4390 = vmatmul.f32.gmra.mxu0 %v7551_v52  ;;  %v4034_v52 = vadd.f32 %v7705_v17, %v3840_v31 }
 0x4dd   : > { %v7779_v2 = vpop.f32.mrf.mxu1  ;;  %v7781_v42 = vpop.f32.mrf.mxu2 }
 0x4de   : > { %8523 = vst [vmem:[#allocation37_spill] sm:$0xff] %v7779_v2  ;;  %v7783_v47 = vpop.f32.mrf.mxu3  ;;  %v4229_v11 = vadd.f32 %v7707_v21, %v4034_v52 }
 0x4e0   : > { %4542 = vmatmul.f32.gmra.mxu1 %v8526_v38  ;;  %v8531_v38 = vld [vmem:[#allocation28_spill] sm:$0xff] }
 0x4e1   : > { %v4346_v14 = vpop.f32.mrf.mxu0 }
 0x4e2   : > { %v7790_v29 = vadd.f32 %v4346_v14, %v4228_v44  ;;  %v8532_v14 = vld [vmem:[#allocation16_spill] sm:$0xff] }
 0x4e3   : > { %v3654_v21 = vadd.f32 %v8532_v14, %v8531_v38 }
 0x4e4   : > { %4393 = vmatmul.f32.gmra.mxu0 %v7567_v34 }
 0x4e5   : > { %v7794_v56 = vpop.f32.mrf.mxu1  ;;  %v7796_v16 = vpop.f32.mrf.mxu2  ;;  %v3848_v31 = vadd.f32 %v7668_v25, %v3654_v21 }
 0x4e6   : > { %8527 = vst [vmem:[#allocation10_spill] sm:$0xff] %v7794_v56  ;;  %v7798_v28 = vpop.f32.mrf.mxu3  ;;  %v8535_v56 = vld [vmem:[#allocation39_spill] sm:$0xff] }
 0x4e8   : > { %4545 = vmatmul.f32.gmra.mxu1 %v8528_v63 }
 0x4e9   : > { %v4349_v59 = vpop.f32.mrf.mxu0 }
 0x4ea   : > { %v7802_v54 = vadd.f32 %v4349_v59, %v4229_v11 }
 0x4ec   : > { %4396 = vmatmul.f32.gmra.mxu0 %v7583_v39 }
 0x4ed   : > { %v7805_v33 = vpop.f32.mrf.mxu1  ;;  %v7807_v17 = vpop.f32.mrf.mxu2 }
 0x4ee   : > { %8529 = vst [vmem:[#allocation23_spill] sm:$0xff] %v7805_v33  ;;  %v7809_v34 = vpop.f32.mrf.mxu3 }
 0x4f0   : > { %4548 = vmatmul.f32.gmra.mxu1 %v8530_v61  ;;  %v8534_v61 = vld [vmem:[#allocation29_spill] sm:$0xff] }
 0x4f1   : > { %v7812_v44 = vpop.f32.mrf.mxu0  ;;  %v3655_v2 = vadd.f32 %v8535_v56, %v8534_v61 }
 0x4f4   : > { %4399 = vmatmul.f32.gmra.mxu0 %v7599_v43  ;;  %v3849_v43 = vadd.f32 %v7679_v50, %v3655_v2 }
 0x4f5   : > { %v7818_v52 = vpop.f32.mrf.mxu1  ;;  %v3984_v39 = vpop.f32.mrf.mxu2 }
 0x4f6   : > { %8533 = vst [vmem:[#allocation18_spill] sm:$0xff] %v7818_v52  ;;  %v4179_v11 = vpop.f32.mrf.mxu3  ;;  %v4042_v63 = vadd.f32 %v3984_v39, %v3848_v31  ;;  %v4280_v39 = vld [vmem:[#allocation3 + $0x199] sm:$0xff] }
 0x4f8   : > { %4551 = vmatmul.f32.gmra.mxu1 %v7542_v18  ;;  %v7821_v59 = vadd.f32 %v4179_v11, %v4042_v63  ;;  %v8537_v11 = vld [vmem:[#allocation30_spill] sm:$0xff]  ;;  %v8538_v63 = vld [vmem:[#allocation19_spill] sm:$0xff] }
 0x4f9   : > { %v7823_v33 = vpop.f32.mrf.mxu0  ;;  %v3656_v52 = vadd.f32 %v8538_v63, %v8537_v11 }
 0x4fc   : > { %4402 = vmatmul.f32.gmra.mxu0 %v7615_v57  ;;  %v3850_v57 = vadd.f32 %v7690_v26, %v3656_v52 }
 0x4fd   : > { %v7829_v38 = vpop.f32.mrf.mxu1  ;;  %v3987_v25 = vpop.f32.mrf.mxu2 }
 0x4fe   : > { %8536 = vst [vmem:[#allocation50_spill] sm:$0xff] %v7829_v38  ;;  %v4182_v14 = vpop.f32.mrf.mxu3  ;;  %v4043_v21 = vadd.f32 %v3987_v25, %v3849_v43  ;;  %v4281_v25 = vld [vmem:[#allocation3 + $0x1a1] sm:$0xff] }
 0x500   : > { %4554 = vmatmul.f32.gmra.mxu1 %v7558_v35  ;;  %v7832_v31 = vadd.f32 %v4182_v14, %v4043_v21  ;;  %v8539_v14 = vld [vmem:[#allocation31_spill] sm:$0xff]  ;;  %v8540_v21 = vld [vmem:[#allocation45_spill] sm:$0xff] }
 0x501   : > { %v7834_v18 = vpop.f32.mrf.mxu0  ;;  %v3657_v38 = vadd.f32 %v8540_v21, %v8539_v14  ;;  %v4414_v14 = vadd.f32 %v7673_v48, %v7586_v3 }
 0x503   : > { %v3851_v11 = vadd.f32 %v7703_v58, %v3657_v38  ;;  %v8541_v58 = vld [vmem:[#allocation32_spill] sm:$0xff] }
 0x504   : > { %4405 = vmatmul.f32.gmra.mxu0 %v4280_v39  ;;  %v8542_v38 = vld [vmem:[#allocation48_spill] sm:$0xff] }
 0x505   : > { %v4510_v56 = vpop.f32.mrf.mxu1  ;;  %v3990_v50 = vpop.f32.mrf.mxu2 }
 0x506   : > { %v4185_v2 = vpop.f32.mrf.mxu3  ;;  %v4044_v61 = vadd.f32 %v3990_v50, %v3850_v57  ;;  %v4412_v57 = vadd.f32 %v7648_v1, %v7554_v9 }
 0x508   : > { %4557 = vmatmul.f32.gmra.mxu1 %v7574_v24  ;;  %v7840_v43 = vadd.f32 %v4185_v2, %v4044_v61  ;;  %v4606_v2 = vadd.f32 %v4510_v56, %v4412_v57  ;;  %v7857_v61 = vld [vmem:[%s8325_s4] ss:$0 sm:$0xff] }
 0x509   : > { %v7842_v35 = vpop.f32.mrf.mxu0 }
 0x50c   : > { %4408 = vmatmul.f32.gmra.mxu0 %v4281_v25  ;;  %v3658_v25 = vadd.f32 %v8542_v38, %v8541_v58  ;;  %v8543_v38 = vld [vmem:[#allocation33_spill] sm:$0xff] }
 0x50d   : > { %v4513_v39 = vpop.f32.mrf.mxu1  ;;  %v3993_v63 = vpop.f32.mrf.mxu2 }
 0x50e   : > { %v4188_v26 = vpop.f32.mrf.mxu3  ;;  %v4045_v52 = vadd.f32 %v3993_v63, %v3851_v11  ;;  %v3852_v9 = vadd.f32 %v7717_v23, %v3658_v25 }
 0x510   : > { %4560 = vmatmul.f32.gmra.mxu1 %v7590_v37  ;;  %v7850_v24 = vadd.f32 %v4188_v26, %v4045_v52  ;;  %v4642_v37 = vadd.f32 %v7857_v61, %v4606_v2  ;;  %v4413_v26 = vadd.f32 %v7662_v32, %v7570_v8  ;;  %v8544_v2 = vld [vmem:[#allocation52_spill] sm:$0xff] }
 0x511   : > { %v7852_v50 = vpop.f32.mrf.mxu0  ;;  %v3659_v25 = vadd.f32 %v8544_v2, %v8543_v38 }
 0x512   : > { %v4674_v3 = vmax.f32 %v4642_v37, 0.0  ;;  %v4607_v48 = vadd.f32 %v4513_v39, %v4413_v26 }
 0x513   : > { %v3853_v8 = vadd.f32 %v7731_v19, %v3659_v25  ;;  %v4416_v19 = vadd.f32 %v7697_v41, %v7618_v12 }
 0x515   : > { %v4516_v1 = vpop.f32.mrf.mxu1  ;;  %v3996_v21 = vpop.f32.mrf.mxu2 }
 0x516   : > { %v4191_v11 = vpop.f32.mrf.mxu3  ;;  %v4608_v63 = vadd.f32 %v4516_v1, %v4414_v14  ;;  %v4046_v56 = vadd.f32 %v3996_v21, %v3852_v9  ;;  %v4415_v14 = vadd.f32 %v7684_v53, %v7602_v0 }
 0x518   : > { %v4644_v52 = vadd.f32 %v7857_v61, %v4608_v63  ;;  %4563 = vmatmul.f32.gmra.mxu1 %v7606_v51  ;;  %v7869_v57 = vadd.f32 %v4191_v11, %v4046_v56  ;;  %v4643_v51 = vadd.f32 %v7857_v61, %v4607_v48 }
 0x519   : > { %v7871_v58 = vpop.f32.mrf.mxu0 }
 0x51a   : > { %v4676_v23 = vmax.f32 %v4644_v52, 0.0  ;;  %v4675_v0 = vmax.f32 %v4643_v51, 0.0 }
 0x51c   : > { %v7877_v9 = vmax.f32 %v4674_v3, %v4676_v23 }
 0x51d   : > { %v4519_v32 = vpop.f32.mrf.mxu1  ;;  %v3999_v1 = vpop.f32.mrf.mxu2 }
 0x51e   : > { %v4609_v21 = vadd.f32 %v4519_v32, %v4415_v14  ;;  %v4047_v11 = vadd.f32 %v3999_v1, %v3853_v8  ;;  %v4194_v63 = vpop.f32.mrf.mxu3  ;;  %v4767_v38 = vrot.slane %v7877_v9, 1  ;;  %v4417_v8 = vadd.f32 %v7710_v45, %v7632_v46 }
 0x51f   : > { %v4418_v46 = vadd.f32 %v7724_v49, %v7646_v10  ;;  %v4419_v10 = vadd.f32 %v7740_v6, %v7660_v30 }
 0x520   : > { %v4645_v39 = vadd.f32 %v7857_v61, %v4609_v21  ;;  %4566 = vmatmul.f32.gmra.mxu1 %v7622_v5  ;;  %v7883_v37 = vadd.f32 %v4194_v63, %v4047_v11 }
 0x521   : > { %v7885_v56 = vpop.f32.mrf.mxu0 }
 0x522   : > { %v4677_v53 = vmax.f32 %v4645_v39, 0.0 }
 0x524   : > { %v7889_v26 = vmax.f32 %v4675_v0, %v4677_v53 }
 0x525   : > { %v4522_v52 = vpop.f32.mrf.mxu1 }
 0x526   : > { %v4610_v3 = vadd.f32 %v4522_v52, %v4416_v19  ;;  %v4768_v48 = vrot.slane %v7889_v26, 1 }
 0x528   : > { %v4646_v5 = vadd.f32 %v7857_v61, %v4610_v3  ;;  %4569 = vmatmul.f32.gmra.mxu1 %v7636_v13  ;;  %v7896_v2 = vsel %vm4766_vm2, %v4767_v38, %v4768_v48 }
 0x529   : > { %v4373_v25 = vpop.f32.mrf.mxu0 }
 0x52a   : > { %v7901_v41 = vadd.f32 %v4373_v25, %v7821_v59  ;;  %v4678_v14 = vmax.f32 %v4646_v5, 0.0 }
 0x52c   : > { %v7905_v32 = vmax.f32 %v4676_v23, %v4678_v14 }
 0x52d   : > { %v4525_v51 = vpop.f32.mrf.mxu1 }
 0x52e   : > { %v4611_v1 = vadd.f32 %v4525_v51, %v4417_v8  ;;  %v4770_v13 = vrot.slane %v7905_v32, 1 }
 0x530   : > { %v4647_v21 = vadd.f32 %v7857_v61, %v4611_v1  ;;  %4572 = vmatmul.f32.gmra.mxu1 %v7650_v22  ;;  %v7911_v11 = vsel %vm4766_vm2, %v4768_v48, %v4770_v13 }
 0x531   : > { %v4376_v63 = vpop.f32.mrf.mxu0 }
 0x532   : > { %v7916_v39 = vadd.f32 %v4376_v63, %v7832_v31  ;;  %v4679_v45 = vmax.f32 %v4647_v21, 0.0  ;;  %v8553_v31 = vld [vmem:[#allocation74_spill] sm:$0xff] }
 0x534   : > { %v7920_v23 = vmax.f32 %v4677_v53, %v4679_v45 }
 0x535   : > { %v4528_v0 = vpop.f32.mrf.mxu1 }
 0x536   : > { %v4612_v19 = vadd.f32 %v4528_v0, %v4418_v46  ;;  %v4772_v22 = vrot.slane %v7920_v23, 1  ;;  %v8545_v46 = vld [vmem:[#allocation69_spill] sm:$0xff] }
 0x538   : > { %v4648_v52 = vadd.f32 %v7857_v61, %v4612_v19  ;;  %4575 = vmatmul.f32.gmra.mxu1 %v7664_v62  ;;  %v7926_v3 = vsel %vm4766_vm2, %v4770_v13, %v4772_v22 }
 0x539   : > { %v4379_v48 = vpop.f32.mrf.mxu0 }
 0x53a   : > { %v7931_v38 = vadd.f32 %v4379_v48, %v7840_v43  ;;  %v4680_v49 = vmax.f32 %v4648_v52, 0.0 }
 0x53c   : > { %v7935_v53 = vmax.f32 %v4678_v14, %v4680_v49 }
 0x53d   : > { %v4531_v5 = vpop.f32.mrf.mxu1 }
 0x53e   : > { %v4613_v25 = vadd.f32 %v4531_v5, %v4419_v10  ;;  %v4774_v62 = vrot.slane %v7935_v53, 1 }
 0x540   : > { %v4649_v8 = vadd.f32 %v7857_v61, %v4613_v25  ;;  %4578 = vmatmul.f32.gmra.mxu1 %v7675_v4  ;;  %v7941_v51 = vsel %vm4766_vm2, %v4772_v22, %v4774_v62  ;;  %v8546_v25 = vld [vmem:[#allocation70_spill] sm:$0xff] }
 0x541   : > { %v4382_v1 = vpop.f32.mrf.mxu0 }
 0x542   : > { %v7946_v13 = vadd.f32 %v4382_v1, %v7850_v24  ;;  %v4681_v6 = vmax.f32 %v4649_v8, 0.0 }
 0x544   : > { %v7948_v30 = vmax.f32 %v4679_v45, %v4681_v6 }
 0x545   : > { %v4534_v14 = vpop.f32.mrf.mxu1 }
 0x546   : > { %v4614_v21 = vadd.f32 %v4534_v14, %v7758_v27  ;;  %v4776_v63 = vrot.slane %v7948_v30, 1 }
 0x548   : > { %v4650_v4 = vadd.f32 %v7857_v61, %v4614_v21  ;;  %4581 = vmatmul.f32.gmra.mxu1 %v8545_v46  ;;  %v7955_v0 = vsel %vm4766_vm2, %v4774_v62, %v4776_v63 }
 0x549   : > { %v4385_v19 = vpop.f32.mrf.mxu0 }
 0x54a   : > { %v7960_v22 = vadd.f32 %v4385_v19, %v7869_v57  ;;  %v4682_v45 = vmax.f32 %v4650_v4, 0.0  ;;  %v8548_v19 = vld [vmem:[#allocation71_spill] sm:$0xff] }
 0x54c   : > { %v7962_v52 = vmax.f32 %v4680_v49, %v4682_v45 }
 0x54d   : > { %v4537_v27 = vpop.f32.mrf.mxu1 }
 0x54e   : > { %v4778_v48 = vrot.slane %v7962_v52, 1  ;;  %v4615_v10 = vadd.f32 %v4537_v27, %v7775_v20 }
 0x550   : > { %v4651_v5 = vadd.f32 %v7857_v61, %v4615_v10  ;;  %4584 = vmatmul.f32.gmra.mxu1 %v8546_v25  ;;  %v7969_v62 = vsel %vm4766_vm2, %v4776_v63, %v4778_v48  ;;  %v8550_v10 = vld [vmem:[#allocation8_spill] sm:$0xff]  ;;  %v8551_v25 = vld [vmem:[#allocation57_spill] sm:$0xff] }
 0x551   : > { %v4388_v8 = vpop.f32.mrf.mxu0 }
 0x552   : > { %v7974_v1 = vadd.f32 %v4388_v8, %v7883_v37  ;;  %v4683_v49 = vmax.f32 %v4651_v5, 0.0  ;;  %v8549_v37 = vld [vmem:[#allocation24_spill] sm:$0xff] }
 0x553   : > { %v3647_v5 = vadd.f32 %v8550_v10, %v8549_v37  ;;  %v8554_v37 = vld [vmem:[#allocation36_spill] sm:$0xff] }
 0x554   : > { %8547 = vst [vmem:[#allocation34_spill] sm:$0xff] %v7974_v1  ;;  %v7976_v14 = vmax.f32 %v4681_v6, %v4683_v49  ;;  %v8559_v1 = vld [vmem:[#allocation20_spill] sm:$0xff] }
 0x555   : > { %v4540_v21 = vpop.f32.mrf.mxu1  ;;  %v3841_v8 = vadd.f32 %v8551_v25, %v3647_v5  ;;  %v8556_v5 = vld [vmem:[#allocation73_spill] sm:$0xff] }
 0x556   : > { %v4780_v20 = vrot.slane %v7976_v14, 1  ;;  %v4616_v4 = vadd.f32 %v4540_v21, %v7790_v29  ;;  %v8552_v29 = vld [vmem:[#allocation72_spill] sm:$0xff] }
 0x557   : > { %v4035_v21 = vadd.f32 %v8552_v29, %v3841_v8  ;;  %v8557_v29 = vld [vmem:[#allocation59_spill] sm:$0xff] }
 0x558   : > { %v4652_v46 = vadd.f32 %v7857_v61, %v4616_v4  ;;  %4587 = vmatmul.f32.gmra.mxu1 %v8548_v19  ;;  %v7983_v63 = vsel %vm4766_vm2, %v4778_v48, %v4780_v20 }
 0x559   : > { %v4230_v25 = vadd.f32 %v8556_v5, %v4035_v21 }
 0x55a   : > { %v4684_v6 = vmax.f32 %v4652_v46, 0.0 }
 0x55c   : > { %v7990_v12 = vmax.f32 %v4682_v45, %v4684_v6  ;;  %v8555_v45 = vld [vmem:[#allocation9_spill] sm:$0xff] }
 0x55d   : > { %v4543_v59 = vpop.f32.mrf.mxu1  ;;  %v3648_v10 = vadd.f32 %v8555_v45, %v8554_v37  ;;  %v8562_v45 = vld [vmem:[#allocation76_spill] sm:$0xff] }
 0x55e   : > { %v4782_v4 = vrot.slane %v7990_v12, 1  ;;  %v4617_v19 = vadd.f32 %v4543_v59, %v7802_v54  ;;  %v4424_v54 = vadd.f32 %v7812_v44, %v4230_v25  ;;  %v8561_v44 = vld [vmem:[#allocation11_spill] sm:$0xff] }
 0x55f   : > { %v3842_v24 = vadd.f32 %v8557_v29, %v3648_v10 }
 0x560   : > { %v4653_v48 = vadd.f32 %v7857_v61, %v4617_v19  ;;  %4590 = vmatmul.f32.gmra.mxu1 %v8553_v31  ;;  %v7998_v43 = vsel %vm4766_vm2, %v4780_v20, %v4782_v4  ;;  %v8558_v31 = vld [vmem:[#allocation75_spill] sm:$0xff] }
 0x561   : > { %v4036_v57 = vadd.f32 %v8558_v31, %v3842_v24  ;;  %v8563_v24 = vld [vmem:[#allocation61_spill] sm:$0xff] }
 0x562   : > { %v4685_v8 = vmax.f32 %v4653_v48, 0.0  ;;  %v8560_v48 = vld [vmem:[#allocation22_spill] sm:$0xff] }
 0x563   : > { %v4231_v10 = vadd.f32 %v8562_v45, %v4036_v57 }
 0x564   : > { %v8007_v59 = vmax.f32 %v4683_v49, %v4685_v8  ;;  %v3649_v49 = vadd.f32 %v8561_v44, %v8560_v48 }
 0x565   : > { %v4546_v19 = vpop.f32.mrf.mxu1  ;;  %v4425_v29 = vadd.f32 %v7823_v33, %v4231_v10  ;;  %v8565_v33 = vld [vmem:[#allocation12_spill] sm:$0xff] }
 0x566   : > { %v4784_v20 = vrot.slane %v8007_v59, 1  ;;  %v4618_v27 = vadd.f32 %v4546_v19, %v4424_v54  ;;  %v3843_v25 = vadd.f32 %v8563_v24, %v3649_v49 }
 0x568   : > { %v4654_v46 = vadd.f32 %v7857_v61, %v4618_v27  ;;  %4593 = vmatmul.f32.gmra.mxu1 %v8559_v1  ;;  %v8014_v37 = vsel %vm4766_vm2, %v4782_v4, %v4784_v20  ;;  %v4037_v1 = vadd.f32 %v7749_v36, %v3843_v25  ;;  %v8566_v36 = vld [vmem:[#allocation63_spill] sm:$0xff] }
 0x569   : > { %v4864_v21 = vmax.f32 %v7990_v12, %v8014_v37  ;;  %v4002_v37 = vpop.f32.mrf.mxu2 }
 0x56a   : > { %v4686_v5 = vmax.f32 %v4654_v46, 0.0  ;;  %v8564_v46 = vld [vmem:[#allocation38_spill] sm:$0xff]  ;;  %v4232_v44 = vadd.f32 %v7751_v7, %v4037_v1 }
 0x56b   : > { %v8567_v1 = vld [vmem:[#allocation26_spill] sm:$0xff] }
 0x56c   : > { %v8023_v54 = vmax.f32 %v4684_v6, %v4686_v5  ;;  %v3650_v6 = vadd.f32 %v8565_v33, %v8564_v46  ;;  %v4426_v10 = vadd.f32 %v7834_v18, %v4232_v44  ;;  %v8568_v18 = vld [vmem:[#allocation13_spill] sm:$0xff] }
 0x56d   : > { %v4549_v27 = vpop.f32.mrf.mxu1 }
 0x56e   : > { %v4786_v4 = vrot.slane %v8023_v54, 1  ;;  %v4619_v19 = vadd.f32 %v4549_v27, %v4425_v29  ;;  %v3844_v45 = vadd.f32 %v8566_v36, %v3650_v6  ;;  %v8569_v6 = vld [vmem:[#allocation65_spill] sm:$0xff] }
 0x570   : > { %v4655_v31 = vadd.f32 %v7857_v61, %v4619_v19  ;;  %4596 = vmatmul.f32.gmra.mxu1 %v7760_v40  ;;  %v8030_v48 = vsel %vm4766_vm2, %v4784_v20, %v4786_v4  ;;  %v4474_v40 = vld [vmem:[#allocation3 + $0x19a] sm:$0xff]  ;;  %v4038_v20 = vadd.f32 %v7766_v60, %v3844_v45 }
 0x571   : > { %v4865_v57 = vmax.f32 %v8007_v59, %v8030_v48  ;;  %v8577_v48 = vmax.f32 %v7962_v52, %v7983_v63 }
 0x572   : > { %v4687_v49 = vmax.f32 %v4655_v31, 0.0  ;;  %v4233_v31 = vadd.f32 %v7768_v55, %v4038_v20  ;;  %v8570_v20 = vld [vmem:[#allocation7_spill] sm:$0xff] }
 0x574   : > { %v8039_v24 = vmax.f32 %v4685_v8, %v4687_v49  ;;  %v3651_v8 = vadd.f32 %v8568_v18, %v8567_v1  ;;  %v4427_v44 = vadd.f32 %v7842_v35, %v4233_v31 }
 0x575   : > { %v4552_v25 = vpop.f32.mrf.mxu1 }
 0x576   : > { %v4788_v29 = vrot.slane %v8039_v24, 1  ;;  %v4620_v27 = vadd.f32 %v4552_v25, %v4426_v10  ;;  %v3845_v60 = vadd.f32 %v8569_v6, %v3651_v8  ;;  %v4475_v10 = vld [vmem:[#allocation3 + $0x1a2] sm:$0xff]  ;;  %v8572_v8 = vld [vmem:[#allocation67_spill] sm:$0xff] }
 0x578   : > { %v4656_v19 = vadd.f32 %v7857_v61, %v4620_v27  ;;  %4599 = vmatmul.f32.gmra.mxu1 %v4474_v40  ;;  %v8045_v46 = vsel %vm4766_vm2, %v4786_v4, %v4788_v29  ;;  %v4039_v4 = vadd.f32 %v7781_v42, %v3845_v60 }
 0x579   : > { %v4866_v7 = vmax.f32 %v8023_v54, %v8045_v46 }
 0x57a   : > { %v4688_v33 = vmax.f32 %v4656_v19, 0.0  ;;  %v8571_v19 = vld [vmem:[#allocation14_spill] sm:$0xff]  ;;  %v4234_v35 = vadd.f32 %v7783_v47, %v4039_v4 }
 0x57b   : > { %v3652_v18 = vadd.f32 %v8571_v19, %v8570_v20  ;;  %v8574_v20 = vld [vmem:[#allocation15_spill] sm:$0xff]  ;;  %v8575_v19 = vld [vmem:[#allocation68_spill] sm:$0xff] }
 0x57c   : > { %v8054_v36 = vmax.f32 %v4686_v5, %v4688_v33  ;;  %v4428_v42 = vadd.f32 %v7852_v50, %v4234_v35 }
 0x57d   : > { %v4555_v45 = vpop.f32.mrf.mxu1  ;;  %v3846_v31 = vadd.f32 %v8572_v8, %v3652_v18 }
 0x57e   : > { %v4790_v25 = vrot.slane %v8054_v36, 1  ;;  %v4621_v40 = vadd.f32 %v4555_v45, %v4427_v44 }
 0x57f   : > { %v4040_v44 = vadd.f32 %v7796_v16, %v3846_v31 }
 0x580   : > { %v4657_v27 = vadd.f32 %v7857_v61, %v4621_v40  ;;  %4602 = vmatmul.f32.gmra.mxu1 %v4475_v10  ;;  %v4791_v1 = vsel %vm4766_vm2, %v4788_v29, %v4790_v25 }
 0x581   : > { %v4867_v55 = vmax.f32 %v8039_v24, %v4791_v1  ;;  %v8573_v1 = vld [vmem:[#allocation43_spill] sm:$0xff]  ;;  %v4235_v4 = vadd.f32 %v7798_v28, %v4040_v44 }
 0x582   : > { %v4689_v5 = vmax.f32 %v4657_v27, 0.0  ;;  %v3653_v47 = vadd.f32 %v8574_v20, %v8573_v1 }
 0x584   : > { %v4719_v6 = vmax.f32 %v4687_v49, %v4689_v5  ;;  %v3847_v50 = vadd.f32 %v8575_v19, %v3653_v47  ;;  %v4429_v49 = vadd.f32 %v7871_v58, %v4235_v4 }
 0x585   : > { %v4558_v60 = vpop.f32.mrf.mxu1 }
 0x586   : > { %v4792_v45 = vrot.slane %v4719_v6, 1  ;;  %v4622_v10 = vadd.f32 %v4558_v60, %v4428_v42  ;;  %v4041_v35 = vadd.f32 %v7807_v17, %v3847_v50 }
 0x588   : > { %v4658_v29 = vadd.f32 %v7857_v61, %v4622_v10  ;;  %v4793_v24 = vsel %vm4766_vm2, %v4790_v25, %v4792_v45  ;;  %v4236_v60 = vadd.f32 %v7809_v34, %v4041_v35 }
 0x589   : > { %v4868_v40 = vmax.f32 %v8054_v36, %v4793_v24 }
 0x58a   : > { %v4690_v27 = vmax.f32 %v4658_v29, 0.0  ;;  %v4430_v28 = vadd.f32 %v7885_v56, %v4236_v60  ;;  %v4197_v60 = vpop.f32.mrf.mxu3 }
 0x58c   : > { %v4720_v18 = vmax.f32 %v4688_v33, %v4690_v27 }
 0x58d   : > { %v4561_v16 = vpop.f32.mrf.mxu1 }
 0x58e   : > { %v4794_v8 = vrot.slane %v4720_v18, 1  ;;  %v4623_v31 = vadd.f32 %v4561_v16, %v4429_v49 }
 0x590   : > { %v4659_v25 = vadd.f32 %v7857_v61, %v4623_v31  ;;  %v4795_v36 = vsel %vm4766_vm2, %v4792_v45, %v4794_v8 }
 0x591   : > { %v4869_v42 = vmax.f32 %v4719_v6, %v4795_v36 }
 0x592   : > { %v4691_v10 = vmax.f32 %v4659_v25, 0.0 }
 0x594   : > { %v4721_v44 = vmax.f32 %v4689_v5, %v4691_v10 }
 0x595   : > { %v4564_v29 = vpop.f32.mrf.mxu1 }
 0x596   : > { %v4796_v24 = vrot.slane %v4721_v44, 1  ;;  %v4624_v58 = vadd.f32 %v4564_v29, %v4430_v28  ;;  %v8581_v28 = vmax.f32 %v7905_v32, %v7926_v3  ;;  %v4005_v29 = vpop.f32.mrf.mxu2  ;;  %v8584_v3 = vld [vmem:[#allocation35_spill] sm:$0xff] }
 0x598   : > { %v4660_v33 = vadd.f32 %v7857_v61, %v4624_v58  ;;  %v4797_v17 = vsel %vm4766_vm2, %v4794_v8, %v4796_v24  ;;  %v8585_v58 = vld [vmem:[#allocation55_spill] sm:$0xff] }
 0x599   : > { %v4870_v1 = vmax.f32 %v4720_v18, %v4797_v17 }
 0x59a   : > { %v4692_v20 = vmax.f32 %v4660_v33, 0.0 }
 0x59c   : > { %v8082_v47 = vmax.f32 %v4690_v27, %v4692_v20 }
 0x59d   : > { %v4567_v4 = vpop.f32.mrf.mxu1 }
 0x59e   : > { %v4798_v6 = vrot.slane %v8082_v47, 1  ;;  %v4625_v34 = vadd.f32 %v4567_v4, %v7901_v41 }
 0x5a0   : > { %v4661_v45 = vadd.f32 %v7857_v61, %v4625_v34  ;;  %v4799_v56 = vsel %vm4766_vm2, %v4796_v24, %v4798_v6  ;;  %v8583_v24 = vmax.f32 %v7877_v9, %v7896_v2 }
 0x5a1   : > { %v4871_v5 = vmax.f32 %v4721_v44, %v4799_v56  ;;  %v8582_v44 = vmax.f32 %v7889_v26, %v7911_v11 }
 0x5a2   : > { %v4693_v19 = vmax.f32 %v4661_v45, 0.0 }
 0x5a3   : > { %4930 = vmatpush.msrb.mxu2 %v4871_v5  ;;  %v8587_v5 = vld [vmem:[#allocation17_spill] sm:$0xff] }
 0x5a4   : > { %v8088_v50 = vmax.f32 %v4691_v10, %v4693_v19 }
 0x5a5   : > { %v4570_v49 = vpop.f32.mrf.mxu1  ;;  %4931 = vmatpush.msrb.mxu2 %v4870_v1 }
 0x5a6   : > { %v4800_v18 = vrot.slane %v8088_v50, 1  ;;  %v4626_v27 = vadd.f32 %v4570_v49, %v7916_v39 }
 0x5a7   : > { %4932 = vmatpush.msrb.mxu2 %v4869_v42 }
 0x5a8   : > { %v4662_v16 = vadd.f32 %v7857_v61, %v4626_v27  ;;  %v8094_v41 = vsel %vm4766_vm2, %v4798_v6, %v4800_v18  ;;  %v8586_v6 = vld [vmem:[#allocation34_spill] sm:$0xff]  ;;  %v4008_v27 = vpop.f32.mrf.mxu2 }
 0x5a9   : > { %4933 = vmatpush.msrb.mxu2 %v4868_v40  ;;  %v4872_v35 = vmax.f32 %v8082_v47, %v8094_v41  ;;  %v4898_v47 = vld [vmem:[%s8326_s5 + $0x60] sm:$0xff]  ;;  %v4893_v41 = vld [vmem:[%s8326_s5 + $0x38] sm:$0xff] }
 0x5aa   : > { %v4694_v8 = vmax.f32 %v4662_v16, 0.0  ;;  %v8589_v16 = vld [vmem:[#allocation25_spill] sm:$0xff] }
 0x5ab   : > { %4934 = vmatpush.msrb.mxu2 %v4867_v55 }
 0x5ac   : > { %v8098_v31 = vmax.f32 %v4692_v20, %v4694_v8  ;;  %v4200_v20 = vpop.f32.mrf.mxu3 }
 0x5ad   : > { %v4573_v25 = vpop.f32.mrf.mxu1  ;;  %4935 = vmatpush.msrb.mxu2 %v4866_v7 }
 0x5ae   : > { %v4802_v39 = vrot.slane %v8098_v31, 1  ;;  %v4627_v36 = vadd.f32 %v4573_v25, %v7931_v38  ;;  %v8576_v38 = vmax.f32 %v7976_v14, %v7998_v43  ;;  %v8579_v14 = vmax.f32 %v7935_v53, %v7955_v0 }
 0x5af   : > { %4936 = vmatpush.msrb.mxu2 %v4865_v57 }
 0x5b0   : > { %v4663_v40 = vadd.f32 %v7857_v61, %v4627_v36  ;;  %v8110_v42 = vsel %vm4766_vm2, %v4800_v18, %v4802_v39 }
 0x5b1   : > { %4937 = vmatpush.msrb.mxu2 %v4864_v21  ;;  %v4873_v54 = vmax.f32 %v8088_v50, %v8110_v42  ;;  %v8578_v21 = vmax.f32 %v7948_v30, %v7969_v62  ;;  %v4391_v62 = vpop.f32.mrf.mxu0  ;;  %v4889_v50 = vld [vmem:[%s8326_s5 + $0x18] sm:$0xff]  ;;  %v4891_v42 = vld [vmem:[%s8326_s5 + $0x28] sm:$0xff] }
 0x5b2   : > { %v4695_v46 = vmax.f32 %v4663_v40, 0.0 }
 0x5b3   : > { %4938 = vmatpush.msrb.mxu2 %v8576_v38 }
 0x5b4   : > { %v8120_v7 = vmax.f32 %v4693_v19, %v4695_v46 }
 0x5b5   : > { %v4576_v59 = vpop.f32.mrf.mxu1  ;;  %4939 = vmatpush.msrb.mxu2 %v8577_v48 }
 0x5b6   : > { %v4804_v57 = vrot.slane %v8120_v7, 1  ;;  %v4628_v12 = vadd.f32 %v4576_v59, %v7946_v13  ;;  %v8580_v13 = vmax.f32 %v7920_v23, %v7941_v51  ;;  %v4203_v59 = vpop.f32.mrf.mxu3 }
 0x5b7   : > { %4940 = vmatpush.msrb.mxu2 %v8578_v21  ;;  %v8590_v21 = vld [vmem:[#allocation41_spill] sm:$0xff] }
 0x5b8   : > { %v4664_v55 = vadd.f32 %v7857_v61, %v4628_v12  ;;  %v8132_v43 = vsel %vm4766_vm2, %v4802_v39, %v4804_v57 }
 0x5b9   : > { %4941 = vmatpush.msrb.mxu2 %v8579_v14  ;;  %v4874_v52 = vmax.f32 %v8098_v31, %v8132_v43  ;;  %v4394_v9 = vpop.f32.mrf.mxu0  ;;  %v4896_v31 = vld [vmem:[%s8326_s5 + $0x50] sm:$0xff]  ;;  %v4899_v43 = vld [vmem:[%s8326_s5 + $0x68] sm:$0xff] }
 0x5ba   : > { %v4696_v63 = vmax.f32 %v4664_v55, 0.0  ;;  %v8591_v55 = vld [vmem:[#allocation58_spill] sm:$0xff] }
 0x5bb   : > { %4942 = vmatpush.msrb.mxu2 %v8580_v13  ;;  %v3662_v14 = vadd.f32 %v8591_v55, %v8590_v21 }
 0x5bc   : > { %v8142_v30 = vmax.f32 %v4694_v8, %v4696_v63 }
 0x5bd   : > { %v4579_v10 = vpop.f32.mrf.mxu1  ;;  %4943 = vmatpush.msrb.mxu2 %v8581_v28 }
 0x5be   : > { %v4806_v53 = vrot.slane %v8142_v30, 1  ;;  %v4629_v0 = vadd.f32 %v4579_v10, %v7960_v22  ;;  %v3660_v22 = vadd.f32 %v8585_v58, %v8584_v3 }
 0x5bf   : > { %4944 = vmatpush.msrb.mxu2 %v8582_v44 }
 0x5c0   : > { %v4665_v23 = vadd.f32 %v7857_v61, %v4629_v0  ;;  %v8154_v51 = vsel %vm4766_vm2, %v4804_v57, %v4806_v53  ;;  %v3854_v26 = vadd.f32 %v7747_v15, %v3660_v22  ;;  %v8588_v15 = vld [vmem:[#allocation56_spill] sm:$0xff] }
 0x5c1   : > { %4945 = vmatpush.msrb.mxu2 %v8583_v24  ;;  %v4875_v32 = vmax.f32 %v8120_v7, %v8154_v51  ;;  %v3661_v19 = vadd.f32 %v8588_v15, %v8587_v5  ;;  %v4397_v12 = vpop.f32.mrf.mxu0  ;;  %v8593_v22 = vld [vmem:[#allocation44_spill] sm:$0xff]  ;;  %v4897_v7 = vld [vmem:[%s8326_s5 + $0x58] sm:$0xff] }
 0x5c2   : > { %v4697_v33 = vmax.f32 %v4665_v23, 0.0  ;;  %v4048_v1 = vadd.f32 %v4002_v37, %v3854_v26  ;;  %v8594_v26 = vld [vmem:[#allocation60_spill] sm:$0xff] }
 0x5c3   : > { %v3855_v8 = vadd.f32 %v8589_v16, %v3661_v19 }
 0x5c4   : > { %v8164_v11 = vmax.f32 %v4695_v46, %v4697_v33  ;;  %v4243_v49 = vadd.f32 %v4197_v60, %v4048_v1  ;;  %v8592_v60 = vld [vmem:[#allocation37_spill] sm:$0xff] }
 0x5c5   : > { %v4582_v17 = vpop.f32.mrf.mxu1  ;;  %v4049_v40 = vadd.f32 %v4005_v29, %v3855_v8 }
 0x5c6   : > { %v4808_v4 = vrot.slane %v8164_v11, 1  ;;  %v4630_v34 = vadd.f32 %v4582_v17, %v8586_v6  ;;  %v4437_v25 = vadd.f32 %v4391_v62, %v4243_v49  ;;  %v3856_v62 = vadd.f32 %v8592_v60, %v3662_v14  ;;  %v8595_v6 = vld [vmem:[#allocation10_spill] sm:$0xff] }
 0x5c7   : > { %v3663_v17 = vadd.f32 %v8594_v26, %v8593_v22 }
 0x5c8   : > { %v4666_v2 = vadd.f32 %v7857_v61, %v4630_v34  ;;  %v8170_v45 = vsel %vm4766_vm2, %v4806_v53, %v4808_v4  ;;  %v4011_v53 = vpop.f32.mrf.mxu2  ;;  %v4050_v44 = vadd.f32 %v4008_v27, %v3856_v62 }
 0x5c9   : > { %v4876_v56 = vmax.f32 %v8142_v30, %v8170_v45  ;;  %v3857_v34 = vadd.f32 %v8595_v6, %v3663_v17  ;;  %v4894_v30 = vld [vmem:[%s8326_s5 + $0x40] sm:$0xff] }
 0x5ca   : > { %v4698_v18 = vmax.f32 %v4666_v2, 0.0  ;;  %v4245_v1 = vadd.f32 %v4203_v59, %v4050_v44  ;;  %v8598_v59 = vld [vmem:[#allocation23_spill] sm:$0xff] }
 0x5cb   : > { %v4051_v15 = vadd.f32 %v4011_v53, %v3857_v34 }
 0x5cc   : > { %v8177_v39 = vmax.f32 %v4696_v63, %v4698_v18  ;;  %v4244_v63 = vadd.f32 %v4200_v20, %v4049_v40  ;;  %v8597_v40 = vld [vmem:[#allocation62_spill] sm:$0xff] }
 0x5cd   : > { %v4585_v36 = vpop.f32.mrf.mxu1 }
 0x5ce   : > { %v4810_v46 = vrot.slane %v8177_v39, 1  ;;  %v4631_v38 = vadd.f32 %v4585_v36, %v4437_v25  ;;  %v4438_v10 = vadd.f32 %v4394_v9, %v4244_v63  ;;  %v4439_v9 = vadd.f32 %v4397_v12, %v4245_v1  ;;  %v8596_v36 = vld [vmem:[#allocation47_spill] sm:$0xff] }
 0x5d0   : > { %v4667_v48 = vadd.f32 %v7857_v61, %v4631_v38  ;;  %v8182_v57 = vsel %vm4766_vm2, %v4808_v4, %v4810_v46  ;;  %v4400_v4 = vpop.f32.mrf.mxu0  ;;  %v4014_v27 = vpop.f32.mrf.mxu2 }
 0x5d1   : > { %v4877_v37 = vmax.f32 %v8164_v11, %v8182_v57  ;;  %v4887_v11 = vld [vmem:[%s8326_s5 + $0x8] sm:$0xff] }
 0x5d2   : > { %v4699_v13 = vmax.f32 %v4667_v48, 0.0 }
 0x5d4   : > { %v8189_v28 = vmax.f32 %v4697_v33, %v4699_v13  ;;  %v4206_v33 = vpop.f32.mrf.mxu3 }
 0x5d5   : > { %v4588_v0 = vpop.f32.mrf.mxu1  ;;  %v4246_v38 = vadd.f32 %v4206_v33, %v4051_v15 }
 0x5d6   : > { %v4812_v23 = vrot.slane %v8189_v28, 1  ;;  %v4632_v29 = vadd.f32 %v4588_v0, %v4438_v10 }
 0x5d7   : > { %v4440_v21 = vadd.f32 %v4400_v4, %v4246_v38 }
 0x5d8   : > { %v4668_v24 = vadd.f32 %v7857_v61, %v4632_v29  ;;  %v8194_v3 = vsel %vm4766_vm2, %v4810_v46, %v4812_v23  ;;  %v3664_v46 = vadd.f32 %v8597_v40, %v8596_v36  ;;  %v4403_v14 = vpop.f32.mrf.mxu0  ;;  %v4017_v44 = vpop.f32.mrf.mxu2  ;;  %v8599_v29 = vld [vmem:[#allocation51_spill] sm:$0xff]  ;;  %v8603_v36 = vld [vmem:[#allocation66_spill] sm:$0xff] }
 0x5d9   : > { %v4878_v58 = vmax.f32 %v8177_v39, %v8194_v3 }
 0x5da   : > { %v4700_v20 = vmax.f32 %v4668_v24, 0.0  ;;  %v3858_v48 = vadd.f32 %v8598_v59, %v3664_v46  ;;  %v8600_v24 = vld [vmem:[#allocation64_spill] sm:$0xff] }
 0x5db   : > { %v3665_v22 = vadd.f32 %v8600_v24, %v8599_v29 }
 0x5dc   : > { %v8201_v2 = vmax.f32 %v4698_v18, %v4700_v20  ;;  %v4209_v12 = vpop.f32.mrf.mxu3  ;;  %v4052_v60 = vadd.f32 %v4014_v27, %v3858_v48  ;;  %v8604_v48 = vld [vmem:[#allocation50_spill] sm:$0xff] }
 0x5dd   : > { %v4591_v5 = vpop.f32.mrf.mxu1 }
 0x5de   : > { %v4814_v19 = vrot.slane %v8201_v2, 1  ;;  %v4633_v49 = vadd.f32 %v4591_v5, %v4439_v9  ;;  %v4247_v26 = vadd.f32 %v4209_v12, %v4052_v60 }
 0x5e0   : > { %v4669_v16 = vadd.f32 %v7857_v61, %v4633_v49  ;;  %v8206_v8 = vsel %vm4766_vm2, %v4812_v23, %v4814_v19  ;;  %v4441_v33 = vadd.f32 %v4403_v14, %v4247_v26  ;;  %v4406_v49 = vpop.f32.mrf.mxu0  ;;  %v4020_v59 = vpop.f32.mrf.mxu2 }
 0x5e1   : > { %v4879_v25 = vmax.f32 %v8189_v28, %v8206_v8 }
 0x5e2   : > { %v4701_v18 = vmax.f32 %v4669_v16, 0.0  ;;  %v8602_v16 = vld [vmem:[#allocation54_spill] sm:$0xff] }
 0x5e3   : > { %v3666_v40 = vadd.f32 %v8603_v36, %v8602_v16 }
 0x5e4   : > { %v8213_v55 = vmax.f32 %v4699_v13, %v4701_v18  ;;  %v8601_v13 = vld [vmem:[#allocation18_spill] sm:$0xff]  ;;  %v4212_v6 = vpop.f32.mrf.mxu3 }
 0x5e5   : > { %v4594_v63 = vpop.f32.mrf.mxu1  ;;  %v3859_v1 = vadd.f32 %v8601_v13, %v3665_v22 }
 0x5e6   : > { %v4816_v62 = vrot.slane %v8213_v55, 1  ;;  %v4634_v10 = vadd.f32 %v4594_v63, %v4440_v21 }
 0x5e7   : > { %v4053_v9 = vadd.f32 %v4017_v44, %v3859_v1 }
 0x5e8   : > { %v4670_v53 = vadd.f32 %v7857_v61, %v4634_v10  ;;  %v4817_v0 = vsel %vm4766_vm2, %v4814_v19, %v4816_v62 }
 0x5e9   : > { %v4880_v23 = vmax.f32 %v8201_v2, %v4817_v0  ;;  %v4248_v46 = vadd.f32 %v4212_v6, %v4053_v9 }
 0x5ea   : > { %v4702_v17 = vmax.f32 %v4670_v53, 0.0 }
 0x5eb   : > { %v4442_v12 = vadd.f32 %v4406_v49, %v4248_v46 }
 0x5ec   : > { %v4732_v4 = vmax.f32 %v4700_v20, %v4702_v17  ;;  %v3860_v20 = vadd.f32 %v8604_v48, %v3666_v40  ;;  %v4215_v53 = vpop.f32.mrf.mxu3 }
 0x5ed   : > { %v4597_v34 = vpop.f32.mrf.mxu1 }
 0x5ee   : > { %v4818_v5 = vrot.slane %v4732_v4, 1  ;;  %v4635_v15 = vadd.f32 %v4597_v34, %v4441_v33  ;;  %v4054_v63 = vadd.f32 %v4020_v59, %v3860_v20 }
 0x5f0   : > { %v4671_v19 = vadd.f32 %v7857_v61, %v4635_v15  ;;  %v4819_v27 = vsel %vm4766_vm2, %v4816_v62, %v4818_v5  ;;  %v4249_v29 = vadd.f32 %v4215_v53, %v4054_v63 }
 0x5f1   : > { %v4881_v2 = vmax.f32 %v8213_v55, %v4819_v27  ;;  %v4409_v55 = vpop.f32.mrf.mxu0  ;;  %v4890_v27 = vld [vmem:[%s8326_s5 + $0x20] sm:$0xff] }
 0x5f2   : > { %v4703_v38 = vmax.f32 %v4671_v19, 0.0  ;;  %v4443_v22 = vadd.f32 %v4409_v55, %v4249_v29 }
 0x5f4   : > { %v4733_v21 = vmax.f32 %v4701_v18, %v4703_v38 }
 0x5f5   : > { %v4600_v14 = vpop.f32.mrf.mxu1 }
 0x5f6   : > { %v4820_v60 = vrot.slane %v4733_v21, 1  ;;  %v4636_v10 = vadd.f32 %v4600_v14, %v4442_v12 }
 0x5f8   : > { %v4672_v0 = vadd.f32 %v7857_v61, %v4636_v10  ;;  %v4821_v62 = vsel %vm4766_vm2, %v4818_v5, %v4820_v60  ;;  %v4886_v5 = vld [vmem:[%s8326_s5] sm:$0xff] }
 0x5f9   : > { %v4882_v44 = vmax.f32 %v4732_v4, %v4821_v62  ;;  %4946 = vmatmul.f32.vlgmr.msrb.gmra.mxu2 %v4886_v5 }
 0x5fa   : > { %v4704_v24 = vmax.f32 %v4672_v0, 0.0 }
 0x5fc   : > { %v4734_v26 = vmax.f32 %v4702_v17, %v4704_v24 }
 0x5fd   : > { %v4603_v13 = vpop.f32.mrf.mxu1 }
 0x5fe   : > { %v4822_v1 = vrot.slane %v4734_v26, 1  ;;  %v4637_v33 = vadd.f32 %v4603_v13, %v4443_v22 }
 0x600   : > { %v4673_v18 = vadd.f32 %v7857_v61, %v4637_v33  ;;  %v4823_v6 = vsel %vm4766_vm2, %v4820_v60, %v4822_v1  ;;  %v4888_v61 = vld [vmem:[%s8326_s5 + $0x10] sm:$0xff] }
 0x601   : > { %v4883_v34 = vmax.f32 %v4733_v21, %v4823_v6  ;;  %4949 = vmatmul.f32.gmra.mxu2 %v4888_v61 }
 0x602   : > { %v4705_v9 = vmax.f32 %v4673_v18, 0.0 }
 0x604   : > { %v4735_v15 = vmax.f32 %v4703_v38, %v4705_v9 }
 0x606   : > { %v4824_v4 = vrot.slane %v4735_v15, 1 }
 0x608   : > { %v4885_v49 = vmax.f32 %v4735_v15, %v4824_v4  ;;  %v4825_v19 = vsel %vm4766_vm2, %v4822_v1, %v4824_v4 }
 0x609   : > { %v4884_v17 = vmax.f32 %v4734_v26, %v4825_v19  ;;  %4952 = vmatmul.f32.gmra.mxu2 %v4890_v27 }
 0x60a   : > { %5394 = vmatpush.msk.msrb.mxu3 %vm4766_vm2, %v4885_v49 }
 0x60c   : > { %4974 = vmatpush.msrb.mxu3 %v4884_v17 }
 0x60e   : > { %4975 = vmatpush.msrb.mxu3 %v4883_v34 }
 0x610   : > { %4976 = vmatpush.msrb.mxu3 %v4882_v44 }
 0x612   : > { %4977 = vmatpush.msrb.mxu3 %v4881_v2  ;;  %v4892_v2 = vld [vmem:[%s8326_s5 + $0x30] sm:$0xff] }
 0x613   : > { %4955 = vmatmul.f32.gmra.mxu2 %v4892_v2 }
 0x614   : > { %4978 = vmatpush.msrb.mxu3 %v4880_v23 }
 0x616   : > { %4979 = vmatpush.msrb.mxu3 %v4879_v25 }
 0x618   : > { %4980 = vmatpush.msrb.mxu3 %v4878_v58 }
 0x61a   : > { %4981 = vmatpush.msrb.mxu3 %v4877_v37 }
 0x61b   : > { %4958 = vmatmul.f32.gmra.mxu2 %v4894_v30 }
 0x61c   : > { %4982 = vmatpush.msrb.mxu3 %v4876_v56 }
 0x61e   : > { %4983 = vmatpush.msrb.mxu3 %v4875_v32 }
 0x620   : > { %4984 = vmatpush.msrb.mxu3 %v4874_v52  ;;  %v4901_v52 = vld [vmem:[%s8326_s5 + $0x78] sm:$0xff] }
 0x622   : > { %4985 = vmatpush.msrb.mxu3 %v4873_v54  ;;  %v4895_v54 = vld [vmem:[%s8326_s5 + $0x48] sm:$0xff] }
 0x623   : > { %4961 = vmatmul.f32.gmra.mxu2 %v4896_v31 }
 0x624   : > { %4986 = vmatpush.msrb.mxu3 %v4872_v35  ;;  %v4900_v35 = vld [vmem:[%s8326_s5 + $0x70] sm:$0xff] }
 0x625   : > { %5395 = vmatmul.msk.f32.vlgmr.msrb.gmra.mxu3 %vm4902_vm3, %v4887_v11 }
 0x62b   : > { %4964 = vmatmul.f32.gmra.mxu2 %v4898_v47 }
 0x62d   : > { %5396 = vmatmul.msk.f32.gmra.mxu3 %vm4902_vm3, %v4889_v50 }
 0x633   : > { %4967 = vmatmul.f32.gmra.mxu2 %v4900_v35 }
 0x635   : > { %5397 = vmatmul.msk.f32.gmra.mxu3 %vm4902_vm3, %v4891_v42 }
 0x63d   : > { %5398 = vmatmul.msk.f32.gmra.mxu3 %vm4902_vm3, %v4893_v41 }
 0x645   : > { %5399 = vmatmul.msk.f32.gmra.mxu3 %vm4902_vm3, %v4895_v54 }
 0x64d   : > { %5400 = vmatmul.msk.f32.gmra.mxu3 %vm4902_vm3, %v4897_v7 }
 0x655   : > { %5401 = vmatmul.msk.f32.gmra.mxu3 %vm4902_vm3, %v4899_v43 }
 0x65d   : > { %5402 = vmatmul.msk.f32.gmra.mxu3 %vm4902_vm3, %v4901_v52 }
 0x67c   : > { %v4947_v51 = vpop.f32.mrf.mxu2 }
 0x684   : > { %v4950_v32 = vpop.f32.mrf.mxu2 }
 0x68c   : > { %v4953_v39 = vpop.f32.mrf.mxu2 }
 0x696   : > { %v4956_v28 = vpop.f32.mrf.mxu2 }
 0x69e   : > { %v4959_v25 = vpop.f32.mrf.mxu2 }
 0x6a6   : > { %v4962_v40 = vpop.f32.mrf.mxu2 }
 0x6a8   : > { %v4988_v45 = vpop.f32.mrf.mxu3 }
 0x6a9   : > { %v4989_v56 = vadd.f32 %v4988_v45, %v4947_v51 }
 0x6ab   : > { %5012 = vst [vmem:[%s268_s27] sm:$0xff] %v4989_v56 }
 0x6ae   : > { %v4965_v59 = vpop.f32.mrf.mxu2 }
 0x6b0   : > { %v4991_v57 = vpop.f32.mrf.mxu3 }
 0x6b1   : > { %v4992_v37 = vadd.f32 %v4991_v57, %v4950_v32 }
 0x6b3   : > { %5013 = vst [vmem:[%s268_s27 + $0x8] sm:$0xff] %v4992_v37 }
 0x6b6   : > { %v4968_v12 = vpop.f32.mrf.mxu2 }
 0x6b8   : > { %v4994_v3 = vpop.f32.mrf.mxu3 }
 0x6b9   : > { %v4995_v58 = vadd.f32 %v4994_v3, %v4953_v39 }
 0x6bb   : > { %5014 = vst [vmem:[%s268_s27 + $0x10] sm:$0xff] %v4995_v58 }
 0x6c0   : > { %v4997_v8 = vpop.f32.mrf.mxu3 }
 0x6c1   : > { %v4998_v23 = vadd.f32 %v4997_v8, %v4956_v28 }
 0x6c3   : > { %5015 = vst [vmem:[%s268_s27 + $0x18] sm:$0xff] %v4998_v23 }
 0x6c8   : > { %v5000_v16 = vpop.f32.mrf.mxu3 }
 0x6c9   : > { %v5001_v36 = vadd.f32 %v5000_v16, %v4959_v25 }
 0x6cb   : > { %5016 = vst [vmem:[%s268_s27 + $0x20] sm:$0xff] %v5001_v36 }
 0x6d0   : > { %v5003_v46 = vpop.f32.mrf.mxu3 }
 0x6d1   : > { %v5004_v38 = vadd.f32 %v5003_v46, %v4962_v40 }
 0x6d3   : > { %5017 = vst [vmem:[%s268_s27 + $0x28] sm:$0xff] %v5004_v38 }
 0x6d8   : > { %v5006_v48 = vpop.f32.mrf.mxu3 }
 0x6d9   : > { %v5007_v20 = vadd.f32 %v5006_v48, %v4965_v59 }
 0x6db   : > { %5018 = vst [vmem:[%s268_s27 + $0x30] sm:$0xff] %v5007_v20 }
 0x6e0   : > { %v5009_v21 = vpop.f32.mrf.mxu3 }
 0x6e1   : > { %v5010_v14 = vadd.f32 %v5009_v21, %v4968_v12 }
 0x6e3   : > { %5019 = vst [vmem:[%s268_s27 + $0x38] sm:$0xff] %v5010_v14 }
 0x6e4 PF: > { %s17_s21 = sadd.s32 1, %s5476_s21  }
 0x6e5   : > { %p14_p7 = scmp.ge.s32.totalorder %s17_s21, 4  }
 0x6e7   :  { %16 = sbr.rel (!%p14_p7) target bundleno = 1 (0x1), region = 99 }
 0x6ec   :  { %5041 = vsyncpa [#allocation5], 1 }
 0x6ed   :  { %5043 = vsyncpa [#allocation5 + $0x1], 1 }

</bundles_post_ra>
